<compile_context>
chip_gen: v7x
topology: tpu7x:2x2x1
jax: 0.10.0
libtpu: 0.0.40
codegen_flags: <defaults>
</compile_context>

<pallas_src>
from collections import OrderedDict

import numpy as np
import jax
import jax.numpy as jnp
from jax.experimental import pallas as pl
from jax.experimental.pallas import tpu as pltpu


# ----------------------------------------------------------------------------
# In-kernel building blocks (trace-time Python; lowers to MXU dots, row
# loads/stores and a few VPU adds/maxes).
# ----------------------------------------------------------------------------

def _conv_rows(in_ref, out_ref, w_ref, b_ref, *, k, stride, pad,
               relu_in=False, relu_out=False):
    """Row-wise conv on lane-dense activations.

    in_ref : (1, H_in,  W_in*C_in)        feature rows
    w_ref  : (k, W_in*C_in, W_out*C_out)  lowered weights (one matrix per kh)
    b_ref  : (1, W_out*C_out)             column-tiled bias
    out_ref: (1, H_out, W_out*C_out)
    """
    h_in, h_out = in_ref.shape[1], out_ref.shape[1]
    n_out = out_ref.shape[-1]
    for oh in range(h_out):
        acc = jnp.zeros((1, n_out), jnp.float32)
        for kh in range(k):
            l = stride * oh + kh - pad
            if 0 <= l < h_in:                      # row zero-padding -> skip tap
                row = in_ref[:, l, :]
                if relu_in:
                    row = jnp.maximum(row, 0.0)
                acc = acc + jnp.dot(row, w_ref[kh],
                                    preferred_element_type=jnp.float32)
        acc = acc + b_ref[...]
        if relu_out:
            acc = jnp.maximum(acc, 0.0)
        out_ref[:, oh, :] = acc


def _merge_rows(lat_ref, coarse_ref, out_ref, wi_ref, bi_ref, up_ref):
    """FPN top-down merge: out = 1x1 lateral conv(lat) + nearest_up(coarse)."""
    h_fine, h_coarse = out_ref.shape[1], coarse_ref.shape[1]
    for oh in range(h_fine):
        lat = jnp.dot(lat_ref[:, oh, :], wi_ref[0],
                      preferred_element_type=jnp.float32) + bi_ref[...]
        src = (oh * h_coarse) // h_fine            # nearest-neighbour row
        td = jnp.dot(coarse_ref[:, src, :], up_ref[...],
                     preferred_element_type=jnp.float32)
        out_ref[:, oh, :] = lat + td


def _fpn_kernel(x_ref,
                b1w, b1b, b2w, b2b, b3w, b3b,
                i0w, i0b, i1w, i1b, i2w, i2b,
                l0w, l0b, l1w, l1b, l2w, l2b,
                p6w, p6b, p7w, p7b,
                u0, u1,
                out0_ref, out1_ref, out2_ref, p6_ref, p7_ref,
                c1, c2, c3, m2, m1, m0):
    # --- body: three stride-2 3x3 conv + ReLU stages -------------------------
    _conv_rows(x_ref, c1, b1w, b1b, k=3, stride=2, pad=1, relu_out=True)
    _conv_rows(c1, c2, b2w, b2b, k=3, stride=2, pad=1, relu_out=True)
    _conv_rows(c2, c3, b3w, b3b, k=3, stride=2, pad=1, relu_out=True)
    # --- torchvision FeaturePyramidNetwork (top-down) ------------------------
    _conv_rows(c3, m2, i2w, i2b, k=1, stride=1, pad=0)          # last_inner @2
    _conv_rows(m2, out2_ref, l2w, l2b, k=3, stride=1, pad=1)    # results['2']=P5
    _merge_rows(c2, m2, m1, i1w, i1b, u1)                       # last_inner @1
    _conv_rows(m1, out1_ref, l1w, l1b, k=3, stride=1, pad=1)    # results['1']
    _merge_rows(c1, m1, m0, i0w, i0b, u0)                       # last_inner @0
    _conv_rows(m0, out0_ref, l0w, l0b, k=3, stride=1, pad=1)    # results['0']
    # --- LastLevelP6P7 (use_P5: in_channels == out_channels) ----------------
    _conv_rows(out2_ref, p6_ref, p6w, p6b, k=3, stride=2, pad=1)
    _conv_rows(p6_ref, p7_ref, p7w, p7b, k=3, stride=2, pad=1, relu_in=True)


# ----------------------------------------------------------------------------
# Wrapper-side weight lowering (exact XLA glue, done once per call)
# ----------------------------------------------------------------------------

def _lower_conv(wt, b, *, stride, pad, w_in, w_out):
    """Lower an HWIO conv (k,k,Cin,Cout) for the lane-dense (H, W*C) layout.

    Returns (k, w_in*Cin, w_out*Cout) per-kernel-row matrices plus the
    (1, w_out*Cout) column-tiled bias.  Column taps / stride / zero padding are
    baked into 0/1 selection matrices, so the construction is exact.
    """
    k, _, cin, cout = wt.shape
    sel = np.zeros((k, w_in, w_out), np.float32)
    for kw in range(k):
        for ow in range(w_out):
            iw = stride * ow + kw - pad
            if 0 <= iw < w_in:
                sel[kw, iw, ow] = 1.0
    wt = wt.astype(jnp.float32)
    # (kh, kw, w_in, cin, w_out, cout) summed over kw (exact: 0/1 weights)
    wl = (jnp.asarray(sel)[None, :, :, None, :, None]
          * wt[:, :, None, :, None, :]).sum(axis=1)
    wl = wl.reshape(k, w_in * cin, w_out * cout)
    bl = jnp.tile(b.astype(jnp.float32), (w_out,)).reshape(1, w_out * cout)
    return wl, bl


def _nearest_up_matrix(w_coarse, w_fine, c):
    """0/1 matrix mapping a (W_coarse*C) row to its nearest-upsampled (W_fine*C) row."""
    u = np.zeros((w_coarse * c, w_fine * c), np.float32)
    for wf in range(w_fine):
        wc = (wf * w_coarse) // w_fine
        u[wc * c:(wc + 1) * c, wf * c:(wf + 1) * c] = np.eye(c, dtype=np.float32)
    return jnp.asarray(u)


# ----------------------------------------------------------------------------
# Parameters and full forward
# ----------------------------------------------------------------------------

def _conv_init(key, k, cin, cout):
    kw, kb = jax.random.split(key)
    fan_in = k * k * cin
    wt = jax.random.normal(kw, (k, k, cin, cout), jnp.float32) / jnp.sqrt(fan_in)
    b = jax.random.normal(kb, (cout,), jnp.float32) * 0.01
    return wt, b


def init_params(key, in_ch=3, body_channels=(8, 16, 32), out_channels=32):
    keys = jax.random.split(key, 16)
    params = {}
    # TODO(synk): the timm `features_only` backbone has no clean Pallas
    # equivalent; it is replaced by a synthetic 3-stage stride-2 conv+ReLU
    # stack producing the last three feature levels (the only ones consumed).
    body = []
    c_prev = in_ch
    for i, c in enumerate(body_channels):
        body.append(_conv_init(keys[i], 3, c_prev, c))
        c_prev = c
    params['body'] = body
    params['fpn_inner'] = [_conv_init(keys[3 + i], 1, c, out_channels)
                           for i, c in enumerate(body_channels)]
    params['fpn_layer'] = [_conv_init(keys[6 + i], 3, out_channels, out_channels)
                           for i in range(len(body_channels))]
    params['p6'] = _conv_init(keys[9], 3, out_channels, out_channels)
    params['p7'] = _conv_init(keys[10], 3, out_channels, out_channels)
    return params


def paps_backbone_with_fpn(x_nchw, params):
    n, cin, h, w = x_nchw.shape
    body, inner, layer = params['body'], params['fpn_inner'], params['fpn_layer']
    cb = [wt.shape[-1] for wt, _ in body]          # body stage channels
    cout = layer[0][0].shape[-1]                   # FPN out_channels

    def dn(v):                                     # 3x3 / stride 2 / pad 1
        return (v + 1) // 2

    h1, w1 = dn(h), dn(w)
    h2, w2 = dn(h1), dn(w1)
    h3, w3 = dn(h2), dn(w2)
    h6, w6 = dn(h3), dn(w3)
    h7, w7 = dn(h6), dn(w6)

    # --- lower weights to the lane-dense row-matmul form ---------------------
    b1 = _lower_conv(*body[0], stride=2, pad=1, w_in=w, w_out=w1)
    b2 = _lower_conv(*body[1], stride=2, pad=1, w_in=w1, w_out=w2)
    b3 = _lower_conv(*body[2], stride=2, pad=1, w_in=w2, w_out=w3)
    i0 = _lower_conv(*inner[0], stride=1, pad=0, w_in=w1, w_out=w1)
    i1 = _lower_conv(*inner[1], stride=1, pad=0, w_in=w2, w_out=w2)
    i2 = _lower_conv(*inner[2], stride=1, pad=0, w_in=w3, w_out=w3)
    l0 = _lower_conv(*layer[0], stride=1, pad=1, w_in=w1, w_out=w1)
    l1 = _lower_conv(*layer[1], stride=1, pad=1, w_in=w2, w_out=w2)
    l2 = _lower_conv(*layer[2], stride=1, pad=1, w_in=w3, w_out=w3)
    p6 = _lower_conv(*params['p6'], stride=2, pad=1, w_in=w3, w_out=w6)
    p7 = _lower_conv(*params['p7'], stride=2, pad=1, w_in=w6, w_out=w7)
    u0 = _nearest_up_matrix(w2, w1, cout)          # level1 -> level0 columns
    u1 = _nearest_up_matrix(w3, w2, cout)          # level2 -> level1 columns

    # NCHW -> lane-dense (N, H, W*Cin)
    x_rows = jnp.transpose(x_nchw, (0, 2, 3, 1)).astype(jnp.float32)
    x_rows = x_rows.reshape(n, h, w * cin)

    operands = (x_rows,
                b1[0], b1[1], b2[0], b2[1], b3[0], b3[1],
                i0[0], i0[1], i1[0], i1[1], i2[0], i2[1],
                l0[0], l0[1], l1[0], l1[1], l2[0], l2[1],
                p6[0], p6[1], p7[0], p7[1],
                u0, u1)

    def const_spec(a):
        nd = a.ndim
        return pl.BlockSpec(a.shape, lambda i: (0,) * nd)

    in_specs = [pl.BlockSpec((1, h, w * cin), lambda i: (i, 0, 0))]
    in_specs += [const_spec(a) for a in operands[1:]]

    out_shape = (
        jax.ShapeDtypeStruct((n, h1, w1 * cout), jnp.float32),   # '0'
        jax.ShapeDtypeStruct((n, h2, w2 * cout), jnp.float32),   # '1'
        jax.ShapeDtypeStruct((n, h3, w3 * cout), jnp.float32),   # '2' (= P5)
        jax.ShapeDtypeStruct((n, h6, w6 * cout), jnp.float32),   # 'p6'
        jax.ShapeDtypeStruct((n, h7, w7 * cout), jnp.float32),   # 'p7'
    )
    out_specs = tuple(
        pl.BlockSpec((1, s.shape[1], s.shape[2]), lambda i: (i, 0, 0))
        for s in out_shape)

    scratch_shapes = [
        pltpu.VMEM((1, h1, w1 * cb[0]), jnp.float32),   # c1 (body stage 1)
        pltpu.VMEM((1, h2, w2 * cb[1]), jnp.float32),   # c2
        pltpu.VMEM((1, h3, w3 * cb[2]), jnp.float32),   # c3
        pltpu.VMEM((1, h3, w3 * cout), jnp.float32),    # m2 (last_inner @2)
        pltpu.VMEM((1, h2, w2 * cout), jnp.float32),    # m1
        pltpu.VMEM((1, h1, w1 * cout), jnp.float32),    # m0
    ]

    outs = pl.pallas_call(
        _fpn_kernel,
        out_shape=out_shape,
        grid_spec=pltpu.PrefetchScalarGridSpec(
            num_scalar_prefetch=0,
            grid=(n,),
            in_specs=in_specs,
            out_specs=out_specs,
            scratch_shapes=scratch_shapes,
        ),
        compiler_params=pltpu.CompilerParams(
            dimension_semantics=("parallel",)),
    )(*operands)

    spatial = [(h1, w1), (h2, w2), (h3, w3), (h6, w6), (h7, w7)]
    names = ['0', '1', '2', 'p6', 'p7']
    result = OrderedDict()
    for name, t, (hh, ww) in zip(names, outs, spatial):
        result[name] = jnp.transpose(t.reshape(n, hh, ww, cout), (0, 3, 1, 2))
    return result


# ----------------------------------------------------------------------------
# Pure-JAX reference (validation only)
# ----------------------------------------------------------------------------

def _reference_forward(x_nchw, params):
    prec = jax.lax.Precision.HIGHEST

    def conv(x, wt, b, stride, pad):
        y = jax.lax.conv_general_dilated(
            x, wt, window_strides=(stride, stride),
            padding=((pad, pad), (pad, pad)),
            dimension_numbers=('NHWC', 'HWIO', 'NHWC'),
            precision=prec)
        return y + b.reshape(1, 1, 1, -1)

    def up_nearest(x, size):
        ho, wo = size
        hi = (jnp.arange(ho) * x.shape[1]) // ho
        wi = (jnp.arange(wo) * x.shape[2]) // wo
        return x[:, hi][:, :, wi]

    x = jnp.transpose(x_nchw, (0, 2, 3, 1)).astype(jnp.float32)
    feats = []
    cur = x
    for wt, b in params['body']:
        cur = jax.nn.relu(conv(cur, wt, b, 2, 1))
        feats.append(cur)
    inner, layer = params['fpn_inner'], params['fpn_layer']
    last = conv(feats[2], *inner[2], 1, 0)
    res2 = conv(last, *layer[2], 1, 1)
    lat1 = conv(feats[1], *inner[1], 1, 0)
    last = lat1 + up_nearest(last, lat1.shape[1:3])
    res1 = conv(last, *layer[1], 1, 1)
    lat0 = conv(feats[0], *inner[0], 1, 0)
    last = lat0 + up_nearest(last, lat0.shape[1:3])
    res0 = conv(last, *layer[0], 1, 1)
    p6 = conv(res2, *params['p6'], 2, 1)
    p7 = conv(jax.nn.relu(p6), *params['p7'], 2, 1)
    names = ['0', '1', '2', 'p6', 'p7']
    outs = [res0, res1, res2, p6, p7]
    return OrderedDict((nm, jnp.transpose(t, (0, 3, 1, 2)))
                       for nm, t in zip(names, outs))


if __name__ == "__main__":
    root = jax.random.PRNGKey(0)
    k_x, k_p = jax.random.split(root)
    # PyTorch-style NCHW image input.
    x = jax.random.normal(k_x, (2, 3, 16, 16), jnp.float32)
    params = init_params(k_p, in_ch=3, body_channels=(8, 16, 32), out_channels=32)

    out = paps_backbone_with_fpn(x, params)
    out = jax.tree_util.tree_map(jax.block_until_ready, out)

    expected = {'0': (2, 32, 8, 8), '1': (2, 32, 4, 4), '2': (2, 32, 2, 2),
                'p6': (2, 32, 1, 1), 'p7': (2, 32, 1, 1)}
    for name, shp in expected.items():
        assert out[name].shape == shp, (name, out[name].shape)
        assert out[name].dtype == jnp.float32

    ref = _reference_forward(x, params)
    for name in expected:
        np.testing.assert_allclose(np.asarray(out[name]), np.asarray(ref[name]),
                                   rtol=1e-2, atol=1e-2)

    print("KERNEL_OK")
</pallas_src>

<mosaic_0001>
module attributes {stable_mosaic.version = 11 : i64} {
  func.func @_fpn_kernel(%arg0: i32, %arg1: memref<1x16x48xf32, #tpu.memory_space<vmem>>, %arg2: memref<3x48x64xf32, #tpu.memory_space<vmem>>, %arg3: memref<1x64xf32, #tpu.memory_space<vmem>>, %arg4: memref<3x64x64xf32, #tpu.memory_space<vmem>>, %arg5: memref<1x64xf32, #tpu.memory_space<vmem>>, %arg6: memref<3x64x64xf32, #tpu.memory_space<vmem>>, %arg7: memref<1x64xf32, #tpu.memory_space<vmem>>, %arg8: memref<1x64x256xf32, #tpu.memory_space<vmem>>, %arg9: memref<1x256xf32, #tpu.memory_space<vmem>>, %arg10: memref<1x64x128xf32, #tpu.memory_space<vmem>>, %arg11: memref<1x128xf32, #tpu.memory_space<vmem>>, %arg12: memref<1x64x64xf32, #tpu.memory_space<vmem>>, %arg13: memref<1x64xf32, #tpu.memory_space<vmem>>, %arg14: memref<3x256x256xf32, #tpu.memory_space<vmem>>, %arg15: memref<1x256xf32, #tpu.memory_space<vmem>>, %arg16: memref<3x128x128xf32, #tpu.memory_space<vmem>>, %arg17: memref<1x128xf32, #tpu.memory_space<vmem>>, %arg18: memref<3x64x64xf32, #tpu.memory_space<vmem>>, %arg19: memref<1x64xf32, #tpu.memory_space<vmem>>, %arg20: memref<3x64x32xf32, #tpu.memory_space<vmem>>, %arg21: memref<1x32xf32, #tpu.memory_space<vmem>>, %arg22: memref<3x32x32xf32, #tpu.memory_space<vmem>>, %arg23: memref<1x32xf32, #tpu.memory_space<vmem>>, %arg24: memref<128x256xf32, #tpu.memory_space<vmem>>, %arg25: memref<64x128xf32, #tpu.memory_space<vmem>>, %arg26: memref<1x8x256xf32, #tpu.memory_space<vmem>>, %arg27: memref<1x4x128xf32, #tpu.memory_space<vmem>>, %arg28: memref<1x2x64xf32, #tpu.memory_space<vmem>>, %arg29: memref<1x1x32xf32, #tpu.memory_space<vmem>>, %arg30: memref<1x1x32xf32, #tpu.memory_space<vmem>>, %arg31: memref<1x8x64xf32, #tpu.memory_space<vmem>>, %arg32: memref<1x4x64xf32, #tpu.memory_space<vmem>>, %arg33: memref<1x2x64xf32, #tpu.memory_space<vmem>>, %arg34: memref<1x2x64xf32, #tpu.memory_space<vmem>>, %arg35: memref<1x4x128xf32, #tpu.memory_space<vmem>>, %arg36: memref<1x8x256xf32, #tpu.memory_space<vmem>>) attributes {dimension_semantics = [#tpu.dimension_semantics<parallel>], iteration_bounds = array<i64: 2>, scalar_prefetch = 0 : i64, scratch_operands = 6 : i64, tpu.core_type = #tpu.core_type<tc>, window_params = [{transform_indices = @transform_0, window_bounds = array<i64: 1, 16, 48>}, {pipeline_mode = #tpu.pipeline_mode<synchronous>, transform_indices = @transform_1, window_bounds = array<i64: 3, 48, 64>}, {pipeline_mode = #tpu.pipeline_mode<synchronous>, transform_indices = @transform_2, window_bounds = array<i64: 1, 64>}, {pipeline_mode = #tpu.pipeline_mode<synchronous>, transform_indices = @transform_3, window_bounds = array<i64: 3, 64, 64>}, {pipeline_mode = #tpu.pipeline_mode<synchronous>, transform_indices = @transform_4, window_bounds = array<i64: 1, 64>}, {pipeline_mode = #tpu.pipeline_mode<synchronous>, transform_indices = @transform_5, window_bounds = array<i64: 3, 64, 64>}, {pipeline_mode = #tpu.pipeline_mode<synchronous>, transform_indices = @transform_6, window_bounds = array<i64: 1, 64>}, {pipeline_mode = #tpu.pipeline_mode<synchronous>, transform_indices = @transform_7, window_bounds = array<i64: 1, 64, 256>}, {pipeline_mode = #tpu.pipeline_mode<synchronous>, transform_indices = @transform_8, window_bounds = array<i64: 1, 256>}, {pipeline_mode = #tpu.pipeline_mode<synchronous>, transform_indices = @transform_9, window_bounds = array<i64: 1, 64, 128>}, {pipeline_mode = #tpu.pipeline_mode<synchronous>, transform_indices = @transform_10, window_bounds = array<i64: 1, 128>}, {pipeline_mode = #tpu.pipeline_mode<synchronous>, transform_indices = @transform_11, window_bounds = array<i64: 1, 64, 64>}, {pipeline_mode = #tpu.pipeline_mode<synchronous>, transform_indices = @transform_12, window_bounds = array<i64: 1, 64>}, {pipeline_mode = #tpu.pipeline_mode<synchronous>, transform_indices = @transform_13, window_bounds = array<i64: 3, 256, 256>}, {pipeline_mode = #tpu.pipeline_mode<synchronous>, transform_indices = @transform_14, window_bounds = array<i64: 1, 256>}, {pipeline_mode = #tpu.pipeline_mode<synchronous>, transform_indices = @transform_15, window_bounds = array<i64: 3, 128, 128>}, {pipeline_mode = #tpu.pipeline_mode<synchronous>, transform_indices = @transform_16, window_bounds = array<i64: 1, 128>}, {pipeline_mode = #tpu.pipeline_mode<synchronous>, transform_indices = @transform_17, window_bounds = array<i64: 3, 64, 64>}, {pipeline_mode = #tpu.pipeline_mode<synchronous>, transform_indices = @transform_18, window_bounds = array<i64: 1, 64>}, {pipeline_mode = #tpu.pipeline_mode<synchronous>, transform_indices = @transform_19, window_bounds = array<i64: 3, 64, 32>}, {pipeline_mode = #tpu.pipeline_mode<synchronous>, transform_indices = @transform_20, window_bounds = array<i64: 1, 32>}, {pipeline_mode = #tpu.pipeline_mode<synchronous>, transform_indices = @transform_21, window_bounds = array<i64: 3, 32, 32>}, {pipeline_mode = #tpu.pipeline_mode<synchronous>, transform_indices = @transform_22, window_bounds = array<i64: 1, 32>}, {pipeline_mode = #tpu.pipeline_mode<synchronous>, transform_indices = @transform_23, window_bounds = array<i64: 128, 256>}, {pipeline_mode = #tpu.pipeline_mode<synchronous>, transform_indices = @transform_24, window_bounds = array<i64: 64, 128>}, {transform_indices = @transform_25, window_bounds = array<i64: 1, 8, 256>}, {transform_indices = @transform_26, window_bounds = array<i64: 1, 4, 128>}, {transform_indices = @transform_27, window_bounds = array<i64: 1, 2, 64>}, {transform_indices = @transform_28, window_bounds = array<i64: 1, 1, 32>}, {transform_indices = @transform_29, window_bounds = array<i64: 1, 1, 32>}]} {
    %cst = arith.constant 0.000000e+00 : f32
    %0 = vector.broadcast %cst : f32 to vector<1x64xf32>
    %c0 = arith.constant 0 : index
    %c0_0 = arith.constant 0 : index
    %c0_1 = arith.constant 0 : index
    %1 = vector.load %arg1[%c0, %c0_0, %c0_1] : memref<1x16x48xf32, #tpu.memory_space<vmem>>, vector<1x1x48xf32>
    %2 = vector.shape_cast %1 : vector<1x1x48xf32> to vector<1x48xf32>
    %c1 = arith.constant 1 : index
    %c0_2 = arith.constant 0 : index
    %c0_3 = arith.constant 0 : index
    %3 = vector.load %arg2[%c1, %c0_2, %c0_3] : memref<3x48x64xf32, #tpu.memory_space<vmem>>, vector<1x48x64xf32>
    %4 = vector.shape_cast %3 : vector<1x48x64xf32> to vector<48x64xf32>
    %cst_4 = arith.constant dense<0.000000e+00> : vector<1x64xf32>
    %5 = tpu.matmul %2, %4, %cst_4 {dimension_numbers = #tpu.dot_dimension_numbers<[1], [0], [0], [1], [0, 0, 1, 1], [], []>} : vector<1x48xf32>, vector<48x64xf32>, vector<1x64xf32> -> vector<1x64xf32>
    %6 = arith.addf %0, %5 : vector<1x64xf32>
    %c0_5 = arith.constant 0 : index
    %c1_6 = arith.constant 1 : index
    %c0_7 = arith.constant 0 : index
    %7 = vector.load %arg1[%c0_5, %c1_6, %c0_7] : memref<1x16x48xf32, #tpu.memory_space<vmem>>, vector<1x1x48xf32>
    %8 = vector.shape_cast %7 : vector<1x1x48xf32> to vector<1x48xf32>
    %c2 = arith.constant 2 : index
    %c0_8 = arith.constant 0 : index
    %c0_9 = arith.constant 0 : index
    %9 = vector.load %arg2[%c2, %c0_8, %c0_9] : memref<3x48x64xf32, #tpu.memory_space<vmem>>, vector<1x48x64xf32>
    %10 = vector.shape_cast %9 : vector<1x48x64xf32> to vector<48x64xf32>
    %cst_10 = arith.constant dense<0.000000e+00> : vector<1x64xf32>
    %11 = tpu.matmul %8, %10, %cst_10 {dimension_numbers = #tpu.dot_dimension_numbers<[1], [0], [0], [1], [0, 0, 1, 1], [], []>} : vector<1x48xf32>, vector<48x64xf32>, vector<1x64xf32> -> vector<1x64xf32>
    %12 = arith.addf %6, %11 : vector<1x64xf32>
    %c0_11 = arith.constant 0 : index
    %c0_12 = arith.constant 0 : index
    %13 = vector.load %arg3[%c0_11, %c0_12] : memref<1x64xf32, #tpu.memory_space<vmem>>, vector<1x64xf32>
    %14 = arith.addf %12, %13 : vector<1x64xf32>
    %cst_13 = arith.constant 0.000000e+00 : f32
    %15 = vector.broadcast %cst_13 : f32 to vector<1x64xf32>
    %16 = arith.maximumf %14, %15 : vector<1x64xf32>
    %c0_14 = arith.constant 0 : index
    %c0_15 = arith.constant 0 : index
    %c0_16 = arith.constant 0 : index
    %17 = vector.load %arg31[%c0_14, %c0_15, %c0_16] : memref<1x8x64xf32, #tpu.memory_space<vmem>>, vector<1x1x64xf32>
    %18 = vector.shape_cast %17 : vector<1x1x64xf32> to vector<1x64xf32>
    %19 = vector.shape_cast %16 : vector<1x64xf32> to vector<1x1x64xf32>
    tpu.vector_store %arg31[%c0_14, %c0_15, %c0_16], %19 {strides = array<i32>} : memref<1x8x64xf32, #tpu.memory_space<vmem>>, vector<1x1x64xf32>,
    %cst_17 = arith.constant 0.000000e+00 : f32
    %20 = vector.broadcast %cst_17 : f32 to vector<1x64xf32>
    %c0_18 = arith.constant 0 : index
    %c1_19 = arith.constant 1 : index
    %c0_20 = arith.constant 0 : index
    %21 = vector.load %arg1[%c0_18, %c1_19, %c0_20] : memref<1x16x48xf32, #tpu.memory_space<vmem>>, vector<1x1x48xf32>
    %22 = vector.shape_cast %21 : vector<1x1x48xf32> to vector<1x48xf32>
    %c0_21 = arith.constant 0 : index
    %c0_22 = arith.constant 0 : index
    %c0_23 = arith.constant 0 : index
    %23 = vector.load %arg2[%c0_21, %c0_22, %c0_23] : memref<3x48x64xf32, #tpu.memory_space<vmem>>, vector<1x48x64xf32>
    %24 = vector.shape_cast %23 : vector<1x48x64xf32> to vector<48x64xf32>
    %cst_24 = arith.constant dense<0.000000e+00> : vector<1x64xf32>
    %25 = tpu.matmul %22, %24, %cst_24 {dimension_numbers = #tpu.dot_dimension_numbers<[1], [0], [0], [1], [0, 0, 1, 1], [], []>} : vector<1x48xf32>, vector<48x64xf32>, vector<1x64xf32> -> vector<1x64xf32>
    %26 = arith.addf %20, %25 : vector<1x64xf32>
    %c0_25 = arith.constant 0 : index
    %c2_26 = arith.constant 2 : index
    %c0_27 = arith.constant 0 : index
    %27 = vector.load %arg1[%c0_25, %c2_26, %c0_27] : memref<1x16x48xf32, #tpu.memory_space<vmem>>, vector<1x1x48xf32>
    %28 = vector.shape_cast %27 : vector<1x1x48xf32> to vector<1x48xf32>
    %c1_28 = arith.constant 1 : index
    %c0_29 = arith.constant 0 : index
    %c0_30 = arith.constant 0 : index
    %29 = vector.load %arg2[%c1_28, %c0_29, %c0_30] : memref<3x48x64xf32, #tpu.memory_space<vmem>>, vector<1x48x64xf32>
    %30 = vector.shape_cast %29 : vector<1x48x64xf32> to vector<48x64xf32>
    %cst_31 = arith.constant dense<0.000000e+00> : vector<1x64xf32>
    %31 = tpu.matmul %28, %30, %cst_31 {dimension_numbers = #tpu.dot_dimension_numbers<[1], [0], [0], [1], [0, 0, 1, 1], [], []>} : vector<1x48xf32>, vector<48x64xf32>, vector<1x64xf32> -> vector<1x64xf32>
    %32 = arith.addf %26, %31 : vector<1x64xf32>
    %c0_32 = arith.constant 0 : index
    %c3 = arith.constant 3 : index
    %c0_33 = arith.constant 0 : index
    %33 = vector.load %arg1[%c0_32, %c3, %c0_33] : memref<1x16x48xf32, #tpu.memory_space<vmem>>, vector<1x1x48xf32>
    %34 = vector.shape_cast %33 : vector<1x1x48xf32> to vector<1x48xf32>
    %c2_34 = arith.constant 2 : index
    %c0_35 = arith.constant 0 : index
    %c0_36 = arith.constant 0 : index
    %35 = vector.load %arg2[%c2_34, %c0_35, %c0_36] : memref<3x48x64xf32, #tpu.memory_space<vmem>>, vector<1x48x64xf32>
    %36 = vector.shape_cast %35 : vector<1x48x64xf32> to vector<48x64xf32>
    %cst_37 = arith.constant dense<0.000000e+00> : vector<1x64xf32>
    %37 = tpu.matmul %34, %36, %cst_37 {dimension_numbers = #tpu.dot_dimension_numbers<[1], [0], [0], [1], [0, 0, 1, 1], [], []>} : vector<1x48xf32>, vector<48x64xf32>, vector<1x64xf32> -> vector<1x64xf32>
    %38 = arith.addf %32, %37 : vector<1x64xf32>
    %c0_38 = arith.constant 0 : index
    %c0_39 = arith.constant 0 : index
    %39 = vector.load %arg3[%c0_38, %c0_39] : memref<1x64xf32, #tpu.memory_space<vmem>>, vector<1x64xf32>
    %40 = arith.addf %38, %39 : vector<1x64xf32>
    %cst_40 = arith.constant 0.000000e+00 : f32
    %41 = vector.broadcast %cst_40 : f32 to vector<1x64xf32>
    %42 = arith.maximumf %40, %41 : vector<1x64xf32>
    %c0_41 = arith.constant 0 : index
    %c1_42 = arith.constant 1 : index
    %c0_43 = arith.constant 0 : index
    %43 = vector.load %arg31[%c0_41, %c1_42, %c0_43] : memref<1x8x64xf32, #tpu.memory_space<vmem>>, vector<1x1x64xf32>
    %44 = vector.shape_cast %43 : vector<1x1x64xf32> to vector<1x64xf32>
    %45 = vector.shape_cast %42 : vector<1x64xf32> to vector<1x1x64xf32>
    tpu.vector_store %arg31[%c0_41, %c1_42, %c0_43], %45 {strides = array<i32>} : memref<1x8x64xf32, #tpu.memory_space<vmem>>, vector<1x1x64xf32>,
    %cst_44 = arith.constant 0.000000e+00 : f32
    %46 = vector.broadcast %cst_44 : f32 to vector<1x64xf32>
    %c0_45 = arith.constant 0 : index
    %c3_46 = arith.constant 3 : index
    %c0_47 = arith.constant 0 : index
    %47 = vector.load %arg1[%c0_45, %c3_46, %c0_47] : memref<1x16x48xf32, #tpu.memory_space<vmem>>, vector<1x1x48xf32>
    %48 = vector.shape_cast %47 : vector<1x1x48xf32> to vector<1x48xf32>
    %c0_48 = arith.constant 0 : index
    %c0_49 = arith.constant 0 : index
    %c0_50 = arith.constant 0 : index
    %49 = vector.load %arg2[%c0_48, %c0_49, %c0_50] : memref<3x48x64xf32, #tpu.memory_space<vmem>>, vector<1x48x64xf32>
    %50 = vector.shape_cast %49 : vector<1x48x64xf32> to vector<48x64xf32>
    %cst_51 = arith.constant dense<0.000000e+00> : vector<1x64xf32>
    %51 = tpu.matmul %48, %50, %cst_51 {dimension_numbers = #tpu.dot_dimension_numbers<[1], [0], [0], [1], [0, 0, 1, 1], [], []>} : vector<1x48xf32>, vector<48x64xf32>, vector<1x64xf32> -> vector<1x64xf32>
    %52 = arith.addf %46, %51 : vector<1x64xf32>
    %c0_52 = arith.constant 0 : index
    %c4 = arith.constant 4 : index
    %c0_53 = arith.constant 0 : index
    %53 = vector.load %arg1[%c0_52, %c4, %c0_53] : memref<1x16x48xf32, #tpu.memory_space<vmem>>, vector<1x1x48xf32>
    %54 = vector.shape_cast %53 : vector<1x1x48xf32> to vector<1x48xf32>
    %c1_54 = arith.constant 1 : index
    %c0_55 = arith.constant 0 : index
    %c0_56 = arith.constant 0 : index
    %55 = vector.load %arg2[%c1_54, %c0_55, %c0_56] : memref<3x48x64xf32, #tpu.memory_space<vmem>>, vector<1x48x64xf32>
    %56 = vector.shape_cast %55 : vector<1x48x64xf32> to vector<48x64xf32>
    %cst_57 = arith.constant dense<0.000000e+00> : vector<1x64xf32>
    %57 = tpu.matmul %54, %56, %cst_57 {dimension_numbers = #tpu.dot_dimension_numbers<[1], [0], [0], [1], [0, 0, 1, 1], [], []>} : vector<1x48xf32>, vector<48x64xf32>, vector<1x64xf32> -> vector<1x64xf32>
    %58 = arith.addf %52, %57 : vector<1x64xf32>
    %c0_58 = arith.constant 0 : index
    %c5 = arith.constant 5 : index
    %c0_59 = arith.constant 0 : index
    %59 = vector.load %arg1[%c0_58, %c5, %c0_59] : memref<1x16x48xf32, #tpu.memory_space<vmem>>, vector<1x1x48xf32>
    %60 = vector.shape_cast %59 : vector<1x1x48xf32> to vector<1x48xf32>
    %c2_60 = arith.constant 2 : index
    %c0_61 = arith.constant 0 : index
    %c0_62 = arith.constant 0 : index
    %61 = vector.load %arg2[%c2_60, %c0_61, %c0_62] : memref<3x48x64xf32, #tpu.memory_space<vmem>>, vector<1x48x64xf32>
    %62 = vector.shape_cast %61 : vector<1x48x64xf32> to vector<48x64xf32>
    %cst_63 = arith.constant dense<0.000000e+00> : vector<1x64xf32>
    %63 = tpu.matmul %60, %62, %cst_63 {dimension_numbers = #tpu.dot_dimension_numbers<[1], [0], [0], [1], [0, 0, 1, 1], [], []>} : vector<1x48xf32>, vector<48x64xf32>, vector<1x64xf32> -> vector<1x64xf32>
    %64 = arith.addf %58, %63 : vector<1x64xf32>
    %c0_64 = arith.constant 0 : index
    %c0_65 = arith.constant 0 : index
    %65 = vector.load %arg3[%c0_64, %c0_65] : memref<1x64xf32, #tpu.memory_space<vmem>>, vector<1x64xf32>
    %66 = arith.addf %64, %65 : vector<1x64xf32>
    %cst_66 = arith.constant 0.000000e+00 : f32
    %67 = vector.broadcast %cst_66 : f32 to vector<1x64xf32>
    %68 = arith.maximumf %66, %67 : vector<1x64xf32>
    %c0_67 = arith.constant 0 : index
    %c2_68 = arith.constant 2 : index
    %c0_69 = arith.constant 0 : index
    %69 = vector.load %arg31[%c0_67, %c2_68, %c0_69] : memref<1x8x64xf32, #tpu.memory_space<vmem>>, vector<1x1x64xf32>
    %70 = vector.shape_cast %69 : vector<1x1x64xf32> to vector<1x64xf32>
    %71 = vector.shape_cast %68 : vector<1x64xf32> to vector<1x1x64xf32>
    tpu.vector_store %arg31[%c0_67, %c2_68, %c0_69], %71 {strides = array<i32>} : memref<1x8x64xf32, #tpu.memory_space<vmem>>, vector<1x1x64xf32>,
    %cst_70 = arith.constant 0.000000e+00 : f32
    %72 = vector.broadcast %cst_70 : f32 to vector<1x64xf32>
    %c0_71 = arith.constant 0 : index
    %c5_72 = arith.constant 5 : index
    %c0_73 = arith.constant 0 : index
    %73 = vector.load %arg1[%c0_71, %c5_72, %c0_73] : memref<1x16x48xf32, #tpu.memory_space<vmem>>, vector<1x1x48xf32>
    %74 = vector.shape_cast %73 : vector<1x1x48xf32> to vector<1x48xf32>
    %c0_74 = arith.constant 0 : index
    %c0_75 = arith.constant 0 : index
    %c0_76 = arith.constant 0 : index
    %75 = vector.load %arg2[%c0_74, %c0_75, %c0_76] : memref<3x48x64xf32, #tpu.memory_space<vmem>>, vector<1x48x64xf32>
    %76 = vector.shape_cast %75 : vector<1x48x64xf32> to vector<48x64xf32>
    %cst_77 = arith.constant dense<0.000000e+00> : vector<1x64xf32>
    %77 = tpu.matmul %74, %76, %cst_77 {dimension_numbers = #tpu.dot_dimension_numbers<[1], [0], [0], [1], [0, 0, 1, 1], [], []>} : vector<1x48xf32>, vector<48x64xf32>, vector<1x64xf32> -> vector<1x64xf32>
    %78 = arith.addf %72, %77 : vector<1x64xf32>
    %c0_78 = arith.constant 0 : index
    %c6 = arith.constant 6 : index
    %c0_79 = arith.constant 0 : index
    %79 = vector.load %arg1[%c0_78, %c6, %c0_79] : memref<1x16x48xf32, #tpu.memory_space<vmem>>, vector<1x1x48xf32>
    %80 = vector.shape_cast %79 : vector<1x1x48xf32> to vector<1x48xf32>
    %c1_80 = arith.constant 1 : index
    %c0_81 = arith.constant 0 : index
    %c0_82 = arith.constant 0 : index
    %81 = vector.load %arg2[%c1_80, %c0_81, %c0_82] : memref<3x48x64xf32, #tpu.memory_space<vmem>>, vector<1x48x64xf32>
    %82 = vector.shape_cast %81 : vector<1x48x64xf32> to vector<48x64xf32>
    %cst_83 = arith.constant dense<0.000000e+00> : vector<1x64xf32>
    %83 = tpu.matmul %80, %82, %cst_83 {dimension_numbers = #tpu.dot_dimension_numbers<[1], [0], [0], [1], [0, 0, 1, 1], [], []>} : vector<1x48xf32>, vector<48x64xf32>, vector<1x64xf32> -> vector<1x64xf32>
    %84 = arith.addf %78, %83 : vector<1x64xf32>
    %c0_84 = arith.constant 0 : index
    %c7 = arith.constant 7 : index
    %c0_85 = arith.constant 0 : index
    %85 = vector.load %arg1[%c0_84, %c7, %c0_85] : memref<1x16x48xf32, #tpu.memory_space<vmem>>, vector<1x1x48xf32>
    %86 = vector.shape_cast %85 : vector<1x1x48xf32> to vector<1x48xf32>
    %c2_86 = arith.constant 2 : index
    %c0_87 = arith.constant 0 : index
    %c0_88 = arith.constant 0 : index
    %87 = vector.load %arg2[%c2_86, %c0_87, %c0_88] : memref<3x48x64xf32, #tpu.memory_space<vmem>>, vector<1x48x64xf32>
    %88 = vector.shape_cast %87 : vector<1x48x64xf32> to vector<48x64xf32>
    %cst_89 = arith.constant dense<0.000000e+00> : vector<1x64xf32>
    %89 = tpu.matmul %86, %88, %cst_89 {dimension_numbers = #tpu.dot_dimension_numbers<[1], [0], [0], [1], [0, 0, 1, 1], [], []>} : vector<1x48xf32>, vector<48x64xf32>, vector<1x64xf32> -> vector<1x64xf32>
    %90 = arith.addf %84, %89 : vector<1x64xf32>
    %c0_90 = arith.constant 0 : index
    %c0_91 = arith.constant 0 : index
    %91 = vector.load %arg3[%c0_90, %c0_91] : memref<1x64xf32, #tpu.memory_space<vmem>>, vector<1x64xf32>
    %92 = arith.addf %90, %91 : vector<1x64xf32>
    %cst_92 = arith.constant 0.000000e+00 : f32
    %93 = vector.broadcast %cst_92 : f32 to vector<1x64xf32>
    %94 = arith.maximumf %92, %93 : vector<1x64xf32>
    %c0_93 = arith.constant 0 : index
    %c3_94 = arith.constant 3 : index
    %c0_95 = arith.constant 0 : index
    %95 = vector.load %arg31[%c0_93, %c3_94, %c0_95] : memref<1x8x64xf32, #tpu.memory_space<vmem>>, vector<1x1x64xf32>
    %96 = vector.shape_cast %95 : vector<1x1x64xf32> to vector<1x64xf32>
    %97 = vector.shape_cast %94 : vector<1x64xf32> to vector<1x1x64xf32>
    tpu.vector_store %arg31[%c0_93, %c3_94, %c0_95], %97 {strides = array<i32>} : memref<1x8x64xf32, #tpu.memory_space<vmem>>, vector<1x1x64xf32>,
    %cst_96 = arith.constant 0.000000e+00 : f32
    %98 = vector.broadcast %cst_96 : f32 to vector<1x64xf32>
    %c0_97 = arith.constant 0 : index
    %c7_98 = arith.constant 7 : index
    %c0_99 = arith.constant 0 : index
    %99 = vector.load %arg1[%c0_97, %c7_98, %c0_99] : memref<1x16x48xf32, #tpu.memory_space<vmem>>, vector<1x1x48xf32>
    %100 = vector.shape_cast %99 : vector<1x1x48xf32> to vector<1x48xf32>
    %c0_100 = arith.constant 0 : index
    %c0_101 = arith.constant 0 : index
    %c0_102 = arith.constant 0 : index
    %101 = vector.load %arg2[%c0_100, %c0_101, %c0_102] : memref<3x48x64xf32, #tpu.memory_space<vmem>>, vector<1x48x64xf32>
    %102 = vector.shape_cast %101 : vector<1x48x64xf32> to vector<48x64xf32>
    %cst_103 = arith.constant dense<0.000000e+00> : vector<1x64xf32>
    %103 = tpu.matmul %100, %102, %cst_103 {dimension_numbers = #tpu.dot_dimension_numbers<[1], [0], [0], [1], [0, 0, 1, 1], [], []>} : vector<1x48xf32>, vector<48x64xf32>, vector<1x64xf32> -> vector<1x64xf32>
    %104 = arith.addf %98, %103 : vector<1x64xf32>
    %c0_104 = arith.constant 0 : index
    %c8 = arith.constant 8 : index
    %c0_105 = arith.constant 0 : index
    %105 = vector.load %arg1[%c0_104, %c8, %c0_105] : memref<1x16x48xf32, #tpu.memory_space<vmem>>, vector<1x1x48xf32>
    %106 = vector.shape_cast %105 : vector<1x1x48xf32> to vector<1x48xf32>
    %c1_106 = arith.constant 1 : index
    %c0_107 = arith.constant 0 : index
    %c0_108 = arith.constant 0 : index
    %107 = vector.load %arg2[%c1_106, %c0_107, %c0_108] : memref<3x48x64xf32, #tpu.memory_space<vmem>>, vector<1x48x64xf32>
    %108 = vector.shape_cast %107 : vector<1x48x64xf32> to vector<48x64xf32>
    %cst_109 = arith.constant dense<0.000000e+00> : vector<1x64xf32>
    %109 = tpu.matmul %106, %108, %cst_109 {dimension_numbers = #tpu.dot_dimension_numbers<[1], [0], [0], [1], [0, 0, 1, 1], [], []>} : vector<1x48xf32>, vector<48x64xf32>, vector<1x64xf32> -> vector<1x64xf32>
    %110 = arith.addf %104, %109 : vector<1x64xf32>
    %c0_110 = arith.constant 0 : index
    %c9 = arith.constant 9 : index
    %c0_111 = arith.constant 0 : index
    %111 = vector.load %arg1[%c0_110, %c9, %c0_111] : memref<1x16x48xf32, #tpu.memory_space<vmem>>, vector<1x1x48xf32>
    %112 = vector.shape_cast %111 : vector<1x1x48xf32> to vector<1x48xf32>
    %c2_112 = arith.constant 2 : index
    %c0_113 = arith.constant 0 : index
    %c0_114 = arith.constant 0 : index
    %113 = vector.load %arg2[%c2_112, %c0_113, %c0_114] : memref<3x48x64xf32, #tpu.memory_space<vmem>>, vector<1x48x64xf32>
    %114 = vector.shape_cast %113 : vector<1x48x64xf32> to vector<48x64xf32>
    %cst_115 = arith.constant dense<0.000000e+00> : vector<1x64xf32>
    %115 = tpu.matmul %112, %114, %cst_115 {dimension_numbers = #tpu.dot_dimension_numbers<[1], [0], [0], [1], [0, 0, 1, 1], [], []>} : vector<1x48xf32>, vector<48x64xf32>, vector<1x64xf32> -> vector<1x64xf32>
    %116 = arith.addf %110, %115 : vector<1x64xf32>
    %c0_116 = arith.constant 0 : index
    %c0_117 = arith.constant 0 : index
    %117 = vector.load %arg3[%c0_116, %c0_117] : memref<1x64xf32, #tpu.memory_space<vmem>>, vector<1x64xf32>
    %118 = arith.addf %116, %117 : vector<1x64xf32>
    %cst_118 = arith.constant 0.000000e+00 : f32
    %119 = vector.broadcast %cst_118 : f32 to vector<1x64xf32>
    %120 = arith.maximumf %118, %119 : vector<1x64xf32>
    %c0_119 = arith.constant 0 : index
    %c4_120 = arith.constant 4 : index
    %c0_121 = arith.constant 0 : index
    %121 = vector.load %arg31[%c0_119, %c4_120, %c0_121] : memref<1x8x64xf32, #tpu.memory_space<vmem>>, vector<1x1x64xf32>
    %122 = vector.shape_cast %121 : vector<1x1x64xf32> to vector<1x64xf32>
    %123 = vector.shape_cast %120 : vector<1x64xf32> to vector<1x1x64xf32>
    tpu.vector_store %arg31[%c0_119, %c4_120, %c0_121], %123 {strides = array<i32>} : memref<1x8x64xf32, #tpu.memory_space<vmem>>, vector<1x1x64xf32>,
    %cst_122 = arith.constant 0.000000e+00 : f32
    %124 = vector.broadcast %cst_122 : f32 to vector<1x64xf32>
    %c0_123 = arith.constant 0 : index
    %c9_124 = arith.constant 9 : index
    %c0_125 = arith.constant 0 : index
    %125 = vector.load %arg1[%c0_123, %c9_124, %c0_125] : memref<1x16x48xf32, #tpu.memory_space<vmem>>, vector<1x1x48xf32>
    %126 = vector.shape_cast %125 : vector<1x1x48xf32> to vector<1x48xf32>
    %c0_126 = arith.constant 0 : index
    %c0_127 = arith.constant 0 : index
    %c0_128 = arith.constant 0 : index
    %127 = vector.load %arg2[%c0_126, %c0_127, %c0_128] : memref<3x48x64xf32, #tpu.memory_space<vmem>>, vector<1x48x64xf32>
    %128 = vector.shape_cast %127 : vector<1x48x64xf32> to vector<48x64xf32>
    %cst_129 = arith.constant dense<0.000000e+00> : vector<1x64xf32>
    %129 = tpu.matmul %126, %128, %cst_129 {dimension_numbers = #tpu.dot_dimension_numbers<[1], [0], [0], [1], [0, 0, 1, 1], [], []>} : vector<1x48xf32>, vector<48x64xf32>, vector<1x64xf32> -> vector<1x64xf32>
    %130 = arith.addf %124, %129 : vector<1x64xf32>
    %c0_130 = arith.constant 0 : index
    %c10 = arith.constant 10 : index
    %c0_131 = arith.constant 0 : index
    %131 = vector.load %arg1[%c0_130, %c10, %c0_131] : memref<1x16x48xf32, #tpu.memory_space<vmem>>, vector<1x1x48xf32>
    %132 = vector.shape_cast %131 : vector<1x1x48xf32> to vector<1x48xf32>
    %c1_132 = arith.constant 1 : index
    %c0_133 = arith.constant 0 : index
    %c0_134 = arith.constant 0 : index
    %133 = vector.load %arg2[%c1_132, %c0_133, %c0_134] : memref<3x48x64xf32, #tpu.memory_space<vmem>>, vector<1x48x64xf32>
    %134 = vector.shape_cast %133 : vector<1x48x64xf32> to vector<48x64xf32>
    %cst_135 = arith.constant dense<0.000000e+00> : vector<1x64xf32>
    %135 = tpu.matmul %132, %134, %cst_135 {dimension_numbers = #tpu.dot_dimension_numbers<[1], [0], [0], [1], [0, 0, 1, 1], [], []>} : vector<1x48xf32>, vector<48x64xf32>, vector<1x64xf32> -> vector<1x64xf32>
    %136 = arith.addf %130, %135 : vector<1x64xf32>
    %c0_136 = arith.constant 0 : index
    %c11 = arith.constant 11 : index
    %c0_137 = arith.constant 0 : index
    %137 = vector.load %arg1[%c0_136, %c11, %c0_137] : memref<1x16x48xf32, #tpu.memory_space<vmem>>, vector<1x1x48xf32>
    %138 = vector.shape_cast %137 : vector<1x1x48xf32> to vector<1x48xf32>
    %c2_138 = arith.constant 2 : index
    %c0_139 = arith.constant 0 : index
    %c0_140 = arith.constant 0 : index
    %139 = vector.load %arg2[%c2_138, %c0_139, %c0_140] : memref<3x48x64xf32, #tpu.memory_space<vmem>>, vector<1x48x64xf32>
    %140 = vector.shape_cast %139 : vector<1x48x64xf32> to vector<48x64xf32>
    %cst_141 = arith.constant dense<0.000000e+00> : vector<1x64xf32>
    %141 = tpu.matmul %138, %140, %cst_141 {dimension_numbers = #tpu.dot_dimension_numbers<[1], [0], [0], [1], [0, 0, 1, 1], [], []>} : vector<1x48xf32>, vector<48x64xf32>, vector<1x64xf32> -> vector<1x64xf32>
    %142 = arith.addf %136, %141 : vector<1x64xf32>
    %c0_142 = arith.constant 0 : index
    %c0_143 = arith.constant 0 : index
    %143 = vector.load %arg3[%c0_142, %c0_143] : memref<1x64xf32, #tpu.memory_space<vmem>>, vector<1x64xf32>
    %144 = arith.addf %142, %143 : vector<1x64xf32>
    %cst_144 = arith.constant 0.000000e+00 : f32
    %145 = vector.broadcast %cst_144 : f32 to vector<1x64xf32>
    %146 = arith.maximumf %144, %145 : vector<1x64xf32>
    %c0_145 = arith.constant 0 : index
    %c5_146 = arith.constant 5 : index
    %c0_147 = arith.constant 0 : index
    %147 = vector.load %arg31[%c0_145, %c5_146, %c0_147] : memref<1x8x64xf32, #tpu.memory_space<vmem>>, vector<1x1x64xf32>
    %148 = vector.shape_cast %147 : vector<1x1x64xf32> to vector<1x64xf32>
    %149 = vector.shape_cast %146 : vector<1x64xf32> to vector<1x1x64xf32>
    tpu.vector_store %arg31[%c0_145, %c5_146, %c0_147], %149 {strides = array<i32>} : memref<1x8x64xf32, #tpu.memory_space<vmem>>, vector<1x1x64xf32>,
    %cst_148 = arith.constant 0.000000e+00 : f32
    %150 = vector.broadcast %cst_148 : f32 to vector<1x64xf32>
    %c0_149 = arith.constant 0 : index
    %c11_150 = arith.constant 11 : index
    %c0_151 = arith.constant 0 : index
    %151 = vector.load %arg1[%c0_149, %c11_150, %c0_151] : memref<1x16x48xf32, #tpu.memory_space<vmem>>, vector<1x1x48xf32>
    %152 = vector.shape_cast %151 : vector<1x1x48xf32> to vector<1x48xf32>
    %c0_152 = arith.constant 0 : index
    %c0_153 = arith.constant 0 : index
    %c0_154 = arith.constant 0 : index
    %153 = vector.load %arg2[%c0_152, %c0_153, %c0_154] : memref<3x48x64xf32, #tpu.memory_space<vmem>>, vector<1x48x64xf32>
    %154 = vector.shape_cast %153 : vector<1x48x64xf32> to vector<48x64xf32>
    %cst_155 = arith.constant dense<0.000000e+00> : vector<1x64xf32>
    %155 = tpu.matmul %152, %154, %cst_155 {dimension_numbers = #tpu.dot_dimension_numbers<[1], [0], [0], [1], [0, 0, 1, 1], [], []>} : vector<1x48xf32>, vector<48x64xf32>, vector<1x64xf32> -> vector<1x64xf32>
    %156 = arith.addf %150, %155 : vector<1x64xf32>
    %c0_156 = arith.constant 0 : index
    %c12 = arith.constant 12 : index
    %c0_157 = arith.constant 0 : index
    %157 = vector.load %arg1[%c0_156, %c12, %c0_157] : memref<1x16x48xf32, #tpu.memory_space<vmem>>, vector<1x1x48xf32>
    %158 = vector.shape_cast %157 : vector<1x1x48xf32> to vector<1x48xf32>
    %c1_158 = arith.constant 1 : index
    %c0_159 = arith.constant 0 : index
    %c0_160 = arith.constant 0 : index
    %159 = vector.load %arg2[%c1_158, %c0_159, %c0_160] : memref<3x48x64xf32, #tpu.memory_space<vmem>>, vector<1x48x64xf32>
    %160 = vector.shape_cast %159 : vector<1x48x64xf32> to vector<48x64xf32>
    %cst_161 = arith.constant dense<0.000000e+00> : vector<1x64xf32>
    %161 = tpu.matmul %158, %160, %cst_161 {dimension_numbers = #tpu.dot_dimension_numbers<[1], [0], [0], [1], [0, 0, 1, 1], [], []>} : vector<1x48xf32>, vector<48x64xf32>, vector<1x64xf32> -> vector<1x64xf32>
    %162 = arith.addf %156, %161 : vector<1x64xf32>
    %c0_162 = arith.constant 0 : index
    %c13 = arith.constant 13 : index
    %c0_163 = arith.constant 0 : index
    %163 = vector.load %arg1[%c0_162, %c13, %c0_163] : memref<1x16x48xf32, #tpu.memory_space<vmem>>, vector<1x1x48xf32>
    %164 = vector.shape_cast %163 : vector<1x1x48xf32> to vector<1x48xf32>
    %c2_164 = arith.constant 2 : index
    %c0_165 = arith.constant 0 : index
    %c0_166 = arith.constant 0 : index
    %165 = vector.load %arg2[%c2_164, %c0_165, %c0_166] : memref<3x48x64xf32, #tpu.memory_space<vmem>>, vector<1x48x64xf32>
    %166 = vector.shape_cast %165 : vector<1x48x64xf32> to vector<48x64xf32>
    %cst_167 = arith.constant dense<0.000000e+00> : vector<1x64xf32>
    %167 = tpu.matmul %164, %166, %cst_167 {dimension_numbers = #tpu.dot_dimension_numbers<[1], [0], [0], [1], [0, 0, 1, 1], [], []>} : vector<1x48xf32>, vector<48x64xf32>, vector<1x64xf32> -> vector<1x64xf32>
    %168 = arith.addf %162, %167 : vector<1x64xf32>
    %c0_168 = arith.constant 0 : index
    %c0_169 = arith.constant 0 : index
    %169 = vector.load %arg3[%c0_168, %c0_169] : memref<1x64xf32, #tpu.memory_space<vmem>>, vector<1x64xf32>
    %170 = arith.addf %168, %169 : vector<1x64xf32>
    %cst_170 = arith.constant 0.000000e+00 : f32
    %171 = vector.broadcast %cst_170 : f32 to vector<1x64xf32>
    %172 = arith.maximumf %170, %171 : vector<1x64xf32>
    %c0_171 = arith.constant 0 : index
    %c6_172 = arith.constant 6 : index
    %c0_173 = arith.constant 0 : index
    %173 = vector.load %arg31[%c0_171, %c6_172, %c0_173] : memref<1x8x64xf32, #tpu.memory_space<vmem>>, vector<1x1x64xf32>
    %174 = vector.shape_cast %173 : vector<1x1x64xf32> to vector<1x64xf32>
    %175 = vector.shape_cast %172 : vector<1x64xf32> to vector<1x1x64xf32>
    tpu.vector_store %arg31[%c0_171, %c6_172, %c0_173], %175 {strides = array<i32>} : memref<1x8x64xf32, #tpu.memory_space<vmem>>, vector<1x1x64xf32>,
    %cst_174 = arith.constant 0.000000e+00 : f32
    %176 = vector.broadcast %cst_174 : f32 to vector<1x64xf32>
    %c0_175 = arith.constant 0 : index
    %c13_176 = arith.constant 13 : index
    %c0_177 = arith.constant 0 : index
    %177 = vector.load %arg1[%c0_175, %c13_176, %c0_177] : memref<1x16x48xf32, #tpu.memory_space<vmem>>, vector<1x1x48xf32>
    %178 = vector.shape_cast %177 : vector<1x1x48xf32> to vector<1x48xf32>
    %c0_178 = arith.constant 0 : index
    %c0_179 = arith.constant 0 : index
    %c0_180 = arith.constant 0 : index
    %179 = vector.load %arg2[%c0_178, %c0_179, %c0_180] : memref<3x48x64xf32, #tpu.memory_space<vmem>>, vector<1x48x64xf32>
    %180 = vector.shape_cast %179 : vector<1x48x64xf32> to vector<48x64xf32>
    %cst_181 = arith.constant dense<0.000000e+00> : vector<1x64xf32>
    %181 = tpu.matmul %178, %180, %cst_181 {dimension_numbers = #tpu.dot_dimension_numbers<[1], [0], [0], [1], [0, 0, 1, 1], [], []>} : vector<1x48xf32>, vector<48x64xf32>, vector<1x64xf32> -> vector<1x64xf32>
    %182 = arith.addf %176, %181 : vector<1x64xf32>
    %c0_182 = arith.constant 0 : index
    %c14 = arith.constant 14 : index
    %c0_183 = arith.constant 0 : index
    %183 = vector.load %arg1[%c0_182, %c14, %c0_183] : memref<1x16x48xf32, #tpu.memory_space<vmem>>, vector<1x1x48xf32>
    %184 = vector.shape_cast %183 : vector<1x1x48xf32> to vector<1x48xf32>
    %c1_184 = arith.constant 1 : index
    %c0_185 = arith.constant 0 : index
    %c0_186 = arith.constant 0 : index
    %185 = vector.load %arg2[%c1_184, %c0_185, %c0_186] : memref<3x48x64xf32, #tpu.memory_space<vmem>>, vector<1x48x64xf32>
    %186 = vector.shape_cast %185 : vector<1x48x64xf32> to vector<48x64xf32>
    %cst_187 = arith.constant dense<0.000000e+00> : vector<1x64xf32>
    %187 = tpu.matmul %184, %186, %cst_187 {dimension_numbers = #tpu.dot_dimension_numbers<[1], [0], [0], [1], [0, 0, 1, 1], [], []>} : vector<1x48xf32>, vector<48x64xf32>, vector<1x64xf32> -> vector<1x64xf32>
    %188 = arith.addf %182, %187 : vector<1x64xf32>
    %c0_188 = arith.constant 0 : index
    %c15 = arith.constant 15 : index
    %c0_189 = arith.constant 0 : index
    %189 = vector.load %arg1[%c0_188, %c15, %c0_189] : memref<1x16x48xf32, #tpu.memory_space<vmem>>, vector<1x1x48xf32>
    %190 = vector.shape_cast %189 : vector<1x1x48xf32> to vector<1x48xf32>
    %c2_190 = arith.constant 2 : index
    %c0_191 = arith.constant 0 : index
    %c0_192 = arith.constant 0 : index
    %191 = vector.load %arg2[%c2_190, %c0_191, %c0_192] : memref<3x48x64xf32, #tpu.memory_space<vmem>>, vector<1x48x64xf32>
    %192 = vector.shape_cast %191 : vector<1x48x64xf32> to vector<48x64xf32>
    %cst_193 = arith.constant dense<0.000000e+00> : vector<1x64xf32>
    %193 = tpu.matmul %190, %192, %cst_193 {dimension_numbers = #tpu.dot_dimension_numbers<[1], [0], [0], [1], [0, 0, 1, 1], [], []>} : vector<1x48xf32>, vector<48x64xf32>, vector<1x64xf32> -> vector<1x64xf32>
    %194 = arith.addf %188, %193 : vector<1x64xf32>
    %c0_194 = arith.constant 0 : index
    %c0_195 = arith.constant 0 : index
    %195 = vector.load %arg3[%c0_194, %c0_195] : memref<1x64xf32, #tpu.memory_space<vmem>>, vector<1x64xf32>
    %196 = arith.addf %194, %195 : vector<1x64xf32>
    %cst_196 = arith.constant 0.000000e+00 : f32
    %197 = vector.broadcast %cst_196 : f32 to vector<1x64xf32>
    %198 = arith.maximumf %196, %197 : vector<1x64xf32>
    %c0_197 = arith.constant 0 : index
    %c7_198 = arith.constant 7 : index
    %c0_199 = arith.constant 0 : index
    %199 = vector.load %arg31[%c0_197, %c7_198, %c0_199] : memref<1x8x64xf32, #tpu.memory_space<vmem>>, vector<1x1x64xf32>
    %200 = vector.shape_cast %199 : vector<1x1x64xf32> to vector<1x64xf32>
    %201 = vector.shape_cast %198 : vector<1x64xf32> to vector<1x1x64xf32>
    tpu.vector_store %arg31[%c0_197, %c7_198, %c0_199], %201 {strides = array<i32>} : memref<1x8x64xf32, #tpu.memory_space<vmem>>, vector<1x1x64xf32>,
    %cst_200 = arith.constant 0.000000e+00 : f32
    %202 = vector.broadcast %cst_200 : f32 to vector<1x64xf32>
    %c0_201 = arith.constant 0 : index
    %c0_202 = arith.constant 0 : index
    %c0_203 = arith.constant 0 : index
    %203 = vector.load %arg31[%c0_201, %c0_202, %c0_203] : memref<1x8x64xf32, #tpu.memory_space<vmem>>, vector<1x1x64xf32>
    %204 = vector.shape_cast %203 : vector<1x1x64xf32> to vector<1x64xf32>
    %c1_204 = arith.constant 1 : index
    %c0_205 = arith.constant 0 : index
    %c0_206 = arith.constant 0 : index
    %205 = vector.load %arg4[%c1_204, %c0_205, %c0_206] : memref<3x64x64xf32, #tpu.memory_space<vmem>>, vector<1x64x64xf32>
    %206 = vector.shape_cast %205 : vector<1x64x64xf32> to vector<64x64xf32>
    %cst_207 = arith.constant dense<0.000000e+00> : vector<1x64xf32>
    %207 = tpu.matmul %204, %206, %cst_207 {dimension_numbers = #tpu.dot_dimension_numbers<[1], [0], [0], [1], [0, 0, 1, 1], [], []>} : vector<1x64xf32>, vector<64x64xf32>, vector<1x64xf32> -> vector<1x64xf32>
    %208 = arith.addf %202, %207 : vector<1x64xf32>
    %c0_208 = arith.constant 0 : index
    %c1_209 = arith.constant 1 : index
    %c0_210 = arith.constant 0 : index
    %209 = vector.load %arg31[%c0_208, %c1_209, %c0_210] : memref<1x8x64xf32, #tpu.memory_space<vmem>>, vector<1x1x64xf32>
    %210 = vector.shape_cast %209 : vector<1x1x64xf32> to vector<1x64xf32>
    %c2_211 = arith.constant 2 : index
    %c0_212 = arith.constant 0 : index
    %c0_213 = arith.constant 0 : index
    %211 = vector.load %arg4[%c2_211, %c0_212, %c0_213] : memref<3x64x64xf32, #tpu.memory_space<vmem>>, vector<1x64x64xf32>
    %212 = vector.shape_cast %211 : vector<1x64x64xf32> to vector<64x64xf32>
    %cst_214 = arith.constant dense<0.000000e+00> : vector<1x64xf32>
    %213 = tpu.matmul %210, %212, %cst_214 {dimension_numbers = #tpu.dot_dimension_numbers<[1], [0], [0], [1], [0, 0, 1, 1], [], []>} : vector<1x64xf32>, vector<64x64xf32>, vector<1x64xf32> -> vector<1x64xf32>
    %214 = arith.addf %208, %213 : vector<1x64xf32>
    %c0_215 = arith.constant 0 : index
    %c0_216 = arith.constant 0 : index
    %215 = vector.load %arg5[%c0_215, %c0_216] : memref<1x64xf32, #tpu.memory_space<vmem>>, vector<1x64xf32>
    %216 = arith.addf %214, %215 : vector<1x64xf32>
    %cst_217 = arith.constant 0.000000e+00 : f32
    %217 = vector.broadcast %cst_217 : f32 to vector<1x64xf32>
    %218 = arith.maximumf %216, %217 : vector<1x64xf32>
    %c0_218 = arith.constant 0 : index
    %c0_219 = arith.constant 0 : index
    %c0_220 = arith.constant 0 : index
    %219 = vector.load %arg32[%c0_218, %c0_219, %c0_220] : memref<1x4x64xf32, #tpu.memory_space<vmem>>, vector<1x1x64xf32>
    %220 = vector.shape_cast %219 : vector<1x1x64xf32> to vector<1x64xf32>
    %221 = vector.shape_cast %218 : vector<1x64xf32> to vector<1x1x64xf32>
    tpu.vector_store %arg32[%c0_218, %c0_219, %c0_220], %221 {strides = array<i32>} : memref<1x4x64xf32, #tpu.memory_space<vmem>>, vector<1x1x64xf32>,
    %cst_221 = arith.constant 0.000000e+00 : f32
    %222 = vector.broadcast %cst_221 : f32 to vector<1x64xf32>
    %c0_222 = arith.constant 0 : index
    %c1_223 = arith.constant 1 : index
    %c0_224 = arith.constant 0 : index
    %223 = vector.load %arg31[%c0_222, %c1_223, %c0_224] : memref<1x8x64xf32, #tpu.memory_space<vmem>>, vector<1x1x64xf32>
    %224 = vector.shape_cast %223 : vector<1x1x64xf32> to vector<1x64xf32>
    %c0_225 = arith.constant 0 : index
    %c0_226 = arith.constant 0 : index
    %c0_227 = arith.constant 0 : index
    %225 = vector.load %arg4[%c0_225, %c0_226, %c0_227] : memref<3x64x64xf32, #tpu.memory_space<vmem>>, vector<1x64x64xf32>
    %226 = vector.shape_cast %225 : vector<1x64x64xf32> to vector<64x64xf32>
    %cst_228 = arith.constant dense<0.000000e+00> : vector<1x64xf32>
    %227 = tpu.matmul %224, %226, %cst_228 {dimension_numbers = #tpu.dot_dimension_numbers<[1], [0], [0], [1], [0, 0, 1, 1], [], []>} : vector<1x64xf32>, vector<64x64xf32>, vector<1x64xf32> -> vector<1x64xf32>
    %228 = arith.addf %222, %227 : vector<1x64xf32>
    %c0_229 = arith.constant 0 : index
    %c2_230 = arith.constant 2 : index
    %c0_231 = arith.constant 0 : index
    %229 = vector.load %arg31[%c0_229, %c2_230, %c0_231] : memref<1x8x64xf32, #tpu.memory_space<vmem>>, vector<1x1x64xf32>
    %230 = vector.shape_cast %229 : vector<1x1x64xf32> to vector<1x64xf32>
    %c1_232 = arith.constant 1 : index
    %c0_233 = arith.constant 0 : index
    %c0_234 = arith.constant 0 : index
    %231 = vector.load %arg4[%c1_232, %c0_233, %c0_234] : memref<3x64x64xf32, #tpu.memory_space<vmem>>, vector<1x64x64xf32>
    %232 = vector.shape_cast %231 : vector<1x64x64xf32> to vector<64x64xf32>
    %cst_235 = arith.constant dense<0.000000e+00> : vector<1x64xf32>
    %233 = tpu.matmul %230, %232, %cst_235 {dimension_numbers = #tpu.dot_dimension_numbers<[1], [0], [0], [1], [0, 0, 1, 1], [], []>} : vector<1x64xf32>, vector<64x64xf32>, vector<1x64xf32> -> vector<1x64xf32>
    %234 = arith.addf %228, %233 : vector<1x64xf32>
    %c0_236 = arith.constant 0 : index
    %c3_237 = arith.constant 3 : index
    %c0_238 = arith.constant 0 : index
    %235 = vector.load %arg31[%c0_236, %c3_237, %c0_238] : memref<1x8x64xf32, #tpu.memory_space<vmem>>, vector<1x1x64xf32>
    %236 = vector.shape_cast %235 : vector<1x1x64xf32> to vector<1x64xf32>
    %c2_239 = arith.constant 2 : index
    %c0_240 = arith.constant 0 : index
    %c0_241 = arith.constant 0 : index
    %237 = vector.load %arg4[%c2_239, %c0_240, %c0_241] : memref<3x64x64xf32, #tpu.memory_space<vmem>>, vector<1x64x64xf32>
    %238 = vector.shape_cast %237 : vector<1x64x64xf32> to vector<64x64xf32>
    %cst_242 = arith.constant dense<0.000000e+00> : vector<1x64xf32>
    %239 = tpu.matmul %236, %238, %cst_242 {dimension_numbers = #tpu.dot_dimension_numbers<[1], [0], [0], [1], [0, 0, 1, 1], [], []>} : vector<1x64xf32>, vector<64x64xf32>, vector<1x64xf32> -> vector<1x64xf32>
    %240 = arith.addf %234, %239 : vector<1x64xf32>
    %c0_243 = arith.constant 0 : index
    %c0_244 = arith.constant 0 : index
    %241 = vector.load %arg5[%c0_243, %c0_244] : memref<1x64xf32, #tpu.memory_space<vmem>>, vector<1x64xf32>
    %242 = arith.addf %240, %241 : vector<1x64xf32>
    %cst_245 = arith.constant 0.000000e+00 : f32
    %243 = vector.broadcast %cst_245 : f32 to vector<1x64xf32>
    %244 = arith.maximumf %242, %243 : vector<1x64xf32>
    %c0_246 = arith.constant 0 : index
    %c1_247 = arith.constant 1 : index
    %c0_248 = arith.constant 0 : index
    %245 = vector.load %arg32[%c0_246, %c1_247, %c0_248] : memref<1x4x64xf32, #tpu.memory_space<vmem>>, vector<1x1x64xf32>
    %246 = vector.shape_cast %245 : vector<1x1x64xf32> to vector<1x64xf32>
    %247 = vector.shape_cast %244 : vector<1x64xf32> to vector<1x1x64xf32>
    tpu.vector_store %arg32[%c0_246, %c1_247, %c0_248], %247 {strides = array<i32>} : memref<1x4x64xf32, #tpu.memory_space<vmem>>, vector<1x1x64xf32>,
    %cst_249 = arith.constant 0.000000e+00 : f32
    %248 = vector.broadcast %cst_249 : f32 to vector<1x64xf32>
    %c0_250 = arith.constant 0 : index
    %c3_251 = arith.constant 3 : index
    %c0_252 = arith.constant 0 : index
    %249 = vector.load %arg31[%c0_250, %c3_251, %c0_252] : memref<1x8x64xf32, #tpu.memory_space<vmem>>, vector<1x1x64xf32>
    %250 = vector.shape_cast %249 : vector<1x1x64xf32> to vector<1x64xf32>
    %c0_253 = arith.constant 0 : index
    %c0_254 = arith.constant 0 : index
    %c0_255 = arith.constant 0 : index
    %251 = vector.load %arg4[%c0_253, %c0_254, %c0_255] : memref<3x64x64xf32, #tpu.memory_space<vmem>>, vector<1x64x64xf32>
    %252 = vector.shape_cast %251 : vector<1x64x64xf32> to vector<64x64xf32>
    %cst_256 = arith.constant dense<0.000000e+00> : vector<1x64xf32>
    %253 = tpu.matmul %250, %252, %cst_256 {dimension_numbers = #tpu.dot_dimension_numbers<[1], [0], [0], [1], [0, 0, 1, 1], [], []>} : vector<1x64xf32>, vector<64x64xf32>, vector<1x64xf32> -> vector<1x64xf32>
    %254 = arith.addf %248, %253 : vector<1x64xf32>
    %c0_257 = arith.constant 0 : index
    %c4_258 = arith.constant 4 : index
    %c0_259 = arith.constant 0 : index
    %255 = vector.load %arg31[%c0_257, %c4_258, %c0_259] : memref<1x8x64xf32, #tpu.memory_space<vmem>>, vector<1x1x64xf32>
    %256 = vector.shape_cast %255 : vector<1x1x64xf32> to vector<1x64xf32>
    %c1_260 = arith.constant 1 : index
    %c0_261 = arith.constant 0 : index
    %c0_262 = arith.constant 0 : index
    %257 = vector.load %arg4[%c1_260, %c0_261, %c0_262] : memref<3x64x64xf32, #tpu.memory_space<vmem>>, vector<1x64x64xf32>
    %258 = vector.shape_cast %257 : vector<1x64x64xf32> to vector<64x64xf32>
    %cst_263 = arith.constant dense<0.000000e+00> : vector<1x64xf32>
    %259 = tpu.matmul %256, %258, %cst_263 {dimension_numbers = #tpu.dot_dimension_numbers<[1], [0], [0], [1], [0, 0, 1, 1], [], []>} : vector<1x64xf32>, vector<64x64xf32>, vector<1x64xf32> -> vector<1x64xf32>
    %260 = arith.addf %254, %259 : vector<1x64xf32>
    %c0_264 = arith.constant 0 : index
    %c5_265 = arith.constant 5 : index
    %c0_266 = arith.constant 0 : index
    %261 = vector.load %arg31[%c0_264, %c5_265, %c0_266] : memref<1x8x64xf32, #tpu.memory_space<vmem>>, vector<1x1x64xf32>
    %262 = vector.shape_cast %261 : vector<1x1x64xf32> to vector<1x64xf32>
    %c2_267 = arith.constant 2 : index
    %c0_268 = arith.constant 0 : index
    %c0_269 = arith.constant 0 : index
    %263 = vector.load %arg4[%c2_267, %c0_268, %c0_269] : memref<3x64x64xf32, #tpu.memory_space<vmem>>, vector<1x64x64xf32>
    %264 = vector.shape_cast %263 : vector<1x64x64xf32> to vector<64x64xf32>
    %cst_270 = arith.constant dense<0.000000e+00> : vector<1x64xf32>
    %265 = tpu.matmul %262, %264, %cst_270 {dimension_numbers = #tpu.dot_dimension_numbers<[1], [0], [0], [1], [0, 0, 1, 1], [], []>} : vector<1x64xf32>, vector<64x64xf32>, vector<1x64xf32> -> vector<1x64xf32>
    %266 = arith.addf %260, %265 : vector<1x64xf32>
    %c0_271 = arith.constant 0 : index
    %c0_272 = arith.constant 0 : index
    %267 = vector.load %arg5[%c0_271, %c0_272] : memref<1x64xf32, #tpu.memory_space<vmem>>, vector<1x64xf32>
    %268 = arith.addf %266, %267 : vector<1x64xf32>
    %cst_273 = arith.constant 0.000000e+00 : f32
    %269 = vector.broadcast %cst_273 : f32 to vector<1x64xf32>
    %270 = arith.maximumf %268, %269 : vector<1x64xf32>
    %c0_274 = arith.constant 0 : index
    %c2_275 = arith.constant 2 : index
    %c0_276 = arith.constant 0 : index
    %271 = vector.load %arg32[%c0_274, %c2_275, %c0_276] : memref<1x4x64xf32, #tpu.memory_space<vmem>>, vector<1x1x64xf32>
    %272 = vector.shape_cast %271 : vector<1x1x64xf32> to vector<1x64xf32>
    %273 = vector.shape_cast %270 : vector<1x64xf32> to vector<1x1x64xf32>
    tpu.vector_store %arg32[%c0_274, %c2_275, %c0_276], %273 {strides = array<i32>} : memref<1x4x64xf32, #tpu.memory_space<vmem>>, vector<1x1x64xf32>,
    %cst_277 = arith.constant 0.000000e+00 : f32
    %274 = vector.broadcast %cst_277 : f32 to vector<1x64xf32>
    %c0_278 = arith.constant 0 : index
    %c5_279 = arith.constant 5 : index
    %c0_280 = arith.constant 0 : index
    %275 = vector.load %arg31[%c0_278, %c5_279, %c0_280] : memref<1x8x64xf32, #tpu.memory_space<vmem>>, vector<1x1x64xf32>
    %276 = vector.shape_cast %275 : vector<1x1x64xf32> to vector<1x64xf32>
    %c0_281 = arith.constant 0 : index
    %c0_282 = arith.constant 0 : index
    %c0_283 = arith.constant 0 : index
    %277 = vector.load %arg4[%c0_281, %c0_282, %c0_283] : memref<3x64x64xf32, #tpu.memory_space<vmem>>, vector<1x64x64xf32>
    %278 = vector.shape_cast %277 : vector<1x64x64xf32> to vector<64x64xf32>
    %cst_284 = arith.constant dense<0.000000e+00> : vector<1x64xf32>
    %279 = tpu.matmul %276, %278, %cst_284 {dimension_numbers = #tpu.dot_dimension_numbers<[1], [0], [0], [1], [0, 0, 1, 1], [], []>} : vector<1x64xf32>, vector<64x64xf32>, vector<1x64xf32> -> vector<1x64xf32>
    %280 = arith.addf %274, %279 : vector<1x64xf32>
    %c0_285 = arith.constant 0 : index
    %c6_286 = arith.constant 6 : index
    %c0_287 = arith.constant 0 : index
    %281 = vector.load %arg31[%c0_285, %c6_286, %c0_287] : memref<1x8x64xf32, #tpu.memory_space<vmem>>, vector<1x1x64xf32>
    %282 = vector.shape_cast %281 : vector<1x1x64xf32> to vector<1x64xf32>
    %c1_288 = arith.constant 1 : index
    %c0_289 = arith.constant 0 : index
    %c0_290 = arith.constant 0 : index
    %283 = vector.load %arg4[%c1_288, %c0_289, %c0_290] : memref<3x64x64xf32, #tpu.memory_space<vmem>>, vector<1x64x64xf32>
    %284 = vector.shape_cast %283 : vector<1x64x64xf32> to vector<64x64xf32>
    %cst_291 = arith.constant dense<0.000000e+00> : vector<1x64xf32>
    %285 = tpu.matmul %282, %284, %cst_291 {dimension_numbers = #tpu.dot_dimension_numbers<[1], [0], [0], [1], [0, 0, 1, 1], [], []>} : vector<1x64xf32>, vector<64x64xf32>, vector<1x64xf32> -> vector<1x64xf32>
    %286 = arith.addf %280, %285 : vector<1x64xf32>
    %c0_292 = arith.constant 0 : index
    %c7_293 = arith.constant 7 : index
    %c0_294 = arith.constant 0 : index
    %287 = vector.load %arg31[%c0_292, %c7_293, %c0_294] : memref<1x8x64xf32, #tpu.memory_space<vmem>>, vector<1x1x64xf32>
    %288 = vector.shape_cast %287 : vector<1x1x64xf32> to vector<1x64xf32>
    %c2_295 = arith.constant 2 : index
    %c0_296 = arith.constant 0 : index
    %c0_297 = arith.constant 0 : index
    %289 = vector.load %arg4[%c2_295, %c0_296, %c0_297] : memref<3x64x64xf32, #tpu.memory_space<vmem>>, vector<1x64x64xf32>
    %290 = vector.shape_cast %289 : vector<1x64x64xf32> to vector<64x64xf32>
    %cst_298 = arith.constant dense<0.000000e+00> : vector<1x64xf32>
    %291 = tpu.matmul %288, %290, %cst_298 {dimension_numbers = #tpu.dot_dimension_numbers<[1], [0], [0], [1], [0, 0, 1, 1], [], []>} : vector<1x64xf32>, vector<64x64xf32>, vector<1x64xf32> -> vector<1x64xf32>
    %292 = arith.addf %286, %291 : vector<1x64xf32>
    %c0_299 = arith.constant 0 : index
    %c0_300 = arith.constant 0 : index
    %293 = vector.load %arg5[%c0_299, %c0_300] : memref<1x64xf32, #tpu.memory_space<vmem>>, vector<1x64xf32>
    %294 = arith.addf %292, %293 : vector<1x64xf32>
    %cst_301 = arith.constant 0.000000e+00 : f32
    %295 = vector.broadcast %cst_301 : f32 to vector<1x64xf32>
    %296 = arith.maximumf %294, %295 : vector<1x64xf32>
    %c0_302 = arith.constant 0 : index
    %c3_303 = arith.constant 3 : index
    %c0_304 = arith.constant 0 : index
    %297 = vector.load %arg32[%c0_302, %c3_303, %c0_304] : memref<1x4x64xf32, #tpu.memory_space<vmem>>, vector<1x1x64xf32>
    %298 = vector.shape_cast %297 : vector<1x1x64xf32> to vector<1x64xf32>
    %299 = vector.shape_cast %296 : vector<1x64xf32> to vector<1x1x64xf32>
    tpu.vector_store %arg32[%c0_302, %c3_303, %c0_304], %299 {strides = array<i32>} : memref<1x4x64xf32, #tpu.memory_space<vmem>>, vector<1x1x64xf32>,
    %cst_305 = arith.constant 0.000000e+00 : f32
    %300 = vector.broadcast %cst_305 : f32 to vector<1x64xf32>
    %c0_306 = arith.constant 0 : index
    %c0_307 = arith.constant 0 : index
    %c0_308 = arith.constant 0 : index
    %301 = vector.load %arg32[%c0_306, %c0_307, %c0_308] : memref<1x4x64xf32, #tpu.memory_space<vmem>>, vector<1x1x64xf32>
    %302 = vector.shape_cast %301 : vector<1x1x64xf32> to vector<1x64xf32>
    %c1_309 = arith.constant 1 : index
    %c0_310 = arith.constant 0 : index
    %c0_311 = arith.constant 0 : index
    %303 = vector.load %arg6[%c1_309, %c0_310, %c0_311] : memref<3x64x64xf32, #tpu.memory_space<vmem>>, vector<1x64x64xf32>
    %304 = vector.shape_cast %303 : vector<1x64x64xf32> to vector<64x64xf32>
    %cst_312 = arith.constant dense<0.000000e+00> : vector<1x64xf32>
    %305 = tpu.matmul %302, %304, %cst_312 {dimension_numbers = #tpu.dot_dimension_numbers<[1], [0], [0], [1], [0, 0, 1, 1], [], []>} : vector<1x64xf32>, vector<64x64xf32>, vector<1x64xf32> -> vector<1x64xf32>
    %306 = arith.addf %300, %305 : vector<1x64xf32>
    %c0_313 = arith.constant 0 : index
    %c1_314 = arith.constant 1 : index
    %c0_315 = arith.constant 0 : index
    %307 = vector.load %arg32[%c0_313, %c1_314, %c0_315] : memref<1x4x64xf32, #tpu.memory_space<vmem>>, vector<1x1x64xf32>
    %308 = vector.shape_cast %307 : vector<1x1x64xf32> to vector<1x64xf32>
    %c2_316 = arith.constant 2 : index
    %c0_317 = arith.constant 0 : index
    %c0_318 = arith.constant 0 : index
    %309 = vector.load %arg6[%c2_316, %c0_317, %c0_318] : memref<3x64x64xf32, #tpu.memory_space<vmem>>, vector<1x64x64xf32>
    %310 = vector.shape_cast %309 : vector<1x64x64xf32> to vector<64x64xf32>
    %cst_319 = arith.constant dense<0.000000e+00> : vector<1x64xf32>
    %311 = tpu.matmul %308, %310, %cst_319 {dimension_numbers = #tpu.dot_dimension_numbers<[1], [0], [0], [1], [0, 0, 1, 1], [], []>} : vector<1x64xf32>, vector<64x64xf32>, vector<1x64xf32> -> vector<1x64xf32>
    %312 = arith.addf %306, %311 : vector<1x64xf32>
    %c0_320 = arith.constant 0 : index
    %c0_321 = arith.constant 0 : index
    %313 = vector.load %arg7[%c0_320, %c0_321] : memref<1x64xf32, #tpu.memory_space<vmem>>, vector<1x64xf32>
    %314 = arith.addf %312, %313 : vector<1x64xf32>
    %cst_322 = arith.constant 0.000000e+00 : f32
    %315 = vector.broadcast %cst_322 : f32 to vector<1x64xf32>
    %316 = arith.maximumf %314, %315 : vector<1x64xf32>
    %c0_323 = arith.constant 0 : index
    %c0_324 = arith.constant 0 : index
    %c0_325 = arith.constant 0 : index
    %317 = vector.load %arg33[%c0_323, %c0_324, %c0_325] : memref<1x2x64xf32, #tpu.memory_space<vmem>>, vector<1x1x64xf32>
    %318 = vector.shape_cast %317 : vector<1x1x64xf32> to vector<1x64xf32>
    %319 = vector.shape_cast %316 : vector<1x64xf32> to vector<1x1x64xf32>
    tpu.vector_store %arg33[%c0_323, %c0_324, %c0_325], %319 {strides = array<i32>} : memref<1x2x64xf32, #tpu.memory_space<vmem>>, vector<1x1x64xf32>,
    %cst_326 = arith.constant 0.000000e+00 : f32
    %320 = vector.broadcast %cst_326 : f32 to vector<1x64xf32>
    %c0_327 = arith.constant 0 : index
    %c1_328 = arith.constant 1 : index
    %c0_329 = arith.constant 0 : index
    %321 = vector.load %arg32[%c0_327, %c1_328, %c0_329] : memref<1x4x64xf32, #tpu.memory_space<vmem>>, vector<1x1x64xf32>
    %322 = vector.shape_cast %321 : vector<1x1x64xf32> to vector<1x64xf32>
    %c0_330 = arith.constant 0 : index
    %c0_331 = arith.constant 0 : index
    %c0_332 = arith.constant 0 : index
    %323 = vector.load %arg6[%c0_330, %c0_331, %c0_332] : memref<3x64x64xf32, #tpu.memory_space<vmem>>, vector<1x64x64xf32>
    %324 = vector.shape_cast %323 : vector<1x64x64xf32> to vector<64x64xf32>
    %cst_333 = arith.constant dense<0.000000e+00> : vector<1x64xf32>
    %325 = tpu.matmul %322, %324, %cst_333 {dimension_numbers = #tpu.dot_dimension_numbers<[1], [0], [0], [1], [0, 0, 1, 1], [], []>} : vector<1x64xf32>, vector<64x64xf32>, vector<1x64xf32> -> vector<1x64xf32>
    %326 = arith.addf %320, %325 : vector<1x64xf32>
    %c0_334 = arith.constant 0 : index
    %c2_335 = arith.constant 2 : index
    %c0_336 = arith.constant 0 : index
    %327 = vector.load %arg32[%c0_334, %c2_335, %c0_336] : memref<1x4x64xf32, #tpu.memory_space<vmem>>, vector<1x1x64xf32>
    %328 = vector.shape_cast %327 : vector<1x1x64xf32> to vector<1x64xf32>
    %c1_337 = arith.constant 1 : index
    %c0_338 = arith.constant 0 : index
    %c0_339 = arith.constant 0 : index
    %329 = vector.load %arg6[%c1_337, %c0_338, %c0_339] : memref<3x64x64xf32, #tpu.memory_space<vmem>>, vector<1x64x64xf32>
    %330 = vector.shape_cast %329 : vector<1x64x64xf32> to vector<64x64xf32>
    %cst_340 = arith.constant dense<0.000000e+00> : vector<1x64xf32>
    %331 = tpu.matmul %328, %330, %cst_340 {dimension_numbers = #tpu.dot_dimension_numbers<[1], [0], [0], [1], [0, 0, 1, 1], [], []>} : vector<1x64xf32>, vector<64x64xf32>, vector<1x64xf32> -> vector<1x64xf32>
    %332 = arith.addf %326, %331 : vector<1x64xf32>
    %c0_341 = arith.constant 0 : index
    %c3_342 = arith.constant 3 : index
    %c0_343 = arith.constant 0 : index
    %333 = vector.load %arg32[%c0_341, %c3_342, %c0_343] : memref<1x4x64xf32, #tpu.memory_space<vmem>>, vector<1x1x64xf32>
    %334 = vector.shape_cast %333 : vector<1x1x64xf32> to vector<1x64xf32>
    %c2_344 = arith.constant 2 : index
    %c0_345 = arith.constant 0 : index
    %c0_346 = arith.constant 0 : index
    %335 = vector.load %arg6[%c2_344, %c0_345, %c0_346] : memref<3x64x64xf32, #tpu.memory_space<vmem>>, vector<1x64x64xf32>
    %336 = vector.shape_cast %335 : vector<1x64x64xf32> to vector<64x64xf32>
    %cst_347 = arith.constant dense<0.000000e+00> : vector<1x64xf32>
    %337 = tpu.matmul %334, %336, %cst_347 {dimension_numbers = #tpu.dot_dimension_numbers<[1], [0], [0], [1], [0, 0, 1, 1], [], []>} : vector<1x64xf32>, vector<64x64xf32>, vector<1x64xf32> -> vector<1x64xf32>
    %338 = arith.addf %332, %337 : vector<1x64xf32>
    %c0_348 = arith.constant 0 : index
    %c0_349 = arith.constant 0 : index
    %339 = vector.load %arg7[%c0_348, %c0_349] : memref<1x64xf32, #tpu.memory_space<vmem>>, vector<1x64xf32>
    %340 = arith.addf %338, %339 : vector<1x64xf32>
    %cst_350 = arith.constant 0.000000e+00 : f32
    %341 = vector.broadcast %cst_350 : f32 to vector<1x64xf32>
    %342 = arith.maximumf %340, %341 : vector<1x64xf32>
    %c0_351 = arith.constant 0 : index
    %c1_352 = arith.constant 1 : index
    %c0_353 = arith.constant 0 : index
    %343 = vector.load %arg33[%c0_351, %c1_352, %c0_353] : memref<1x2x64xf32, #tpu.memory_space<vmem>>, vector<1x1x64xf32>
    %344 = vector.shape_cast %343 : vector<1x1x64xf32> to vector<1x64xf32>
    %345 = vector.shape_cast %342 : vector<1x64xf32> to vector<1x1x64xf32>
    tpu.vector_store %arg33[%c0_351, %c1_352, %c0_353], %345 {strides = array<i32>} : memref<1x2x64xf32, #tpu.memory_space<vmem>>, vector<1x1x64xf32>,
    %cst_354 = arith.constant 0.000000e+00 : f32
    %346 = vector.broadcast %cst_354 : f32 to vector<1x64xf32>
    %c0_355 = arith.constant 0 : index
    %c0_356 = arith.constant 0 : index
    %c0_357 = arith.constant 0 : index
    %347 = vector.load %arg33[%c0_355, %c0_356, %c0_357] : memref<1x2x64xf32, #tpu.memory_space<vmem>>, vector<1x1x64xf32>
    %348 = vector.shape_cast %347 : vector<1x1x64xf32> to vector<1x64xf32>
    %c0_358 = arith.constant 0 : index
    %c0_359 = arith.constant 0 : index
    %c0_360 = arith.constant 0 : index
    %349 = vector.load %arg12[%c0_358, %c0_359, %c0_360] : memref<1x64x64xf32, #tpu.memory_space<vmem>>, vector<1x64x64xf32>
    %350 = vector.shape_cast %349 : vector<1x64x64xf32> to vector<64x64xf32>
    %cst_361 = arith.constant dense<0.000000e+00> : vector<1x64xf32>
    %351 = tpu.matmul %348, %350, %cst_361 {dimension_numbers = #tpu.dot_dimension_numbers<[1], [0], [0], [1], [0, 0, 1, 1], [], []>} : vector<1x64xf32>, vector<64x64xf32>, vector<1x64xf32> -> vector<1x64xf32>
    %352 = arith.addf %346, %351 : vector<1x64xf32>
    %c0_362 = arith.constant 0 : index
    %c0_363 = arith.constant 0 : index
    %353 = vector.load %arg13[%c0_362, %c0_363] : memref<1x64xf32, #tpu.memory_space<vmem>>, vector<1x64xf32>
    %354 = arith.addf %352, %353 : vector<1x64xf32>
    %c0_364 = arith.constant 0 : index
    %c0_365 = arith.constant 0 : index
    %c0_366 = arith.constant 0 : index
    %355 = vector.load %arg34[%c0_364, %c0_365, %c0_366] : memref<1x2x64xf32, #tpu.memory_space<vmem>>, vector<1x1x64xf32>
    %356 = vector.shape_cast %355 : vector<1x1x64xf32> to vector<1x64xf32>
    %357 = vector.shape_cast %354 : vector<1x64xf32> to vector<1x1x64xf32>
    tpu.vector_store %arg34[%c0_364, %c0_365, %c0_366], %357 {strides = array<i32>} : memref<1x2x64xf32, #tpu.memory_space<vmem>>, vector<1x1x64xf32>,
    %cst_367 = arith.constant 0.000000e+00 : f32
    %358 = vector.broadcast %cst_367 : f32 to vector<1x64xf32>
    %c0_368 = arith.constant 0 : index
    %c1_369 = arith.constant 1 : index
    %c0_370 = arith.constant 0 : index
    %359 = vector.load %arg33[%c0_368, %c1_369, %c0_370] : memref<1x2x64xf32, #tpu.memory_space<vmem>>, vector<1x1x64xf32>
    %360 = vector.shape_cast %359 : vector<1x1x64xf32> to vector<1x64xf32>
    %c0_371 = arith.constant 0 : index
    %c0_372 = arith.constant 0 : index
    %c0_373 = arith.constant 0 : index
    %361 = vector.load %arg12[%c0_371, %c0_372, %c0_373] : memref<1x64x64xf32, #tpu.memory_space<vmem>>, vector<1x64x64xf32>
    %362 = vector.shape_cast %361 : vector<1x64x64xf32> to vector<64x64xf32>
    %cst_374 = arith.constant dense<0.000000e+00> : vector<1x64xf32>
    %363 = tpu.matmul %360, %362, %cst_374 {dimension_numbers = #tpu.dot_dimension_numbers<[1], [0], [0], [1], [0, 0, 1, 1], [], []>} : vector<1x64xf32>, vector<64x64xf32>, vector<1x64xf32> -> vector<1x64xf32>
    %364 = arith.addf %358, %363 : vector<1x64xf32>
    %c0_375 = arith.constant 0 : index
    %c0_376 = arith.constant 0 : index
    %365 = vector.load %arg13[%c0_375, %c0_376] : memref<1x64xf32, #tpu.memory_space<vmem>>, vector<1x64xf32>
    %366 = arith.addf %364, %365 : vector<1x64xf32>
    %c0_377 = arith.constant 0 : index
    %c1_378 = arith.constant 1 : index
    %c0_379 = arith.constant 0 : index
    %367 = vector.load %arg34[%c0_377, %c1_378, %c0_379] : memref<1x2x64xf32, #tpu.memory_space<vmem>>, vector<1x1x64xf32>
    %368 = vector.shape_cast %367 : vector<1x1x64xf32> to vector<1x64xf32>
    %369 = vector.shape_cast %366 : vector<1x64xf32> to vector<1x1x64xf32>
    tpu.vector_store %arg34[%c0_377, %c1_378, %c0_379], %369 {strides = array<i32>} : memref<1x2x64xf32, #tpu.memory_space<vmem>>, vector<1x1x64xf32>,
    %cst_380 = arith.constant 0.000000e+00 : f32
    %370 = vector.broadcast %cst_380 : f32 to vector<1x64xf32>
    %c0_381 = arith.constant 0 : index
    %c0_382 = arith.constant 0 : index
    %c0_383 = arith.constant 0 : index
    %371 = vector.load %arg34[%c0_381, %c0_382, %c0_383] : memref<1x2x64xf32, #tpu.memory_space<vmem>>, vector<1x1x64xf32>
    %372 = vector.shape_cast %371 : vector<1x1x64xf32> to vector<1x64xf32>
    %c1_384 = arith.constant 1 : index
    %c0_385 = arith.constant 0 : index
    %c0_386 = arith.constant 0 : index
    %373 = vector.load %arg18[%c1_384, %c0_385, %c0_386] : memref<3x64x64xf32, #tpu.memory_space<vmem>>, vector<1x64x64xf32>
    %374 = vector.shape_cast %373 : vector<1x64x64xf32> to vector<64x64xf32>
    %cst_387 = arith.constant dense<0.000000e+00> : vector<1x64xf32>
    %375 = tpu.matmul %372, %374, %cst_387 {dimension_numbers = #tpu.dot_dimension_numbers<[1], [0], [0], [1], [0, 0, 1, 1], [], []>} : vector<1x64xf32>, vector<64x64xf32>, vector<1x64xf32> -> vector<1x64xf32>
    %376 = arith.addf %370, %375 : vector<1x64xf32>
    %c0_388 = arith.constant 0 : index
    %c1_389 = arith.constant 1 : index
    %c0_390 = arith.constant 0 : index
    %377 = vector.load %arg34[%c0_388, %c1_389, %c0_390] : memref<1x2x64xf32, #tpu.memory_space<vmem>>, vector<1x1x64xf32>
    %378 = vector.shape_cast %377 : vector<1x1x64xf32> to vector<1x64xf32>
    %c2_391 = arith.constant 2 : index
    %c0_392 = arith.constant 0 : index
    %c0_393 = arith.constant 0 : index
    %379 = vector.load %arg18[%c2_391, %c0_392, %c0_393] : memref<3x64x64xf32, #tpu.memory_space<vmem>>, vector<1x64x64xf32>
    %380 = vector.shape_cast %379 : vector<1x64x64xf32> to vector<64x64xf32>
    %cst_394 = arith.constant dense<0.000000e+00> : vector<1x64xf32>
    %381 = tpu.matmul %378, %380, %cst_394 {dimension_numbers = #tpu.dot_dimension_numbers<[1], [0], [0], [1], [0, 0, 1, 1], [], []>} : vector<1x64xf32>, vector<64x64xf32>, vector<1x64xf32> -> vector<1x64xf32>
    %382 = arith.addf %376, %381 : vector<1x64xf32>
    %c0_395 = arith.constant 0 : index
    %c0_396 = arith.constant 0 : index
    %383 = vector.load %arg19[%c0_395, %c0_396] : memref<1x64xf32, #tpu.memory_space<vmem>>, vector<1x64xf32>
    %384 = arith.addf %382, %383 : vector<1x64xf32>
    %c0_397 = arith.constant 0 : index
    %c0_398 = arith.constant 0 : index
    %c0_399 = arith.constant 0 : index
    %385 = vector.load %arg28[%c0_397, %c0_398, %c0_399] : memref<1x2x64xf32, #tpu.memory_space<vmem>>, vector<1x1x64xf32>
    %386 = vector.shape_cast %385 : vector<1x1x64xf32> to vector<1x64xf32>
    %387 = vector.shape_cast %384 : vector<1x64xf32> to vector<1x1x64xf32>
    tpu.vector_store %arg28[%c0_397, %c0_398, %c0_399], %387 {strides = array<i32>} : memref<1x2x64xf32, #tpu.memory_space<vmem>>, vector<1x1x64xf32>,
    %cst_400 = arith.constant 0.000000e+00 : f32
    %388 = vector.broadcast %cst_400 : f32 to vector<1x64xf32>
    %c0_401 = arith.constant 0 : index
    %c0_402 = arith.constant 0 : index
    %c0_403 = arith.constant 0 : index
    %389 = vector.load %arg34[%c0_401, %c0_402, %c0_403] : memref<1x2x64xf32, #tpu.memory_space<vmem>>, vector<1x1x64xf32>
    %390 = vector.shape_cast %389 : vector<1x1x64xf32> to vector<1x64xf32>
    %c0_404 = arith.constant 0 : index
    %c0_405 = arith.constant 0 : index
    %c0_406 = arith.constant 0 : index
    %391 = vector.load %arg18[%c0_404, %c0_405, %c0_406] : memref<3x64x64xf32, #tpu.memory_space<vmem>>, vector<1x64x64xf32>
    %392 = vector.shape_cast %391 : vector<1x64x64xf32> to vector<64x64xf32>
    %cst_407 = arith.constant dense<0.000000e+00> : vector<1x64xf32>
    %393 = tpu.matmul %390, %392, %cst_407 {dimension_numbers = #tpu.dot_dimension_numbers<[1], [0], [0], [1], [0, 0, 1, 1], [], []>} : vector<1x64xf32>, vector<64x64xf32>, vector<1x64xf32> -> vector<1x64xf32>
    %394 = arith.addf %388, %393 : vector<1x64xf32>
    %c0_408 = arith.constant 0 : index
    %c1_409 = arith.constant 1 : index
    %c0_410 = arith.constant 0 : index
    %395 = vector.load %arg34[%c0_408, %c1_409, %c0_410] : memref<1x2x64xf32, #tpu.memory_space<vmem>>, vector<1x1x64xf32>
    %396 = vector.shape_cast %395 : vector<1x1x64xf32> to vector<1x64xf32>
    %c1_411 = arith.constant 1 : index
    %c0_412 = arith.constant 0 : index
    %c0_413 = arith.constant 0 : index
    %397 = vector.load %arg18[%c1_411, %c0_412, %c0_413] : memref<3x64x64xf32, #tpu.memory_space<vmem>>, vector<1x64x64xf32>
    %398 = vector.shape_cast %397 : vector<1x64x64xf32> to vector<64x64xf32>
    %cst_414 = arith.constant dense<0.000000e+00> : vector<1x64xf32>
    %399 = tpu.matmul %396, %398, %cst_414 {dimension_numbers = #tpu.dot_dimension_numbers<[1], [0], [0], [1], [0, 0, 1, 1], [], []>} : vector<1x64xf32>, vector<64x64xf32>, vector<1x64xf32> -> vector<1x64xf32>
    %400 = arith.addf %394, %399 : vector<1x64xf32>
    %c0_415 = arith.constant 0 : index
    %c0_416 = arith.constant 0 : index
    %401 = vector.load %arg19[%c0_415, %c0_416] : memref<1x64xf32, #tpu.memory_space<vmem>>, vector<1x64xf32>
    %402 = arith.addf %400, %401 : vector<1x64xf32>
    %c0_417 = arith.constant 0 : index
    %c1_418 = arith.constant 1 : index
    %c0_419 = arith.constant 0 : index
    %403 = vector.load %arg28[%c0_417, %c1_418, %c0_419] : memref<1x2x64xf32, #tpu.memory_space<vmem>>, vector<1x1x64xf32>
    %404 = vector.shape_cast %403 : vector<1x1x64xf32> to vector<1x64xf32>
    %405 = vector.shape_cast %402 : vector<1x64xf32> to vector<1x1x64xf32>
    tpu.vector_store %arg28[%c0_417, %c1_418, %c0_419], %405 {strides = array<i32>} : memref<1x2x64xf32, #tpu.memory_space<vmem>>, vector<1x1x64xf32>,
    %c0_420 = arith.constant 0 : index
    %c0_421 = arith.constant 0 : index
    %c0_422 = arith.constant 0 : index
    %406 = vector.load %arg32[%c0_420, %c0_421, %c0_422] : memref<1x4x64xf32, #tpu.memory_space<vmem>>, vector<1x1x64xf32>
    %407 = vector.shape_cast %406 : vector<1x1x64xf32> to vector<1x64xf32>
    %c0_423 = arith.constant 0 : index
    %c0_424 = arith.constant 0 : index
    %c0_425 = arith.constant 0 : index
    %408 = vector.load %arg10[%c0_423, %c0_424, %c0_425] : memref<1x64x128xf32, #tpu.memory_space<vmem>>, vector<1x64x128xf32>
    %409 = vector.shape_cast %408 : vector<1x64x128xf32> to vector<64x128xf32>
    %cst_426 = arith.constant dense<0.000000e+00> : vector<1x128xf32>
    %410 = tpu.matmul %407, %409, %cst_426 {dimension_numbers = #tpu.dot_dimension_numbers<[1], [0], [0], [1], [0, 0, 1, 1], [], []>} : vector<1x64xf32>, vector<64x128xf32>, vector<1x128xf32> -> vector<1x128xf32>
    %c0_427 = arith.constant 0 : index
    %c0_428 = arith.constant 0 : index
    %411 = vector.load %arg11[%c0_427, %c0_428] : memref<1x128xf32, #tpu.memory_space<vmem>>, vector<1x128xf32>
    %412 = arith.addf %410, %411 : vector<1x128xf32>
    %c0_429 = arith.constant 0 : index
    %c0_430 = arith.constant 0 : index
    %c0_431 = arith.constant 0 : index
    %413 = vector.load %arg34[%c0_429, %c0_430, %c0_431] : memref<1x2x64xf32, #tpu.memory_space<vmem>>, vector<1x1x64xf32>
    %414 = vector.shape_cast %413 : vector<1x1x64xf32> to vector<1x64xf32>
    %c0_432 = arith.constant 0 : index
    %c0_433 = arith.constant 0 : index
    %415 = vector.load %arg25[%c0_432, %c0_433] : memref<64x128xf32, #tpu.memory_space<vmem>>, vector<64x128xf32>
    %cst_434 = arith.constant dense<0.000000e+00> : vector<1x128xf32>
    %416 = tpu.matmul %414, %415, %cst_434 {dimension_numbers = #tpu.dot_dimension_numbers<[1], [0], [0], [1], [0, 0, 1, 1], [], []>} : vector<1x64xf32>, vector<64x128xf32>, vector<1x128xf32> -> vector<1x128xf32>
    %417 = arith.addf %412, %416 : vector<1x128xf32>
    %c0_435 = arith.constant 0 : index
    %c0_436 = arith.constant 0 : index
    %c0_437 = arith.constant 0 : index
    %418 = vector.load %arg35[%c0_435, %c0_436, %c0_437] : memref<1x4x128xf32, #tpu.memory_space<vmem>>, vector<1x1x128xf32>
    %419 = vector.shape_cast %418 : vector<1x1x128xf32> to vector<1x128xf32>
    %420 = vector.shape_cast %417 : vector<1x128xf32> to vector<1x1x128xf32>
    tpu.vector_store %arg35[%c0_435, %c0_436, %c0_437], %420 {strides = array<i32>} : memref<1x4x128xf32, #tpu.memory_space<vmem>>, vector<1x1x128xf32>,
    %c0_438 = arith.constant 0 : index
    %c1_439 = arith.constant 1 : index
    %c0_440 = arith.constant 0 : index
    %421 = vector.load %arg32[%c0_438, %c1_439, %c0_440] : memref<1x4x64xf32, #tpu.memory_space<vmem>>, vector<1x1x64xf32>
    %422 = vector.shape_cast %421 : vector<1x1x64xf32> to vector<1x64xf32>
    %c0_441 = arith.constant 0 : index
    %c0_442 = arith.constant 0 : index
    %c0_443 = arith.constant 0 : index
    %423 = vector.load %arg10[%c0_441, %c0_442, %c0_443] : memref<1x64x128xf32, #tpu.memory_space<vmem>>, vector<1x64x128xf32>
    %424 = vector.shape_cast %423 : vector<1x64x128xf32> to vector<64x128xf32>
    %cst_444 = arith.constant dense<0.000000e+00> : vector<1x128xf32>
    %425 = tpu.matmul %422, %424, %cst_444 {dimension_numbers = #tpu.dot_dimension_numbers<[1], [0], [0], [1], [0, 0, 1, 1], [], []>} : vector<1x64xf32>, vector<64x128xf32>, vector<1x128xf32> -> vector<1x128xf32>
    %c0_445 = arith.constant 0 : index
    %c0_446 = arith.constant 0 : index
    %426 = vector.load %arg11[%c0_445, %c0_446] : memref<1x128xf32, #tpu.memory_space<vmem>>, vector<1x128xf32>
    %427 = arith.addf %425, %426 : vector<1x128xf32>
    %c0_447 = arith.constant 0 : index
    %c0_448 = arith.constant 0 : index
    %c0_449 = arith.constant 0 : index
    %428 = vector.load %arg34[%c0_447, %c0_448, %c0_449] : memref<1x2x64xf32, #tpu.memory_space<vmem>>, vector<1x1x64xf32>
    %429 = vector.shape_cast %428 : vector<1x1x64xf32> to vector<1x64xf32>
    %c0_450 = arith.constant 0 : index
    %c0_451 = arith.constant 0 : index
    %430 = vector.load %arg25[%c0_450, %c0_451] : memref<64x128xf32, #tpu.memory_space<vmem>>, vector<64x128xf32>
    %cst_452 = arith.constant dense<0.000000e+00> : vector<1x128xf32>
    %431 = tpu.matmul %429, %430, %cst_452 {dimension_numbers = #tpu.dot_dimension_numbers<[1], [0], [0], [1], [0, 0, 1, 1], [], []>} : vector<1x64xf32>, vector<64x128xf32>, vector<1x128xf32> -> vector<1x128xf32>
    %432 = arith.addf %427, %431 : vector<1x128xf32>
    %c0_453 = arith.constant 0 : index
    %c1_454 = arith.constant 1 : index
    %c0_455 = arith.constant 0 : index
    %433 = vector.load %arg35[%c0_453, %c1_454, %c0_455] : memref<1x4x128xf32, #tpu.memory_space<vmem>>, vector<1x1x128xf32>
    %434 = vector.shape_cast %433 : vector<1x1x128xf32> to vector<1x128xf32>
    %435 = vector.shape_cast %432 : vector<1x128xf32> to vector<1x1x128xf32>
    tpu.vector_store %arg35[%c0_453, %c1_454, %c0_455], %435 {strides = array<i32>} : memref<1x4x128xf32, #tpu.memory_space<vmem>>, vector<1x1x128xf32>,
    %c0_456 = arith.constant 0 : index
    %c2_457 = arith.constant 2 : index
    %c0_458 = arith.constant 0 : index
    %436 = vector.load %arg32[%c0_456, %c2_457, %c0_458] : memref<1x4x64xf32, #tpu.memory_space<vmem>>, vector<1x1x64xf32>
    %437 = vector.shape_cast %436 : vector<1x1x64xf32> to vector<1x64xf32>
    %c0_459 = arith.constant 0 : index
    %c0_460 = arith.constant 0 : index
    %c0_461 = arith.constant 0 : index
    %438 = vector.load %arg10[%c0_459, %c0_460, %c0_461] : memref<1x64x128xf32, #tpu.memory_space<vmem>>, vector<1x64x128xf32>
    %439 = vector.shape_cast %438 : vector<1x64x128xf32> to vector<64x128xf32>
    %cst_462 = arith.constant dense<0.000000e+00> : vector<1x128xf32>
    %440 = tpu.matmul %437, %439, %cst_462 {dimension_numbers = #tpu.dot_dimension_numbers<[1], [0], [0], [1], [0, 0, 1, 1], [], []>} : vector<1x64xf32>, vector<64x128xf32>, vector<1x128xf32> -> vector<1x128xf32>
    %c0_463 = arith.constant 0 : index
    %c0_464 = arith.constant 0 : index
    %441 = vector.load %arg11[%c0_463, %c0_464] : memref<1x128xf32, #tpu.memory_space<vmem>>, vector<1x128xf32>
    %442 = arith.addf %440, %441 : vector<1x128xf32>
    %c0_465 = arith.constant 0 : index
    %c1_466 = arith.constant 1 : index
    %c0_467 = arith.constant 0 : index
    %443 = vector.load %arg34[%c0_465, %c1_466, %c0_467] : memref<1x2x64xf32, #tpu.memory_space<vmem>>, vector<1x1x64xf32>
    %444 = vector.shape_cast %443 : vector<1x1x64xf32> to vector<1x64xf32>
    %c0_468 = arith.constant 0 : index
    %c0_469 = arith.constant 0 : index
    %445 = vector.load %arg25[%c0_468, %c0_469] : memref<64x128xf32, #tpu.memory_space<vmem>>, vector<64x128xf32>
    %cst_470 = arith.constant dense<0.000000e+00> : vector<1x128xf32>
    %446 = tpu.matmul %444, %445, %cst_470 {dimension_numbers = #tpu.dot_dimension_numbers<[1], [0], [0], [1], [0, 0, 1, 1], [], []>} : vector<1x64xf32>, vector<64x128xf32>, vector<1x128xf32> -> vector<1x128xf32>
    %447 = arith.addf %442, %446 : vector<1x128xf32>
    %c0_471 = arith.constant 0 : index
    %c2_472 = arith.constant 2 : index
    %c0_473 = arith.constant 0 : index
    %448 = vector.load %arg35[%c0_471, %c2_472, %c0_473] : memref<1x4x128xf32, #tpu.memory_space<vmem>>, vector<1x1x128xf32>
    %449 = vector.shape_cast %448 : vector<1x1x128xf32> to vector<1x128xf32>
    %450 = vector.shape_cast %447 : vector<1x128xf32> to vector<1x1x128xf32>
    tpu.vector_store %arg35[%c0_471, %c2_472, %c0_473], %450 {strides = array<i32>} : memref<1x4x128xf32, #tpu.memory_space<vmem>>, vector<1x1x128xf32>,
    %c0_474 = arith.constant 0 : index
    %c3_475 = arith.constant 3 : index
    %c0_476 = arith.constant 0 : index
    %451 = vector.load %arg32[%c0_474, %c3_475, %c0_476] : memref<1x4x64xf32, #tpu.memory_space<vmem>>, vector<1x1x64xf32>
    %452 = vector.shape_cast %451 : vector<1x1x64xf32> to vector<1x64xf32>
    %c0_477 = arith.constant 0 : index
    %c0_478 = arith.constant 0 : index
    %c0_479 = arith.constant 0 : index
    %453 = vector.load %arg10[%c0_477, %c0_478, %c0_479] : memref<1x64x128xf32, #tpu.memory_space<vmem>>, vector<1x64x128xf32>
    %454 = vector.shape_cast %453 : vector<1x64x128xf32> to vector<64x128xf32>
    %cst_480 = arith.constant dense<0.000000e+00> : vector<1x128xf32>
    %455 = tpu.matmul %452, %454, %cst_480 {dimension_numbers = #tpu.dot_dimension_numbers<[1], [0], [0], [1], [0, 0, 1, 1], [], []>} : vector<1x64xf32>, vector<64x128xf32>, vector<1x128xf32> -> vector<1x128xf32>
    %c0_481 = arith.constant 0 : index
    %c0_482 = arith.constant 0 : index
    %456 = vector.load %arg11[%c0_481, %c0_482] : memref<1x128xf32, #tpu.memory_space<vmem>>, vector<1x128xf32>
    %457 = arith.addf %455, %456 : vector<1x128xf32>
    %c0_483 = arith.constant 0 : index
    %c1_484 = arith.constant 1 : index
    %c0_485 = arith.constant 0 : index
    %458 = vector.load %arg34[%c0_483, %c1_484, %c0_485] : memref<1x2x64xf32, #tpu.memory_space<vmem>>, vector<1x1x64xf32>
    %459 = vector.shape_cast %458 : vector<1x1x64xf32> to vector<1x64xf32>
    %c0_486 = arith.constant 0 : index
    %c0_487 = arith.constant 0 : index
    %460 = vector.load %arg25[%c0_486, %c0_487] : memref<64x128xf32, #tpu.memory_space<vmem>>, vector<64x128xf32>
    %cst_488 = arith.constant dense<0.000000e+00> : vector<1x128xf32>
    %461 = tpu.matmul %459, %460, %cst_488 {dimension_numbers = #tpu.dot_dimension_numbers<[1], [0], [0], [1], [0, 0, 1, 1], [], []>} : vector<1x64xf32>, vector<64x128xf32>, vector<1x128xf32> -> vector<1x128xf32>
    %462 = arith.addf %457, %461 : vector<1x128xf32>
    %c0_489 = arith.constant 0 : index
    %c3_490 = arith.constant 3 : index
    %c0_491 = arith.constant 0 : index
    %463 = vector.load %arg35[%c0_489, %c3_490, %c0_491] : memref<1x4x128xf32, #tpu.memory_space<vmem>>, vector<1x1x128xf32>
    %464 = vector.shape_cast %463 : vector<1x1x128xf32> to vector<1x128xf32>
    %465 = vector.shape_cast %462 : vector<1x128xf32> to vector<1x1x128xf32>
    tpu.vector_store %arg35[%c0_489, %c3_490, %c0_491], %465 {strides = array<i32>} : memref<1x4x128xf32, #tpu.memory_space<vmem>>, vector<1x1x128xf32>,
    %cst_492 = arith.constant 0.000000e+00 : f32
    %466 = vector.broadcast %cst_492 : f32 to vector<1x128xf32>
    %c0_493 = arith.constant 0 : index
    %c0_494 = arith.constant 0 : index
    %c0_495 = arith.constant 0 : index
    %467 = vector.load %arg35[%c0_493, %c0_494, %c0_495] : memref<1x4x128xf32, #tpu.memory_space<vmem>>, vector<1x1x128xf32>
    %468 = vector.shape_cast %467 : vector<1x1x128xf32> to vector<1x128xf32>
    %c1_496 = arith.constant 1 : index
    %c0_497 = arith.constant 0 : index
    %c0_498 = arith.constant 0 : index
    %469 = vector.load %arg16[%c1_496, %c0_497, %c0_498] : memref<3x128x128xf32, #tpu.memory_space<vmem>>, vector<1x128x128xf32>
    %470 = vector.shape_cast %469 : vector<1x128x128xf32> to vector<128x128xf32>
    %cst_499 = arith.constant dense<0.000000e+00> : vector<1x128xf32>
    %471 = tpu.matmul %468, %470, %cst_499 {dimension_numbers = #tpu.dot_dimension_numbers<[1], [0], [0], [1], [0, 0, 1, 1], [], []>} : vector<1x128xf32>, vector<128x128xf32>, vector<1x128xf32> -> vector<1x128xf32>
    %472 = arith.addf %466, %471 : vector<1x128xf32>
    %c0_500 = arith.constant 0 : index
    %c1_501 = arith.constant 1 : index
    %c0_502 = arith.constant 0 : index
    %473 = vector.load %arg35[%c0_500, %c1_501, %c0_502] : memref<1x4x128xf32, #tpu.memory_space<vmem>>, vector<1x1x128xf32>
    %474 = vector.shape_cast %473 : vector<1x1x128xf32> to vector<1x128xf32>
    %c2_503 = arith.constant 2 : index
    %c0_504 = arith.constant 0 : index
    %c0_505 = arith.constant 0 : index
    %475 = vector.load %arg16[%c2_503, %c0_504, %c0_505] : memref<3x128x128xf32, #tpu.memory_space<vmem>>, vector<1x128x128xf32>
    %476 = vector.shape_cast %475 : vector<1x128x128xf32> to vector<128x128xf32>
    %cst_506 = arith.constant dense<0.000000e+00> : vector<1x128xf32>
    %477 = tpu.matmul %474, %476, %cst_506 {dimension_numbers = #tpu.dot_dimension_numbers<[1], [0], [0], [1], [0, 0, 1, 1], [], []>} : vector<1x128xf32>, vector<128x128xf32>, vector<1x128xf32> -> vector<1x128xf32>
    %478 = arith.addf %472, %477 : vector<1x128xf32>
    %c0_507 = arith.constant 0 : index
    %c0_508 = arith.constant 0 : index
    %479 = vector.load %arg17[%c0_507, %c0_508] : memref<1x128xf32, #tpu.memory_space<vmem>>, vector<1x128xf32>
    %480 = arith.addf %478, %479 : vector<1x128xf32>
    %c0_509 = arith.constant 0 : index
    %c0_510 = arith.constant 0 : index
    %c0_511 = arith.constant 0 : index
    %481 = vector.load %arg27[%c0_509, %c0_510, %c0_511] : memref<1x4x128xf32, #tpu.memory_space<vmem>>, vector<1x1x128xf32>
    %482 = vector.shape_cast %481 : vector<1x1x128xf32> to vector<1x128xf32>
    %483 = vector.shape_cast %480 : vector<1x128xf32> to vector<1x1x128xf32>
    tpu.vector_store %arg27[%c0_509, %c0_510, %c0_511], %483 {strides = array<i32>} : memref<1x4x128xf32, #tpu.memory_space<vmem>>, vector<1x1x128xf32>,
    %cst_512 = arith.constant 0.000000e+00 : f32
    %484 = vector.broadcast %cst_512 : f32 to vector<1x128xf32>
    %c0_513 = arith.constant 0 : index
    %c0_514 = arith.constant 0 : index
    %c0_515 = arith.constant 0 : index
    %485 = vector.load %arg35[%c0_513, %c0_514, %c0_515] : memref<1x4x128xf32, #tpu.memory_space<vmem>>, vector<1x1x128xf32>
    %486 = vector.shape_cast %485 : vector<1x1x128xf32> to vector<1x128xf32>
    %c0_516 = arith.constant 0 : index
    %c0_517 = arith.constant 0 : index
    %c0_518 = arith.constant 0 : index
    %487 = vector.load %arg16[%c0_516, %c0_517, %c0_518] : memref<3x128x128xf32, #tpu.memory_space<vmem>>, vector<1x128x128xf32>
    %488 = vector.shape_cast %487 : vector<1x128x128xf32> to vector<128x128xf32>
    %cst_519 = arith.constant dense<0.000000e+00> : vector<1x128xf32>
    %489 = tpu.matmul %486, %488, %cst_519 {dimension_numbers = #tpu.dot_dimension_numbers<[1], [0], [0], [1], [0, 0, 1, 1], [], []>} : vector<1x128xf32>, vector<128x128xf32>, vector<1x128xf32> -> vector<1x128xf32>
    %490 = arith.addf %484, %489 : vector<1x128xf32>
    %c0_520 = arith.constant 0 : index
    %c1_521 = arith.constant 1 : index
    %c0_522 = arith.constant 0 : index
    %491 = vector.load %arg35[%c0_520, %c1_521, %c0_522] : memref<1x4x128xf32, #tpu.memory_space<vmem>>, vector<1x1x128xf32>
    %492 = vector.shape_cast %491 : vector<1x1x128xf32> to vector<1x128xf32>
    %c1_523 = arith.constant 1 : index
    %c0_524 = arith.constant 0 : index
    %c0_525 = arith.constant 0 : index
    %493 = vector.load %arg16[%c1_523, %c0_524, %c0_525] : memref<3x128x128xf32, #tpu.memory_space<vmem>>, vector<1x128x128xf32>
    %494 = vector.shape_cast %493 : vector<1x128x128xf32> to vector<128x128xf32>
    %cst_526 = arith.constant dense<0.000000e+00> : vector<1x128xf32>
    %495 = tpu.matmul %492, %494, %cst_526 {dimension_numbers = #tpu.dot_dimension_numbers<[1], [0], [0], [1], [0, 0, 1, 1], [], []>} : vector<1x128xf32>, vector<128x128xf32>, vector<1x128xf32> -> vector<1x128xf32>
    %496 = arith.addf %490, %495 : vector<1x128xf32>
    %c0_527 = arith.constant 0 : index
    %c2_528 = arith.constant 2 : index
    %c0_529 = arith.constant 0 : index
    %497 = vector.load %arg35[%c0_527, %c2_528, %c0_529] : memref<1x4x128xf32, #tpu.memory_space<vmem>>, vector<1x1x128xf32>
    %498 = vector.shape_cast %497 : vector<1x1x128xf32> to vector<1x128xf32>
    %c2_530 = arith.constant 2 : index
    %c0_531 = arith.constant 0 : index
    %c0_532 = arith.constant 0 : index
    %499 = vector.load %arg16[%c2_530, %c0_531, %c0_532] : memref<3x128x128xf32, #tpu.memory_space<vmem>>, vector<1x128x128xf32>
    %500 = vector.shape_cast %499 : vector<1x128x128xf32> to vector<128x128xf32>
    %cst_533 = arith.constant dense<0.000000e+00> : vector<1x128xf32>
    %501 = tpu.matmul %498, %500, %cst_533 {dimension_numbers = #tpu.dot_dimension_numbers<[1], [0], [0], [1], [0, 0, 1, 1], [], []>} : vector<1x128xf32>, vector<128x128xf32>, vector<1x128xf32> -> vector<1x128xf32>
    %502 = arith.addf %496, %501 : vector<1x128xf32>
    %c0_534 = arith.constant 0 : index
    %c0_535 = arith.constant 0 : index
    %503 = vector.load %arg17[%c0_534, %c0_535] : memref<1x128xf32, #tpu.memory_space<vmem>>, vector<1x128xf32>
    %504 = arith.addf %502, %503 : vector<1x128xf32>
    %c0_536 = arith.constant 0 : index
    %c1_537 = arith.constant 1 : index
    %c0_538 = arith.constant 0 : index
    %505 = vector.load %arg27[%c0_536, %c1_537, %c0_538] : memref<1x4x128xf32, #tpu.memory_space<vmem>>, vector<1x1x128xf32>
    %506 = vector.shape_cast %505 : vector<1x1x128xf32> to vector<1x128xf32>
    %507 = vector.shape_cast %504 : vector<1x128xf32> to vector<1x1x128xf32>
    tpu.vector_store %arg27[%c0_536, %c1_537, %c0_538], %507 {strides = array<i32>} : memref<1x4x128xf32, #tpu.memory_space<vmem>>, vector<1x1x128xf32>,
    %cst_539 = arith.constant 0.000000e+00 : f32
    %508 = vector.broadcast %cst_539 : f32 to vector<1x128xf32>
    %c0_540 = arith.constant 0 : index
    %c1_541 = arith.constant 1 : index
    %c0_542 = arith.constant 0 : index
    %509 = vector.load %arg35[%c0_540, %c1_541, %c0_542] : memref<1x4x128xf32, #tpu.memory_space<vmem>>, vector<1x1x128xf32>
    %510 = vector.shape_cast %509 : vector<1x1x128xf32> to vector<1x128xf32>
    %c0_543 = arith.constant 0 : index
    %c0_544 = arith.constant 0 : index
    %c0_545 = arith.constant 0 : index
    %511 = vector.load %arg16[%c0_543, %c0_544, %c0_545] : memref<3x128x128xf32, #tpu.memory_space<vmem>>, vector<1x128x128xf32>
    %512 = vector.shape_cast %511 : vector<1x128x128xf32> to vector<128x128xf32>
    %cst_546 = arith.constant dense<0.000000e+00> : vector<1x128xf32>
    %513 = tpu.matmul %510, %512, %cst_546 {dimension_numbers = #tpu.dot_dimension_numbers<[1], [0], [0], [1], [0, 0, 1, 1], [], []>} : vector<1x128xf32>, vector<128x128xf32>, vector<1x128xf32> -> vector<1x128xf32>
    %514 = arith.addf %508, %513 : vector<1x128xf32>
    %c0_547 = arith.constant 0 : index
    %c2_548 = arith.constant 2 : index
    %c0_549 = arith.constant 0 : index
    %515 = vector.load %arg35[%c0_547, %c2_548, %c0_549] : memref<1x4x128xf32, #tpu.memory_space<vmem>>, vector<1x1x128xf32>
    %516 = vector.shape_cast %515 : vector<1x1x128xf32> to vector<1x128xf32>
    %c1_550 = arith.constant 1 : index
    %c0_551 = arith.constant 0 : index
    %c0_552 = arith.constant 0 : index
    %517 = vector.load %arg16[%c1_550, %c0_551, %c0_552] : memref<3x128x128xf32, #tpu.memory_space<vmem>>, vector<1x128x128xf32>
    %518 = vector.shape_cast %517 : vector<1x128x128xf32> to vector<128x128xf32>
    %cst_553 = arith.constant dense<0.000000e+00> : vector<1x128xf32>
    %519 = tpu.matmul %516, %518, %cst_553 {dimension_numbers = #tpu.dot_dimension_numbers<[1], [0], [0], [1], [0, 0, 1, 1], [], []>} : vector<1x128xf32>, vector<128x128xf32>, vector<1x128xf32> -> vector<1x128xf32>
    %520 = arith.addf %514, %519 : vector<1x128xf32>
    %c0_554 = arith.constant 0 : index
    %c3_555 = arith.constant 3 : index
    %c0_556 = arith.constant 0 : index
    %521 = vector.load %arg35[%c0_554, %c3_555, %c0_556] : memref<1x4x128xf32, #tpu.memory_space<vmem>>, vector<1x1x128xf32>
    %522 = vector.shape_cast %521 : vector<1x1x128xf32> to vector<1x128xf32>
    %c2_557 = arith.constant 2 : index
    %c0_558 = arith.constant 0 : index
    %c0_559 = arith.constant 0 : index
    %523 = vector.load %arg16[%c2_557, %c0_558, %c0_559] : memref<3x128x128xf32, #tpu.memory_space<vmem>>, vector<1x128x128xf32>
    %524 = vector.shape_cast %523 : vector<1x128x128xf32> to vector<128x128xf32>
    %cst_560 = arith.constant dense<0.000000e+00> : vector<1x128xf32>
    %525 = tpu.matmul %522, %524, %cst_560 {dimension_numbers = #tpu.dot_dimension_numbers<[1], [0], [0], [1], [0, 0, 1, 1], [], []>} : vector<1x128xf32>, vector<128x128xf32>, vector<1x128xf32> -> vector<1x128xf32>
    %526 = arith.addf %520, %525 : vector<1x128xf32>
    %c0_561 = arith.constant 0 : index
    %c0_562 = arith.constant 0 : index
    %527 = vector.load %arg17[%c0_561, %c0_562] : memref<1x128xf32, #tpu.memory_space<vmem>>, vector<1x128xf32>
    %528 = arith.addf %526, %527 : vector<1x128xf32>
    %c0_563 = arith.constant 0 : index
    %c2_564 = arith.constant 2 : index
    %c0_565 = arith.constant 0 : index
    %529 = vector.load %arg27[%c0_563, %c2_564, %c0_565] : memref<1x4x128xf32, #tpu.memory_space<vmem>>, vector<1x1x128xf32>
    %530 = vector.shape_cast %529 : vector<1x1x128xf32> to vector<1x128xf32>
    %531 = vector.shape_cast %528 : vector<1x128xf32> to vector<1x1x128xf32>
    tpu.vector_store %arg27[%c0_563, %c2_564, %c0_565], %531 {strides = array<i32>} : memref<1x4x128xf32, #tpu.memory_space<vmem>>, vector<1x1x128xf32>,
    %cst_566 = arith.constant 0.000000e+00 : f32
    %532 = vector.broadcast %cst_566 : f32 to vector<1x128xf32>
    %c0_567 = arith.constant 0 : index
    %c2_568 = arith.constant 2 : index
    %c0_569 = arith.constant 0 : index
    %533 = vector.load %arg35[%c0_567, %c2_568, %c0_569] : memref<1x4x128xf32, #tpu.memory_space<vmem>>, vector<1x1x128xf32>
    %534 = vector.shape_cast %533 : vector<1x1x128xf32> to vector<1x128xf32>
    %c0_570 = arith.constant 0 : index
    %c0_571 = arith.constant 0 : index
    %c0_572 = arith.constant 0 : index
    %535 = vector.load %arg16[%c0_570, %c0_571, %c0_572] : memref<3x128x128xf32, #tpu.memory_space<vmem>>, vector<1x128x128xf32>
    %536 = vector.shape_cast %535 : vector<1x128x128xf32> to vector<128x128xf32>
    %cst_573 = arith.constant dense<0.000000e+00> : vector<1x128xf32>
    %537 = tpu.matmul %534, %536, %cst_573 {dimension_numbers = #tpu.dot_dimension_numbers<[1], [0], [0], [1], [0, 0, 1, 1], [], []>} : vector<1x128xf32>, vector<128x128xf32>, vector<1x128xf32> -> vector<1x128xf32>
    %538 = arith.addf %532, %537 : vector<1x128xf32>
    %c0_574 = arith.constant 0 : index
    %c3_575 = arith.constant 3 : index
    %c0_576 = arith.constant 0 : index
    %539 = vector.load %arg35[%c0_574, %c3_575, %c0_576] : memref<1x4x128xf32, #tpu.memory_space<vmem>>, vector<1x1x128xf32>
    %540 = vector.shape_cast %539 : vector<1x1x128xf32> to vector<1x128xf32>
    %c1_577 = arith.constant 1 : index
    %c0_578 = arith.constant 0 : index
    %c0_579 = arith.constant 0 : index
    %541 = vector.load %arg16[%c1_577, %c0_578, %c0_579] : memref<3x128x128xf32, #tpu.memory_space<vmem>>, vector<1x128x128xf32>
    %542 = vector.shape_cast %541 : vector<1x128x128xf32> to vector<128x128xf32>
    %cst_580 = arith.constant dense<0.000000e+00> : vector<1x128xf32>
    %543 = tpu.matmul %540, %542, %cst_580 {dimension_numbers = #tpu.dot_dimension_numbers<[1], [0], [0], [1], [0, 0, 1, 1], [], []>} : vector<1x128xf32>, vector<128x128xf32>, vector<1x128xf32> -> vector<1x128xf32>
    %544 = arith.addf %538, %543 : vector<1x128xf32>
    %c0_581 = arith.constant 0 : index
    %c0_582 = arith.constant 0 : index
    %545 = vector.load %arg17[%c0_581, %c0_582] : memref<1x128xf32, #tpu.memory_space<vmem>>, vector<1x128xf32>
    %546 = arith.addf %544, %545 : vector<1x128xf32>
    %c0_583 = arith.constant 0 : index
    %c3_584 = arith.constant 3 : index
    %c0_585 = arith.constant 0 : index
    %547 = vector.load %arg27[%c0_583, %c3_584, %c0_585] : memref<1x4x128xf32, #tpu.memory_space<vmem>>, vector<1x1x128xf32>
    %548 = vector.shape_cast %547 : vector<1x1x128xf32> to vector<1x128xf32>
    %549 = vector.shape_cast %546 : vector<1x128xf32> to vector<1x1x128xf32>
    tpu.vector_store %arg27[%c0_583, %c3_584, %c0_585], %549 {strides = array<i32>} : memref<1x4x128xf32, #tpu.memory_space<vmem>>, vector<1x1x128xf32>,
    %c0_586 = arith.constant 0 : index
    %c0_587 = arith.constant 0 : index
    %c0_588 = arith.constant 0 : index
    %550 = vector.load %arg31[%c0_586, %c0_587, %c0_588] : memref<1x8x64xf32, #tpu.memory_space<vmem>>, vector<1x1x64xf32>
    %551 = vector.shape_cast %550 : vector<1x1x64xf32> to vector<1x64xf32>
    %c0_589 = arith.constant 0 : index
    %c0_590 = arith.constant 0 : index
    %c0_591 = arith.constant 0 : index
    %552 = vector.load %arg8[%c0_589, %c0_590, %c0_591] : memref<1x64x256xf32, #tpu.memory_space<vmem>>, vector<1x64x256xf32>
    %553 = vector.shape_cast %552 : vector<1x64x256xf32> to vector<64x256xf32>
    %cst_592 = arith.constant dense<0.000000e+00> : vector<1x256xf32>
    %554 = tpu.matmul %551, %553, %cst_592 {dimension_numbers = #tpu.dot_dimension_numbers<[1], [0], [0], [1], [0, 0, 1, 1], [], []>} : vector<1x64xf32>, vector<64x256xf32>, vector<1x256xf32> -> vector<1x256xf32>
    %c0_593 = arith.constant 0 : index
    %c0_594 = arith.constant 0 : index
    %555 = vector.load %arg9[%c0_593, %c0_594] : memref<1x256xf32, #tpu.memory_space<vmem>>, vector<1x256xf32>
    %556 = arith.addf %554, %555 : vector<1x256xf32>
    %c0_595 = arith.constant 0 : index
    %c0_596 = arith.constant 0 : index
    %c0_597 = arith.constant 0 : index
    %557 = vector.load %arg35[%c0_595, %c0_596, %c0_597] : memref<1x4x128xf32, #tpu.memory_space<vmem>>, vector<1x1x128xf32>
    %558 = vector.shape_cast %557 : vector<1x1x128xf32> to vector<1x128xf32>
    %c0_598 = arith.constant 0 : index
    %c0_599 = arith.constant 0 : index
    %559 = vector.load %arg24[%c0_598, %c0_599] : memref<128x256xf32, #tpu.memory_space<vmem>>, vector<128x256xf32>
    %cst_600 = arith.constant dense<0.000000e+00> : vector<1x256xf32>
    %560 = tpu.matmul %558, %559, %cst_600 {dimension_numbers = #tpu.dot_dimension_numbers<[1], [0], [0], [1], [0, 0, 1, 1], [], []>} : vector<1x128xf32>, vector<128x256xf32>, vector<1x256xf32> -> vector<1x256xf32>
    %561 = arith.addf %556, %560 : vector<1x256xf32>
    %c0_601 = arith.constant 0 : index
    %c0_602 = arith.constant 0 : index
    %c0_603 = arith.constant 0 : index
    %562 = vector.load %arg36[%c0_601, %c0_602, %c0_603] : memref<1x8x256xf32, #tpu.memory_space<vmem>>, vector<1x1x256xf32>
    %563 = vector.shape_cast %562 : vector<1x1x256xf32> to vector<1x256xf32>
    %564 = vector.shape_cast %561 : vector<1x256xf32> to vector<1x1x256xf32>
    tpu.vector_store %arg36[%c0_601, %c0_602, %c0_603], %564 {strides = array<i32>} : memref<1x8x256xf32, #tpu.memory_space<vmem>>, vector<1x1x256xf32>,
    %c0_604 = arith.constant 0 : index
    %c1_605 = arith.constant 1 : index
    %c0_606 = arith.constant 0 : index
    %565 = vector.load %arg31[%c0_604, %c1_605, %c0_606] : memref<1x8x64xf32, #tpu.memory_space<vmem>>, vector<1x1x64xf32>
    %566 = vector.shape_cast %565 : vector<1x1x64xf32> to vector<1x64xf32>
    %c0_607 = arith.constant 0 : index
    %c0_608 = arith.constant 0 : index
    %c0_609 = arith.constant 0 : index
    %567 = vector.load %arg8[%c0_607, %c0_608, %c0_609] : memref<1x64x256xf32, #tpu.memory_space<vmem>>, vector<1x64x256xf32>
    %568 = vector.shape_cast %567 : vector<1x64x256xf32> to vector<64x256xf32>
    %cst_610 = arith.constant dense<0.000000e+00> : vector<1x256xf32>
    %569 = tpu.matmul %566, %568, %cst_610 {dimension_numbers = #tpu.dot_dimension_numbers<[1], [0], [0], [1], [0, 0, 1, 1], [], []>} : vector<1x64xf32>, vector<64x256xf32>, vector<1x256xf32> -> vector<1x256xf32>
    %c0_611 = arith.constant 0 : index
    %c0_612 = arith.constant 0 : index
    %570 = vector.load %arg9[%c0_611, %c0_612] : memref<1x256xf32, #tpu.memory_space<vmem>>, vector<1x256xf32>
    %571 = arith.addf %569, %570 : vector<1x256xf32>
    %c0_613 = arith.constant 0 : index
    %c0_614 = arith.constant 0 : index
    %c0_615 = arith.constant 0 : index
    %572 = vector.load %arg35[%c0_613, %c0_614, %c0_615] : memref<1x4x128xf32, #tpu.memory_space<vmem>>, vector<1x1x128xf32>
    %573 = vector.shape_cast %572 : vector<1x1x128xf32> to vector<1x128xf32>
    %c0_616 = arith.constant 0 : index
    %c0_617 = arith.constant 0 : index
    %574 = vector.load %arg24[%c0_616, %c0_617] : memref<128x256xf32, #tpu.memory_space<vmem>>, vector<128x256xf32>
    %cst_618 = arith.constant dense<0.000000e+00> : vector<1x256xf32>
    %575 = tpu.matmul %573, %574, %cst_618 {dimension_numbers = #tpu.dot_dimension_numbers<[1], [0], [0], [1], [0, 0, 1, 1], [], []>} : vector<1x128xf32>, vector<128x256xf32>, vector<1x256xf32> -> vector<1x256xf32>
    %576 = arith.addf %571, %575 : vector<1x256xf32>
    %c0_619 = arith.constant 0 : index
    %c1_620 = arith.constant 1 : index
    %c0_621 = arith.constant 0 : index
    %577 = vector.load %arg36[%c0_619, %c1_620, %c0_621] : memref<1x8x256xf32, #tpu.memory_space<vmem>>, vector<1x1x256xf32>
    %578 = vector.shape_cast %577 : vector<1x1x256xf32> to vector<1x256xf32>
    %579 = vector.shape_cast %576 : vector<1x256xf32> to vector<1x1x256xf32>
    tpu.vector_store %arg36[%c0_619, %c1_620, %c0_621], %579 {strides = array<i32>} : memref<1x8x256xf32, #tpu.memory_space<vmem>>, vector<1x1x256xf32>,
    %c0_622 = arith.constant 0 : index
    %c2_623 = arith.constant 2 : index
    %c0_624 = arith.constant 0 : index
    %580 = vector.load %arg31[%c0_622, %c2_623, %c0_624] : memref<1x8x64xf32, #tpu.memory_space<vmem>>, vector<1x1x64xf32>
    %581 = vector.shape_cast %580 : vector<1x1x64xf32> to vector<1x64xf32>
    %c0_625 = arith.constant 0 : index
    %c0_626 = arith.constant 0 : index
    %c0_627 = arith.constant 0 : index
    %582 = vector.load %arg8[%c0_625, %c0_626, %c0_627] : memref<1x64x256xf32, #tpu.memory_space<vmem>>, vector<1x64x256xf32>
    %583 = vector.shape_cast %582 : vector<1x64x256xf32> to vector<64x256xf32>
    %cst_628 = arith.constant dense<0.000000e+00> : vector<1x256xf32>
    %584 = tpu.matmul %581, %583, %cst_628 {dimension_numbers = #tpu.dot_dimension_numbers<[1], [0], [0], [1], [0, 0, 1, 1], [], []>} : vector<1x64xf32>, vector<64x256xf32>, vector<1x256xf32> -> vector<1x256xf32>
    %c0_629 = arith.constant 0 : index
    %c0_630 = arith.constant 0 : index
    %585 = vector.load %arg9[%c0_629, %c0_630] : memref<1x256xf32, #tpu.memory_space<vmem>>, vector<1x256xf32>
    %586 = arith.addf %584, %585 : vector<1x256xf32>
    %c0_631 = arith.constant 0 : index
    %c1_632 = arith.constant 1 : index
    %c0_633 = arith.constant 0 : index
    %587 = vector.load %arg35[%c0_631, %c1_632, %c0_633] : memref<1x4x128xf32, #tpu.memory_space<vmem>>, vector<1x1x128xf32>
    %588 = vector.shape_cast %587 : vector<1x1x128xf32> to vector<1x128xf32>
    %c0_634 = arith.constant 0 : index
    %c0_635 = arith.constant 0 : index
    %589 = vector.load %arg24[%c0_634, %c0_635] : memref<128x256xf32, #tpu.memory_space<vmem>>, vector<128x256xf32>
    %cst_636 = arith.constant dense<0.000000e+00> : vector<1x256xf32>
    %590 = tpu.matmul %588, %589, %cst_636 {dimension_numbers = #tpu.dot_dimension_numbers<[1], [0], [0], [1], [0, 0, 1, 1], [], []>} : vector<1x128xf32>, vector<128x256xf32>, vector<1x256xf32> -> vector<1x256xf32>
    %591 = arith.addf %586, %590 : vector<1x256xf32>
    %c0_637 = arith.constant 0 : index
    %c2_638 = arith.constant 2 : index
    %c0_639 = arith.constant 0 : index
    %592 = vector.load %arg36[%c0_637, %c2_638, %c0_639] : memref<1x8x256xf32, #tpu.memory_space<vmem>>, vector<1x1x256xf32>
    %593 = vector.shape_cast %592 : vector<1x1x256xf32> to vector<1x256xf32>
    %594 = vector.shape_cast %591 : vector<1x256xf32> to vector<1x1x256xf32>
    tpu.vector_store %arg36[%c0_637, %c2_638, %c0_639], %594 {strides = array<i32>} : memref<1x8x256xf32, #tpu.memory_space<vmem>>, vector<1x1x256xf32>,
    %c0_640 = arith.constant 0 : index
    %c3_641 = arith.constant 3 : index
    %c0_642 = arith.constant 0 : index
    %595 = vector.load %arg31[%c0_640, %c3_641, %c0_642] : memref<1x8x64xf32, #tpu.memory_space<vmem>>, vector<1x1x64xf32>
    %596 = vector.shape_cast %595 : vector<1x1x64xf32> to vector<1x64xf32>
    %c0_643 = arith.constant 0 : index
    %c0_644 = arith.constant 0 : index
    %c0_645 = arith.constant 0 : index
    %597 = vector.load %arg8[%c0_643, %c0_644, %c0_645] : memref<1x64x256xf32, #tpu.memory_space<vmem>>, vector<1x64x256xf32>
    %598 = vector.shape_cast %597 : vector<1x64x256xf32> to vector<64x256xf32>
    %cst_646 = arith.constant dense<0.000000e+00> : vector<1x256xf32>
    %599 = tpu.matmul %596, %598, %cst_646 {dimension_numbers = #tpu.dot_dimension_numbers<[1], [0], [0], [1], [0, 0, 1, 1], [], []>} : vector<1x64xf32>, vector<64x256xf32>, vector<1x256xf32> -> vector<1x256xf32>
    %c0_647 = arith.constant 0 : index
    %c0_648 = arith.constant 0 : index
    %600 = vector.load %arg9[%c0_647, %c0_648] : memref<1x256xf32, #tpu.memory_space<vmem>>, vector<1x256xf32>
    %601 = arith.addf %599, %600 : vector<1x256xf32>
    %c0_649 = arith.constant 0 : index
    %c1_650 = arith.constant 1 : index
    %c0_651 = arith.constant 0 : index
    %602 = vector.load %arg35[%c0_649, %c1_650, %c0_651] : memref<1x4x128xf32, #tpu.memory_space<vmem>>, vector<1x1x128xf32>
    %603 = vector.shape_cast %602 : vector<1x1x128xf32> to vector<1x128xf32>
    %c0_652 = arith.constant 0 : index
    %c0_653 = arith.constant 0 : index
    %604 = vector.load %arg24[%c0_652, %c0_653] : memref<128x256xf32, #tpu.memory_space<vmem>>, vector<128x256xf32>
    %cst_654 = arith.constant dense<0.000000e+00> : vector<1x256xf32>
    %605 = tpu.matmul %603, %604, %cst_654 {dimension_numbers = #tpu.dot_dimension_numbers<[1], [0], [0], [1], [0, 0, 1, 1], [], []>} : vector<1x128xf32>, vector<128x256xf32>, vector<1x256xf32> -> vector<1x256xf32>
    %606 = arith.addf %601, %605 : vector<1x256xf32>
    %c0_655 = arith.constant 0 : index
    %c3_656 = arith.constant 3 : index
    %c0_657 = arith.constant 0 : index
    %607 = vector.load %arg36[%c0_655, %c3_656, %c0_657] : memref<1x8x256xf32, #tpu.memory_space<vmem>>, vector<1x1x256xf32>
    %608 = vector.shape_cast %607 : vector<1x1x256xf32> to vector<1x256xf32>
    %609 = vector.shape_cast %606 : vector<1x256xf32> to vector<1x1x256xf32>
    tpu.vector_store %arg36[%c0_655, %c3_656, %c0_657], %609 {strides = array<i32>} : memref<1x8x256xf32, #tpu.memory_space<vmem>>, vector<1x1x256xf32>,
    %c0_658 = arith.constant 0 : index
    %c4_659 = arith.constant 4 : index
    %c0_660 = arith.constant 0 : index
    %610 = vector.load %arg31[%c0_658, %c4_659, %c0_660] : memref<1x8x64xf32, #tpu.memory_space<vmem>>, vector<1x1x64xf32>
    %611 = vector.shape_cast %610 : vector<1x1x64xf32> to vector<1x64xf32>
    %c0_661 = arith.constant 0 : index
    %c0_662 = arith.constant 0 : index
    %c0_663 = arith.constant 0 : index
    %612 = vector.load %arg8[%c0_661, %c0_662, %c0_663] : memref<1x64x256xf32, #tpu.memory_space<vmem>>, vector<1x64x256xf32>
    %613 = vector.shape_cast %612 : vector<1x64x256xf32> to vector<64x256xf32>
    %cst_664 = arith.constant dense<0.000000e+00> : vector<1x256xf32>
    %614 = tpu.matmul %611, %613, %cst_664 {dimension_numbers = #tpu.dot_dimension_numbers<[1], [0], [0], [1], [0, 0, 1, 1], [], []>} : vector<1x64xf32>, vector<64x256xf32>, vector<1x256xf32> -> vector<1x256xf32>
    %c0_665 = arith.constant 0 : index
    %c0_666 = arith.constant 0 : index
    %615 = vector.load %arg9[%c0_665, %c0_666] : memref<1x256xf32, #tpu.memory_space<vmem>>, vector<1x256xf32>
    %616 = arith.addf %614, %615 : vector<1x256xf32>
    %c0_667 = arith.constant 0 : index
    %c2_668 = arith.constant 2 : index
    %c0_669 = arith.constant 0 : index
    %617 = vector.load %arg35[%c0_667, %c2_668, %c0_669] : memref<1x4x128xf32, #tpu.memory_space<vmem>>, vector<1x1x128xf32>
    %618 = vector.shape_cast %617 : vector<1x1x128xf32> to vector<1x128xf32>
    %c0_670 = arith.constant 0 : index
    %c0_671 = arith.constant 0 : index
    %619 = vector.load %arg24[%c0_670, %c0_671] : memref<128x256xf32, #tpu.memory_space<vmem>>, vector<128x256xf32>
    %cst_672 = arith.constant dense<0.000000e+00> : vector<1x256xf32>
    %620 = tpu.matmul %618, %619, %cst_672 {dimension_numbers = #tpu.dot_dimension_numbers<[1], [0], [0], [1], [0, 0, 1, 1], [], []>} : vector<1x128xf32>, vector<128x256xf32>, vector<1x256xf32> -> vector<1x256xf32>
    %621 = arith.addf %616, %620 : vector<1x256xf32>
    %c0_673 = arith.constant 0 : index
    %c4_674 = arith.constant 4 : index
    %c0_675 = arith.constant 0 : index
    %622 = vector.load %arg36[%c0_673, %c4_674, %c0_675] : memref<1x8x256xf32, #tpu.memory_space<vmem>>, vector<1x1x256xf32>
    %623 = vector.shape_cast %622 : vector<1x1x256xf32> to vector<1x256xf32>
    %624 = vector.shape_cast %621 : vector<1x256xf32> to vector<1x1x256xf32>
    tpu.vector_store %arg36[%c0_673, %c4_674, %c0_675], %624 {strides = array<i32>} : memref<1x8x256xf32, #tpu.memory_space<vmem>>, vector<1x1x256xf32>,
    %c0_676 = arith.constant 0 : index
    %c5_677 = arith.constant 5 : index
    %c0_678 = arith.constant 0 : index
    %625 = vector.load %arg31[%c0_676, %c5_677, %c0_678] : memref<1x8x64xf32, #tpu.memory_space<vmem>>, vector<1x1x64xf32>
    %626 = vector.shape_cast %625 : vector<1x1x64xf32> to vector<1x64xf32>
    %c0_679 = arith.constant 0 : index
    %c0_680 = arith.constant 0 : index
    %c0_681 = arith.constant 0 : index
    %627 = vector.load %arg8[%c0_679, %c0_680, %c0_681] : memref<1x64x256xf32, #tpu.memory_space<vmem>>, vector<1x64x256xf32>
    %628 = vector.shape_cast %627 : vector<1x64x256xf32> to vector<64x256xf32>
    %cst_682 = arith.constant dense<0.000000e+00> : vector<1x256xf32>
    %629 = tpu.matmul %626, %628, %cst_682 {dimension_numbers = #tpu.dot_dimension_numbers<[1], [0], [0], [1], [0, 0, 1, 1], [], []>} : vector<1x64xf32>, vector<64x256xf32>, vector<1x256xf32> -> vector<1x256xf32>
    %c0_683 = arith.constant 0 : index
    %c0_684 = arith.constant 0 : index
    %630 = vector.load %arg9[%c0_683, %c0_684] : memref<1x256xf32, #tpu.memory_space<vmem>>, vector<1x256xf32>
    %631 = arith.addf %629, %630 : vector<1x256xf32>
    %c0_685 = arith.constant 0 : index
    %c2_686 = arith.constant 2 : index
    %c0_687 = arith.constant 0 : index
    %632 = vector.load %arg35[%c0_685, %c2_686, %c0_687] : memref<1x4x128xf32, #tpu.memory_space<vmem>>, vector<1x1x128xf32>
    %633 = vector.shape_cast %632 : vector<1x1x128xf32> to vector<1x128xf32>
    %c0_688 = arith.constant 0 : index
    %c0_689 = arith.constant 0 : index
    %634 = vector.load %arg24[%c0_688, %c0_689] : memref<128x256xf32, #tpu.memory_space<vmem>>, vector<128x256xf32>
    %cst_690 = arith.constant dense<0.000000e+00> : vector<1x256xf32>
    %635 = tpu.matmul %633, %634, %cst_690 {dimension_numbers = #tpu.dot_dimension_numbers<[1], [0], [0], [1], [0, 0, 1, 1], [], []>} : vector<1x128xf32>, vector<128x256xf32>, vector<1x256xf32> -> vector<1x256xf32>
    %636 = arith.addf %631, %635 : vector<1x256xf32>
    %c0_691 = arith.constant 0 : index
    %c5_692 = arith.constant 5 : index
    %c0_693 = arith.constant 0 : index
    %637 = vector.load %arg36[%c0_691, %c5_692, %c0_693] : memref<1x8x256xf32, #tpu.memory_space<vmem>>, vector<1x1x256xf32>
    %638 = vector.shape_cast %637 : vector<1x1x256xf32> to vector<1x256xf32>
    %639 = vector.shape_cast %636 : vector<1x256xf32> to vector<1x1x256xf32>
    tpu.vector_store %arg36[%c0_691, %c5_692, %c0_693], %639 {strides = array<i32>} : memref<1x8x256xf32, #tpu.memory_space<vmem>>, vector<1x1x256xf32>,
    %c0_694 = arith.constant 0 : index
    %c6_695 = arith.constant 6 : index
    %c0_696 = arith.constant 0 : index
    %640 = vector.load %arg31[%c0_694, %c6_695, %c0_696] : memref<1x8x64xf32, #tpu.memory_space<vmem>>, vector<1x1x64xf32>
    %641 = vector.shape_cast %640 : vector<1x1x64xf32> to vector<1x64xf32>
    %c0_697 = arith.constant 0 : index
    %c0_698 = arith.constant 0 : index
    %c0_699 = arith.constant 0 : index
    %642 = vector.load %arg8[%c0_697, %c0_698, %c0_699] : memref<1x64x256xf32, #tpu.memory_space<vmem>>, vector<1x64x256xf32>
    %643 = vector.shape_cast %642 : vector<1x64x256xf32> to vector<64x256xf32>
    %cst_700 = arith.constant dense<0.000000e+00> : vector<1x256xf32>
    %644 = tpu.matmul %641, %643, %cst_700 {dimension_numbers = #tpu.dot_dimension_numbers<[1], [0], [0], [1], [0, 0, 1, 1], [], []>} : vector<1x64xf32>, vector<64x256xf32>, vector<1x256xf32> -> vector<1x256xf32>
    %c0_701 = arith.constant 0 : index
    %c0_702 = arith.constant 0 : index
    %645 = vector.load %arg9[%c0_701, %c0_702] : memref<1x256xf32, #tpu.memory_space<vmem>>, vector<1x256xf32>
    %646 = arith.addf %644, %645 : vector<1x256xf32>
    %c0_703 = arith.constant 0 : index
    %c3_704 = arith.constant 3 : index
    %c0_705 = arith.constant 0 : index
    %647 = vector.load %arg35[%c0_703, %c3_704, %c0_705] : memref<1x4x128xf32, #tpu.memory_space<vmem>>, vector<1x1x128xf32>
    %648 = vector.shape_cast %647 : vector<1x1x128xf32> to vector<1x128xf32>
    %c0_706 = arith.constant 0 : index
    %c0_707 = arith.constant 0 : index
    %649 = vector.load %arg24[%c0_706, %c0_707] : memref<128x256xf32, #tpu.memory_space<vmem>>, vector<128x256xf32>
    %cst_708 = arith.constant dense<0.000000e+00> : vector<1x256xf32>
    %650 = tpu.matmul %648, %649, %cst_708 {dimension_numbers = #tpu.dot_dimension_numbers<[1], [0], [0], [1], [0, 0, 1, 1], [], []>} : vector<1x128xf32>, vector<128x256xf32>, vector<1x256xf32> -> vector<1x256xf32>
    %651 = arith.addf %646, %650 : vector<1x256xf32>
    %c0_709 = arith.constant 0 : index
    %c6_710 = arith.constant 6 : index
    %c0_711 = arith.constant 0 : index
    %652 = vector.load %arg36[%c0_709, %c6_710, %c0_711] : memref<1x8x256xf32, #tpu.memory_space<vmem>>, vector<1x1x256xf32>
    %653 = vector.shape_cast %652 : vector<1x1x256xf32> to vector<1x256xf32>
    %654 = vector.shape_cast %651 : vector<1x256xf32> to vector<1x1x256xf32>
    tpu.vector_store %arg36[%c0_709, %c6_710, %c0_711], %654 {strides = array<i32>} : memref<1x8x256xf32, #tpu.memory_space<vmem>>, vector<1x1x256xf32>,
    %c0_712 = arith.constant 0 : index
    %c7_713 = arith.constant 7 : index
    %c0_714 = arith.constant 0 : index
    %655 = vector.load %arg31[%c0_712, %c7_713, %c0_714] : memref<1x8x64xf32, #tpu.memory_space<vmem>>, vector<1x1x64xf32>
    %656 = vector.shape_cast %655 : vector<1x1x64xf32> to vector<1x64xf32>
    %c0_715 = arith.constant 0 : index
    %c0_716 = arith.constant 0 : index
    %c0_717 = arith.constant 0 : index
    %657 = vector.load %arg8[%c0_715, %c0_716, %c0_717] : memref<1x64x256xf32, #tpu.memory_space<vmem>>, vector<1x64x256xf32>
    %658 = vector.shape_cast %657 : vector<1x64x256xf32> to vector<64x256xf32>
    %cst_718 = arith.constant dense<0.000000e+00> : vector<1x256xf32>
    %659 = tpu.matmul %656, %658, %cst_718 {dimension_numbers = #tpu.dot_dimension_numbers<[1], [0], [0], [1], [0, 0, 1, 1], [], []>} : vector<1x64xf32>, vector<64x256xf32>, vector<1x256xf32> -> vector<1x256xf32>
    %c0_719 = arith.constant 0 : index
    %c0_720 = arith.constant 0 : index
    %660 = vector.load %arg9[%c0_719, %c0_720] : memref<1x256xf32, #tpu.memory_space<vmem>>, vector<1x256xf32>
    %661 = arith.addf %659, %660 : vector<1x256xf32>
    %c0_721 = arith.constant 0 : index
    %c3_722 = arith.constant 3 : index
    %c0_723 = arith.constant 0 : index
    %662 = vector.load %arg35[%c0_721, %c3_722, %c0_723] : memref<1x4x128xf32, #tpu.memory_space<vmem>>, vector<1x1x128xf32>
    %663 = vector.shape_cast %662 : vector<1x1x128xf32> to vector<1x128xf32>
    %c0_724 = arith.constant 0 : index
    %c0_725 = arith.constant 0 : index
    %664 = vector.load %arg24[%c0_724, %c0_725] : memref<128x256xf32, #tpu.memory_space<vmem>>, vector<128x256xf32>
    %cst_726 = arith.constant dense<0.000000e+00> : vector<1x256xf32>
    %665 = tpu.matmul %663, %664, %cst_726 {dimension_numbers = #tpu.dot_dimension_numbers<[1], [0], [0], [1], [0, 0, 1, 1], [], []>} : vector<1x128xf32>, vector<128x256xf32>, vector<1x256xf32> -> vector<1x256xf32>
    %666 = arith.addf %661, %665 : vector<1x256xf32>
    %c0_727 = arith.constant 0 : index
    %c7_728 = arith.constant 7 : index
    %c0_729 = arith.constant 0 : index
    %667 = vector.load %arg36[%c0_727, %c7_728, %c0_729] : memref<1x8x256xf32, #tpu.memory_space<vmem>>, vector<1x1x256xf32>
    %668 = vector.shape_cast %667 : vector<1x1x256xf32> to vector<1x256xf32>
    %669 = vector.shape_cast %666 : vector<1x256xf32> to vector<1x1x256xf32>
    tpu.vector_store %arg36[%c0_727, %c7_728, %c0_729], %669 {strides = array<i32>} : memref<1x8x256xf32, #tpu.memory_space<vmem>>, vector<1x1x256xf32>,
    %cst_730 = arith.constant 0.000000e+00 : f32
    %670 = vector.broadcast %cst_730 : f32 to vector<1x256xf32>
    %c0_731 = arith.constant 0 : index
    %c0_732 = arith.constant 0 : index
    %c0_733 = arith.constant 0 : index
    %671 = vector.load %arg36[%c0_731, %c0_732, %c0_733] : memref<1x8x256xf32, #tpu.memory_space<vmem>>, vector<1x1x256xf32>
    %672 = vector.shape_cast %671 : vector<1x1x256xf32> to vector<1x256xf32>
    %c1_734 = arith.constant 1 : index
    %c0_735 = arith.constant 0 : index
    %c0_736 = arith.constant 0 : index
    %673 = vector.load %arg14[%c1_734, %c0_735, %c0_736] : memref<3x256x256xf32, #tpu.memory_space<vmem>>, vector<1x256x256xf32>
    %674 = vector.shape_cast %673 : vector<1x256x256xf32> to vector<256x256xf32>
    %cst_737 = arith.constant dense<0.000000e+00> : vector<1x256xf32>
    %675 = tpu.matmul %672, %674, %cst_737 {dimension_numbers = #tpu.dot_dimension_numbers<[1], [0], [0], [1], [0, 0, 1, 1], [], []>} : vector<1x256xf32>, vector<256x256xf32>, vector<1x256xf32> -> vector<1x256xf32>
    %676 = arith.addf %670, %675 : vector<1x256xf32>
    %c0_738 = arith.constant 0 : index
    %c1_739 = arith.constant 1 : index
    %c0_740 = arith.constant 0 : index
    %677 = vector.load %arg36[%c0_738, %c1_739, %c0_740] : memref<1x8x256xf32, #tpu.memory_space<vmem>>, vector<1x1x256xf32>
    %678 = vector.shape_cast %677 : vector<1x1x256xf32> to vector<1x256xf32>
    %c2_741 = arith.constant 2 : index
    %c0_742 = arith.constant 0 : index
    %c0_743 = arith.constant 0 : index
    %679 = vector.load %arg14[%c2_741, %c0_742, %c0_743] : memref<3x256x256xf32, #tpu.memory_space<vmem>>, vector<1x256x256xf32>
    %680 = vector.shape_cast %679 : vector<1x256x256xf32> to vector<256x256xf32>
    %cst_744 = arith.constant dense<0.000000e+00> : vector<1x256xf32>
    %681 = tpu.matmul %678, %680, %cst_744 {dimension_numbers = #tpu.dot_dimension_numbers<[1], [0], [0], [1], [0, 0, 1, 1], [], []>} : vector<1x256xf32>, vector<256x256xf32>, vector<1x256xf32> -> vector<1x256xf32>
    %682 = arith.addf %676, %681 : vector<1x256xf32>
    %c0_745 = arith.constant 0 : index
    %c0_746 = arith.constant 0 : index
    %683 = vector.load %arg15[%c0_745, %c0_746] : memref<1x256xf32, #tpu.memory_space<vmem>>, vector<1x256xf32>
    %684 = arith.addf %682, %683 : vector<1x256xf32>
    %c0_747 = arith.constant 0 : index
    %c0_748 = arith.constant 0 : index
    %c0_749 = arith.constant 0 : index
    %685 = vector.load %arg26[%c0_747, %c0_748, %c0_749] : memref<1x8x256xf32, #tpu.memory_space<vmem>>, vector<1x1x256xf32>
    %686 = vector.shape_cast %685 : vector<1x1x256xf32> to vector<1x256xf32>
    %687 = vector.shape_cast %684 : vector<1x256xf32> to vector<1x1x256xf32>
    tpu.vector_store %arg26[%c0_747, %c0_748, %c0_749], %687 {strides = array<i32>} : memref<1x8x256xf32, #tpu.memory_space<vmem>>, vector<1x1x256xf32>,
    %cst_750 = arith.constant 0.000000e+00 : f32
    %688 = vector.broadcast %cst_750 : f32 to vector<1x256xf32>
    %c0_751 = arith.constant 0 : index
    %c0_752 = arith.constant 0 : index
    %c0_753 = arith.constant 0 : index
    %689 = vector.load %arg36[%c0_751, %c0_752, %c0_753] : memref<1x8x256xf32, #tpu.memory_space<vmem>>, vector<1x1x256xf32>
    %690 = vector.shape_cast %689 : vector<1x1x256xf32> to vector<1x256xf32>
    %c0_754 = arith.constant 0 : index
    %c0_755 = arith.constant 0 : index
    %c0_756 = arith.constant 0 : index
    %691 = vector.load %arg14[%c0_754, %c0_755, %c0_756] : memref<3x256x256xf32, #tpu.memory_space<vmem>>, vector<1x256x256xf32>
    %692 = vector.shape_cast %691 : vector<1x256x256xf32> to vector<256x256xf32>
    %cst_757 = arith.constant dense<0.000000e+00> : vector<1x256xf32>
    %693 = tpu.matmul %690, %692, %cst_757 {dimension_numbers = #tpu.dot_dimension_numbers<[1], [0], [0], [1], [0, 0, 1, 1], [], []>} : vector<1x256xf32>, vector<256x256xf32>, vector<1x256xf32> -> vector<1x256xf32>
    %694 = arith.addf %688, %693 : vector<1x256xf32>
    %c0_758 = arith.constant 0 : index
    %c1_759 = arith.constant 1 : index
    %c0_760 = arith.constant 0 : index
    %695 = vector.load %arg36[%c0_758, %c1_759, %c0_760] : memref<1x8x256xf32, #tpu.memory_space<vmem>>, vector<1x1x256xf32>
    %696 = vector.shape_cast %695 : vector<1x1x256xf32> to vector<1x256xf32>
    %c1_761 = arith.constant 1 : index
    %c0_762 = arith.constant 0 : index
    %c0_763 = arith.constant 0 : index
    %697 = vector.load %arg14[%c1_761, %c0_762, %c0_763] : memref<3x256x256xf32, #tpu.memory_space<vmem>>, vector<1x256x256xf32>
    %698 = vector.shape_cast %697 : vector<1x256x256xf32> to vector<256x256xf32>
    %cst_764 = arith.constant dense<0.000000e+00> : vector<1x256xf32>
    %699 = tpu.matmul %696, %698, %cst_764 {dimension_numbers = #tpu.dot_dimension_numbers<[1], [0], [0], [1], [0, 0, 1, 1], [], []>} : vector<1x256xf32>, vector<256x256xf32>, vector<1x256xf32> -> vector<1x256xf32>
    %700 = arith.addf %694, %699 : vector<1x256xf32>
    %c0_765 = arith.constant 0 : index
    %c2_766 = arith.constant 2 : index
    %c0_767 = arith.constant 0 : index
    %701 = vector.load %arg36[%c0_765, %c2_766, %c0_767] : memref<1x8x256xf32, #tpu.memory_space<vmem>>, vector<1x1x256xf32>
    %702 = vector.shape_cast %701 : vector<1x1x256xf32> to vector<1x256xf32>
    %c2_768 = arith.constant 2 : index
    %c0_769 = arith.constant 0 : index
    %c0_770 = arith.constant 0 : index
    %703 = vector.load %arg14[%c2_768, %c0_769, %c0_770] : memref<3x256x256xf32, #tpu.memory_space<vmem>>, vector<1x256x256xf32>
    %704 = vector.shape_cast %703 : vector<1x256x256xf32> to vector<256x256xf32>
    %cst_771 = arith.constant dense<0.000000e+00> : vector<1x256xf32>
    %705 = tpu.matmul %702, %704, %cst_771 {dimension_numbers = #tpu.dot_dimension_numbers<[1], [0], [0], [1], [0, 0, 1, 1], [], []>} : vector<1x256xf32>, vector<256x256xf32>, vector<1x256xf32> -> vector<1x256xf32>
    %706 = arith.addf %700, %705 : vector<1x256xf32>
    %c0_772 = arith.constant 0 : index
    %c0_773 = arith.constant 0 : index
    %707 = vector.load %arg15[%c0_772, %c0_773] : memref<1x256xf32, #tpu.memory_space<vmem>>, vector<1x256xf32>
    %708 = arith.addf %706, %707 : vector<1x256xf32>
    %c0_774 = arith.constant 0 : index
    %c1_775 = arith.constant 1 : index
    %c0_776 = arith.constant 0 : index
    %709 = vector.load %arg26[%c0_774, %c1_775, %c0_776] : memref<1x8x256xf32, #tpu.memory_space<vmem>>, vector<1x1x256xf32>
    %710 = vector.shape_cast %709 : vector<1x1x256xf32> to vector<1x256xf32>
    %711 = vector.shape_cast %708 : vector<1x256xf32> to vector<1x1x256xf32>
    tpu.vector_store %arg26[%c0_774, %c1_775, %c0_776], %711 {strides = array<i32>} : memref<1x8x256xf32, #tpu.memory_space<vmem>>, vector<1x1x256xf32>,
    %cst_777 = arith.constant 0.000000e+00 : f32
    %712 = vector.broadcast %cst_777 : f32 to vector<1x256xf32>
    %c0_778 = arith.constant 0 : index
    %c1_779 = arith.constant 1 : index
    %c0_780 = arith.constant 0 : index
    %713 = vector.load %arg36[%c0_778, %c1_779, %c0_780] : memref<1x8x256xf32, #tpu.memory_space<vmem>>, vector<1x1x256xf32>
    %714 = vector.shape_cast %713 : vector<1x1x256xf32> to vector<1x256xf32>
    %c0_781 = arith.constant 0 : index
    %c0_782 = arith.constant 0 : index
    %c0_783 = arith.constant 0 : index
    %715 = vector.load %arg14[%c0_781, %c0_782, %c0_783] : memref<3x256x256xf32, #tpu.memory_space<vmem>>, vector<1x256x256xf32>
    %716 = vector.shape_cast %715 : vector<1x256x256xf32> to vector<256x256xf32>
    %cst_784 = arith.constant dense<0.000000e+00> : vector<1x256xf32>
    %717 = tpu.matmul %714, %716, %cst_784 {dimension_numbers = #tpu.dot_dimension_numbers<[1], [0], [0], [1], [0, 0, 1, 1], [], []>} : vector<1x256xf32>, vector<256x256xf32>, vector<1x256xf32> -> vector<1x256xf32>
    %718 = arith.addf %712, %717 : vector<1x256xf32>
    %c0_785 = arith.constant 0 : index
    %c2_786 = arith.constant 2 : index
    %c0_787 = arith.constant 0 : index
    %719 = vector.load %arg36[%c0_785, %c2_786, %c0_787] : memref<1x8x256xf32, #tpu.memory_space<vmem>>, vector<1x1x256xf32>
    %720 = vector.shape_cast %719 : vector<1x1x256xf32> to vector<1x256xf32>
    %c1_788 = arith.constant 1 : index
    %c0_789 = arith.constant 0 : index
    %c0_790 = arith.constant 0 : index
    %721 = vector.load %arg14[%c1_788, %c0_789, %c0_790] : memref<3x256x256xf32, #tpu.memory_space<vmem>>, vector<1x256x256xf32>
    %722 = vector.shape_cast %721 : vector<1x256x256xf32> to vector<256x256xf32>
    %cst_791 = arith.constant dense<0.000000e+00> : vector<1x256xf32>
    %723 = tpu.matmul %720, %722, %cst_791 {dimension_numbers = #tpu.dot_dimension_numbers<[1], [0], [0], [1], [0, 0, 1, 1], [], []>} : vector<1x256xf32>, vector<256x256xf32>, vector<1x256xf32> -> vector<1x256xf32>
    %724 = arith.addf %718, %723 : vector<1x256xf32>
    %c0_792 = arith.constant 0 : index
    %c3_793 = arith.constant 3 : index
    %c0_794 = arith.constant 0 : index
    %725 = vector.load %arg36[%c0_792, %c3_793, %c0_794] : memref<1x8x256xf32, #tpu.memory_space<vmem>>, vector<1x1x256xf32>
    %726 = vector.shape_cast %725 : vector<1x1x256xf32> to vector<1x256xf32>
    %c2_795 = arith.constant 2 : index
    %c0_796 = arith.constant 0 : index
    %c0_797 = arith.constant 0 : index
    %727 = vector.load %arg14[%c2_795, %c0_796, %c0_797] : memref<3x256x256xf32, #tpu.memory_space<vmem>>, vector<1x256x256xf32>
    %728 = vector.shape_cast %727 : vector<1x256x256xf32> to vector<256x256xf32>
    %cst_798 = arith.constant dense<0.000000e+00> : vector<1x256xf32>
    %729 = tpu.matmul %726, %728, %cst_798 {dimension_numbers = #tpu.dot_dimension_numbers<[1], [0], [0], [1], [0, 0, 1, 1], [], []>} : vector<1x256xf32>, vector<256x256xf32>, vector<1x256xf32> -> vector<1x256xf32>
    %730 = arith.addf %724, %729 : vector<1x256xf32>
    %c0_799 = arith.constant 0 : index
    %c0_800 = arith.constant 0 : index
    %731 = vector.load %arg15[%c0_799, %c0_800] : memref<1x256xf32, #tpu.memory_space<vmem>>, vector<1x256xf32>
    %732 = arith.addf %730, %731 : vector<1x256xf32>
    %c0_801 = arith.constant 0 : index
    %c2_802 = arith.constant 2 : index
    %c0_803 = arith.constant 0 : index
    %733 = vector.load %arg26[%c0_801, %c2_802, %c0_803] : memref<1x8x256xf32, #tpu.memory_space<vmem>>, vector<1x1x256xf32>
    %734 = vector.shape_cast %733 : vector<1x1x256xf32> to vector<1x256xf32>
    %735 = vector.shape_cast %732 : vector<1x256xf32> to vector<1x1x256xf32>
    tpu.vector_store %arg26[%c0_801, %c2_802, %c0_803], %735 {strides = array<i32>} : memref<1x8x256xf32, #tpu.memory_space<vmem>>, vector<1x1x256xf32>,
    %cst_804 = arith.constant 0.000000e+00 : f32
    %736 = vector.broadcast %cst_804 : f32 to vector<1x256xf32>
    %c0_805 = arith.constant 0 : index
    %c2_806 = arith.constant 2 : index
    %c0_807 = arith.constant 0 : index
    %737 = vector.load %arg36[%c0_805, %c2_806, %c0_807] : memref<1x8x256xf32, #tpu.memory_space<vmem>>, vector<1x1x256xf32>
    %738 = vector.shape_cast %737 : vector<1x1x256xf32> to vector<1x256xf32>
    %c0_808 = arith.constant 0 : index
    %c0_809 = arith.constant 0 : index
    %c0_810 = arith.constant 0 : index
    %739 = vector.load %arg14[%c0_808, %c0_809, %c0_810] : memref<3x256x256xf32, #tpu.memory_space<vmem>>, vector<1x256x256xf32>
    %740 = vector.shape_cast %739 : vector<1x256x256xf32> to vector<256x256xf32>
    %cst_811 = arith.constant dense<0.000000e+00> : vector<1x256xf32>
    %741 = tpu.matmul %738, %740, %cst_811 {dimension_numbers = #tpu.dot_dimension_numbers<[1], [0], [0], [1], [0, 0, 1, 1], [], []>} : vector<1x256xf32>, vector<256x256xf32>, vector<1x256xf32> -> vector<1x256xf32>
    %742 = arith.addf %736, %741 : vector<1x256xf32>
    %c0_812 = arith.constant 0 : index
    %c3_813 = arith.constant 3 : index
    %c0_814 = arith.constant 0 : index
    %743 = vector.load %arg36[%c0_812, %c3_813, %c0_814] : memref<1x8x256xf32, #tpu.memory_space<vmem>>, vector<1x1x256xf32>
    %744 = vector.shape_cast %743 : vector<1x1x256xf32> to vector<1x256xf32>
    %c1_815 = arith.constant 1 : index
    %c0_816 = arith.constant 0 : index
    %c0_817 = arith.constant 0 : index
    %745 = vector.load %arg14[%c1_815, %c0_816, %c0_817] : memref<3x256x256xf32, #tpu.memory_space<vmem>>, vector<1x256x256xf32>
    %746 = vector.shape_cast %745 : vector<1x256x256xf32> to vector<256x256xf32>
    %cst_818 = arith.constant dense<0.000000e+00> : vector<1x256xf32>
    %747 = tpu.matmul %744, %746, %cst_818 {dimension_numbers = #tpu.dot_dimension_numbers<[1], [0], [0], [1], [0, 0, 1, 1], [], []>} : vector<1x256xf32>, vector<256x256xf32>, vector<1x256xf32> -> vector<1x256xf32>
    %748 = arith.addf %742, %747 : vector<1x256xf32>
    %c0_819 = arith.constant 0 : index
    %c4_820 = arith.constant 4 : index
    %c0_821 = arith.constant 0 : index
    %749 = vector.load %arg36[%c0_819, %c4_820, %c0_821] : memref<1x8x256xf32, #tpu.memory_space<vmem>>, vector<1x1x256xf32>
    %750 = vector.shape_cast %749 : vector<1x1x256xf32> to vector<1x256xf32>
    %c2_822 = arith.constant 2 : index
    %c0_823 = arith.constant 0 : index
    %c0_824 = arith.constant 0 : index
    %751 = vector.load %arg14[%c2_822, %c0_823, %c0_824] : memref<3x256x256xf32, #tpu.memory_space<vmem>>, vector<1x256x256xf32>
    %752 = vector.shape_cast %751 : vector<1x256x256xf32> to vector<256x256xf32>
    %cst_825 = arith.constant dense<0.000000e+00> : vector<1x256xf32>
    %753 = tpu.matmul %750, %752, %cst_825 {dimension_numbers = #tpu.dot_dimension_numbers<[1], [0], [0], [1], [0, 0, 1, 1], [], []>} : vector<1x256xf32>, vector<256x256xf32>, vector<1x256xf32> -> vector<1x256xf32>
    %754 = arith.addf %748, %753 : vector<1x256xf32>
    %c0_826 = arith.constant 0 : index
    %c0_827 = arith.constant 0 : index
    %755 = vector.load %arg15[%c0_826, %c0_827] : memref<1x256xf32, #tpu.memory_space<vmem>>, vector<1x256xf32>
    %756 = arith.addf %754, %755 : vector<1x256xf32>
    %c0_828 = arith.constant 0 : index
    %c3_829 = arith.constant 3 : index
    %c0_830 = arith.constant 0 : index
    %757 = vector.load %arg26[%c0_828, %c3_829, %c0_830] : memref<1x8x256xf32, #tpu.memory_space<vmem>>, vector<1x1x256xf32>
    %758 = vector.shape_cast %757 : vector<1x1x256xf32> to vector<1x256xf32>
    %759 = vector.shape_cast %756 : vector<1x256xf32> to vector<1x1x256xf32>
    tpu.vector_store %arg26[%c0_828, %c3_829, %c0_830], %759 {strides = array<i32>} : memref<1x8x256xf32, #tpu.memory_space<vmem>>, vector<1x1x256xf32>,
    %cst_831 = arith.constant 0.000000e+00 : f32
    %760 = vector.broadcast %cst_831 : f32 to vector<1x256xf32>
    %c0_832 = arith.constant 0 : index
    %c3_833 = arith.constant 3 : index
    %c0_834 = arith.constant 0 : index
    %761 = vector.load %arg36[%c0_832, %c3_833, %c0_834] : memref<1x8x256xf32, #tpu.memory_space<vmem>>, vector<1x1x256xf32>
    %762 = vector.shape_cast %761 : vector<1x1x256xf32> to vector<1x256xf32>
    %c0_835 = arith.constant 0 : index
    %c0_836 = arith.constant 0 : index
    %c0_837 = arith.constant 0 : index
    %763 = vector.load %arg14[%c0_835, %c0_836, %c0_837] : memref<3x256x256xf32, #tpu.memory_space<vmem>>, vector<1x256x256xf32>
    %764 = vector.shape_cast %763 : vector<1x256x256xf32> to vector<256x256xf32>
    %cst_838 = arith.constant dense<0.000000e+00> : vector<1x256xf32>
    %765 = tpu.matmul %762, %764, %cst_838 {dimension_numbers = #tpu.dot_dimension_numbers<[1], [0], [0], [1], [0, 0, 1, 1], [], []>} : vector<1x256xf32>, vector<256x256xf32>, vector<1x256xf32> -> vector<1x256xf32>
    %766 = arith.addf %760, %765 : vector<1x256xf32>
    %c0_839 = arith.constant 0 : index
    %c4_840 = arith.constant 4 : index
    %c0_841 = arith.constant 0 : index
    %767 = vector.load %arg36[%c0_839, %c4_840, %c0_841] : memref<1x8x256xf32, #tpu.memory_space<vmem>>, vector<1x1x256xf32>
    %768 = vector.shape_cast %767 : vector<1x1x256xf32> to vector<1x256xf32>
    %c1_842 = arith.constant 1 : index
    %c0_843 = arith.constant 0 : index
    %c0_844 = arith.constant 0 : index
    %769 = vector.load %arg14[%c1_842, %c0_843, %c0_844] : memref<3x256x256xf32, #tpu.memory_space<vmem>>, vector<1x256x256xf32>
    %770 = vector.shape_cast %769 : vector<1x256x256xf32> to vector<256x256xf32>
    %cst_845 = arith.constant dense<0.000000e+00> : vector<1x256xf32>
    %771 = tpu.matmul %768, %770, %cst_845 {dimension_numbers = #tpu.dot_dimension_numbers<[1], [0], [0], [1], [0, 0, 1, 1], [], []>} : vector<1x256xf32>, vector<256x256xf32>, vector<1x256xf32> -> vector<1x256xf32>
    %772 = arith.addf %766, %771 : vector<1x256xf32>
    %c0_846 = arith.constant 0 : index
    %c5_847 = arith.constant 5 : index
    %c0_848 = arith.constant 0 : index
    %773 = vector.load %arg36[%c0_846, %c5_847, %c0_848] : memref<1x8x256xf32, #tpu.memory_space<vmem>>, vector<1x1x256xf32>
    %774 = vector.shape_cast %773 : vector<1x1x256xf32> to vector<1x256xf32>
    %c2_849 = arith.constant 2 : index
    %c0_850 = arith.constant 0 : index
    %c0_851 = arith.constant 0 : index
    %775 = vector.load %arg14[%c2_849, %c0_850, %c0_851] : memref<3x256x256xf32, #tpu.memory_space<vmem>>, vector<1x256x256xf32>
    %776 = vector.shape_cast %775 : vector<1x256x256xf32> to vector<256x256xf32>
    %cst_852 = arith.constant dense<0.000000e+00> : vector<1x256xf32>
    %777 = tpu.matmul %774, %776, %cst_852 {dimension_numbers = #tpu.dot_dimension_numbers<[1], [0], [0], [1], [0, 0, 1, 1], [], []>} : vector<1x256xf32>, vector<256x256xf32>, vector<1x256xf32> -> vector<1x256xf32>
    %778 = arith.addf %772, %777 : vector<1x256xf32>
    %c0_853 = arith.constant 0 : index
    %c0_854 = arith.constant 0 : index
    %779 = vector.load %arg15[%c0_853, %c0_854] : memref<1x256xf32, #tpu.memory_space<vmem>>, vector<1x256xf32>
    %780 = arith.addf %778, %779 : vector<1x256xf32>
    %c0_855 = arith.constant 0 : index
    %c4_856 = arith.constant 4 : index
    %c0_857 = arith.constant 0 : index
    %781 = vector.load %arg26[%c0_855, %c4_856, %c0_857] : memref<1x8x256xf32, #tpu.memory_space<vmem>>, vector<1x1x256xf32>
    %782 = vector.shape_cast %781 : vector<1x1x256xf32> to vector<1x256xf32>
    %783 = vector.shape_cast %780 : vector<1x256xf32> to vector<1x1x256xf32>
    tpu.vector_store %arg26[%c0_855, %c4_856, %c0_857], %783 {strides = array<i32>} : memref<1x8x256xf32, #tpu.memory_space<vmem>>, vector<1x1x256xf32>,
    %cst_858 = arith.constant 0.000000e+00 : f32
    %784 = vector.broadcast %cst_858 : f32 to vector<1x256xf32>
    %c0_859 = arith.constant 0 : index
    %c4_860 = arith.constant 4 : index
    %c0_861 = arith.constant 0 : index
    %785 = vector.load %arg36[%c0_859, %c4_860, %c0_861] : memref<1x8x256xf32, #tpu.memory_space<vmem>>, vector<1x1x256xf32>
    %786 = vector.shape_cast %785 : vector<1x1x256xf32> to vector<1x256xf32>
    %c0_862 = arith.constant 0 : index
    %c0_863 = arith.constant 0 : index
    %c0_864 = arith.constant 0 : index
    %787 = vector.load %arg14[%c0_862, %c0_863, %c0_864] : memref<3x256x256xf32, #tpu.memory_space<vmem>>, vector<1x256x256xf32>
    %788 = vector.shape_cast %787 : vector<1x256x256xf32> to vector<256x256xf32>
    %cst_865 = arith.constant dense<0.000000e+00> : vector<1x256xf32>
    %789 = tpu.matmul %786, %788, %cst_865 {dimension_numbers = #tpu.dot_dimension_numbers<[1], [0], [0], [1], [0, 0, 1, 1], [], []>} : vector<1x256xf32>, vector<256x256xf32>, vector<1x256xf32> -> vector<1x256xf32>
    %790 = arith.addf %784, %789 : vector<1x256xf32>
    %c0_866 = arith.constant 0 : index
    %c5_867 = arith.constant 5 : index
    %c0_868 = arith.constant 0 : index
    %791 = vector.load %arg36[%c0_866, %c5_867, %c0_868] : memref<1x8x256xf32, #tpu.memory_space<vmem>>, vector<1x1x256xf32>
    %792 = vector.shape_cast %791 : vector<1x1x256xf32> to vector<1x256xf32>
    %c1_869 = arith.constant 1 : index
    %c0_870 = arith.constant 0 : index
    %c0_871 = arith.constant 0 : index
    %793 = vector.load %arg14[%c1_869, %c0_870, %c0_871] : memref<3x256x256xf32, #tpu.memory_space<vmem>>, vector<1x256x256xf32>
    %794 = vector.shape_cast %793 : vector<1x256x256xf32> to vector<256x256xf32>
    %cst_872 = arith.constant dense<0.000000e+00> : vector<1x256xf32>
    %795 = tpu.matmul %792, %794, %cst_872 {dimension_numbers = #tpu.dot_dimension_numbers<[1], [0], [0], [1], [0, 0, 1, 1], [], []>} : vector<1x256xf32>, vector<256x256xf32>, vector<1x256xf32> -> vector<1x256xf32>
    %796 = arith.addf %790, %795 : vector<1x256xf32>
    %c0_873 = arith.constant 0 : index
    %c6_874 = arith.constant 6 : index
    %c0_875 = arith.constant 0 : index
    %797 = vector.load %arg36[%c0_873, %c6_874, %c0_875] : memref<1x8x256xf32, #tpu.memory_space<vmem>>, vector<1x1x256xf32>
    %798 = vector.shape_cast %797 : vector<1x1x256xf32> to vector<1x256xf32>
    %c2_876 = arith.constant 2 : index
    %c0_877 = arith.constant 0 : index
    %c0_878 = arith.constant 0 : index
    %799 = vector.load %arg14[%c2_876, %c0_877, %c0_878] : memref<3x256x256xf32, #tpu.memory_space<vmem>>, vector<1x256x256xf32>
    %800 = vector.shape_cast %799 : vector<1x256x256xf32> to vector<256x256xf32>
    %cst_879 = arith.constant dense<0.000000e+00> : vector<1x256xf32>
    %801 = tpu.matmul %798, %800, %cst_879 {dimension_numbers = #tpu.dot_dimension_numbers<[1], [0], [0], [1], [0, 0, 1, 1], [], []>} : vector<1x256xf32>, vector<256x256xf32>, vector<1x256xf32> -> vector<1x256xf32>
    %802 = arith.addf %796, %801 : vector<1x256xf32>
    %c0_880 = arith.constant 0 : index
    %c0_881 = arith.constant 0 : index
    %803 = vector.load %arg15[%c0_880, %c0_881] : memref<1x256xf32, #tpu.memory_space<vmem>>, vector<1x256xf32>
    %804 = arith.addf %802, %803 : vector<1x256xf32>
    %c0_882 = arith.constant 0 : index
    %c5_883 = arith.constant 5 : index
    %c0_884 = arith.constant 0 : index
    %805 = vector.load %arg26[%c0_882, %c5_883, %c0_884] : memref<1x8x256xf32, #tpu.memory_space<vmem>>, vector<1x1x256xf32>
    %806 = vector.shape_cast %805 : vector<1x1x256xf32> to vector<1x256xf32>
    %807 = vector.shape_cast %804 : vector<1x256xf32> to vector<1x1x256xf32>
    tpu.vector_store %arg26[%c0_882, %c5_883, %c0_884], %807 {strides = array<i32>} : memref<1x8x256xf32, #tpu.memory_space<vmem>>, vector<1x1x256xf32>,
    %cst_885 = arith.constant 0.000000e+00 : f32
    %808 = vector.broadcast %cst_885 : f32 to vector<1x256xf32>
    %c0_886 = arith.constant 0 : index
    %c5_887 = arith.constant 5 : index
    %c0_888 = arith.constant 0 : index
    %809 = vector.load %arg36[%c0_886, %c5_887, %c0_888] : memref<1x8x256xf32, #tpu.memory_space<vmem>>, vector<1x1x256xf32>
    %810 = vector.shape_cast %809 : vector<1x1x256xf32> to vector<1x256xf32>
    %c0_889 = arith.constant 0 : index
    %c0_890 = arith.constant 0 : index
    %c0_891 = arith.constant 0 : index
    %811 = vector.load %arg14[%c0_889, %c0_890, %c0_891] : memref<3x256x256xf32, #tpu.memory_space<vmem>>, vector<1x256x256xf32>
    %812 = vector.shape_cast %811 : vector<1x256x256xf32> to vector<256x256xf32>
    %cst_892 = arith.constant dense<0.000000e+00> : vector<1x256xf32>
    %813 = tpu.matmul %810, %812, %cst_892 {dimension_numbers = #tpu.dot_dimension_numbers<[1], [0], [0], [1], [0, 0, 1, 1], [], []>} : vector<1x256xf32>, vector<256x256xf32>, vector<1x256xf32> -> vector<1x256xf32>
    %814 = arith.addf %808, %813 : vector<1x256xf32>
    %c0_893 = arith.constant 0 : index
    %c6_894 = arith.constant 6 : index
    %c0_895 = arith.constant 0 : index
    %815 = vector.load %arg36[%c0_893, %c6_894, %c0_895] : memref<1x8x256xf32, #tpu.memory_space<vmem>>, vector<1x1x256xf32>
    %816 = vector.shape_cast %815 : vector<1x1x256xf32> to vector<1x256xf32>
    %c1_896 = arith.constant 1 : index
    %c0_897 = arith.constant 0 : index
    %c0_898 = arith.constant 0 : index
    %817 = vector.load %arg14[%c1_896, %c0_897, %c0_898] : memref<3x256x256xf32, #tpu.memory_space<vmem>>, vector<1x256x256xf32>
    %818 = vector.shape_cast %817 : vector<1x256x256xf32> to vector<256x256xf32>
    %cst_899 = arith.constant dense<0.000000e+00> : vector<1x256xf32>
    %819 = tpu.matmul %816, %818, %cst_899 {dimension_numbers = #tpu.dot_dimension_numbers<[1], [0], [0], [1], [0, 0, 1, 1], [], []>} : vector<1x256xf32>, vector<256x256xf32>, vector<1x256xf32> -> vector<1x256xf32>
    %820 = arith.addf %814, %819 : vector<1x256xf32>
    %c0_900 = arith.constant 0 : index
    %c7_901 = arith.constant 7 : index
    %c0_902 = arith.constant 0 : index
    %821 = vector.load %arg36[%c0_900, %c7_901, %c0_902] : memref<1x8x256xf32, #tpu.memory_space<vmem>>, vector<1x1x256xf32>
    %822 = vector.shape_cast %821 : vector<1x1x256xf32> to vector<1x256xf32>
    %c2_903 = arith.constant 2 : index
    %c0_904 = arith.constant 0 : index
    %c0_905 = arith.constant 0 : index
    %823 = vector.load %arg14[%c2_903, %c0_904, %c0_905] : memref<3x256x256xf32, #tpu.memory_space<vmem>>, vector<1x256x256xf32>
    %824 = vector.shape_cast %823 : vector<1x256x256xf32> to vector<256x256xf32>
    %cst_906 = arith.constant dense<0.000000e+00> : vector<1x256xf32>
    %825 = tpu.matmul %822, %824, %cst_906 {dimension_numbers = #tpu.dot_dimension_numbers<[1], [0], [0], [1], [0, 0, 1, 1], [], []>} : vector<1x256xf32>, vector<256x256xf32>, vector<1x256xf32> -> vector<1x256xf32>
    %826 = arith.addf %820, %825 : vector<1x256xf32>
    %c0_907 = arith.constant 0 : index
    %c0_908 = arith.constant 0 : index
    %827 = vector.load %arg15[%c0_907, %c0_908] : memref<1x256xf32, #tpu.memory_space<vmem>>, vector<1x256xf32>
    %828 = arith.addf %826, %827 : vector<1x256xf32>
    %c0_909 = arith.constant 0 : index
    %c6_910 = arith.constant 6 : index
    %c0_911 = arith.constant 0 : index
    %829 = vector.load %arg26[%c0_909, %c6_910, %c0_911] : memref<1x8x256xf32, #tpu.memory_space<vmem>>, vector<1x1x256xf32>
    %830 = vector.shape_cast %829 : vector<1x1x256xf32> to vector<1x256xf32>
    %831 = vector.shape_cast %828 : vector<1x256xf32> to vector<1x1x256xf32>
    tpu.vector_store %arg26[%c0_909, %c6_910, %c0_911], %831 {strides = array<i32>} : memref<1x8x256xf32, #tpu.memory_space<vmem>>, vector<1x1x256xf32>,
    %cst_912 = arith.constant 0.000000e+00 : f32
    %832 = vector.broadcast %cst_912 : f32 to vector<1x256xf32>
    %c0_913 = arith.constant 0 : index
    %c6_914 = arith.constant 6 : index
    %c0_915 = arith.constant 0 : index
    %833 = vector.load %arg36[%c0_913, %c6_914, %c0_915] : memref<1x8x256xf32, #tpu.memory_space<vmem>>, vector<1x1x256xf32>
    %834 = vector.shape_cast %833 : vector<1x1x256xf32> to vector<1x256xf32>
    %c0_916 = arith.constant 0 : index
    %c0_917 = arith.constant 0 : index
    %c0_918 = arith.constant 0 : index
    %835 = vector.load %arg14[%c0_916, %c0_917, %c0_918] : memref<3x256x256xf32, #tpu.memory_space<vmem>>, vector<1x256x256xf32>
    %836 = vector.shape_cast %835 : vector<1x256x256xf32> to vector<256x256xf32>
    %cst_919 = arith.constant dense<0.000000e+00> : vector<1x256xf32>
    %837 = tpu.matmul %834, %836, %cst_919 {dimension_numbers = #tpu.dot_dimension_numbers<[1], [0], [0], [1], [0, 0, 1, 1], [], []>} : vector<1x256xf32>, vector<256x256xf32>, vector<1x256xf32> -> vector<1x256xf32>
    %838 = arith.addf %832, %837 : vector<1x256xf32>
    %c0_920 = arith.constant 0 : index
    %c7_921 = arith.constant 7 : index
    %c0_922 = arith.constant 0 : index
    %839 = vector.load %arg36[%c0_920, %c7_921, %c0_922] : memref<1x8x256xf32, #tpu.memory_space<vmem>>, vector<1x1x256xf32>
    %840 = vector.shape_cast %839 : vector<1x1x256xf32> to vector<1x256xf32>
    %c1_923 = arith.constant 1 : index
    %c0_924 = arith.constant 0 : index
    %c0_925 = arith.constant 0 : index
    %841 = vector.load %arg14[%c1_923, %c0_924, %c0_925] : memref<3x256x256xf32, #tpu.memory_space<vmem>>, vector<1x256x256xf32>
    %842 = vector.shape_cast %841 : vector<1x256x256xf32> to vector<256x256xf32>
    %cst_926 = arith.constant dense<0.000000e+00> : vector<1x256xf32>
    %843 = tpu.matmul %840, %842, %cst_926 {dimension_numbers = #tpu.dot_dimension_numbers<[1], [0], [0], [1], [0, 0, 1, 1], [], []>} : vector<1x256xf32>, vector<256x256xf32>, vector<1x256xf32> -> vector<1x256xf32>
    %844 = arith.addf %838, %843 : vector<1x256xf32>
    %c0_927 = arith.constant 0 : index
    %c0_928 = arith.constant 0 : index
    %845 = vector.load %arg15[%c0_927, %c0_928] : memref<1x256xf32, #tpu.memory_space<vmem>>, vector<1x256xf32>
    %846 = arith.addf %844, %845 : vector<1x256xf32>
    %c0_929 = arith.constant 0 : index
    %c7_930 = arith.constant 7 : index
    %c0_931 = arith.constant 0 : index
    %847 = vector.load %arg26[%c0_929, %c7_930, %c0_931] : memref<1x8x256xf32, #tpu.memory_space<vmem>>, vector<1x1x256xf32>
    %848 = vector.shape_cast %847 : vector<1x1x256xf32> to vector<1x256xf32>
    %849 = vector.shape_cast %846 : vector<1x256xf32> to vector<1x1x256xf32>
    tpu.vector_store %arg26[%c0_929, %c7_930, %c0_931], %849 {strides = array<i32>} : memref<1x8x256xf32, #tpu.memory_space<vmem>>, vector<1x1x256xf32>,
    %cst_932 = arith.constant 0.000000e+00 : f32
    %850 = vector.broadcast %cst_932 : f32 to vector<1x32xf32>
    %c0_933 = arith.constant 0 : index
    %c0_934 = arith.constant 0 : index
    %c0_935 = arith.constant 0 : index
    %851 = vector.load %arg28[%c0_933, %c0_934, %c0_935] : memref<1x2x64xf32, #tpu.memory_space<vmem>>, vector<1x1x64xf32>
    %852 = vector.shape_cast %851 : vector<1x1x64xf32> to vector<1x64xf32>
    %c1_936 = arith.constant 1 : index
    %c0_937 = arith.constant 0 : index
    %c0_938 = arith.constant 0 : index
    %853 = vector.load %arg20[%c1_936, %c0_937, %c0_938] : memref<3x64x32xf32, #tpu.memory_space<vmem>>, vector<1x64x32xf32>
    %854 = vector.shape_cast %853 : vector<1x64x32xf32> to vector<64x32xf32>
    %cst_939 = arith.constant dense<0.000000e+00> : vector<1x32xf32>
    %855 = tpu.matmul %852, %854, %cst_939 {dimension_numbers = #tpu.dot_dimension_numbers<[1], [0], [0], [1], [0, 0, 1, 1], [], []>} : vector<1x64xf32>, vector<64x32xf32>, vector<1x32xf32> -> vector<1x32xf32>
    %856 = arith.addf %850, %855 : vector<1x32xf32>
    %c0_940 = arith.constant 0 : index
    %c1_941 = arith.constant 1 : index
    %c0_942 = arith.constant 0 : index
    %857 = vector.load %arg28[%c0_940, %c1_941, %c0_942] : memref<1x2x64xf32, #tpu.memory_space<vmem>>, vector<1x1x64xf32>
    %858 = vector.shape_cast %857 : vector<1x1x64xf32> to vector<1x64xf32>
    %c2_943 = arith.constant 2 : index
    %c0_944 = arith.constant 0 : index
    %c0_945 = arith.constant 0 : index
    %859 = vector.load %arg20[%c2_943, %c0_944, %c0_945] : memref<3x64x32xf32, #tpu.memory_space<vmem>>, vector<1x64x32xf32>
    %860 = vector.shape_cast %859 : vector<1x64x32xf32> to vector<64x32xf32>
    %cst_946 = arith.constant dense<0.000000e+00> : vector<1x32xf32>
    %861 = tpu.matmul %858, %860, %cst_946 {dimension_numbers = #tpu.dot_dimension_numbers<[1], [0], [0], [1], [0, 0, 1, 1], [], []>} : vector<1x64xf32>, vector<64x32xf32>, vector<1x32xf32> -> vector<1x32xf32>
    %862 = arith.addf %856, %861 : vector<1x32xf32>
    %c0_947 = arith.constant 0 : index
    %c0_948 = arith.constant 0 : index
    %863 = vector.load %arg21[%c0_947, %c0_948] : memref<1x32xf32, #tpu.memory_space<vmem>>, vector<1x32xf32>
    %864 = arith.addf %862, %863 : vector<1x32xf32>
    %c0_949 = arith.constant 0 : index
    %c0_950 = arith.constant 0 : index
    %c0_951 = arith.constant 0 : index
    %865 = vector.load %arg29[%c0_949, %c0_950, %c0_951] : memref<1x1x32xf32, #tpu.memory_space<vmem>>, vector<1x1x32xf32>
    %866 = vector.shape_cast %865 : vector<1x1x32xf32> to vector<1x32xf32>
    %867 = vector.shape_cast %864 : vector<1x32xf32> to vector<1x1x32xf32>
    tpu.vector_store %arg29[%c0_949, %c0_950, %c0_951], %867 {strides = array<i32>} : memref<1x1x32xf32, #tpu.memory_space<vmem>>, vector<1x1x32xf32>,
    %cst_952 = arith.constant 0.000000e+00 : f32
    %868 = vector.broadcast %cst_952 : f32 to vector<1x32xf32>
    %c0_953 = arith.constant 0 : index
    %c0_954 = arith.constant 0 : index
    %c0_955 = arith.constant 0 : index
    %869 = vector.load %arg29[%c0_953, %c0_954, %c0_955] : memref<1x1x32xf32, #tpu.memory_space<vmem>>, vector<1x1x32xf32>
    %870 = vector.shape_cast %869 : vector<1x1x32xf32> to vector<1x32xf32>
    %cst_956 = arith.constant 0.000000e+00 : f32
    %871 = vector.broadcast %cst_956 : f32 to vector<1x32xf32>
    %872 = arith.maximumf %870, %871 : vector<1x32xf32>
    %c1_957 = arith.constant 1 : index
    %c0_958 = arith.constant 0 : index
    %c0_959 = arith.constant 0 : index
    %873 = vector.load %arg22[%c1_957, %c0_958, %c0_959] : memref<3x32x32xf32, #tpu.memory_space<vmem>>, vector<1x32x32xf32>
    %874 = vector.shape_cast %873 : vector<1x32x32xf32> to vector<32x32xf32>
    %cst_960 = arith.constant dense<0.000000e+00> : vector<1x32xf32>
    %875 = tpu.matmul %872, %874, %cst_960 {dimension_numbers = #tpu.dot_dimension_numbers<[1], [0], [0], [1], [0, 0, 1, 1], [], []>} : vector<1x32xf32>, vector<32x32xf32>, vector<1x32xf32> -> vector<1x32xf32>
    %876 = arith.addf %868, %875 : vector<1x32xf32>
    %c0_961 = arith.constant 0 : index
    %c0_962 = arith.constant 0 : index
    %877 = vector.load %arg23[%c0_961, %c0_962] : memref<1x32xf32, #tpu.memory_space<vmem>>, vector<1x32xf32>
    %878 = arith.addf %876, %877 : vector<1x32xf32>
    %c0_963 = arith.constant 0 : index
    %c0_964 = arith.constant 0 : index
    %c0_965 = arith.constant 0 : index
    %879 = vector.load %arg30[%c0_963, %c0_964, %c0_965] : memref<1x1x32xf32, #tpu.memory_space<vmem>>, vector<1x1x32xf32>
    %880 = vector.shape_cast %879 : vector<1x1x32xf32> to vector<1x32xf32>
    %881 = vector.shape_cast %878 : vector<1x32xf32> to vector<1x1x32xf32>
    tpu.vector_store %arg30[%c0_963, %c0_964, %c0_965], %881 {strides = array<i32>} : memref<1x1x32xf32, #tpu.memory_space<vmem>>, vector<1x1x32xf32>,
    return
  }
  func.func @transform_0(%arg0: i32) -> (i32, i32, i32) {
    %c0_i32 = arith.constant 0 : i32
    %c0_i32_0 = arith.constant 0 : i32
    %c0_i32_1 = arith.constant 0 : i32
    return %arg0, %c0_i32, %c0_i32_0 : i32, i32, i32
  }
  func.func @transform_1(%arg0: i32) -> (i32, i32, i32) {
    %c0_i32 = arith.constant 0 : i32
    %c0_i32_0 = arith.constant 0 : i32
    %c0_i32_1 = arith.constant 0 : i32
    %c0_i32_2 = arith.constant 0 : i32
    return %c0_i32, %c0_i32_0, %c0_i32_1 : i32, i32, i32
  }
  func.func @transform_2(%arg0: i32) -> (i32, i32) {
    %c0_i32 = arith.constant 0 : i32
    %c0_i32_0 = arith.constant 0 : i32
    %c0_i32_1 = arith.constant 0 : i32
    return %c0_i32, %c0_i32_0 : i32, i32
  }
  func.func @transform_3(%arg0: i32) -> (i32, i32, i32) {
    %c0_i32 = arith.constant 0 : i32
    %c0_i32_0 = arith.constant 0 : i32
    %c0_i32_1 = arith.constant 0 : i32
    %c0_i32_2 = arith.constant 0 : i32
    return %c0_i32, %c0_i32_0, %c0_i32_1 : i32, i32, i32
  }
  func.func @transform_4(%arg0: i32) -> (i32, i32) {
    %c0_i32 = arith.constant 0 : i32
    %c0_i32_0 = arith.constant 0 : i32
    %c0_i32_1 = arith.constant 0 : i32
    return %c0_i32, %c0_i32_0 : i32, i32
  }
  func.func @transform_5(%arg0: i32) -> (i32, i32, i32) {
    %c0_i32 = arith.constant 0 : i32
    %c0_i32_0 = arith.constant 0 : i32
    %c0_i32_1 = arith.constant 0 : i32
    %c0_i32_2 = arith.constant 0 : i32
    return %c0_i32, %c0_i32_0, %c0_i32_1 : i32, i32, i32
  }
  func.func @transform_6(%arg0: i32) -> (i32, i32) {
    %c0_i32 = arith.constant 0 : i32
    %c0_i32_0 = arith.constant 0 : i32
    %c0_i32_1 = arith.constant 0 : i32
    return %c0_i32, %c0_i32_0 : i32, i32
  }
  func.func @transform_7(%arg0: i32) -> (i32, i32, i32) {
    %c0_i32 = arith.constant 0 : i32
    %c0_i32_0 = arith.constant 0 : i32
    %c0_i32_1 = arith.constant 0 : i32
    %c0_i32_2 = arith.constant 0 : i32
    return %c0_i32, %c0_i32_0, %c0_i32_1 : i32, i32, i32
  }
  func.func @transform_8(%arg0: i32) -> (i32, i32) {
    %c0_i32 = arith.constant 0 : i32
    %c0_i32_0 = arith.constant 0 : i32
    %c0_i32_1 = arith.constant 0 : i32
    return %c0_i32, %c0_i32_0 : i32, i32
  }
  func.func @transform_9(%arg0: i32) -> (i32, i32, i32) {
    %c0_i32 = arith.constant 0 : i32
    %c0_i32_0 = arith.constant 0 : i32
    %c0_i32_1 = arith.constant 0 : i32
    %c0_i32_2 = arith.constant 0 : i32
    return %c0_i32, %c0_i32_0, %c0_i32_1 : i32, i32, i32
  }
  func.func @transform_10(%arg0: i32) -> (i32, i32) {
    %c0_i32 = arith.constant 0 : i32
    %c0_i32_0 = arith.constant 0 : i32
    %c0_i32_1 = arith.constant 0 : i32
    return %c0_i32, %c0_i32_0 : i32, i32
  }
  func.func @transform_11(%arg0: i32) -> (i32, i32, i32) {
    %c0_i32 = arith.constant 0 : i32
    %c0_i32_0 = arith.constant 0 : i32
    %c0_i32_1 = arith.constant 0 : i32
    %c0_i32_2 = arith.constant 0 : i32
    return %c0_i32, %c0_i32_0, %c0_i32_1 : i32, i32, i32
  }
  func.func @transform_12(%arg0: i32) -> (i32, i32) {
    %c0_i32 = arith.constant 0 : i32
    %c0_i32_0 = arith.constant 0 : i32
    %c0_i32_1 = arith.constant 0 : i32
    return %c0_i32, %c0_i32_0 : i32, i32
  }
  func.func @transform_13(%arg0: i32) -> (i32, i32, i32) {
    %c0_i32 = arith.constant 0 : i32
    %c0_i32_0 = arith.constant 0 : i32
    %c0_i32_1 = arith.constant 0 : i32
    %c0_i32_2 = arith.constant 0 : i32
    return %c0_i32, %c0_i32_0, %c0_i32_1 : i32, i32, i32
  }
  func.func @transform_14(%arg0: i32) -> (i32, i32) {
    %c0_i32 = arith.constant 0 : i32
    %c0_i32_0 = arith.constant 0 : i32
    %c0_i32_1 = arith.constant 0 : i32
    return %c0_i32, %c0_i32_0 : i32, i32
  }
  func.func @transform_15(%arg0: i32) -> (i32, i32, i32) {
    %c0_i32 = arith.constant 0 : i32
    %c0_i32_0 = arith.constant 0 : i32
    %c0_i32_1 = arith.constant 0 : i32
    %c0_i32_2 = arith.constant 0 : i32
    return %c0_i32, %c0_i32_0, %c0_i32_1 : i32, i32, i32
  }
  func.func @transform_16(%arg0: i32) -> (i32, i32) {
    %c0_i32 = arith.constant 0 : i32
    %c0_i32_0 = arith.constant 0 : i32
    %c0_i32_1 = arith.constant 0 : i32
    return %c0_i32, %c0_i32_0 : i32, i32
  }
  func.func @transform_17(%arg0: i32) -> (i32, i32, i32) {
    %c0_i32 = arith.constant 0 : i32
    %c0_i32_0 = arith.constant 0 : i32
    %c0_i32_1 = arith.constant 0 : i32
    %c0_i32_2 = arith.constant 0 : i32
    return %c0_i32, %c0_i32_0, %c0_i32_1 : i32, i32, i32
  }
  func.func @transform_18(%arg0: i32) -> (i32, i32) {
    %c0_i32 = arith.constant 0 : i32
    %c0_i32_0 = arith.constant 0 : i32
    %c0_i32_1 = arith.constant 0 : i32
    return %c0_i32, %c0_i32_0 : i32, i32
  }
  func.func @transform_19(%arg0: i32) -> (i32, i32, i32) {
    %c0_i32 = arith.constant 0 : i32
    %c0_i32_0 = arith.constant 0 : i32
    %c0_i32_1 = arith.constant 0 : i32
    %c0_i32_2 = arith.constant 0 : i32
    return %c0_i32, %c0_i32_0, %c0_i32_1 : i32, i32, i32
  }
  func.func @transform_20(%arg0: i32) -> (i32, i32) {
    %c0_i32 = arith.constant 0 : i32
    %c0_i32_0 = arith.constant 0 : i32
    %c0_i32_1 = arith.constant 0 : i32
    return %c0_i32, %c0_i32_0 : i32, i32
  }
  func.func @transform_21(%arg0: i32) -> (i32, i32, i32) {
    %c0_i32 = arith.constant 0 : i32
    %c0_i32_0 = arith.constant 0 : i32
    %c0_i32_1 = arith.constant 0 : i32
    %c0_i32_2 = arith.constant 0 : i32
    return %c0_i32, %c0_i32_0, %c0_i32_1 : i32, i32, i32
  }
  func.func @transform_22(%arg0: i32) -> (i32, i32) {
    %c0_i32 = arith.constant 0 : i32
    %c0_i32_0 = arith.constant 0 : i32
    %c0_i32_1 = arith.constant 0 : i32
    return %c0_i32, %c0_i32_0 : i32, i32
  }
  func.func @transform_23(%arg0: i32) -> (i32, i32) {
    %c0_i32 = arith.constant 0 : i32
    %c0_i32_0 = arith.constant 0 : i32
    %c0_i32_1 = arith.constant 0 : i32
    return %c0_i32, %c0_i32_0 : i32, i32
  }
  func.func @transform_24(%arg0: i32) -> (i32, i32) {
    %c0_i32 = arith.constant 0 : i32
    %c0_i32_0 = arith.constant 0 : i32
    %c0_i32_1 = arith.constant 0 : i32
    return %c0_i32, %c0_i32_0 : i32, i32
  }
  func.func @transform_25(%arg0: i32) -> (i32, i32, i32) {
    %c0_i32 = arith.constant 0 : i32
    %c0_i32_0 = arith.constant 0 : i32
    %c0_i32_1 = arith.constant 0 : i32
    return %arg0, %c0_i32, %c0_i32_0 : i32, i32, i32
  }
  func.func @transform_26(%arg0: i32) -> (i32, i32, i32) {
    %c0_i32 = arith.constant 0 : i32
    %c0_i32_0 = arith.constant 0 : i32
    %c0_i32_1 = arith.constant 0 : i32
    return %arg0, %c0_i32, %c0_i32_0 : i32, i32, i32
  }
  func.func @transform_27(%arg0: i32) -> (i32, i32, i32) {
    %c0_i32 = arith.constant 0 : i32
    %c0_i32_0 = arith.constant 0 : i32
    %c0_i32_1 = arith.constant 0 : i32
    return %arg0, %c0_i32, %c0_i32_0 : i32, i32, i32
  }
  func.func @transform_28(%arg0: i32) -> (i32, i32, i32) {
    %c0_i32 = arith.constant 0 : i32
    %c0_i32_0 = arith.constant 0 : i32
    %c0_i32_1 = arith.constant 0 : i32
    return %arg0, %c0_i32, %c0_i32_0 : i32, i32, i32
  }
  func.func @transform_29(%arg0: i32) -> (i32, i32, i32) {
    %c0_i32 = arith.constant 0 : i32
    %c0_i32_0 = arith.constant 0 : i32
    %c0_i32_1 = arith.constant 0 : i32
    return %arg0, %c0_i32, %c0_i32_0 : i32, i32, i32
  }
}

</mosaic_0001>

<bundles_post_ra>
// kernel: tpu_custom_call.1
= control target key start
LH: loop header
LB: loop body
LE: loop exit
PB: predicated region body
PF: predicated region fallthrough
CT: control target
= control target key end

     0   :  { %s17897_s6 = smov 1   ;;  %s17898_s10 = smov 2   ;;  %s21309_s0 = inlined_call_operand.smem [shape: u32[30], index: -1, kind: input, shape index: {}] }
   0x1   :  { %s17958_s5 = sld [smem:[%s21309_s0]]   ;;  %s17899_s14 = smov 3  }
   0x2   :  { %s17963_s9 = sld [smem:[%s21309_s0 + %s17897_s6]]   ;;  %s17900_s18 = smov 4  }
   0x3   :  { %s17968_s13 = sld [smem:[%s21309_s0 + %s17898_s10]]   ;;  %s17901_s22 = smov 5  }
   0x4   :  { %s17973_s17 = sld [smem:[%s21309_s0 + %s17899_s14]]   ;;  %s17902_s26 = smov 6  }
   0x5   :  { %s17978_s21 = sld [smem:[%s21309_s0 + %s17900_s18]]   ;;  %s17903_s30 = smov 7  }
   0x6   :  { %s17983_s25 = sld [smem:[%s21309_s0 + %s17901_s22]]   ;;  %s17904_s4 = smov 8  }
   0x7   :  { %21353 = sst [smem:[#allocation42_spill]] %s17958_s5  ;;  %s17905_s10 = smov 9  }
   0x8   :  { %21354 = sst [smem:[#allocation43_spill]] %s17963_s9  ;;  %s17906_s15 = smov 10  }
   0x9   :  { %21355 = sst [smem:[#allocation44_spill]] %s17968_s13  ;;  %s17907_s20 = smov 11  }
   0xa   :  { %21356 = sst [smem:[#allocation45_spill]] %s17973_s17  ;;  %s17909_s1 = smov 13  }
   0xb   :  { %21357 = sst [smem:[#allocation46_spill]] %s17978_s21  ;;  %s17910_s7 = smov 14  }
   0xc   :  { %21358 = sst [smem:[#allocation47_spill]] %s17983_s25  ;;  %s17912_s22 = smov 16  }
   0xd   :  { %s17988_s29 = sld [smem:[%s21309_s0 + %s17902_s26]]   ;;  %s17908_s26 = smov 12  }
   0xe   :  { %s17993_s3 = sld [smem:[%s21309_s0 + %s17903_s30]]   ;;  %s17913_s28 = smov 17  }
   0xf   :  { %s17998_s8 = sld [smem:[%s21309_s0 + %s17904_s4]]  }
  0x10   :  { %s18003_s14 = sld [smem:[%s21309_s0 + %s17905_s10]]  }
  0x11   :  { %s18008_s19 = sld [smem:[%s21309_s0 + %s17906_s15]]   ;;  %s17911_s15 = smov 15  }
  0x12   :  { %s18013_s24 = sld [smem:[%s21309_s0 + %s17907_s20]]  }
  0x13   :  { %s18018_s30 = sld [smem:[%s21309_s0 + %s17908_s26]]  }
  0x14   :  { %21359 = sst [smem:[#allocation48_spill]] %s17993_s3 }
  0x15   :  { %21360 = sst [smem:[#allocation49_spill]] %s17998_s8 }
  0x16   :  { %21361 = sst [smem:[#allocation50_spill]] %s18003_s14 }
  0x17   :  { %21362 = sst [smem:[#allocation51_spill]] %s18008_s19 }
  0x18   :  { %s18023_s6 = sld [smem:[%s21309_s0 + %s17909_s1]]  }
  0x19   :  { %21363 = sst [smem:[#allocation52_spill]] %s18018_s30 }
  0x1a   :  { %s18028_s12 = sld [smem:[%s21309_s0 + %s17910_s7]]   ;;  %s17914_s7 = smov 18  }
  0x1b   :  { %s18033_s20 = sld [smem:[%s21309_s0 + %s17911_s15]]   ;;  %s17915_s15 = smov 19  }
  0x1c   :  { %s18038_s27 = sld [smem:[%s21309_s0 + %s17912_s22]]   ;;  %s17916_s22 = smov 20  }
  0x1d   :  { %s18043_s4 = sld [smem:[%s21309_s0 + %s17913_s28]]   ;;  %s17917_s28 = smov 21  }
  0x1e   :  { %21364 = sst [smem:[#allocation53_spill]] %s18023_s6 }
  0x1f   :  { %s18053_s8 = sld [smem:[%s21309_s0 + %s17915_s15]]   ;;  %s17919_s15 = smov 23  }
  0x20   :  { %21365 = sst [smem:[#allocation54_spill]] %s18028_s12 }
  0x21   :  { %21366 = sst [smem:[#allocation55_spill]] %s18033_s20 }
  0x22   :  { %21367 = sst [smem:[#allocation56_spill]] %s18038_s27 }
  0x23   :  { %21368 = sst [smem:[#allocation57_spill]] %s18043_s4 }
  0x24   :  { %s18048_s12 = sld [smem:[%s21309_s0 + %s17914_s7]]   ;;  %s17918_s7 = smov 22  }
  0x25   :  { %21370 = sst [smem:[#allocation59_spill]] %s18053_s8 }
  0x26   :  { %s18058_s27 = sld [smem:[%s21309_s0 + %s17916_s22]]   ;;  %s17920_s22 = smov 24  }
  0x27   :  { %s18063_s19 = sld [smem:[%s21309_s0 + %s17917_s28]]   ;;  %s17921_s28 = smov 25  }
  0x28   :  { %s18073_s8 = sld [smem:[%s21309_s0 + %s17919_s15]]   ;;  %s17923_s15 = smov 27  }
  0x2a   :  { %21369 = sst [smem:[#allocation58_spill]] %s18048_s12 }
  0x2b   :  { %s18068_s12 = sld [smem:[%s21309_s0 + %s17918_s7]]   ;;  %s17922_s7 = smov 26  }
  0x2c   :  { %21371 = sst [smem:[#allocation60_spill]] %s18058_s27 }
  0x2d   :  { %21372 = sst [smem:[#allocation61_spill]] %s18063_s19 }
  0x2e   :  { %21374 = sst [smem:[#allocation63_spill]] %s18073_s8 }
  0x2f   :  { %s18078_s27 = sld [smem:[%s21309_s0 + %s17920_s22]]   ;;  %s17924_s22 = smov 28  }
  0x30   :  { %s18083_s19 = sld [smem:[%s21309_s0 + %s17921_s28]]   ;;  %s17925_s28 = smov 29  }
  0x31   :  { %21373 = sst [smem:[#allocation62_spill]] %s18068_s12 }
  0x32   :  { %s18088_s12 = sld [smem:[%s21309_s0 + %s17922_s7]]  }
  0x33   :  { %s18093_s8 = sld [smem:[%s21309_s0 + %s17923_s15]]  }
  0x34   :  { %s18098_s30 = sld [smem:[%s21309_s0 + %s17924_s22]]  }
  0x36   :  { %21375 = sst [smem:[#allocation64_spill]] %s18083_s19 }
  0x37   :  { %s18103_s19 = sld [smem:[%s21309_s0 + %s17925_s28]]  }
  0x38   :  { %21376 = sst [smem:[#allocation65_spill]] %s18088_s12 }
  0x39   :  { %21377 = sst [smem:[#allocation66_spill]] %s18093_s8 }
  0x3d   :  { %21378 = sst [smem:[#allocation67_spill]] %s18103_s19 }
  0x3e   :  { %65 = vsyncpa [#allocation9], 0 }
  0x3f   :  { %67 = vsyncpa [#allocation9 + $0x1], 0 }
  0x40   :  { %68 = vsyncpa [#allocation12], 0 }
  0x41   :  { %69 = vsyncpa [#allocation15], 0 }
  0x42   :  { %70 = vsyncpa [#allocation18], 0 }
  0x43   :  { %71 = vsyncpa [#allocation21], 0 }
  0x44   :  { %72 = vsyncpa [#allocation24], 0 }
  0x45   :  { %73 = vsyncpa [#allocation10], 0 }
  0x46   :  { %75 = vsyncpa [#allocation10 + $0x1], 0 }
  0x47   :  { %76 = vsyncpa [#allocation28], 0 }
  0x48   :  { %78 = vsyncpa [#allocation28 + $0x1], 0 }
  0x49   :  { %79 = vsyncpa [#allocation31], 0 }
  0x4a   :  { %81 = vsyncpa [#allocation31 + $0x1], 0  ;;  %s18105_s7 = smov 0   ;;  %s18107_s10 = smov 0  }
  0x4b   :  { %s18109_s11 = smov 0   ;;  %s18111_s0 = smov 0  }
  0x4c LB: > { %s21379_s12 = sld [smem:[#allocation65_spill]]  ;;  %s21380_s21 = sld [smem:[#allocation46_spill]]  ;;  %s17895_s0 = sphi %s18111_s0, %s21440_s0   ;;  %s17891_s11 = sphi %s18109_s11, %s21439_s11   ;;  %s17887_s10 = sphi %s18107_s10, %s21438_s10   ;;  %s17883_s7 = sphi %s18105_s7, %s21437_s7  }
  0x4d   : > { %s21381_s13 = sld [smem:[#allocation44_spill]]  ;;  %s21382_s5 = sld [smem:[#allocation42_spill]] }
  0x4e   : > { %s21383_s20 = sld [smem:[#allocation55_spill]]  ;;  %s21384_s17 = sld [smem:[#allocation45_spill]] }
  0x4f   : > { %s21385_s14 = sld [smem:[#allocation50_spill]]  ;;  %s21386_s6 = sld [smem:[#allocation53_spill]] }
  0x50   : > { %s21387_s4 = sld [smem:[#allocation57_spill]]  ;;  %s21388_s3 = sld [smem:[#allocation48_spill]] }
  0x51   : > { %s21389_s25 = sld [smem:[#allocation47_spill]]  ;;  %s21390_s9 = sld [smem:[#allocation43_spill]] }
  0x52   : > { %s17926_s15 = smov [#allocation11]   ;;  %s18126_s18 = sadd.s32 4294967295, %s17895_s0  }
  0x53   : > { %s764_s16 = sshll.u32 %s17926_s15, 4  ;;  %p12402_p0 = scmp.ge.s32.totalorder %s17895_s0, 1  ;;  %s18131_s16 = int_to_ptr.vmem [resolvable:$true] %s764_s16 }
  0x54   : > { %p21321_p1 = scmp.eq.s32.totalorder %s18126_s18, 0  ;;  %p752_p2 = scmp.lt.s32.totalorder %s17895_s0, 3 }
  0x55   : > { %s17927_s23 = smov [#allocation14]   ;;  %s17928_s1 = smov [#allocation17]  }
  0x56   : > { %p18133_p3 = pnand %p12402_p0, %p752_p2  ;;  %s796_s26 = sshll.u32 %s17927_s23, 4  ;;  %s18146_s26 = int_to_ptr.vmem [resolvable:$true] %s796_s26 }
  0x57   : > { %s828_s2 = sshll.u32 %s17928_s1, 4  ;;  %s17379_s15 = scalar_lea.hbm %s21390_s9, 2304  ;;  %s18148_s2 = int_to_ptr.vmem [resolvable:$true] %s828_s2 }
  0x58   : > { %s21391_s22 = scalar_select %p18133_p3, 1, 0 }
  0x59   : > { %p17227_p5 = pneg %p18133_p3  ;;  %p17380_p7 = scmp.ne.s32.totalorder %s21390_s9, %s17379_s15 }
  0x5a   : > { %p17386_p11 = scmp.lt.u32.totalorder %s17379_s15, %s21390_s9 }
  0x5b   : > { %p18142_p6 = pnand %p17227_p5, %p21321_p1 }
  0x5d   : > { %p18154_p8 = pneg %p18142_p6 }
  0x5f   : > { %p17382_p9 = pnand %p18154_p8, %p17380_p7 }
  0x61   : > { %p17383_p10 = pneg %p17382_p9 }
  0x63   : > { %p17388_p12 = pnand %p17386_p11, %p17383_p10 }
  0x65   : > { %17391 = shalt.err (!%p17388_p12)
}
  0x66   : > { %s17392_s23 = scalar_lea.vmem %s18131_s16, 2304  ;;  %p17400_p5 = scmp.lt.s32.totalorder %s18131_s16, %s18131_s16 }
  0x67   : > { %p17393_p13 = scmp.ne.s32.totalorder %s18131_s16, %s17392_s23  ;;  %p17401_p4 = scmp.lt.s32.totalorder %s17392_s23, %s17392_s23 }
  0x69   : > { %p17395_p0 = pnand %p17393_p13, %p18154_p8  ;;  %p17402_p1 = por %p17401_p4, %p17400_p5 }
  0x6b   : > { %p17396_p2 = pneg %p17395_p0 }
  0x6d   : > { %p17403_p3 = pnand %p17402_p1, %p17396_p2 }
  0x6f   : > { %17406 = shalt.err (!%p17403_p3)
}
  0x70   : > { %s21328_s1 = smov 128   ;;  %s21330_s15 = smov 8  }
  0x71   : > { %17230 = dma.hbm_to_vmem [thread:$0]  (!%p18142_p6), %s21390_s9, 2304, %s18131_s16, [#allocation12], %s21328_s1, %s21328_s1, %s21330_s15  }
  0x72   : > { %s17407_s8 = scalar_lea.hbm %s21389_s25, 3072 }
  0x73   : > { %p17408_p7 = scmp.ne.s32.totalorder %s21389_s25, %s17407_s8  ;;  %p17414_p3 = scmp.lt.u32.totalorder %s17407_s8, %s21389_s25 }
  0x75   : > { %p17410_p4 = pnand %p17408_p7, %p18154_p8 }
  0x77   : > { %p17411_p1 = pneg %p17410_p4 }
  0x79   : > { %p17416_p9 = pnand %p17414_p3, %p17411_p1 }
  0x7b   : > { %17419 = shalt.err (!%p17416_p9)
}
  0x7c   : > { %s17420_s23 = scalar_lea.vmem %s18146_s26, 3072  ;;  %p17428_p13 = scmp.lt.s32.totalorder %s18146_s26, %s18146_s26 }
  0x7d   : > { %p17421_p10 = scmp.ne.s32.totalorder %s18146_s26, %s17420_s23  ;;  %p17429_p0 = scmp.lt.s32.totalorder %s17420_s23, %s17420_s23 }
  0x7f   : > { %p17423_p11 = pnand %p17421_p10, %p18154_p8  ;;  %p17430_p2 = por %p17429_p0, %p17428_p13 }
  0x81   : > { %p17424_p12 = pneg %p17423_p11 }
  0x83   : > { %p17431_p5 = pnand %p17430_p2, %p17424_p12 }
  0x85   : > { %17434 = shalt.err (!%p17431_p5)
}
  0x86   : > { %17236 = dma.hbm_to_vmem [thread:$0]  (!%p18142_p6), %s21389_s25, 3072, %s18146_s26, [#allocation15], %s21328_s1, %s21328_s1, %s21330_s15  }
  0x87   : > { %s17435_s8 = scalar_lea.hbm %s21385_s14, 1024 }
  0x88   : > { %p17436_p7 = scmp.ne.s32.totalorder %s21385_s14, %s17435_s8  ;;  %p17442_p3 = scmp.lt.u32.totalorder %s17435_s8, %s21385_s14 }
  0x8a   : > { %p17438_p4 = pnand %p17436_p7, %p18154_p8 }
  0x8c   : > { %p17439_p1 = pneg %p17438_p4 }
  0x8e   : > { %p17444_p9 = pnand %p17442_p3, %p17439_p1 }
  0x90   : > { %17447 = shalt.err (!%p17444_p9)
}
  0x91   : > { %s17448_s16 = scalar_lea.vmem %s18148_s2, 1024  ;;  %p17456_p13 = scmp.lt.s32.totalorder %s18148_s2, %s18148_s2 }
  0x92   : > { %p17449_p10 = scmp.ne.s32.totalorder %s18148_s2, %s17448_s16  ;;  %p17457_p0 = scmp.lt.s32.totalorder %s17448_s16, %s17448_s16 }
  0x94   : > { %p17451_p11 = pnand %p17449_p10, %p18154_p8  ;;  %p17458_p2 = por %p17457_p0, %p17456_p13 }
  0x96   : > { %p17452_p12 = pneg %p17451_p11 }
  0x98   : > { %p17459_p5 = pnand %p17458_p2, %p17452_p12 }
  0x9a   : > { %17462 = shalt.err (!%p17459_p5)
}
  0x9b   : > { %17242 = dma.hbm_to_vmem [thread:$0]  (!%p18142_p6), %s21385_s14, 1024, %s18148_s2, [#allocation18], %s21328_s1, %s21328_s1, %s21330_s15  }
  0x9c   : > { %s17931_s26 = smov [#allocation20]   ;;  %s17932_s8 = smov [#allocation23]  }
  0x9d   : > { %s860_s23 = sshll.u32 %s17931_s26, 4  ;;  %s892_s16 = sshll.u32 %s17932_s8, 4  ;;  %s861_s23 = int_to_ptr.vmem [resolvable:$true] %s860_s23  ;;  %s893_s16 = int_to_ptr.vmem [resolvable:$true] %s892_s16 }
  0x9e   : > { %s17463_s9 = scalar_lea.hbm %s21386_s6, 24576 }
  0x9f   : > { %p17464_p7 = scmp.ne.s32.totalorder %s21386_s6, %s17463_s9  ;;  %p17470_p3 = scmp.lt.u32.totalorder %s17463_s9, %s21386_s6 }
  0xa1   : > { %p17466_p4 = pnand %p17464_p7, %p18154_p8 }
  0xa3   : > { %p17467_p1 = pneg %p17466_p4 }
  0xa5   : > { %p17472_p9 = pnand %p17470_p3, %p17467_p1 }
  0xa7   : > { %17475 = shalt.err (!%p17472_p9)
}
  0xa8   : > { %s17476_s25 = scalar_lea.vmem %s861_s23, 24576  ;;  %p17484_p13 = scmp.lt.s32.totalorder %s861_s23, %s861_s23 }
  0xa9   : > { %p17477_p10 = scmp.ne.s32.totalorder %s861_s23, %s17476_s25  ;;  %p17485_p0 = scmp.lt.s32.totalorder %s17476_s25, %s17476_s25 }
  0xab   : > { %p17479_p11 = pnand %p17477_p10, %p18154_p8  ;;  %p17486_p2 = por %p17485_p0, %p17484_p13 }
  0xad   : > { %p17480_p12 = pneg %p17479_p11 }
  0xaf   : > { %p17487_p5 = pnand %p17486_p2, %p17480_p12 }
  0xb1   : > { %17490 = shalt.err (!%p17487_p5)
}
  0xb2   : > { %s21326_s2 = smov 256   ;;  %s21327_s9 = smov 16  }
  0xb3   : > { %17248 = dma.hbm_to_vmem [thread:$0]  (!%p18142_p6), %s21386_s6, 24576, %s861_s23, [#allocation21], %s21326_s2, %s21326_s2, %s21327_s9  }
  0xb4   : > { %s17491_s26 = scalar_lea.hbm %s21387_s4, 3072 }
  0xb5   : > { %p17492_p7 = scmp.ne.s32.totalorder %s21387_s4, %s17491_s26  ;;  %p17498_p3 = scmp.lt.u32.totalorder %s17491_s26, %s21387_s4 }
  0xb7   : > { %p17494_p4 = pnand %p17492_p7, %p18154_p8 }
  0xb9   : > { %p17495_p1 = pneg %p17494_p4 }
  0xbb   : > { %p17500_p9 = pnand %p17498_p3, %p17495_p1 }
  0xbd   : > { %17503 = shalt.err (!%p17500_p9)
}
  0xbe   : > { %s17504_s25 = scalar_lea.vmem %s893_s16, 3072  ;;  %p17512_p13 = scmp.lt.s32.totalorder %s893_s16, %s893_s16 }
  0xbf   : > { %p17505_p10 = scmp.ne.s32.totalorder %s893_s16, %s17504_s25  ;;  %p17513_p0 = scmp.lt.s32.totalorder %s17504_s25, %s17504_s25 }
  0xc1   : > { %p17507_p11 = pnand %p17505_p10, %p18154_p8  ;;  %p17514_p2 = por %p17513_p0, %p17512_p13 }
  0xc3   : > { %p17508_p12 = pneg %p17507_p11 }
  0xc5   : > { %p17515_p5 = pnand %p17514_p2, %p17508_p12 }
  0xc7   : > { %17518 = shalt.err (!%p17515_p5)
}
  0xc8   : > { %17254 = dma.hbm_to_vmem [thread:$0]  (!%p18142_p6), %s21387_s4, 3072, %s893_s16, [#allocation24], %s21328_s1, %s21328_s1, %s21330_s15  }
  0xc9   : > { %s17935_s23 = smov [#allocation13]   ;;  %s17936_s26 = smov [#allocation16]  }
  0xca   : > { %s780_s8 = sshll.u32 %s17935_s23, 4  ;;  %s812_s2 = sshll.u32 %s17936_s26, 4  ;;  %s781_s8 = int_to_ptr.vmem [resolvable:$true] %s780_s8  ;;  %s813_s2 = int_to_ptr.vmem [resolvable:$true] %s812_s2 }
  0xcb   : > { %s17519_s25 = scalar_lea.hbm %s21384_s17, 3072 }
  0xcc   : > { %p17520_p7 = scmp.ne.s32.totalorder %s21384_s17, %s17519_s25  ;;  %p17526_p3 = scmp.lt.u32.totalorder %s17519_s25, %s21384_s17 }
  0xce   : > { %p17522_p4 = pnand %p17520_p7, %p18154_p8 }
  0xd0   : > { %p17523_p1 = pneg %p17522_p4 }
  0xd2   : > { %p17528_p9 = pnand %p17526_p3, %p17523_p1 }
  0xd4   : > { %17531 = shalt.err (!%p17528_p9)
}
  0xd5   : > { %s17532_s9 = scalar_lea.vmem %s781_s8, 3072  ;;  %p17540_p13 = scmp.lt.s32.totalorder %s781_s8, %s781_s8 }
  0xd6   : > { %p17533_p10 = scmp.ne.s32.totalorder %s781_s8, %s17532_s9  ;;  %p17541_p0 = scmp.lt.s32.totalorder %s17532_s9, %s17532_s9 }
  0xd8   : > { %p17535_p11 = pnand %p17533_p10, %p18154_p8  ;;  %p17542_p2 = por %p17541_p0, %p17540_p13 }
  0xda   : > { %p17536_p12 = pneg %p17535_p11 }
  0xdc   : > { %p17543_p5 = pnand %p17542_p2, %p17536_p12 }
  0xde   : > { %17546 = shalt.err (!%p17543_p5)
}
  0xdf   : > { %17233 = dma.hbm_to_vmem [thread:$0]  (!%p18142_p6), %s21384_s17, 3072, %s781_s8, [#allocation12], %s21328_s1, %s21328_s1, %s21330_s15  }
  0xe0   : > { %s17547_s16 = scalar_lea.hbm %s21388_s3, 2048 }
  0xe1   : > { %p17548_p7 = scmp.ne.s32.totalorder %s21388_s3, %s17547_s16  ;;  %p17554_p3 = scmp.lt.u32.totalorder %s17547_s16, %s21388_s3 }
  0xe3   : > { %p17550_p4 = pnand %p17548_p7, %p18154_p8 }
  0xe5   : > { %p17551_p1 = pneg %p17550_p4 }
  0xe7   : > { %p17556_p9 = pnand %p17554_p3, %p17551_p1 }
  0xe9   : > { %17559 = shalt.err (!%p17556_p9)
}
  0xea   : > { %s17560_s9 = scalar_lea.vmem %s813_s2, 2048  ;;  %p17568_p13 = scmp.lt.s32.totalorder %s813_s2, %s813_s2 }
  0xeb   : > { %p17561_p10 = scmp.ne.s32.totalorder %s813_s2, %s17560_s9  ;;  %p17569_p0 = scmp.lt.s32.totalorder %s17560_s9, %s17560_s9 }
  0xed   : > { %p17563_p11 = pnand %p17561_p10, %p18154_p8  ;;  %p17570_p2 = por %p17569_p0, %p17568_p13 }
  0xef   : > { %p17564_p12 = pneg %p17563_p11 }
  0xf1   : > { %p17571_p5 = pnand %p17570_p2, %p17564_p12 }
  0xf3   : > { %17574 = shalt.err (!%p17571_p5)
}
  0xf4   : > { %s21394_s23 = smov 16   ;;  %s21395_s8 = smov 256  }
  0xf5   : > { %17239 = dma.hbm_to_vmem [thread:$0]  (!%p18142_p6), %s21388_s3, 2048, %s813_s2, [#allocation15], %s21395_s8, %s21395_s8, %s21394_s23  }
  0xf6   : > { %s17937_s26 = smov [#allocation19]   ;;  %s17938_s16 = smov [#allocation22]  }
  0xf7   : > { %s844_s25 = sshll.u32 %s17937_s26, 4  ;;  %s876_s1 = sshll.u32 %s17938_s16, 4  ;;  %s845_s25 = int_to_ptr.vmem [resolvable:$true] %s844_s25  ;;  %s877_s1 = int_to_ptr.vmem [resolvable:$true] %s876_s1 }
  0xf8   : > { %s17575_s9 = scalar_lea.hbm %s18013_s24, 1024 }
  0xf9   : > { %p17576_p7 = scmp.ne.s32.totalorder %s18013_s24, %s17575_s9  ;;  %p17582_p3 = scmp.lt.u32.totalorder %s17575_s9, %s18013_s24 }
  0xfb   : > { %p17578_p4 = pnand %p17576_p7, %p18154_p8 }
  0xfd   : > { %p17579_p1 = pneg %p17578_p4 }
  0xff   : > { %p17584_p9 = pnand %p17582_p3, %p17579_p1 }
 0x101   : > { %17587 = shalt.err (!%p17584_p9)
}
 0x102   : > { %s17588_s15 = scalar_lea.vmem %s845_s25, 1024  ;;  %p17596_p13 = scmp.lt.s32.totalorder %s845_s25, %s845_s25 }
 0x103   : > { %p17589_p10 = scmp.ne.s32.totalorder %s845_s25, %s17588_s15  ;;  %p17597_p0 = scmp.lt.s32.totalorder %s17588_s15, %s17588_s15 }
 0x105   : > { %p17591_p11 = pnand %p17589_p10, %p18154_p8  ;;  %p17598_p2 = por %p17597_p0, %p17596_p13 }
 0x107   : > { %p17592_p12 = pneg %p17591_p11 }
 0x109   : > { %p17599_p5 = pnand %p17598_p2, %p17592_p12 }
 0x10b   : > { %17602 = shalt.err (!%p17599_p5)
}
 0x10c   : > { %s21396_s2 = smov 8   ;;  %s21397_s23 = smov 128  }
 0x10d   : > { %17245 = dma.hbm_to_vmem [thread:$0]  (!%p18142_p6), %s18013_s24, 1024, %s845_s25, [#allocation18], %s21397_s23, %s21397_s23, %s21396_s2  }
 0x10e   : > { %s17603_s8 = scalar_lea.hbm %s21383_s20, 6144 }
 0x10f   : > { %p17604_p7 = scmp.ne.s32.totalorder %s21383_s20, %s17603_s8  ;;  %p17610_p3 = scmp.lt.u32.totalorder %s17603_s8, %s21383_s20 }
 0x111   : > { %p17606_p4 = pnand %p17604_p7, %p18154_p8 }
 0x113   : > { %p17607_p1 = pneg %p17606_p4 }
 0x115   : > { %p17612_p9 = pnand %p17610_p3, %p17607_p1 }
 0x117   : > { %17615 = shalt.err (!%p17612_p9)
}
 0x118   : > { %s17616_s15 = scalar_lea.vmem %s877_s1, 6144  ;;  %p17624_p13 = scmp.lt.s32.totalorder %s877_s1, %s877_s1 }
 0x119   : > { %p17617_p10 = scmp.ne.s32.totalorder %s877_s1, %s17616_s15  ;;  %p17625_p0 = scmp.lt.s32.totalorder %s17616_s15, %s17616_s15 }
 0x11b   : > { %p17619_p11 = pnand %p17617_p10, %p18154_p8  ;;  %p17626_p2 = por %p17625_p0, %p17624_p13 }
 0x11d   : > { %p17620_p12 = pneg %p17619_p11 }
 0x11f   : > { %p17627_p5 = pnand %p17626_p2, %p17620_p12 }
 0x121   : > { %17630 = shalt.err (!%p17627_p5)
}
 0x122   : > { %17251 = dma.hbm_to_vmem [thread:$0]  (!%p18142_p6), %s21383_s20, 6144, %s877_s1, [#allocation21], %s21397_s23, %s21397_s23, %s21396_s2  }
 0x123   : > { %s17939_s26 = smov [#allocation25]   ;;  %s17631_s16 = scalar_lea.hbm %s18078_s27, 1024 }
 0x124   : > { %s923_s25 = sshll.u32 %s17939_s26, 4  ;;  %p17632_p7 = scmp.ne.s32.totalorder %s18078_s27, %s17631_s16  ;;  %s924_s25 = int_to_ptr.vmem [resolvable:$true] %s923_s25 }
 0x125   : > { %p17638_p3 = scmp.lt.u32.totalorder %s17631_s16, %s18078_s27 }
 0x126   : > { %p17634_p4 = pnand %p17632_p7, %p18154_p8 }
 0x128   : > { %p17635_p1 = pneg %p17634_p4 }
 0x12a   : > { %p17640_p9 = pnand %p17638_p3, %p17635_p1 }
 0x12c   : > { %17643 = shalt.err (!%p17640_p9)
}
 0x12d   : > { %s17644_s9 = scalar_lea.vmem %s924_s25, 1024  ;;  %p17652_p13 = scmp.lt.s32.totalorder %s924_s25, %s924_s25 }
 0x12e   : > { %p17645_p10 = scmp.ne.s32.totalorder %s924_s25, %s17644_s9  ;;  %p17653_p0 = scmp.lt.s32.totalorder %s17644_s9, %s17644_s9 }
 0x130   : > { %p17647_p11 = pnand %p17645_p10, %p18154_p8  ;;  %p17654_p2 = por %p17653_p0, %p17652_p13 }
 0x132   : > { %p17648_p12 = pneg %p17647_p11 }
 0x134   : > { %p17655_p5 = pnand %p17654_p2, %p17648_p12 }
 0x136   : > { %17658 = shalt.err (!%p17655_p5)
}
 0x137   : > { %17257 = dma.hbm_to_vmem [thread:$0]  (!%p18142_p6), %s18078_s27, 1024, %s924_s25, [#allocation24], %s21397_s23, %s21397_s23, %s21396_s2  }
 0x138   : > { %s21334_s19 = sadd.s32 4294967294, %s17895_s0   ;;  %s18303_s28 = sadd.s32 1, %s17895_s0  }
 0x139   : > { %s91_s1 = ssub.s32 %s17895_s0, %s18303_s28  ;;  %s94_s8 = sadd.s32 1, %s17891_s11 }
 0x13a   : > { %p92_p8 = scmp.eq.s32.totalorder %s91_s1, 0  ;;  %p101_p7 = scmp.ne.s32.totalorder %s17891_s11, %s17887_s10 }
 0x13b   : > { %p102_p4 = scmp.eq.s32.totalorder %s17895_s0, 0  ;;  %p107_p1 = scmp.ne.s32.totalorder %s17887_s10, %s17883_s7 }
 0x13c   : > { %s18314_s15 = scalar_select %p92_p8, %s17891_s11, %s94_s8  }
 0x13d   : > { %p18316_p3 = por %p102_p4, %p101_p7  ;;  %p21399_p9 = scmp.eq.s32.totalorder %s18126_s18, 0 }
 0x13e   : > { %p635_p10 = scmp.eq.s32.totalorder %s18126_s18, 1  ;;  %p641_p11 = scmp.eq.s32.totalorder %s21334_s19, 1 }
 0x13f   : > { %p18322_p6 = por %p21399_p9, %p107_p1  ;;  %p17288_p12 = scmp.lt.s32.totalorder %s17895_s0, 2 }
 0x140   : > { %s937_s16 = sand.u32 1, %s17891_s11   ;;  %p18331_p13 = por %p635_p10, %p101_p7 }
 0x141   : > { %s21400_s25 = scalar_select %p18322_p6, 1, 0 }
 0x142   : > { %s21401_s9 = scalar_select %p18331_p13, 1, 0 }
 0x143   : > { %p18335_p0 = por %p641_p11, %p107_p1  ;;  %s12414_s8 = sshll.u32 %s937_s16, 4 }
 0x144   : > { %s12534_s3 = sshll.u32 %s17895_s0, 8  ;;  %s941_s19 = scalar_lea.vmem [#allocation8], %s12414_s8 }
 0x145   : > { %s21402_s1 = scalar_select %p18335_p0, 1, 0 }
 0x146   : > { %s18341_s4 = scalar_lea.hbm %s21382_s5, %s12534_s3  ;;  %s948_s6 = sshll.u32 %s941_s19, 4  ;;  %s18343_s6 = int_to_ptr.vmem [resolvable:$true] %s948_s6 }
 0x147   : > { %p18347_p2 = pnand %p17288_p12, %p18316_p3  ;;  %s18351_s17 = scalar_lea.sflag [#allocation9], %s937_s16 }
 0x148   : > { %s17659_s20 = scalar_lea.hbm %s18341_s4, 256  ;;  %s17664_s3 = scalar_lea.hbm %s21382_s5, 512 }
 0x149   : > { %p17660_p5 = scmp.ne.s32.totalorder %s18341_s4, %s17659_s20  ;;  %p17661_p8 = pneg %p18347_p2 }
 0x14a   : > { %p17665_p1 = scmp.lt.u32.totalorder %s18341_s4, %s21382_s5  ;;  %p17666_p9 = scmp.lt.u32.totalorder %s17664_s3, %s17659_s20 }
 0x14b   : > { %p17662_p7 = pnand %p17661_p8, %p17660_p5  ;;  %p17668_p3 = scmp.lt.u32.totalorder %s17659_s20, %s18341_s4 }
 0x14c   : > { %p17667_p10 = por %p17666_p9, %p17665_p1 }
 0x14d   : > { %p17663_p4 = pneg %p17662_p7 }
 0x14e   : > { %p17669_p11 = por %p17668_p3, %p17667_p10 }
 0x150   : > { %p17670_p12 = pnand %p17669_p11, %p17663_p4 }
 0x152   : > { %17673 = shalt.err (!%p17670_p12)
}
 0x153   : > { %s17674_s19 = scalar_lea.vmem %s18343_s6, 256  ;;  %s17940_s26 = smov [#allocation8]  }
 0x154   : > { %p17675_p0 = scmp.ne.s32.totalorder %s18343_s6, %s17674_s19  ;;  %s17679_s16 = sshll.u32 %s17940_s26, 4  ;;  %s17680_s16 = int_to_ptr.vmem [resolvable:$false] %s17679_s16 }
 0x155   : > { %s17681_s8 = scalar_lea.vmem %s17680_s16, 512  ;;  %p17682_p5 = scmp.lt.s32.totalorder %s18343_s6, %s17680_s16 }
 0x156   : > { %p17677_p13 = pnand %p17675_p0, %p17661_p8  ;;  %p17683_p7 = scmp.lt.s32.totalorder %s17681_s8, %s17674_s19 }
 0x158   : > { %p17678_p6 = pneg %p17677_p13  ;;  %p17684_p1 = por %p17683_p7, %p17682_p5 }
 0x15a   : > { %p17685_p9 = pnand %p17684_p1, %p17678_p6 }
 0x15c   : > { %17688 = shalt.err (!%p17685_p9)
}
 0x15d   : > { %17261 = dma.hbm_to_vmem [thread:$0]  (!%p18347_p2), %s18341_s4, 256, %s18343_s6, %s18351_s17, %s21397_s23, %s21397_s23, %s21396_s2  }
 0x15e   : > { %p21404_p13 = scmp.ne.s32.totalorder %s21391_s22, 0 }
 0x15f   : > { %s18381_s20 = sand.u32 (!%p21404_p13), 1, %s17887_s10   ;;  %p21405_p6 = scmp.ne.s32.totalorder (!%p21404_p13), %s21400_s25, 0 }
 0x160   : > { %960 = sbr.rel (%p21404_p13) target bundleno = 3210 (0xc8a), region = 120  ;;  %s12418_s3 = sshll.u32 (!%p21404_p13), %s18381_s20, 4 }
 0x161   : > { %s963_s19 = scalar_lea.sflag (!%p21404_p13), [#allocation9], %s18381_s20  ;;  %s18387_s14 = scalar_lea.vmem (!%p21404_p13), [#allocation8], %s12418_s3 }
 0x167   : > { %17846 = dma.done.wait (%p21405_p6), %s963_s19, 256  }
 0x168   : > { %17848 = vsyncadd (%p21405_p6), %s963_s19, 4294967040  ;;  %p21406_p0 = scmp.eq.s32.totalorder %s18126_s18, 0 }
 0x16a   : > { %17850 = dma.done.wait (%p21406_p0), [#allocation12], 5376   ;;  %p21407_p2 = pmov %p21406_p0 }
 0x16b   : > { %p21408_p8 = pmov %p21406_p0 }
 0x16c   : > { %17852 = vsyncadd (%p21407_p2), [#allocation12], 4294961920 }
 0x16d   : > { %17854 = dma.done.wait (%p21408_p8), [#allocation15], 5120   ;;  %p21409_p4 = pmov %p21406_p0 }
 0x16e   : > { %p21410_p10 = pmov %p21406_p0 }
 0x16f   : > { %17856 = vsyncadd (%p21409_p4), [#allocation15], 4294962176 }
 0x170   : > { %17858 = dma.done.wait (%p21410_p10), [#allocation18], 2048   ;;  %p21411_p3 = pmov %p21406_p0 }
 0x171   : > { %p21412_p11 = pmov %p21406_p0 }
 0x172   : > { %17860 = vsyncadd (%p21411_p3), [#allocation18], 4294965248 }
 0x173   : > { %17862 = dma.done.wait (%p21412_p11), [#allocation21], 30720   ;;  %p21413_p12 = pmov %p21406_p0 }
 0x174   : > { %p21414_p5 = pmov %p21406_p0 }
 0x175   : > { %17864 = vsyncadd (%p21413_p12), [#allocation21], 4294936576 }
 0x176   : > { %17866 = dma.done.wait (%p21414_p5), [#allocation24], 4096   ;;  %p21415_p7 = pmov %p21406_p0 }
 0x177   : > { %v17941_v0 = vmov 0.0|0.0   ;;  %vm17942_vm0 = vmmov 0   ;;  %v17943_v1 = vmov 0.0   ;;  %v1109_v2 = vld [vmem:[#allocation11 + $0x60] sm:$0xff]  ;;  %v1110_v3 = vld [vmem:[#allocation11 + $0x68] sm:$0xff]  ;;  %v1101_v4 = vld [vmem:[#allocation11 + $0x30] sm:$0xff] }
 0x178   : > { %17868 = vsyncadd (%p21415_p7), [#allocation24], 4294963200  ;;  %14474 = vmatprep.subr.bf16.mxu0 %v17941_v0  ;;  %14483 = vmatprep.subr.bf16.mxu1 %v17941_v0  ;;  %v18419_v5 = vpack.c.bf16 %v1110_v3, %v1109_v2  ;;  %v1102_v6 = vld [vmem:[#allocation11 + $0x38] sm:$0xff]  ;;  %v1111_v7 = vld [vmem:[#allocation11 + $0x70] sm:$0xff]  ;;  %vm1115_vm1 = vcmask 392192   ;;  %vm1265_vm2 = vcmask 516096  }
 0x179   : > { %13172 = vmatprep.mubr.msk.f32.mxu0 %vm17942_vm0, %v17943_v1  ;;  %13187 = vmatprep.mubr.msk.f32.mxu1 %vm17942_vm0, %v17943_v1  ;;  %v1112_v8 = vld [vmem:[#allocation11 + $0x78] sm:$0xff]  ;;  %v18421_v9 = vpack.c.bf16 %v1102_v6, %v1101_v4  ;;  %v1103_v10 = vld [vmem:[#allocation11 + $0x40] sm:$0xff]  ;;  %v1104_v11 = vld [vmem:[#allocation11 + $0x48] sm:$0xff]  ;;  %vm3002_vm3 = vcmask 523264   ;;  %s21416_s17 = sld [smem:[#allocation52_spill]]  ;;  %s21417_s6 = sld [smem:[#allocation51_spill]] }
 0x17a   : > { %14476 = vmatpush3.bf16.msra.mxu0 %v18419_v5  ;;  %v18424_v12 = vpack.c.bf16 %v1112_v8, %v1111_v7  ;;  %v18428_v13 = vpack.c.bf16 %v1104_v11, %v1103_v10  ;;  %v1113_v14 = vld [vmem:[#allocation11 + $0x80] sm:$0xff]  ;;  %v1114_v15 = vld [vmem:[#allocation11 + $0x88] sm:$0xff]  ;;  %v1105_v16 = vld [vmem:[#allocation11 + $0x50] sm:$0xff]  ;;  %s21418_s4 = sld [smem:[#allocation58_spill]]  ;;  %s12431_s22 = sshll.u32 %s18381_s20, 1  ;;  %vm11923_vm5 = vcmask 253952  }
 0x17b   : > { %14485 = vmatpush3.bf16.msra.mxu1 %v18421_v9  ;;  %14477 = vmatprep.subr.bf16.mxu0 %v17941_v0  ;;  %v1106_v17 = vld [vmem:[#allocation11 + $0x58] sm:$0xff]  ;;  %v18432_v18 = vpack.c.bf16 %v1114_v15, %v1113_v14  ;;  %v1268_v20 = vld [vmem:[#allocation11] sm:$0xff]  ;;  %v1269_v21 = vld [vmem:[#allocation11 + $0x8] sm:$0xff]  ;;  %s19151_s2 = scalar_lea.vmem [#allocation29], %s12431_s22  ;;  %s21419_s23 = sld [smem:[#allocation63_spill]]  ;;  %vm11933_vm6 = vcmask 261120  }
 0x17c   : > { %14486 = vmatprep.subr.bf16.mxu1 %v17941_v0  ;;  %v18436_v19 = vpack.c.bf16 %v1106_v17, %v1105_v16  ;;  %v1107_v22 = vld [vmem:[%s18387_s14 + $0x1] sm:$0x1]  ;;  %v1099_v23 = vld [vmem:[%s18387_s14] sm:$0x1]  ;;  %v18444_v24 = vpack.c.bf16 %v1269_v21, %v1268_v20  ;;  %v1271_v26 = vld [vmem:[#allocation11 + $0x18] sm:$0xff]  ;;  %s21420_s25 = sld [smem:[#allocation56_spill]] }
 0x17d   : > { %v1270_v25 = vld [vmem:[#allocation11 + $0x10] sm:$0xff]  ;;  %v1272_v28 = vld [vmem:[#allocation11 + $0x20] sm:$0xff]  ;;  %v1273_v29 = vld [vmem:[#allocation11 + $0x28] sm:$0xff]  ;;  %s12430_s26 = sshll.u32 %s18381_s20, 2  ;;  %s21421_s8 = sld [smem:[#allocation49_spill]] }
 0x17e   : > { %14479 = vmatpush3.bf16.msra.mxu0 %v18424_v12  ;;  %v18452_v27 = vpack.c.bf16 %v1271_v26, %v1270_v25  ;;  %v18462_v30 = vpack.c.bf16 %v1273_v29, %v1272_v28  ;;  %v1274_v31 = vld [vmem:[%s18387_s14 + $0x2] sm:$0x1]  ;;  %v1267_v32 = vld [vmem:[%s18387_s14 + $0x1] sm:$0x1]  ;;  %v1427_v33 = vld [vmem:[%s18387_s14 + $0x3] sm:$0x1] }
 0x17f   : > { %14488 = vmatpush3.bf16.msra.mxu1 %v18428_v13  ;;  %14480 = vmatprep.subr.bf16.mxu0 %v17941_v0  ;;  %v1519_v34 = vld [vmem:[%s18387_s14 + $0x4] sm:$0x1]  ;;  %v1512_v35 = vld [vmem:[%s18387_s14 + $0x3] sm:$0x1]  ;;  %v1672_v36 = vld [vmem:[%s18387_s14 + $0x5] sm:$0x1] }
 0x180   : > { %14489 = vmatprep.subr.bf16.mxu1 %v17941_v0  ;;  %v1764_v37 = vld [vmem:[%s18387_s14 + $0x6] sm:$0x1]  ;;  %v1757_v38 = vld [vmem:[%s18387_s14 + $0x5] sm:$0x1]  ;;  %v1917_v39 = vld [vmem:[%s18387_s14 + $0x7] sm:$0x1] }
 0x181   : > { %v2009_v40 = vld [vmem:[%s18387_s14 + $0x8] sm:$0x1]  ;;  %v2002_v41 = vld [vmem:[%s18387_s14 + $0x7] sm:$0x1]  ;;  %v2162_v42 = vld [vmem:[%s18387_s14 + $0x9] sm:$0x1] }
 0x182   : > { %14482 = vmatpush3.bf16.msra.mxu0 %v18432_v18  ;;  %v2254_v43 = vld [vmem:[%s18387_s14 + $0xa] sm:$0x1]  ;;  %v2247_v44 = vld [vmem:[%s18387_s14 + $0x9] sm:$0x1]  ;;  %v2407_v45 = vld [vmem:[%s18387_s14 + $0xb] sm:$0x1] }
 0x183   : > { %14491 = vmatpush3.bf16.msra.mxu1 %v18436_v19  ;;  %14492 = vmatprep.subr.bf16.mxu0 %v17941_v0  ;;  %v2499_v46 = vld [vmem:[%s18387_s14 + $0xc] sm:$0x1]  ;;  %v2492_v47 = vld [vmem:[%s18387_s14 + $0xb] sm:$0x1]  ;;  %v2652_v48 = vld [vmem:[%s18387_s14 + $0xd] sm:$0x1] }
 0x184   : > { %14501 = vmatprep.subr.bf16.mxu1 %v17941_v0  ;;  %v2994_v49 = vld [vmem:[#allocation13 + $0x80] sm:$0xff]  ;;  %v2995_v50 = vld [vmem:[#allocation13 + $0x88] sm:$0xff]  ;;  %v2996_v54 = vld [vmem:[#allocation13 + $0x90] sm:$0xff]  ;;  %s19516_s16 = scalar_lea.vmem [#allocation27], %s12430_s26  ;;  %s21424_s19 = sld [smem:[#allocation54_spill]] }
 0x185   : > { %13173 = vmatmul.mubr.msk.f32.vlgmr.msra.gmra.mrb[0].mxu0 %vm1115_vm1, %v1107_v22  ;;  %v2744_v51 = vld [vmem:[%s18387_s14 + $0xe] sm:$0x1]  ;;  %v2737_v52 = vld [vmem:[%s18387_s14 + $0xd] sm:$0x1]  ;;  %v18651_v53 = vpack.c.bf16 %v2995_v50, %v2994_v49  ;;  %v2998_v57 = vld [vmem:[#allocation13 + $0xa0] sm:$0xff]  ;;  %s21426_s22 = sld [smem:[#allocation61_spill]] }
 0x186   : > { %13188 = vmatmul.mubr.msk.f32.vlgmr.msra.gmra.mrb[0].mxu1 %vm1115_vm1, %v1099_v23  ;;  %14494 = vmatpush3.bf16.msra.mxu0 %v18421_v9  ;;  %v2997_v55 = vld [vmem:[#allocation13 + $0x98] sm:$0xff]  ;;  %v2999_v58 = vld [vmem:[#allocation13 + $0xa8] sm:$0xff]  ;;  %v2984_v59 = vld [vmem:[#allocation13 + $0x40] sm:$0xff]  ;;  %s21427_s26 = sld [smem:[#allocation60_spill]]  ;;  %p21428_p9 = scmp.ne.s32.totalorder %s21401_s9, 0 }
 0x187   : > { %14503 = vmatpush3.bf16.msra.mxu1 %v18444_v24  ;;  %14495 = vmatprep.subr.bf16.mxu0 %v17941_v0  ;;  %v18660_v56 = vpack.c.bf16 %v2997_v55, %v2996_v54  ;;  %v2985_v60 = vld [vmem:[#allocation13 + $0x48] sm:$0xff]  ;;  %v18668_v61 = vpack.c.bf16 %v2999_v58, %v2998_v57  ;;  %v3000_v62 = vld [vmem:[#allocation13 + $0xb0] sm:$0xff]  ;;  %v3001_v63 = vld [vmem:[#allocation13 + $0xb8] sm:$0xff] }
 0x188   : > { %14504 = vmatprep.subr.bf16.mxu1 %v17941_v0  ;;  %13202 = vmatprep.mubr.msk.f32.mxu0 %vm17942_vm0, %v17943_v1  ;;  %v2897_v2 = vld [vmem:[%s18387_s14 + $0xf] sm:$0x1]  ;;  %v18673_v3 = vpack.c.bf16 %v2985_v60, %v2984_v59  ;;  %v2986_v4 = vld [vmem:[#allocation13 + $0x50] sm:$0xff]  ;;  %v18677_v6 = vpack.c.bf16 %v3001_v63, %v3000_v62  ;;  %v2988_v8 = vld [vmem:[#allocation13 + $0x60] sm:$0xff]  ;;  %s20386_s14 = scalar_lea.vmem [#allocation26], %s12418_s3  ;;  %s21425_s3 = sld [smem:[#allocation59_spill]] }
 0x189   : > { %13217 = vmatprep.mubr.msk.f32.mxu1 %vm17942_vm0, %v17943_v1  ;;  %v2990_v11 = vld [vmem:[#allocation13 + $0x70] sm:$0xff]  ;;  %v1262_v16 = vld [vmem:[%s21381_s13] sm:$0x1]  ;;  %v3154_v22 = vld [vmem:[#allocation13] sm:$0xff] }
 0x18a   : > { %14497 = vmatpush3.bf16.msra.mxu0 %v18428_v13  ;;  %v3155_v23 = vld [vmem:[#allocation13 + $0x8] sm:$0xff] }
 0x18b   : > { %14506 = vmatpush3.bf16.msra.mxu1 %v18452_v27  ;;  %14498 = vmatprep.subr.bf16.mxu0 %v17941_v0 }
 0x18c   : > { %14507 = vmatprep.subr.bf16.mxu1 %v17941_v0 }
 0x18e   : > { %14500 = vmatpush3.bf16.msra.mxu0 %v18436_v19 }
 0x18f   : > { %14509 = vmatpush3.bf16.msra.mxu1 %v18462_v30  ;;  %14510 = vmatprep.subr.bf16.mxu0 %v17941_v0 }
 0x190   : > { %14519 = vmatprep.subr.bf16.mxu1 %v17941_v0 }
 0x191   : > { %13203 = vmatmul.mubr.msk.f32.vlgmr.msra.gmra.mrb[2].mxu0 %vm1115_vm1, %v1274_v31  ;;  %v3157_v31 = vld [vmem:[#allocation13 + $0x18] sm:$0xff] }
 0x192   : > { %13218 = vmatmul.mubr.msk.f32.vlgmr.msra.gmra.mrb[2].mxu1 %vm1115_vm1, %v1267_v32  ;;  %14512 = vmatpush3.bf16.msra.mxu0 %v18419_v5 }
 0x193   : > { %14521 = vmatpush3.bf16.msra.mxu1 %v18421_v9  ;;  %14513 = vmatprep.subr.bf16.mxu0 %v17941_v0 }
 0x194   : > { %14522 = vmatprep.subr.bf16.mxu1 %v17941_v0  ;;  %13232 = vmatprep.mubr.msk.f32.mxu0 %vm17942_vm0, %v17943_v1 }
 0x195   : > { %13247 = vmatprep.mubr.msk.f32.mxu1 %vm17942_vm0, %v17943_v1 }
 0x196   : > { %14515 = vmatpush3.bf16.msra.mxu0 %v18424_v12 }
 0x197   : > { %14524 = vmatpush3.bf16.msra.mxu1 %v18428_v13  ;;  %14516 = vmatprep.subr.bf16.mxu0 %v17941_v0 }
 0x198   : > { %14525 = vmatprep.subr.bf16.mxu1 %v17941_v0 }
 0x19a   : > { %14518 = vmatpush3.bf16.msra.mxu0 %v18432_v18 }
 0x19b   : > { %14527 = vmatpush3.bf16.msra.mxu1 %v18436_v19  ;;  %14528 = vmatprep.subr.bf16.mxu0 %v17941_v0 }
 0x19c   : > { %14537 = vmatprep.subr.bf16.mxu1 %v17941_v0 }
 0x19d   : > { %13233 = vmatmul.mubr.msk.f32.vlgmr.msra.gmra.mrb[4].mxu0 %vm1115_vm1, %v1427_v33 }
 0x19e   : > { %14530 = vmatpush3.bf16.msra.mxu0 %v18444_v24  ;;  %13248 = vmatmul.mubr.msk.f32.vlgmr.msra.gmra.mrb[4].mxu1 %vm1115_vm1, %v1519_v34  ;;  %v3158_v34 = vld [vmem:[#allocation13 + $0x20] sm:$0xff] }
 0x19f   : > { %14539 = vmatpush3.bf16.msra.mxu1 %v18419_v5  ;;  %14531 = vmatprep.subr.bf16.mxu0 %v17941_v0 }
 0x1a0   : > { %14540 = vmatprep.subr.bf16.mxu1 %v17941_v0  ;;  %13262 = vmatprep.mubr.msk.f32.mxu0 %vm17942_vm0, %v17943_v1 }
 0x1a1   : > { %13277 = vmatprep.mubr.msk.f32.mxu1 %vm17942_vm0, %v17943_v1 }
 0x1a2   : > { %14533 = vmatpush3.bf16.msra.mxu0 %v18452_v27 }
 0x1a3   : > { %14542 = vmatpush3.bf16.msra.mxu1 %v18424_v12  ;;  %14534 = vmatprep.subr.bf16.mxu0 %v17941_v0 }
 0x1a4   : > { %14543 = vmatprep.subr.bf16.mxu1 %v17941_v0 }
 0x1a6   : > { %14536 = vmatpush3.bf16.msra.mxu0 %v18462_v30 }
 0x1a7   : > { %14545 = vmatpush3.bf16.msra.mxu1 %v18432_v18  ;;  %14546 = vmatprep.subr.bf16.mxu0 %v17941_v0 }
 0x1a8   : > { %14555 = vmatprep.subr.bf16.mxu1 %v17941_v0 }
 0x1a9   : > { %13263 = vmatmul.mubr.msk.f32.vlgmr.msra.gmra.mrb[6].mxu0 %vm1115_vm1, %v1512_v35  ;;  %v3159_v35 = vld [vmem:[#allocation13 + $0x28] sm:$0xff] }
 0x1aa   : > { %14548 = vmatpush3.bf16.msra.mxu0 %v18421_v9  ;;  %13278 = vmatmul.mubr.msk.f32.vlgmr.msra.gmra.mrb[6].mxu1 %vm1115_vm1, %v1672_v36  ;;  %v18711_v36 = vpack.c.bf16 %v3159_v35, %v3158_v34 }
 0x1ab   : > { %14557 = vmatpush3.bf16.msra.mxu1 %v18444_v24  ;;  %14549 = vmatprep.subr.bf16.mxu0 %v17941_v0 }
 0x1ac   : > { %14558 = vmatprep.subr.bf16.mxu1 %v17941_v0  ;;  %13292 = vmatprep.mubr.msk.f32.mxu0 %vm17942_vm0, %v17943_v1 }
 0x1ad   : > { %13307 = vmatprep.mubr.msk.f32.mxu1 %vm17942_vm0, %v17943_v1 }
 0x1ae   : > { %14551 = vmatpush3.bf16.msra.mxu0 %v18428_v13 }
 0x1af   : > { %14560 = vmatpush3.bf16.msra.mxu1 %v18452_v27  ;;  %14552 = vmatprep.subr.bf16.mxu0 %v17941_v0 }
 0x1b0   : > { %14561 = vmatprep.subr.bf16.mxu1 %v17941_v0 }
 0x1b2   : > { %14554 = vmatpush3.bf16.msra.mxu0 %v18436_v19 }
 0x1b3   : > { %14563 = vmatpush3.bf16.msra.mxu1 %v18462_v30  ;;  %14564 = vmatprep.subr.bf16.mxu0 %v17941_v0 }
 0x1b4   : > { %14573 = vmatprep.subr.bf16.mxu1 %v17941_v0 }
 0x1b5   : > { %13293 = vmatmul.mubr.msk.f32.vlgmr.msra.gmra.mrb[8].mxu0 %vm1115_vm1, %v1764_v37  ;;  %v3160_v37 = vld [vmem:[#allocation13 + $0x30] sm:$0xff] }
 0x1b6   : > { %13308 = vmatmul.mubr.msk.f32.vlgmr.msra.gmra.mrb[8].mxu1 %vm1115_vm1, %v1757_v38  ;;  %14566 = vmatpush3.bf16.msra.mxu0 %v18419_v5  ;;  %v3161_v38 = vld [vmem:[#allocation13 + $0x38] sm:$0xff] }
 0x1b7   : > { %14575 = vmatpush3.bf16.msra.mxu1 %v18421_v9  ;;  %14567 = vmatprep.subr.bf16.mxu0 %v17941_v0 }
 0x1b8   : > { %14576 = vmatprep.subr.bf16.mxu1 %v17941_v0  ;;  %13322 = vmatprep.mubr.msk.f32.mxu0 %vm17942_vm0, %v17943_v1 }
 0x1b9   : > { %13337 = vmatprep.mubr.msk.f32.mxu1 %vm17942_vm0, %v17943_v1 }
 0x1ba   : > { %14569 = vmatpush3.bf16.msra.mxu0 %v18424_v12 }
 0x1bb   : > { %14578 = vmatpush3.bf16.msra.mxu1 %v18428_v13  ;;  %14570 = vmatprep.subr.bf16.mxu0 %v17941_v0 }
 0x1bc   : > { %14579 = vmatprep.subr.bf16.mxu1 %v17941_v0 }
 0x1be   : > { %14572 = vmatpush3.bf16.msra.mxu0 %v18432_v18 }
 0x1bf   : > { %14581 = vmatpush3.bf16.msra.mxu1 %v18436_v19  ;;  %14582 = vmatprep.subr.bf16.mxu0 %v17941_v0 }
 0x1c0   : > { %14591 = vmatprep.subr.bf16.mxu1 %v17941_v0 }
 0x1c1   : > { %13323 = vmatmul.mubr.msk.f32.vlgmr.msra.gmra.mrb[10].mxu0 %vm1115_vm1, %v1917_v39 }
 0x1c2   : > { %14584 = vmatpush3.bf16.msra.mxu0 %v18444_v24  ;;  %13338 = vmatmul.mubr.msk.f32.vlgmr.msra.gmra.mrb[10].mxu1 %vm1115_vm1, %v2009_v40  ;;  %v1508_v40 = vld [vmem:[%s21381_s13] sm:$0x1] }
 0x1c3   : > { %14593 = vmatpush3.bf16.msra.mxu1 %v18419_v5  ;;  %14585 = vmatprep.subr.bf16.mxu0 %v17941_v0 }
 0x1c4   : > { %14594 = vmatprep.subr.bf16.mxu1 %v17941_v0  ;;  %13352 = vmatprep.mubr.msk.f32.mxu0 %vm17942_vm0, %v17943_v1 }
 0x1c5   : > { %13367 = vmatprep.mubr.msk.f32.mxu1 %vm17942_vm0, %v17943_v1 }
 0x1c6   : > { %14587 = vmatpush3.bf16.msra.mxu0 %v18452_v27 }
 0x1c7   : > { %14596 = vmatpush3.bf16.msra.mxu1 %v18424_v12  ;;  %14588 = vmatprep.subr.bf16.mxu0 %v17941_v0 }
 0x1c8   : > { %14597 = vmatprep.subr.bf16.mxu1 %v17941_v0 }
 0x1ca   : > { %14590 = vmatpush3.bf16.msra.mxu0 %v18462_v30 }
 0x1cb   : > { %14599 = vmatpush3.bf16.msra.mxu1 %v18432_v18  ;;  %14600 = vmatprep.subr.bf16.mxu0 %v17941_v0 }
 0x1cc   : > { %14609 = vmatprep.subr.bf16.mxu1 %v17941_v0 }
 0x1cd   : > { %13353 = vmatmul.mubr.msk.f32.vlgmr.msra.gmra.mrb[12].mxu0 %vm1115_vm1, %v2002_v41 }
 0x1ce   : > { %14602 = vmatpush3.bf16.msra.mxu0 %v18421_v9  ;;  %13368 = vmatmul.mubr.msk.f32.vlgmr.msra.gmra.mrb[12].mxu1 %vm1115_vm1, %v2162_v42 }
 0x1cf   : > { %14611 = vmatpush3.bf16.msra.mxu1 %v18444_v24  ;;  %14603 = vmatprep.subr.bf16.mxu0 %v17941_v0 }
 0x1d0   : > { %14612 = vmatprep.subr.bf16.mxu1 %v17941_v0  ;;  %13382 = vmatprep.mubr.msk.f32.mxu0 %vm17942_vm0, %v17943_v1 }
 0x1d1   : > { %13397 = vmatprep.mubr.msk.f32.mxu1 %vm17942_vm0, %v17943_v1 }
 0x1d2   : > { %14605 = vmatpush3.bf16.msra.mxu0 %v18428_v13 }
 0x1d3   : > { %14614 = vmatpush3.bf16.msra.mxu1 %v18452_v27  ;;  %14606 = vmatprep.subr.bf16.mxu0 %v17941_v0 }
 0x1d4   : > { %14615 = vmatprep.subr.bf16.mxu1 %v17941_v0 }
 0x1d6   : > { %14608 = vmatpush3.bf16.msra.mxu0 %v18436_v19 }
 0x1d7   : > { %14617 = vmatpush3.bf16.msra.mxu1 %v18462_v30  ;;  %14618 = vmatprep.subr.bf16.mxu0 %v17941_v0 }
 0x1d8   : > { %14627 = vmatprep.subr.bf16.mxu1 %v17941_v0 }
 0x1d9   : > { %13383 = vmatmul.mubr.msk.f32.vlgmr.msra.gmra.mrb[14].mxu0 %vm1115_vm1, %v2254_v43 }
 0x1da   : > { %13398 = vmatmul.mubr.msk.f32.vlgmr.msra.gmra.mrb[14].mxu1 %vm1115_vm1, %v2247_v44  ;;  %14620 = vmatpush3.bf16.msra.mxu0 %v18419_v5  ;;  %v18716_v44 = vpack.c.bf16 %v3161_v38, %v3160_v37 }
 0x1db   : > { %14629 = vmatpush3.bf16.msra.mxu1 %v18421_v9  ;;  %14621 = vmatprep.subr.bf16.mxu0 %v17941_v0 }
 0x1dc   : > { %14630 = vmatprep.subr.bf16.mxu1 %v17941_v0  ;;  %13412 = vmatprep.mubr.msk.f32.mxu0 %vm17942_vm0, %v17943_v1 }
 0x1dd   : > { %13427 = vmatprep.mubr.msk.f32.mxu1 %vm17942_vm0, %v17943_v1 }
 0x1de   : > { %14623 = vmatpush3.bf16.msra.mxu0 %v18424_v12 }
 0x1df   : > { %14632 = vmatpush3.bf16.msra.mxu1 %v18428_v13  ;;  %14624 = vmatprep.subr.bf16.mxu0 %v17941_v0 }
 0x1e0   : > { %14633 = vmatprep.subr.bf16.mxu1 %v17941_v0 }
 0x1e2   : > { %14626 = vmatpush3.bf16.msra.mxu0 %v18432_v18 }
 0x1e3   : > { %14635 = vmatpush3.bf16.msra.mxu1 %v18436_v19  ;;  %14636 = vmatprep.subr.bf16.mxu0 %v17941_v0 }
 0x1e4   : > { %14645 = vmatprep.subr.bf16.mxu1 %v17941_v0 }
 0x1e5   : > { %13413 = vmatmul.mubr.msk.f32.vlgmr.msra.gmra.mrb[16].mxu0 %vm1115_vm1, %v2407_v45 }
 0x1e6   : > { %14638 = vmatpush3.bf16.msra.mxu0 %v18444_v24  ;;  %13428 = vmatmul.mubr.msk.f32.vlgmr.msra.gmra.mrb[16].mxu1 %vm1115_vm1, %v2499_v46 }
 0x1e7   : > { %14647 = vmatpush3.bf16.msra.mxu1 %v18419_v5  ;;  %14639 = vmatprep.subr.bf16.mxu0 %v17941_v0 }
 0x1e8   : > { %14648 = vmatprep.subr.bf16.mxu1 %v17941_v0  ;;  %13442 = vmatprep.mubr.msk.f32.mxu0 %vm17942_vm0, %v17943_v1 }
 0x1e9   : > { %13457 = vmatprep.mubr.msk.f32.mxu1 %vm17942_vm0, %v17943_v1 }
 0x1ea   : > { %14641 = vmatpush3.bf16.msra.mxu0 %v18452_v27 }
 0x1eb   : > { %14650 = vmatpush3.bf16.msra.mxu1 %v18424_v12  ;;  %14642 = vmatprep.subr.bf16.mxu0 %v17941_v0 }
 0x1ec   : > { %14651 = vmatprep.subr.bf16.mxu1 %v17941_v0 }
 0x1ee   : > { %14644 = vmatpush3.bf16.msra.mxu0 %v18462_v30 }
 0x1ef   : > { %14653 = vmatpush3.bf16.msra.mxu1 %v18432_v18  ;;  %14654 = vmatprep.subr.bf16.mxu0 %v17941_v0 }
 0x1f0   : > { %14663 = vmatprep.subr.bf16.mxu1 %v17941_v0 }
 0x1f1   : > { %13443 = vmatmul.mubr.msk.f32.vlgmr.msra.gmra.mrb[18].mxu0 %vm1115_vm1, %v2492_v47 }
 0x1f2   : > { %14656 = vmatpush3.bf16.msra.mxu0 %v18421_v9  ;;  %13458 = vmatmul.mubr.msk.f32.vlgmr.msra.gmra.mrb[18].mxu1 %vm1115_vm1, %v2652_v48  ;;  %v2989_v9 = vld [vmem:[#allocation13 + $0x68] sm:$0xff] }
 0x1f3   : > { %14665 = vmatpush3.bf16.msra.mxu1 %v18444_v24  ;;  %14657 = vmatprep.subr.bf16.mxu0 %v17941_v0  ;;  %v18690_v10 = vpack.c.bf16 %v2989_v9, %v2988_v8 }
 0x1f4   : > { %14666 = vmatprep.subr.bf16.mxu1 %v17941_v0  ;;  %13472 = vmatprep.mubr.msk.f32.mxu0 %vm17942_vm0, %v17943_v1 }
 0x1f5   : > { %13487 = vmatprep.mubr.msk.f32.mxu1 %vm17942_vm0, %v17943_v1 }
 0x1f6   : > { %14659 = vmatpush3.bf16.msra.mxu0 %v18428_v13 }
 0x1f7   : > { %14668 = vmatpush3.bf16.msra.mxu1 %v18452_v27  ;;  %14660 = vmatprep.subr.bf16.mxu0 %v17941_v0  ;;  %v18701_v27 = vpack.c.bf16 %v3155_v23, %v3154_v22  ;;  %v2243_v23 = vld [vmem:[%s21381_s13] sm:$0x1] }
 0x1f8   : > { %14669 = vmatprep.subr.bf16.mxu1 %v17941_v0 }
 0x1fa   : > { %14662 = vmatpush3.bf16.msra.mxu0 %v18436_v19 }
 0x1fb   : > { %14671 = vmatpush3.bf16.msra.mxu1 %v18462_v30  ;;  %14672 = vmatprep.subr.bf16.mxu0 %v17941_v0  ;;  %v3156_v30 = vld [vmem:[#allocation13 + $0x10] sm:$0xff] }
 0x1fc   : > { %14681 = vmatprep.subr.bf16.mxu1 %v17941_v0  ;;  %v18705_v33 = vpack.c.bf16 %v3157_v31, %v3156_v30 }
 0x1fd   : > { %13473 = vmatmul.mubr.msk.f32.vlgmr.msra.gmra.mrb[20].mxu0 %vm1115_vm1, %v2744_v51 }
 0x1fe   : > { %13488 = vmatmul.mubr.msk.f32.vlgmr.msra.gmra.mrb[20].mxu1 %vm1115_vm1, %v2737_v52  ;;  %14674 = vmatpush3.bf16.msra.mxu0 %v18419_v5  ;;  %v2987_v5 = vld [vmem:[#allocation13 + $0x58] sm:$0xff]  ;;  %v1753_v52 = vld [vmem:[%s21381_s13] sm:$0x1] }
 0x1ff   : > { %14675 = vmatprep.subr.bf16.mxu0 %v17941_v0  ;;  %13502 = vmatprep.mubr.msk.f32.mxu0 %vm17942_vm0, %v17943_v1  ;;  %v18682_v7 = vpack.c.bf16 %v2987_v5, %v2986_v4 }
 0x200   : > { %14683 = vmatpush3.bf16.msra.mxu1 %v18651_v53  ;;  %13521 = vmatprep.mubr.msk.f32.mxu1 %vm17942_vm0, %v17943_v1 }
 0x201   : > { %14684 = vmatprep.subr.bf16.mxu1 %v17941_v0 }
 0x202   : > { %14677 = vmatpush3.bf16.msra.mxu0 %v18424_v12  ;;  %v2991_v12 = vld [vmem:[#allocation13 + $0x78] sm:$0xff] }
 0x203   : > { %14678 = vmatprep.subr.bf16.mxu0 %v17941_v0  ;;  %v18694_v13 = vpack.c.bf16 %v2991_v12, %v2990_v11  ;;  %v1998_v11 = vld [vmem:[%s21381_s13] sm:$0x1] }
 0x204   : > { %14686 = vmatpush3.bf16.msra.mxu1 %v18660_v56 }
 0x205   : > { %14687 = vmatprep.subr.bf16.mxu1 %v17941_v0 }
 0x206   : > { %14680 = vmatpush3.bf16.msra.mxu0 %v18432_v18 }
 0x207   : > { %14693 = vmatprep.subr.bf16.mxu0 %v17941_v0 }
 0x208   : > { %14689 = vmatpush3.bf16.msra.mxu1 %v18668_v61 }
 0x209   : > { %13503 = vmatmul.mubr.msk.f32.vlgmr.msra.gmra.mrb[22].mxu0 %vm1115_vm1, %v2897_v2  ;;  %14690 = vmatprep.subr.bf16.mxu1 %v17941_v0 }
 0x20a   : > { %14695 = vmatpush3.bf16.msra.mxu0 %v18673_v3  ;;  %13540 = vmatprep.mubr.msk.f32.mxu0 %vm17942_vm0, %v17943_v1 }
 0x20b   : > { %14696 = vmatprep.subr.bf16.mxu0 %v17941_v0 }
 0x20c   : > { %14692 = vmatpush3.bf16.msra.mxu1 %v18677_v6 }
 0x20d   : > { %14705 = vmatprep.subr.bf16.mxu1 %v17941_v0 }
 0x20e   : > { %14698 = vmatpush3.bf16.msra.mxu0 %v18682_v7 }
 0x20f   : > { %14699 = vmatprep.subr.bf16.mxu0 %v17941_v0 }
 0x212   : > { %14701 = vmatpush3.bf16.msra.mxu0 %v18690_v10 }
 0x213   : > { %14702 = vmatprep.subr.bf16.mxu0 %v17941_v0 }
 0x216   : > { %14704 = vmatpush3.bf16.msra.mxu0 %v18694_v13 }
 0x217   : > { %14717 = vmatprep.subr.bf16.mxu0 %v17941_v0 }
 0x258   : > { %v1185_v14 = vpop.f32.mrb[0].mxu0 }
 0x259   : > { %v1258_v15 = vpop.f32.mrb[0].mxu1  ;;  %v13174_v17 = vpop.f32.mrb[1].mxu0 }
 0x25a   : > { %v1259_v18 = vadd.f32 %v1258_v15, %v1185_v14  ;;  %v13189_v19 = vpop.f32.mrb[1].mxu1 }
 0x25c   : > { %v1263_v20 = vadd.f32 %v1262_v16, %v1259_v18 }
 0x25e   : > { %v1264_v21 = vmax.f32 %v1263_v20, 0.0 }
 0x260   : > { %1266 = vst.msk [vmem:[#allocation2] sm:$0x1] %vm1265_vm2, %v1264_v21 }
 0x264   : > { %v1350_v24 = vpop.f32.mrb[2].mxu0 }
 0x265   : > { %v13204_v25 = vpop.f32.mrb[3].mxu0  ;;  %v1423_v26 = vpop.f32.mrb[2].mxu1 }
 0x266   : > { %v1424_v28 = vadd.f32 %v1423_v26, %v1350_v24  ;;  %v13219_v29 = vpop.f32.mrb[3].mxu1 }
 0x267   : > { %v2982_v32 = vld [vmem:[#allocation2] sm:$0x1] }
 0x268   : > { %13541 = vmatmul.mubr.msk.f32.vlgmr.msra.gmra.mrb[24].mxu0 %vm3002_vm3, %v2982_v32 }
 0x269   : > { %14719 = vmatpush3.bf16.msra.mxu0 %v18701_v27  ;;  %13578 = vmatprep.mubr.msk.f32.mxu0 %vm17942_vm0, %v17943_v1 }
 0x26a   : > { %14720 = vmatprep.subr.bf16.mxu0 %v17941_v0 }
 0x26d   : > { %14722 = vmatpush3.bf16.msra.mxu0 %v18705_v33 }
 0x26e   : > { %14723 = vmatprep.subr.bf16.mxu0 %v17941_v0 }
 0x270   : > { %v1503_v39 = vpop.f32.mrb[4].mxu0 }
 0x271   : > { %v1507_v41 = vadd.f32 %v1503_v39, %v1424_v28  ;;  %v13234_v42 = vpop.f32.mrb[5].mxu0  ;;  %14725 = vmatpush3.bf16.msra.mxu0 %v18711_v36  ;;  %v1595_v43 = vpop.f32.mrb[4].mxu1 }
 0x272   : > { %v13249_v45 = vpop.f32.mrb[5].mxu1  ;;  %14726 = vmatprep.subr.bf16.mxu0 %v17941_v0 }
 0x273   : > { %v1509_v46 = vadd.f32 %v1508_v40, %v1507_v41  ;;  %v2488_v40 = vld [vmem:[%s21381_s13] sm:$0x1] }
 0x275   : > { %v1510_v47 = vmax.f32 %v1509_v46, 0.0  ;;  %14728 = vmatpush3.bf16.msra.mxu0 %v18716_v44 }
 0x276   : > { %14741 = vmatprep.subr.bf16.mxu0 %v17941_v0 }
 0x277   : > { %1511 = vst.msk [vmem:[#allocation2 + $0x1] sm:$0x1] %vm1265_vm2, %v1510_v47 }
 0x27c   : > { %v1668_v48 = vpop.f32.mrb[6].mxu0 }
 0x27d   : > { %v1669_v49 = vadd.f32 %v1668_v48, %v1595_v43  ;;  %v13264_v50 = vpop.f32.mrb[7].mxu0  ;;  %v1748_v51 = vpop.f32.mrb[6].mxu1 }
 0x27e   : > { %v2992_v54 = vld [vmem:[#allocation2 + $0x1] sm:$0x1]  ;;  %v13279_v57 = vpop.f32.mrb[7].mxu1  ;;  %v2733_v50 = vld [vmem:[%s21381_s13] sm:$0x1] }
 0x27f   : > { %v3153_v55 = vld [vmem:[#allocation2 + $0x1] sm:$0x1]  ;;  %v1752_v58 = vadd.f32 %v1748_v51, %v1669_v49  ;;  %13522 = vmatmul.mubr.msk.f32.vlgmr.msra.gmra.mrb[22].mxu1 %vm3002_vm3, %v2992_v54 }
 0x280   : > { %13579 = vmatmul.mubr.msk.f32.vlgmr.msra.gmra.mrb[26].mxu0 %vm3002_vm3, %v3153_v55  ;;  %14707 = vmatpush3.bf16.msra.mxu1 %v18673_v3 }
 0x281   : > { %13559 = vmatprep.mubr.msk.f32.mxu1 %vm17942_vm0, %v17943_v1  ;;  %v1754_v59 = vadd.f32 %v1753_v52, %v1752_v58  ;;  %14708 = vmatprep.subr.bf16.mxu1 %v17941_v0 }
 0x282   : > { %14743 = vmatpush3.bf16.msra.mxu0 %v18673_v3  ;;  %13616 = vmatprep.mubr.msk.f32.mxu0 %vm17942_vm0, %v17943_v1 }
 0x283   : > { %14744 = vmatprep.subr.bf16.mxu0 %v17941_v0  ;;  %v1755_v60 = vmax.f32 %v1754_v59, 0.0 }
 0x284   : > { %14710 = vmatpush3.bf16.msra.mxu1 %v18682_v7 }
 0x285   : > { %1756 = vst.msk [vmem:[#allocation2 + $0x2] sm:$0x1] %vm1265_vm2, %v1755_v60  ;;  %14711 = vmatprep.subr.bf16.mxu1 %v17941_v0 }
 0x286   : > { %14746 = vmatpush3.bf16.msra.mxu0 %v18682_v7 }
 0x287   : > { %14747 = vmatprep.subr.bf16.mxu0 %v17941_v0 }
 0x288   : > { %14713 = vmatpush3.bf16.msra.mxu1 %v18690_v10  ;;  %v1840_v62 = vpop.f32.mrb[8].mxu0 }
 0x289   : > { %v13294_v63 = vpop.f32.mrb[9].mxu0  ;;  %v1913_v2 = vpop.f32.mrb[8].mxu1  ;;  %14714 = vmatprep.subr.bf16.mxu1 %v17941_v0 }
 0x28a   : > { %14749 = vmatpush3.bf16.msra.mxu0 %v18690_v10  ;;  %v1914_v4 = vadd.f32 %v1913_v2, %v1840_v62  ;;  %v13309_v5 = vpop.f32.mrb[9].mxu1 }
 0x28b   : > { %14750 = vmatprep.subr.bf16.mxu0 %v17941_v0 }
 0x28c   : > { %14716 = vmatpush3.bf16.msra.mxu1 %v18694_v13  ;;  %v3162_v8 = vld [vmem:[#allocation2 + $0x2] sm:$0x1] }
 0x28d   : > { %14729 = vmatprep.subr.bf16.mxu1 %v17941_v0 }
 0x28e   : > { %14752 = vmatpush3.bf16.msra.mxu0 %v18694_v13 }
 0x28f   : > { %14765 = vmatprep.subr.bf16.mxu0 %v17941_v0  ;;  %13560 = vmatmul.mubr.msk.f32.vlgmr.msra.gmra.mrb[24].mxu1 %vm3002_vm3, %v3162_v8  ;;  %v3910_v8 = vld [vmem:[#allocation14 + $0x50] sm:$0xff] }
 0x290   : > { %14731 = vmatpush3.bf16.msra.mxu1 %v18651_v53  ;;  %13597 = vmatprep.mubr.msk.f32.mxu1 %vm17942_vm0, %v17943_v1 }
 0x291   : > { %14732 = vmatprep.subr.bf16.mxu1 %v17941_v0 }
 0x294   : > { %v1993_v9 = vpop.f32.mrb[10].mxu0  ;;  %14734 = vmatpush3.bf16.msra.mxu1 %v18660_v56 }
 0x295   : > { %v1997_v12 = vadd.f32 %v1993_v9, %v1914_v4  ;;  %v13324_v14 = vpop.f32.mrb[11].mxu0  ;;  %14735 = vmatprep.subr.bf16.mxu1 %v17941_v0  ;;  %v2085_v15 = vpop.f32.mrb[10].mxu1  ;;  %v3908_v4 = vld [vmem:[#allocation14 + $0x40] sm:$0xff]  ;;  %v3911_v9 = vld [vmem:[#allocation14 + $0x58] sm:$0xff] }
 0x296   : > { %v13339_v16 = vpop.f32.mrb[11].mxu1 }
 0x297   : > { %v1999_v17 = vadd.f32 %v1998_v11, %v1997_v12  ;;  %v3913_v12 = vld [vmem:[#allocation14 + $0x68] sm:$0xff]  ;;  %v3915_v16 = vld [vmem:[#allocation14 + $0x78] sm:$0xff] }
 0x298   : > { %14737 = vmatpush3.bf16.msra.mxu1 %v18668_v61 }
 0x299   : > { %v2000_v18 = vmax.f32 %v1999_v17, 0.0  ;;  %14738 = vmatprep.subr.bf16.mxu1 %v17941_v0 }
 0x29b   : > { %2001 = vst.msk [vmem:[#allocation2 + $0x3] sm:$0x1] %vm1265_vm2, %v2000_v18  ;;  %v3918_v18 = vld [vmem:[#allocation14 + $0x80] sm:$0xff] }
 0x29c   : > { %14740 = vmatpush3.bf16.msra.mxu1 %v18677_v6 }
 0x29d   : > { %14753 = vmatprep.subr.bf16.mxu1 %v17941_v0 }
 0x2a0   : > { %v2158_v19 = vpop.f32.mrb[12].mxu0 }
 0x2a1   : > { %v2159_v20 = vadd.f32 %v2158_v19, %v2085_v15  ;;  %v13354_v21 = vpop.f32.mrb[13].mxu0  ;;  %v2238_v22 = vpop.f32.mrb[12].mxu1  ;;  %v3914_v15 = vld [vmem:[#allocation14 + $0x70] sm:$0xff]  ;;  %v3919_v19 = vld [vmem:[#allocation14 + $0x88] sm:$0xff] }
 0x2a2   : > { %v3317_v24 = vld [vmem:[#allocation2 + $0x3] sm:$0x1]  ;;  %v13369_v25 = vpop.f32.mrb[13].mxu1  ;;  %v18839_v17 = vpack.c.bf16 %v3915_v16, %v3914_v15  ;;  %v3920_v21 = vld [vmem:[#allocation14 + $0x90] sm:$0xff] }
 0x2a3   : > { %v2242_v26 = vadd.f32 %v2238_v22, %v2159_v20  ;;  %13598 = vmatmul.mubr.msk.f32.vlgmr.msra.gmra.mrb[26].mxu1 %vm3002_vm3, %v3317_v24  ;;  %v3404_v38 = vld [vmem:[#allocation2 + $0x3] sm:$0x1]  ;;  %v18842_v20 = vpack.c.bf16 %v3919_v19, %v3918_v18  ;;  %v3921_v22 = vld [vmem:[#allocation14 + $0x98] sm:$0xff]  ;;  %v3922_v24 = vld [vmem:[#allocation14 + $0xa0] sm:$0xff] }
 0x2a4   : > { %14755 = vmatpush3.bf16.msra.mxu1 %v18701_v27  ;;  %13635 = vmatprep.mubr.msk.f32.mxu1 %vm17942_vm0, %v17943_v1  ;;  %v3923_v25 = vld [vmem:[#allocation14 + $0xa8] sm:$0xff] }
 0x2a5   : > { %v2244_v28 = vadd.f32 %v2243_v23, %v2242_v26  ;;  %14756 = vmatprep.subr.bf16.mxu1 %v17941_v0  ;;  %v18848_v23 = vpack.c.bf16 %v3921_v22, %v3920_v21  ;;  %v18852_v26 = vpack.c.bf16 %v3923_v25, %v3922_v24 }
 0x2a7   : > { %v2245_v29 = vmax.f32 %v2244_v28, 0.0  ;;  %v3924_v28 = vld [vmem:[#allocation14 + $0xb0] sm:$0xff] }
 0x2a8   : > { %14758 = vmatpush3.bf16.msra.mxu1 %v18705_v33 }
 0x2a9   : > { %2246 = vst.msk [vmem:[#allocation2 + $0x4] sm:$0x1] %vm1265_vm2, %v2245_v29  ;;  %14759 = vmatprep.subr.bf16.mxu1 %v17941_v0  ;;  %v3925_v29 = vld [vmem:[#allocation14 + $0xb8] sm:$0xff] }
 0x2ac   : > { %14761 = vmatpush3.bf16.msra.mxu1 %v18711_v36  ;;  %v2330_v30 = vpop.f32.mrb[14].mxu0 }
 0x2ad   : > { %v13384_v31 = vpop.f32.mrb[15].mxu0  ;;  %v2403_v32 = vpop.f32.mrb[14].mxu1  ;;  %14762 = vmatprep.subr.bf16.mxu1 %v17941_v0 }
 0x2ae   : > { %v2404_v34 = vadd.f32 %v2403_v32, %v2330_v30  ;;  %v13399_v35 = vpop.f32.mrb[15].mxu1  ;;  %v18855_v30 = vpack.c.bf16 %v3925_v29, %v3924_v28 }
 0x2af   : > { %v3149_v35 = vld [vmem:[%s21380_s21] sm:$0x1] }
 0x2b0   : > { %14764 = vmatpush3.bf16.msra.mxu1 %v18716_v44  ;;  %v3413_v37 = vld [vmem:[#allocation2 + $0x4] sm:$0x1] }
 0x2b1   : > { %13617 = vmatmul.mubr.msk.f32.vlgmr.msra.gmra.mrb[28].mxu0 %vm3002_vm3, %v3413_v37  ;;  %14777 = vmatprep.subr.bf16.mxu1 %v17941_v0 }
 0x2b2   : > { %14767 = vmatpush3.bf16.msra.mxu0 %v18651_v53  ;;  %13654 = vmatprep.mubr.msk.f32.mxu0 %vm17942_vm0, %v17943_v1 }
 0x2b3   : > { %13636 = vmatmul.mubr.msk.f32.vlgmr.msra.gmra.mrb[28].mxu1 %vm3002_vm3, %v3404_v38  ;;  %14768 = vmatprep.subr.bf16.mxu0 %v17941_v0 }
 0x2b4   : > { %14779 = vmatpush3.bf16.msra.mxu1 %v18673_v3  ;;  %13673 = vmatprep.mubr.msk.f32.mxu1 %vm17942_vm0, %v17943_v1 }
 0x2b5   : > { %14780 = vmatprep.subr.bf16.mxu1 %v17941_v0 }
 0x2b6   : > { %14770 = vmatpush3.bf16.msra.mxu0 %v18660_v56 }
 0x2b7   : > { %14771 = vmatprep.subr.bf16.mxu0 %v17941_v0 }
 0x2b8   : > { %v2483_v39 = vpop.f32.mrb[16].mxu0  ;;  %14782 = vmatpush3.bf16.msra.mxu1 %v18682_v7 }
 0x2b9   : > { %v2487_v41 = vadd.f32 %v2483_v39, %v2404_v34  ;;  %v13414_v42 = vpop.f32.mrb[17].mxu0  ;;  %v2575_v43 = vpop.f32.mrb[16].mxu1  ;;  %14783 = vmatprep.subr.bf16.mxu1 %v17941_v0 }
 0x2ba   : > { %14773 = vmatpush3.bf16.msra.mxu0 %v18668_v61  ;;  %v13429_v3 = vpop.f32.mrb[17].mxu1 }
 0x2bb   : > { %v2489_v45 = vadd.f32 %v2488_v40, %v2487_v41  ;;  %14774 = vmatprep.subr.bf16.mxu0 %v17941_v0  ;;  %v4078_v3 = vld [vmem:[#allocation14 + $0x8] sm:$0xff] }
 0x2bc   : > { %14785 = vmatpush3.bf16.msra.mxu1 %v18690_v10 }
 0x2bd   : > { %v2490_v46 = vmax.f32 %v2489_v45, 0.0  ;;  %14786 = vmatprep.subr.bf16.mxu1 %v17941_v0 }
 0x2be   : > { %14776 = vmatpush3.bf16.msra.mxu0 %v18677_v6 }
 0x2bf   : > { %2491 = vst.msk [vmem:[#allocation2 + $0x5] sm:$0x1] %vm1265_vm2, %v2490_v46  ;;  %14789 = vmatprep.subr.bf16.mxu0 %v17941_v0  ;;  %v4079_v46 = vld [vmem:[#allocation14 + $0x10] sm:$0xff] }
 0x2c0   : > { %14788 = vmatpush3.bf16.msra.mxu1 %v18694_v13 }
 0x2c1   : > { %14801 = vmatprep.subr.bf16.mxu1 %v17941_v0 }
 0x2c4   : > { %v2648_v7 = vpop.f32.mrb[18].mxu0 }
 0x2c5   : > { %v2649_v47 = vadd.f32 %v2648_v7, %v2575_v43  ;;  %v13444_v48 = vpop.f32.mrb[19].mxu0  ;;  %v2728_v49 = vpop.f32.mrb[18].mxu1  ;;  %v4077_v43 = vld [vmem:[#allocation14] sm:$0xff]  ;;  %v4080_v7 = vld [vmem:[#allocation14 + $0x18] sm:$0xff] }
 0x2c6   : > { %v3568_v51 = vld [vmem:[#allocation2 + $0x5] sm:$0x1]  ;;  %v13459_v10 = vpop.f32.mrb[19].mxu1  ;;  %v14850_v45 = vpack.c.bf16 %v4078_v3, %v4077_v43  ;;  %v4072_v3 = vld [vmem:[%s17988_s29] sm:$0x1] }
 0x2c7   : > { %v2732_v52 = vadd.f32 %v2728_v49, %v2649_v47  ;;  %13655 = vmatmul.mubr.msk.f32.vlgmr.msra.gmra.mrb[30].mxu0 %vm3002_vm3, %v3568_v51  ;;  %v14853_v49 = vpack.c.bf16 %v4080_v7, %v4079_v46  ;;  %v4081_v10 = vld [vmem:[#allocation14 + $0x20] sm:$0xff] }
 0x2c8   : > { %14791 = vmatpush3.bf16.msra.mxu0 %v18701_v27  ;;  %13692 = vmatprep.mubr.msk.f32.mxu0 %vm17942_vm0, %v17943_v1 }
 0x2c9   : > { %v2734_v54 = vadd.f32 %v2733_v50, %v2732_v52  ;;  %14792 = vmatprep.subr.bf16.mxu0 %v17941_v0  ;;  %v4082_v52 = vld [vmem:[#allocation14 + $0x28] sm:$0xff] }
 0x2cb   : > { %v2735_v13 = vmax.f32 %v2734_v54, 0.0  ;;  %v14856_v54 = vpack.c.bf16 %v4082_v52, %v4081_v10 }
 0x2cc   : > { %14794 = vmatpush3.bf16.msra.mxu0 %v18705_v33  ;;  %v3655_v33 = vld [vmem:[#allocation2 + $0x5] sm:$0x1] }
 0x2cd   : > { %2736 = vst.msk [vmem:[#allocation2 + $0x6] sm:$0x1] %vm1265_vm2, %v2735_v13  ;;  %14795 = vmatprep.subr.bf16.mxu0 %v17941_v0  ;;  %v4083_v13 = vld [vmem:[#allocation14 + $0x30] sm:$0xff] }
 0x2d0   : > { %14797 = vmatpush3.bf16.msra.mxu0 %v18711_v36  ;;  %v2820_v55 = vpop.f32.mrb[20].mxu0 }
 0x2d1   : > { %v13474_v57 = vpop.f32.mrb[21].mxu0  ;;  %v2893_v58 = vpop.f32.mrb[20].mxu1  ;;  %14798 = vmatprep.subr.bf16.mxu0 %v17941_v0 }
 0x2d2   : > { %v2894_v27 = vadd.f32 %v2893_v58, %v2820_v55  ;;  %v13489_v59 = vpop.f32.mrb[21].mxu1  ;;  %v4084_v55 = vld [vmem:[#allocation14 + $0x38] sm:$0xff] }
 0x2d3   : > { %v14859_v57 = vpack.c.bf16 %v4084_v55, %v4083_v13  ;;  %v4323_v13 = vld [vmem:[%s17988_s29] sm:$0x1] }
 0x2d4   : > { %14800 = vmatpush3.bf16.msra.mxu0 %v18716_v44  ;;  %v3664_v60 = vld [vmem:[#allocation2 + $0x6] sm:$0x1]  ;;  %v2978_v44 = vld [vmem:[%s21381_s13] sm:$0x1] }
 0x2d5   : > { %13674 = vmatmul.mubr.msk.f32.vlgmr.msra.gmra.mrb[30].mxu1 %vm3002_vm3, %v3664_v60  ;;  %14813 = vmatprep.subr.bf16.mxu0 %v17941_v0 }
 0x2d6   : > { %14803 = vmatpush3.bf16.msra.mxu1 %v18651_v53  ;;  %13711 = vmatprep.mubr.msk.f32.mxu1 %vm17942_vm0, %v17943_v1 }
 0x2d7   : > { %13693 = vmatmul.mubr.msk.f32.vlgmr.msra.gmra.mrb[32].mxu0 %vm3002_vm3, %v3655_v33  ;;  %14804 = vmatprep.subr.bf16.mxu1 %v17941_v0 }
 0x2d8   : > { %13730 = vmatprep.mubr.msk.f32.mxu0 %vm17942_vm0, %v17943_v1  ;;  %14815 = vmatpush3.bf16.msra.mxu0 %v18842_v20 }
 0x2d9   : > { %14816 = vmatprep.subr.bf16.mxu0 %v17941_v0 }
 0x2da   : > { %14806 = vmatpush3.bf16.msra.mxu1 %v18660_v56  ;;  %v3909_v56 = vld [vmem:[#allocation14 + $0x48] sm:$0xff] }
 0x2db   : > { %14807 = vmatprep.subr.bf16.mxu1 %v17941_v0  ;;  %v18825_v5 = vpack.c.bf16 %v3909_v56, %v3908_v4 }
 0x2dc   : > { %v2973_v36 = vpop.f32.mrb[22].mxu0  ;;  %14818 = vmatpush3.bf16.msra.mxu0 %v18848_v23 }
 0x2dd   : > { %v2977_v62 = vadd.f32 %v2973_v36, %v2894_v27  ;;  %v13504_v63 = vpop.f32.mrb[23].mxu0  ;;  %14819 = vmatprep.subr.bf16.mxu0 %v17941_v0  ;;  %v3400_v27 = vld [vmem:[%s21380_s21] sm:$0x1] }
 0x2de   : > { %14809 = vmatpush3.bf16.msra.mxu1 %v18668_v61  ;;  %v18829_v61 = vpack.c.bf16 %v3911_v9, %v3910_v8  ;;  %v3651_v8 = vld [vmem:[%s21380_s21] sm:$0x1] }
 0x2df   : > { %v2979_v53 = vadd.f32 %v2978_v44, %v2977_v62  ;;  %14810 = vmatprep.subr.bf16.mxu1 %v17941_v0 }
 0x2e0   : > { %14821 = vmatpush3.bf16.msra.mxu0 %v18852_v26 }
 0x2e1   : > { %v2980_v2 = vmax.f32 %v2979_v53, 0.0  ;;  %14822 = vmatprep.subr.bf16.mxu0 %v17941_v0 }
 0x2e2   : > { %14812 = vmatpush3.bf16.msra.mxu1 %v18677_v6  ;;  %v3912_v6 = vld [vmem:[#allocation14 + $0x60] sm:$0xff] }
 0x2e3   : > { %2981 = vst.msk [vmem:[#allocation2 + $0x7] sm:$0x1] %vm1265_vm2, %v2980_v2  ;;  %14825 = vmatprep.subr.bf16.mxu1 %v17941_v0  ;;  %v18835_v14 = vpack.c.bf16 %v3913_v12, %v3912_v6 }
 0x2e4   : > { %14824 = vmatpush3.bf16.msra.mxu0 %v18855_v30 }
 0x2e5   : > { %14837 = vmatprep.subr.bf16.mxu0 %v17941_v0 }
 0x2ea   : > { %v3819_v11 = vld [vmem:[#allocation2 + $0x7] sm:$0x1] }
 0x2eb   : > { %13712 = vmatmul.mubr.msk.f32.vlgmr.msra.gmra.mrb[32].mxu1 %vm3002_vm3, %v3819_v11 }
 0x2ec   : > { %14827 = vmatpush3.bf16.msra.mxu1 %v18825_v5  ;;  %13749 = vmatprep.mubr.msk.f32.mxu1 %vm17942_vm0, %v17943_v1 }
 0x2ed   : > { %14828 = vmatprep.subr.bf16.mxu1 %v17941_v0 }
 0x2f0   : > { %14830 = vmatpush3.bf16.msra.mxu1 %v18829_v61 }
 0x2f1   : > { %14831 = vmatprep.subr.bf16.mxu1 %v17941_v0 }
 0x2f4   : > { %14833 = vmatpush3.bf16.msra.mxu1 %v18835_v14 }
 0x2f5   : > { %14834 = vmatprep.subr.bf16.mxu1 %v17941_v0 }
 0x2f8   : > { %14836 = vmatpush3.bf16.msra.mxu1 %v18839_v17 }
 0x2f9   : > { %14849 = vmatprep.subr.bf16.mxu1 %v17941_v0 }
 0x33b   : > { %v3145_v31 = vpop.f32.mrb[24].mxu0 }
 0x33c   : > { %v13542_v32 = vpop.f32.mrb[25].mxu0 }
 0x352   : > { %v3072_v34 = vpop.f32.mrb[22].mxu1 }
 0x353   : > { %v3313_v37 = vpop.f32.mrb[26].mxu0  ;;  %v3146_v38 = vadd.f32 %v3145_v31, %v3072_v34  ;;  %v13523_v39 = vpop.f32.mrb[23].mxu1  ;;  %v4331_v31 = vld [vmem:[#allocation19 + $0x18] sm:$0xff]  ;;  %v4332_v34 = vld [vmem:[#allocation19 + $0x20] sm:$0xff] }
 0x354   : > { %v13580_v40 = vpop.f32.mrb[27].mxu0  ;;  %v4335_v39 = vld [vmem:[#allocation19 + $0x38] sm:$0xff] }
 0x355   : > { %v3150_v41 = vadd.f32 %v3149_v35, %v3146_v38  ;;  %v4333_v35 = vld [vmem:[#allocation19 + $0x28] sm:$0xff]  ;;  %v4334_v38 = vld [vmem:[#allocation19 + $0x30] sm:$0xff] }
 0x356   : > { %v14883_v40 = vpack.c.bf16 %v4335_v39, %v4334_v38  ;;  %v4671_v38 = vld [vmem:[#allocation23 + $0x30] sm:$0xff]  ;;  %v4672_v39 = vld [vmem:[#allocation23 + $0x38] sm:$0xff] }
 0x357   : > { %v3151_v42 = vmax.f32 %v3150_v41, 0.0 }
 0x359   : > { %3152 = vst.msk [vmem:[#allocation3] sm:$0x1] %vm1265_vm2, %v3151_v42 }
 0x360   : > { %v3906_v47 = vld [vmem:[#allocation3] sm:$0x1] }
 0x361   : > { %13750 = vmatmul.mubr.msk.f32.vlgmr.msra.gmra.mrb[34].mxu1 %vm3002_vm3, %v3906_v47 }
 0x362   : > { %v3240_v48 = vpop.f32.mrb[24].mxu1  ;;  %14851 = vmatpush3.bf16.msra.mxu1 %v14850_v45  ;;  %13787 = vmatprep.mubr.msk.f32.mxu1 %vm17942_vm0, %v17943_v1 }
 0x363   : > { %v3314_v50 = vadd.f32 %v3313_v37, %v3240_v48  ;;  %v13561_v51 = vpop.f32.mrb[25].mxu1  ;;  %14852 = vmatprep.subr.bf16.mxu1 %v17941_v0  ;;  %v14880_v37 = vpack.c.bf16 %v4333_v35, %v4332_v34  ;;  %v4669_v34 = vld [vmem:[#allocation23 + $0x20] sm:$0xff]  ;;  %v4670_v35 = vld [vmem:[#allocation23 + $0x28] sm:$0xff] }
 0x366   : > { %14854 = vmatpush3.bf16.msra.mxu1 %v14853_v49 }
 0x367   : > { %14855 = vmatprep.subr.bf16.mxu1 %v17941_v0 }
 0x36a   : > { %14857 = vmatpush3.bf16.msra.mxu1 %v14856_v54 }
 0x36b   : > { %14858 = vmatprep.subr.bf16.mxu1 %v17941_v0 }
 0x36e   : > { %14860 = vmatpush3.bf16.msra.mxu1 %v14859_v57 }
 0x36f   : > { %14873 = vmatprep.subr.bf16.mxu1 %v17941_v0 }
 0x376   : > { %v3395_v58 = vpop.f32.mrb[26].mxu1 }
 0x377   : > { %v3399_v59 = vadd.f32 %v3395_v58, %v3314_v50  ;;  %v13599_v60 = vpop.f32.mrb[27].mxu1 }
 0x378   : > { %v4498_v60 = vld [vmem:[#allocation23 + $0x48] sm:$0xff] }
 0x379   : > { %v3401_v33 = vadd.f32 %v3400_v27, %v3399_v59  ;;  %v4497_v59 = vld [vmem:[#allocation23 + $0x40] sm:$0xff] }
 0x37b   : > { %v3402_v36 = vmax.f32 %v3401_v33, 0.0  ;;  %v18918_v33 = vpack.c.bf16 %v4498_v60, %v4497_v59  ;;  %v5086_v59 = vld [vmem:[#allocation25 + $0x20] sm:$0xff]  ;;  %v5087_v60 = vld [vmem:[#allocation25 + $0x28] sm:$0xff] }
 0x37d   : > { %3403 = vst.msk [vmem:[#allocation3 + $0x1] sm:$0x1] %vm1265_vm2, %v3402_v36  ;;  %v4499_v36 = vld [vmem:[#allocation23 + $0x50] sm:$0xff] }
 0x384   : > { %v3491_v44 = vpop.f32.mrb[28].mxu0  ;;  %v3916_v62 = vld [vmem:[#allocation3 + $0x1] sm:$0x1] }
 0x385   : > { %v4076_v63 = vld [vmem:[#allocation3 + $0x1] sm:$0x1]  ;;  %v13618_v53 = vpop.f32.mrb[29].mxu0  ;;  %13731 = vmatmul.mubr.msk.f32.vlgmr.msra.gmra.mrb[34].mxu0 %vm3002_vm3, %v3916_v62 }
 0x386   : > { %13788 = vmatmul.mubr.msk.f32.vlgmr.msra.gmra.mrb[36].mxu1 %vm3002_vm3, %v4076_v63  ;;  %v3564_v2 = vpop.f32.mrb[28].mxu1  ;;  %14839 = vmatpush3.bf16.msra.mxu0 %v18825_v5  ;;  %v4501_v53 = vld [vmem:[#allocation23 + $0x60] sm:$0xff] }
 0x387   : > { %13768 = vmatprep.mubr.msk.f32.mxu0 %vm17942_vm0, %v17943_v1  ;;  %v3565_v4 = vadd.f32 %v3564_v2, %v3491_v44  ;;  %v13637_v56 = vpop.f32.mrb[29].mxu1  ;;  %14840 = vmatprep.subr.bf16.mxu0 %v17941_v0  ;;  %v4500_v44 = vld [vmem:[#allocation23 + $0x58] sm:$0xff]  ;;  %v4502_v2 = vld [vmem:[#allocation23 + $0x68] sm:$0xff] }
 0x388   : > { %13825 = vmatprep.mubr.msk.f32.mxu1 %vm17942_vm0, %v17943_v1  ;;  %v18922_v63 = vpack.c.bf16 %v4500_v44, %v4499_v36  ;;  %v4503_v56 = vld [vmem:[#allocation23 + $0x70] sm:$0xff]  ;;  %v18979_v36 = vpack.c.bf16 %v5087_v60, %v5086_v59  ;;  %v5532_v59 = vld [vmem:[#allocation22 + $0x168] sm:$0xff] }
 0x389   : > { %v5088_v44 = vld [vmem:[#allocation25 + $0x30] sm:$0xff] }
 0x38a   : > { %14842 = vmatpush3.bf16.msra.mxu0 %v18829_v61 }
 0x38b   : > { %14843 = vmatprep.subr.bf16.mxu0 %v17941_v0 }
 0x38e   : > { %14845 = vmatpush3.bf16.msra.mxu0 %v18835_v14 }
 0x38f   : > { %14846 = vmatprep.subr.bf16.mxu0 %v17941_v0 }
 0x392   : > { %14848 = vmatpush3.bf16.msra.mxu0 %v18839_v17 }
 0x393   : > { %14861 = vmatprep.subr.bf16.mxu0 %v17941_v0 }
 0x39a   : > { %v3646_v5 = vpop.f32.mrb[30].mxu0 }
 0x39b   : > { %v3650_v9 = vadd.f32 %v3646_v5, %v3565_v4  ;;  %v13656_v11 = vpop.f32.mrb[31].mxu0  ;;  %v18929_v4 = vpack.c.bf16 %v4502_v2, %v4501_v53  ;;  %v4504_v5 = vld [vmem:[#allocation23 + $0x78] sm:$0xff] }
 0x39c   : > { %v4508_v11 = vld [vmem:[#allocation23 + $0x88] sm:$0xff] }
 0x39d   : > { %v3652_v6 = vadd.f32 %v3651_v8, %v3650_v9  ;;  %v18932_v8 = vpack.c.bf16 %v4504_v5, %v4503_v56  ;;  %v4507_v9 = vld [vmem:[#allocation23 + $0x80] sm:$0xff]  ;;  %v4420_v56 = vld [vmem:[%s21416_s17] sm:$0x1] }
 0x39f   : > { %v3653_v12 = vmax.f32 %v3652_v6, 0.0  ;;  %v14898_v6 = vpack.c.bf16 %v4508_v11, %v4507_v9 }
 0x3a1   : > { %3654 = vst.msk [vmem:[#allocation3 + $0x2] sm:$0x1] %vm1265_vm2, %v3653_v12  ;;  %v4509_v12 = vld [vmem:[#allocation23 + $0x90] sm:$0xff] }
 0x3a8   : > { %v3742_v15 = vpop.f32.mrb[30].mxu1  ;;  %v4085_v61 = vld [vmem:[#allocation3 + $0x2] sm:$0x1] }
 0x3a9   : > { %v13675_v16 = vpop.f32.mrb[31].mxu1  ;;  %13769 = vmatmul.mubr.msk.f32.vlgmr.msra.gmra.mrb[36].mxu0 %vm3002_vm3, %v4085_v61 }
 0x3aa   : > { %v3815_v14 = vpop.f32.mrb[32].mxu0  ;;  %14863 = vmatpush3.bf16.msra.mxu0 %v18842_v20  ;;  %13806 = vmatprep.mubr.msk.f32.mxu0 %vm17942_vm0, %v17943_v1  ;;  %v3902_v20 = vld [vmem:[%s21380_s21] sm:$0x1]  ;;  %v4511_v16 = vld [vmem:[#allocation23 + $0xa0] sm:$0xff] }
 0x3ab   : > { %v3816_v17 = vadd.f32 %v3815_v14, %v3742_v15  ;;  %v13694_v18 = vpop.f32.mrb[33].mxu0  ;;  %14864 = vmatprep.subr.bf16.mxu0 %v17941_v0  ;;  %v4510_v15 = vld [vmem:[#allocation23 + $0x98] sm:$0xff]  ;;  %v4512_v14 = vld [vmem:[#allocation23 + $0xa8] sm:$0xff] }
 0x3ac   : > { %v14901_v61 = vpack.c.bf16 %v4510_v15, %v4509_v12  ;;  %v4513_v18 = vld [vmem:[#allocation23 + $0xb0] sm:$0xff] }
 0x3ae   : > { %14866 = vmatpush3.bf16.msra.mxu0 %v18848_v23  ;;  %v4328_v23 = vld [vmem:[#allocation19] sm:$0xff] }
 0x3af   : > { %14867 = vmatprep.subr.bf16.mxu0 %v17941_v0 }
 0x3b2   : > { %14869 = vmatpush3.bf16.msra.mxu0 %v18852_v26  ;;  %v4329_v26 = vld [vmem:[#allocation19 + $0x8] sm:$0xff] }
 0x3b3   : > { %14870 = vmatprep.subr.bf16.mxu0 %v17941_v0  ;;  %v14874_v29 = vpack.c.bf16 %v4329_v26, %v4328_v23  ;;  %v4666_v23 = vld [vmem:[#allocation23 + $0x8] sm:$0xff] }
 0x3b5   : > { %14875 = vmatpush3.bf16.msra.mxu1 %v14874_v29 }
 0x3b6   : > { %14872 = vmatpush3.bf16.msra.mxu0 %v18855_v30  ;;  %14876 = vmatprep.subr.bf16.mxu1 %v17941_v0  ;;  %v4330_v30 = vld [vmem:[#allocation19 + $0x10] sm:$0xff] }
 0x3b7   : > { %14885 = vmatprep.subr.bf16.mxu0 %v17941_v0  ;;  %v14877_v32 = vpack.c.bf16 %v4331_v31, %v4330_v30  ;;  %v4668_v30 = vld [vmem:[#allocation23 + $0x18] sm:$0xff] }
 0x3b9   : > { %14878 = vmatpush3.bf16.msra.mxu1 %v14877_v32 }
 0x3ba   : > { %14879 = vmatprep.subr.bf16.mxu1 %v17941_v0 }
 0x3bd   : > { %14881 = vmatpush3.bf16.msra.mxu1 %v14880_v37 }
 0x3be   : > { %v3897_v19 = vpop.f32.mrb[32].mxu1  ;;  %14882 = vmatprep.subr.bf16.mxu1 %v17941_v0 }
 0x3bf   : > { %v3901_v21 = vadd.f32 %v3897_v19, %v3816_v17  ;;  %v13713_v22 = vpop.f32.mrb[33].mxu1  ;;  %v14904_v17 = vpack.c.bf16 %v4512_v14, %v4511_v16  ;;  %v4514_v19 = vld [vmem:[#allocation23 + $0xb8] sm:$0xff]  ;;  %v5697_v16 = vld [vmem:[#allocation22 + $0x88] sm:$0xff] }
 0x3c1   : > { %v3903_v24 = vadd.f32 %v3902_v20, %v3901_v21  ;;  %14884 = vmatpush3.bf16.msra.mxu1 %v14883_v40  ;;  %v14907_v20 = vpack.c.bf16 %v4514_v19, %v4513_v18  ;;  %v4336_v21 = vld [vmem:[%s21416_s17] sm:$0x1]  ;;  %v5699_v18 = vld [vmem:[#allocation22 + $0x98] sm:$0xff] }
 0x3c2   : > { %14897 = vmatprep.subr.bf16.mxu1 %v17941_v0 }
 0x3c3   : > { %v3904_v25 = vmax.f32 %v3903_v24, 0.0 }
 0x3c5   : > { %3905 = vst.msk [vmem:[#allocation3 + $0x3] sm:$0x1] %vm1265_vm2, %v3904_v25 }
 0x3cc   : > { %v4240_v28 = vld [vmem:[#allocation3 + $0x3] sm:$0x1] }
 0x3cd   : > { %13807 = vmatmul.mubr.msk.f32.vlgmr.msra.gmra.mrb[38].mxu0 %vm3002_vm3, %v4240_v28  ;;  %v4665_v28 = vld [vmem:[#allocation23] sm:$0xff] }
 0x3ce   : > { %13844 = vmatprep.mubr.msk.f32.mxu0 %vm17942_vm0, %v17943_v1  ;;  %14887 = vmatpush3.bf16.msra.mxu0 %v14874_v29  ;;  %v14934_v26 = vpack.c.bf16 %v4666_v23, %v4665_v28  ;;  %v4667_v29 = vld [vmem:[#allocation23 + $0x10] sm:$0xff] }
 0x3cf   : > { %14888 = vmatprep.subr.bf16.mxu0 %v17941_v0  ;;  %v5521_v23 = vld [vmem:[#allocation22 + $0x110] sm:$0xff] }
 0x3d2   : > { %14890 = vmatpush3.bf16.msra.mxu0 %v14877_v32  ;;  %v14937_v32 = vpack.c.bf16 %v4668_v30, %v4667_v29  ;;  %v5702_v30 = vld [vmem:[#allocation22 + $0xb0] sm:$0xff] }
 0x3d3   : > { %14891 = vmatprep.subr.bf16.mxu0 %v17941_v0 }
 0x3d6   : > { %14893 = vmatpush3.bf16.msra.mxu0 %v14880_v37  ;;  %v14940_v37 = vpack.c.bf16 %v4670_v35, %v4669_v34  ;;  %v5523_v35 = vld [vmem:[#allocation22 + $0x120] sm:$0xff] }
 0x3d7   : > { %14894 = vmatprep.subr.bf16.mxu0 %v17941_v0 }
 0x3da   : > { %14896 = vmatpush3.bf16.msra.mxu0 %v14883_v40  ;;  %v14943_v40 = vpack.c.bf16 %v4672_v39, %v4671_v38  ;;  %v5704_v38 = vld [vmem:[#allocation22 + $0xc0] sm:$0xff]  ;;  %v5705_v39 = vld [vmem:[#allocation22 + $0xc8] sm:$0xff] }
 0x3db   : > { %14909 = vmatprep.subr.bf16.mxu0 %v17941_v0 }
 0x434   : > { %v4068_v41 = vpop.f32.mrb[34].mxu1 }
 0x435   : > { %v13751_v42 = vpop.f32.mrb[35].mxu1 }
 0x436   : > { %v5000_v42 = vld [vmem:[#allocation17 + $0x8] sm:$0xff] }
 0x458   : > { %v3995_v43 = vpop.f32.mrb[34].mxu0 }
 0x459   : > { %v4236_v45 = vpop.f32.mrb[36].mxu1  ;;  %v4069_v46 = vadd.f32 %v4068_v41, %v3995_v43  ;;  %v13732_v7 = vpop.f32.mrb[35].mxu0  ;;  %v4999_v41 = vld [vmem:[#allocation17] sm:$0xff] }
 0x45a   : > { %v13789_v47 = vpop.f32.mrb[37].mxu1  ;;  %v18949_v43 = vpack.c.bf16 %v5000_v42, %v4999_v41  ;;  %v19098_v41 = vpack.c.bf16 %v5705_v39, %v5704_v38  ;;  %v5525_v42 = vld [vmem:[#allocation22 + $0x130] sm:$0xff]  ;;  %v5679_v38 = vld [vmem:[#allocation22] sm:$0xff]  ;;  %v5680_v39 = vld [vmem:[#allocation22 + $0x8] sm:$0xff] }
 0x45b   : > { %v4073_v48 = vadd.f32 %v4072_v3, %v4069_v46  ;;  %v5001_v3 = vld [vmem:[#allocation17 + $0x10] sm:$0xff]  ;;  %v5003_v47 = vld [vmem:[#allocation17 + $0x20] sm:$0xff] }
 0x45d   : > { %v4074_v49 = vmax.f32 %v4073_v48, 0.0  ;;  %v5004_v48 = vld [vmem:[#allocation17 + $0x28] sm:$0xff] }
 0x45f   : > { %4075 = vst.msk [vmem:[#allocation4] sm:$0x1] %vm1265_vm2, %v4074_v49  ;;  %v18960_v49 = vpack.c.bf16 %v5004_v48, %v5003_v47  ;;  %v5527_v47 = vld [vmem:[#allocation22 + $0x140] sm:$0xff]  ;;  %v5528_v48 = vld [vmem:[#allocation22 + $0x148] sm:$0xff] }
 0x466   : > { %v4327_v50 = vld [vmem:[#allocation4] sm:$0x1] }
 0x467   : > { %13826 = vmatmul.mubr.msk.f32.vlgmr.msra.gmra.mrb[38].mxu1 %vm3002_vm3, %v4327_v50  ;;  %v5005_v50 = vld [vmem:[#allocation17 + $0x30] sm:$0xff] }
 0x468   : > { %13863 = vmatprep.mubr.msk.f32.mxu1 %vm17942_vm0, %v17943_v1  ;;  %14899 = vmatpush3.bf16.msra.mxu1 %v14898_v6  ;;  %v5332_v6 = vld [vmem:[#allocation3 + $0x3] sm:$0x1] }
 0x469   : > { %14900 = vmatprep.subr.bf16.mxu1 %v17941_v0 }
 0x46c   : > { %14902 = vmatpush3.bf16.msra.mxu1 %v14901_v61  ;;  %v5696_v61 = vld [vmem:[#allocation22 + $0x80] sm:$0xff] }
 0x46d   : > { %14903 = vmatprep.subr.bf16.mxu1 %v17941_v0  ;;  %v19064_v14 = vpack.c.bf16 %v5697_v16, %v5696_v61  ;;  %v5341_v16 = vld [vmem:[%s21417_s6] sm:$0x1] }
 0x470   : > { %14905 = vmatpush3.bf16.msra.mxu1 %v14904_v17  ;;  %v5698_v17 = vld [vmem:[#allocation22 + $0x90] sm:$0xff] }
 0x471   : > { %14906 = vmatprep.subr.bf16.mxu1 %v17941_v0  ;;  %v19071_v19 = vpack.c.bf16 %v5699_v18, %v5698_v17 }
 0x474   : > { %14908 = vmatpush3.bf16.msra.mxu1 %v14907_v20  ;;  %v5519_v20 = vld [vmem:[#allocation22 + $0x100] sm:$0xff] }
 0x475   : > { %14921 = vmatprep.subr.bf16.mxu1 %v17941_v0 }
 0x47c   : > { %v4163_v51 = vpop.f32.mrb[36].mxu0 }
 0x47d   : > { %v4237_v10 = vadd.f32 %v4236_v45, %v4163_v51  ;;  %v13770_v52 = vpop.f32.mrb[37].mxu0  ;;  %v5002_v45 = vld [vmem:[#allocation17 + $0x18] sm:$0xff] }
 0x47e   : > { %v18954_v7 = vpack.c.bf16 %v5002_v45, %v5001_v3  ;;  %v5006_v51 = vld [vmem:[#allocation17 + $0x38] sm:$0xff]  ;;  %v5082_v52 = vld [vmem:[#allocation25] sm:$0xff]  ;;  %v5706_v3 = vld [vmem:[#allocation22 + $0xd0] sm:$0xff] }
 0x47f   : > { %v5707_v45 = vld [vmem:[#allocation22 + $0xd8] sm:$0xff] }
 0x4a0   : > { %v4318_v54 = vpop.f32.mrb[38].mxu0 }
 0x4a1   : > { %v4322_v55 = vadd.f32 %v4318_v54, %v4237_v10  ;;  %v13808_v57 = vpop.f32.mrb[39].mxu0  ;;  %v18964_v10 = vpack.c.bf16 %v5006_v51, %v5005_v50  ;;  %v5083_v54 = vld [vmem:[#allocation25 + $0x8] sm:$0xff]  ;;  %v19112_v51 = vpack.c.bf16 %v5528_v48, %v5527_v47  ;;  %v5683_v48 = vld [vmem:[#allocation22 + $0x20] sm:$0xff] }
 0x4a2   : > { %v5085_v57 = vld [vmem:[#allocation25 + $0x18] sm:$0xff]  ;;  %v5709_v50 = vld [vmem:[#allocation22 + $0xe8] sm:$0xff] }
 0x4a3   : > { %v4324_v58 = vadd.f32 %v4323_v13, %v4322_v55  ;;  %v18968_v13 = vpack.c.bf16 %v5083_v54, %v5082_v52  ;;  %v5084_v55 = vld [vmem:[#allocation25 + $0x10] sm:$0xff]  ;;  %v5530_v54 = vld [vmem:[#allocation22 + $0x158] sm:$0xff] }
 0x4a4   : > { %v5529_v52 = vld [vmem:[#allocation22 + $0x150] sm:$0xff] }
 0x4a5   : > { %v4325_v27 = vmax.f32 %v4324_v58, 0.0  ;;  %v4998_v58 = vld [vmem:[#allocation3 + $0x1] sm:$0x1] }
 0x4a7   : > { %4326 = vst.msk [vmem:[#allocation4 + $0x1] sm:$0x1] %vm1265_vm2, %v4325_v27  ;;  %v18973_v27 = vpack.c.bf16 %v5085_v57, %v5084_v55  ;;  %v5711_v55 = vld [vmem:[#allocation22 + $0xf8] sm:$0xff]  ;;  %v19120_v57 = vpack.c.bf16 %v5530_v54, %v5529_v52  ;;  %v5685_v52 = vld [vmem:[#allocation22 + $0x30] sm:$0xff] }
 0x4a8   : > { %v5686_v54 = vld [vmem:[#allocation22 + $0x38] sm:$0xff] }
 0x4ae   : > { %v4411_v62 = vld [vmem:[#allocation4 + $0x1] sm:$0x1] }
 0x4af   : > { %13845 = vmatmul.mubr.msk.f32.vlgmr.msra.gmra.mrb[40].mxu0 %vm3002_vm3, %v4411_v62  ;;  %v5089_v62 = vld [vmem:[#allocation25 + $0x38] sm:$0xff] }
 0x4b0   : > { %14911 = vmatpush3.bf16.msra.mxu0 %v18918_v33  ;;  %13882 = vmatprep.mubr.msk.f32.mxu0 %vm17942_vm0, %v17943_v1  ;;  %v18983_v53 = vpack.c.bf16 %v5089_v62, %v5088_v44  ;;  %v5534_v44 = vld [vmem:[#allocation22 + $0x178] sm:$0xff] }
 0x4b1   : > { %14912 = vmatprep.subr.bf16.mxu0 %v17941_v0 }
 0x4b4   : > { %14914 = vmatpush3.bf16.msra.mxu0 %v18922_v63 }
 0x4b5   : > { %14915 = vmatprep.subr.bf16.mxu0 %v17941_v0 }
 0x4b8   : > { %14917 = vmatpush3.bf16.msra.mxu0 %v18929_v4 }
 0x4b9   : > { %14918 = vmatprep.subr.bf16.mxu0 %v17941_v0 }
 0x4bc   : > { %14920 = vmatpush3.bf16.msra.mxu0 %v18932_v8 }
 0x4bd   : > { %14933 = vmatprep.subr.bf16.mxu0 %v17941_v0 }
 0x53a   : > { %v4406_v22 = vpop.f32.mrb[38].mxu1 }
 0x53b   : > { %v4407_v24 = vadd.f32 %v4406_v22, %v4336_v21  ;;  %v13827_v25 = vpop.f32.mrb[39].mxu1  ;;  %v5520_v21 = vld [vmem:[#allocation22 + $0x108] sm:$0xff]  ;;  %v5700_v22 = vld [vmem:[#allocation22 + $0xa0] sm:$0xff] }
 0x53c   : > { %v19077_v25 = vpack.c.bf16 %v5520_v21, %v5519_v20 }
 0x53d   : > { %4410 = vst.msk [vmem:[#allocation5] sm:$0x1] %vm1265_vm2, %v4407_v24  ;;  %v5701_v24 = vld [vmem:[#allocation22 + $0xa8] sm:$0xff] }
 0x53e   : > { %v19079_v28 = vpack.c.bf16 %v5701_v24, %v5700_v22  ;;  %v4828_v22 = vld [vmem:[%s21418_s4] sm:$0x1] }
 0x544   : > { %v4495_v31 = vld [vmem:[#allocation5] sm:$0x1] }
 0x545   : > { %13883 = vmatmul.mubr.msk.f32.vlgmr.msra.gmra.mrb[42].mxu0 %vm3002_vm3, %v4495_v31  ;;  %v4664_v46 = vld [vmem:[#allocation5] sm:$0x1] }
 0x546   : > { %14935 = vmatpush3.bf16.msra.mxu0 %v14934_v26  ;;  %13920 = vmatprep.mubr.msk.f32.mxu0 %vm17942_vm0, %v17943_v1  ;;  %v5081_v2 = vld [vmem:[#allocation5] sm:$0x1] }
 0x547   : > { %14936 = vmatprep.subr.bf16.mxu0 %v17941_v0  ;;  %v5522_v26 = vld [vmem:[#allocation22 + $0x118] sm:$0xff] }
 0x548   : > { %v5703_v31 = vld [vmem:[#allocation22 + $0xb8] sm:$0xff] }
 0x549   : > { %v19090_v34 = vpack.c.bf16 %v5703_v31, %v5702_v30  ;;  %v4840_v30 = vld [vmem:[%s21417_s6] sm:$0x1] }
 0x54a   : > { %14938 = vmatpush3.bf16.msra.mxu0 %v14937_v32  ;;  %v19086_v32 = vpack.c.bf16 %v5522_v26, %v5521_v23 }
 0x54b   : > { %14939 = vmatprep.subr.bf16.mxu0 %v17941_v0 }
 0x54e   : > { %14941 = vmatpush3.bf16.msra.mxu0 %v14940_v37  ;;  %v5524_v37 = vld [vmem:[#allocation22 + $0x128] sm:$0xff] }
 0x54f   : > { %14942 = vmatprep.subr.bf16.mxu0 %v17941_v0 }
 0x552   : > { %14944 = vmatpush3.bf16.msra.mxu0 %v14943_v40  ;;  %v19096_v40 = vpack.c.bf16 %v5524_v37, %v5523_v35 }
 0x553   : > { %14969 = vmatprep.subr.bf16.mxu0 %v17941_v0 }
 0x555   : > { %13921 = vmatmul.mubr.msk.f32.vlgmr.msra.gmra.mrb[44].mxu0 %vm3002_vm3, %v4664_v46 }
 0x556   : > { %14971 = vmatpush3.bf16.msra.mxu0 %v18949_v43  ;;  %13977 = vmatprep.mubr.msk.f32.mxu0 %vm17942_vm0, %v17943_v1 }
 0x557   : > { %14972 = vmatprep.subr.bf16.mxu0 %v17941_v0 }
 0x55a   : > { %14974 = vmatpush3.bf16.msra.mxu0 %v18954_v7 }
 0x55b   : > { %14975 = vmatprep.subr.bf16.mxu0 %v17941_v0 }
 0x55e   : > { %14977 = vmatpush3.bf16.msra.mxu0 %v18960_v49 }
 0x55f   : > { %14978 = vmatprep.subr.bf16.mxu0 %v17941_v0 }
 0x562   : > { %14980 = vmatpush3.bf16.msra.mxu0 %v18964_v10 }
 0x563   : > { %14981 = vmatprep.subr.bf16.mxu0 %v17941_v0 }
 0x565   : > { %13978 = vmatmul.mubr.msk.f32.vlgmr.msra.gmra.mrb[46].mxu0 %vm3002_vm3, %v4998_v58 }
 0x566   : > { %14983 = vmatpush3.bf16.msra.mxu0 %v18968_v13  ;;  %13996 = vmatprep.mubr.msk.f32.mxu0 %vm17942_vm0, %v17943_v1 }
 0x567   : > { %14984 = vmatprep.subr.bf16.mxu0 %v17941_v0 }
 0x56a   : > { %14986 = vmatpush3.bf16.msra.mxu0 %v18973_v27 }
 0x56b   : > { %14987 = vmatprep.subr.bf16.mxu0 %v17941_v0 }
 0x56e   : > { %14989 = vmatpush3.bf16.msra.mxu0 %v18979_v36 }
 0x56f   : > { %14990 = vmatprep.subr.bf16.mxu0 %v17941_v0 }
 0x572   : > { %14992 = vmatpush3.bf16.msra.mxu0 %v18983_v53 }
 0x573   : > { %15017 = vmatprep.subr.bf16.mxu0 %v17941_v0 }
 0x575   : > { %13997 = vmatmul.mubr.msk.f32.vlgmr.msra.gmra.mrb[46].mxu0 %vm3002_vm3, %v5081_v2 }
 0x576   : > { %15019 = vmatpush3.bf16.msra.mxu0 %v18949_v43  ;;  %14053 = vmatprep.mubr.msk.f32.mxu0 %vm17942_vm0, %v17943_v1 }
 0x577   : > { %15020 = vmatprep.subr.bf16.mxu0 %v17941_v0 }
 0x57a   : > { %15022 = vmatpush3.bf16.msra.mxu0 %v18954_v7 }
 0x57b   : > { %15023 = vmatprep.subr.bf16.mxu0 %v17941_v0 }
 0x57e   : > { %15025 = vmatpush3.bf16.msra.mxu0 %v18960_v49 }
 0x57f   : > { %15026 = vmatprep.subr.bf16.mxu0 %v17941_v0 }
 0x582   : > { %15028 = vmatpush3.bf16.msra.mxu0 %v18964_v10  ;;  %v4490_v5 = vpop.f32.mrb[40].mxu0 }
 0x583   : > { %v4491_v9 = vadd.f32 %v4490_v5, %v4420_v56  ;;  %v13846_v11 = vpop.f32.mrb[41].mxu0  ;;  %15029 = vmatprep.subr.bf16.mxu0 %v17941_v0 }
 0x585   : > { %4494 = vst.msk [vmem:[#allocation5 + $0x1] sm:$0x1] %vm1265_vm2, %v4491_v9  ;;  %14054 = vmatmul.mubr.msk.f32.vlgmr.msra.gmra.mrb[48].mxu0 %vm3002_vm3, %v5332_v6  ;;  %v5007_v9 = vld [vmem:[%s21417_s6] sm:$0x1] }
 0x586   : > { %15031 = vmatpush3.bf16.msra.mxu0 %v18968_v13  ;;  %14072 = vmatprep.mubr.msk.f32.mxu0 %vm17942_vm0, %v17943_v1 }
 0x587   : > { %15032 = vmatprep.subr.bf16.mxu0 %v17941_v0 }
 0x58a   : > { %15034 = vmatpush3.bf16.msra.mxu0 %v18973_v27 }
 0x58b   : > { %15035 = vmatprep.subr.bf16.mxu0 %v17941_v0 }
 0x58c   : > { %v4505_v12 = vld [vmem:[#allocation5 + $0x1] sm:$0x1] }
 0x58d   : > { %13864 = vmatmul.mubr.msk.f32.vlgmr.msra.gmra.mrb[40].mxu1 %vm3002_vm3, %v4505_v12  ;;  %v5415_v15 = vld [vmem:[#allocation5 + $0x1] sm:$0x1] }
 0x58e   : > { %14923 = vmatpush3.bf16.msra.mxu1 %v18918_v33  ;;  %15037 = vmatpush3.bf16.msra.mxu0 %v18979_v36  ;;  %v4673_v33 = vld [vmem:[#allocation5 + $0x1] sm:$0x1] }
 0x58f   : > { %14924 = vmatprep.subr.bf16.mxu1 %v17941_v0  ;;  %15038 = vmatprep.subr.bf16.mxu0 %v17941_v0  ;;  %v5248_v29 = vld [vmem:[#allocation5 + $0x1] sm:$0x1] }
 0x590   : > { %13901 = vmatprep.mubr.msk.f32.mxu1 %vm17942_vm0, %v17943_v1 }
 0x592   : > { %14926 = vmatpush3.bf16.msra.mxu1 %v18922_v63  ;;  %15040 = vmatpush3.bf16.msra.mxu0 %v18983_v53  ;;  %v4831_v63 = vld [vmem:[#allocation3] sm:$0x1] }
 0x593   : > { %14927 = vmatprep.subr.bf16.mxu1 %v17941_v0  ;;  %15065 = vmatprep.subr.bf16.mxu0 %v17941_v0 }
 0x595   : > { %14073 = vmatmul.mubr.msk.f32.vlgmr.msra.gmra.mrb[48].mxu0 %vm3002_vm3, %v5415_v15 }
 0x596   : > { %14929 = vmatpush3.bf16.msra.mxu1 %v18929_v4  ;;  %14142 = vmatprep.mubr.msk.f32.mxu0 %vm17942_vm0, %v17943_v1  ;;  %v4914_v4 = vld [vmem:[#allocation5] sm:$0x1] }
 0x597   : > { %14930 = vmatprep.subr.bf16.mxu1 %v17941_v0  ;;  %15067 = vmatpush3.bf16.msra.mxu0 %v19064_v14 }
 0x598   : > { %15068 = vmatprep.subr.bf16.mxu0 %v17941_v0 }
 0x59a   : > { %14932 = vmatpush3.bf16.msra.mxu1 %v18932_v8  ;;  %v5165_v8 = vld [vmem:[#allocation3 + $0x2] sm:$0x1] }
 0x59b   : > { %14945 = vmatprep.subr.bf16.mxu1 %v17941_v0  ;;  %15070 = vmatpush3.bf16.msra.mxu0 %v19071_v19 }
 0x59c   : > { %15071 = vmatprep.subr.bf16.mxu0 %v17941_v0 }
 0x59d   : > { %13902 = vmatmul.mubr.msk.f32.vlgmr.msra.gmra.mrb[42].mxu1 %vm3002_vm3, %v4673_v33 }
 0x59e   : > { %14947 = vmatpush3.bf16.msra.mxu1 %v18949_v43  ;;  %13939 = vmatprep.mubr.msk.f32.mxu1 %vm17942_vm0, %v17943_v1 }
 0x59f   : > { %14948 = vmatprep.subr.bf16.mxu1 %v17941_v0  ;;  %15073 = vmatpush3.bf16.msra.mxu0 %v19079_v28 }
 0x5a0   : > { %15074 = vmatprep.subr.bf16.mxu0 %v17941_v0 }
 0x5a2   : > { %14950 = vmatpush3.bf16.msra.mxu1 %v18954_v7 }
 0x5a3   : > { %14951 = vmatprep.subr.bf16.mxu1 %v17941_v0  ;;  %15076 = vmatpush3.bf16.msra.mxu0 %v19090_v34 }
 0x5a4   : > { %15077 = vmatprep.subr.bf16.mxu0 %v17941_v0 }
 0x5a6   : > { %14953 = vmatpush3.bf16.msra.mxu1 %v18960_v49 }
 0x5a7   : > { %14954 = vmatprep.subr.bf16.mxu1 %v17941_v0  ;;  %15079 = vmatpush3.bf16.msra.mxu0 %v19098_v41 }
 0x5a8   : > { %15080 = vmatprep.subr.bf16.mxu0 %v17941_v0 }
 0x5aa   : > { %14956 = vmatpush3.bf16.msra.mxu1 %v18964_v10 }
 0x5ab   : > { %14957 = vmatprep.subr.bf16.mxu1 %v17941_v0 }
 0x5ad   : > { %13940 = vmatmul.mubr.msk.f32.vlgmr.msra.gmra.mrb[44].mxu1 %vm3002_vm3, %v4831_v63  ;;  %v4661_v63 = vld [vmem:[%s21418_s4] sm:$0x1]  ;;  %s12013_s4 = sand.u32 1, %s18126_s18  }
 0x5ae   : > { %14959 = vmatpush3.bf16.msra.mxu1 %v18968_v13  ;;  %13958 = vmatprep.mubr.msk.f32.mxu1 %vm17942_vm0, %v17943_v1  ;;  %s21177_s13 = scalar_lea.sflag [#allocation28], %s12013_s4 }
 0x5af   : > { %14960 = vmatprep.subr.bf16.mxu1 %v17941_v0 }
 0x5b2   : > { %14962 = vmatpush3.bf16.msra.mxu1 %v18973_v27 }
 0x5b3   : > { %14963 = vmatprep.subr.bf16.mxu1 %v17941_v0 }
 0x5b6   : > { %14965 = vmatpush3.bf16.msra.mxu1 %v18979_v36 }
 0x5b7   : > { %14966 = vmatprep.subr.bf16.mxu1 %v17941_v0 }
 0x5ba   : > { %14968 = vmatpush3.bf16.msra.mxu1 %v18983_v53 }
 0x5bb   : > { %14993 = vmatprep.subr.bf16.mxu1 %v17941_v0 }
 0x5bd   : > { %13959 = vmatmul.mubr.msk.f32.vlgmr.msra.gmra.mrb[44].mxu1 %vm3002_vm3, %v4914_v4 }
 0x5be   : > { %14995 = vmatpush3.bf16.msra.mxu1 %v18949_v43  ;;  %14015 = vmatprep.mubr.msk.f32.mxu1 %vm17942_vm0, %v17943_v1  ;;  %v5526_v43 = vld [vmem:[#allocation22 + $0x138] sm:$0xff] }
 0x5bf   : > { %14996 = vmatprep.subr.bf16.mxu1 %v17941_v0  ;;  %v19104_v46 = vpack.c.bf16 %v5526_v43, %v5525_v42  ;;  %v19185_v42 = vpack.c.bf16 %v5680_v39, %v5679_v38  ;;  %v5681_v43 = vld [vmem:[#allocation22 + $0x10] sm:$0xff]  ;;  %v6491_v39 = vld [vmem:[%s21419_s23 + $0x10] sm:$0xff] }
 0x5c0   : > { %v6489_v38 = vld [vmem:[%s21419_s23] sm:$0xff] }
 0x5c2   : > { %14998 = vmatpush3.bf16.msra.mxu1 %v18954_v7  ;;  %v19106_v7 = vpack.c.bf16 %v5707_v45, %v5706_v3  ;;  %v5682_v3 = vld [vmem:[#allocation22 + $0x18] sm:$0xff] }
 0x5c3   : > { %14999 = vmatprep.subr.bf16.mxu1 %v17941_v0  ;;  %v19188_v47 = vpack.c.bf16 %v5682_v3, %v5681_v43  ;;  %v6496_v43 = vld [vmem:[%s21419_s23 + $0x38] sm:$0xff]  ;;  %v19333_v3 = vpack.c.bf16 %v6491_v39, %v6489_v38 }
 0x5c4   : > { %15082 = vmatpush3.bf16.msra.mxu0 %v19106_v7 }
 0x5c5   : > { %15083 = vmatprep.subr.bf16.mxu0 %v17941_v0 }
 0x5c6   : > { %15001 = vmatpush3.bf16.msra.mxu1 %v18960_v49  ;;  %v5708_v49 = vld [vmem:[#allocation22 + $0xe0] sm:$0xff] }
 0x5c7   : > { %15002 = vmatprep.subr.bf16.mxu1 %v17941_v0 }
 0x5ca   : > { %15004 = vmatpush3.bf16.msra.mxu1 %v18964_v10  ;;  %v19114_v10 = vpack.c.bf16 %v5709_v50, %v5708_v49  ;;  %v5684_v49 = vld [vmem:[#allocation22 + $0x28] sm:$0xff] }
 0x5cb   : > { %15005 = vmatprep.subr.bf16.mxu1 %v17941_v0  ;;  %v19194_v50 = vpack.c.bf16 %v5684_v49, %v5683_v48  ;;  %v6495_v48 = vld [vmem:[%s21419_s23 + $0x30] sm:$0xff]  ;;  %v6385_v49 = vld [vmem:[#allocation2] sm:$0x1] }
 0x5cc   : > { %15085 = vmatpush3.bf16.msra.mxu0 %v19114_v10 }
 0x5cd   : > { %14016 = vmatmul.mubr.msk.f32.vlgmr.msra.gmra.mrb[46].mxu1 %vm3002_vm3, %v5165_v8  ;;  %15086 = vmatprep.subr.bf16.mxu0 %v17941_v0 }
 0x5ce   : > { %15007 = vmatpush3.bf16.msra.mxu1 %v18968_v13  ;;  %14034 = vmatprep.mubr.msk.f32.mxu1 %vm17942_vm0, %v17943_v1  ;;  %v5710_v13 = vld [vmem:[#allocation22 + $0xf0] sm:$0xff] }
 0x5cf   : > { %15008 = vmatprep.subr.bf16.mxu1 %v17941_v0  ;;  %v19122_v58 = vpack.c.bf16 %v5711_v55, %v5710_v13  ;;  %v19198_v13 = vpack.c.bf16 %v5686_v54, %v5685_v52  ;;  %v5687_v55 = vld [vmem:[#allocation22 + $0x40] sm:$0xff] }
 0x5d0   : > { %v6500_v52 = vld [vmem:[%s21419_s23 + $0x58] sm:$0xff] }
 0x5d1   : > { %15088 = vmatpush3.bf16.msra.mxu0 %v19122_v58 }
 0x5d2   : > { %15010 = vmatpush3.bf16.msra.mxu1 %v18973_v27  ;;  %v5531_v27 = vld [vmem:[#allocation22 + $0x160] sm:$0xff]  ;;  %15113 = vmatprep.subr.bf16.mxu0 %v17941_v0 }
 0x5d3   : > { %15011 = vmatprep.subr.bf16.mxu1 %v17941_v0  ;;  %v19128_v60 = vpack.c.bf16 %v5532_v59, %v5531_v27  ;;  %v5688_v27 = vld [vmem:[#allocation22 + $0x48] sm:$0xff] }
 0x5d4   : > { %v19202_v59 = vpack.c.bf16 %v5688_v27, %v5687_v55  ;;  %v6497_v55 = vld [vmem:[%s21419_s23 + $0x40] sm:$0xff]  ;;  %v6499_v27 = vld [vmem:[%s21419_s23 + $0x50] sm:$0xff] }
 0x5d6   : > { %15013 = vmatpush3.bf16.msra.mxu1 %v18979_v36  ;;  %v5533_v36 = vld [vmem:[#allocation22 + $0x170] sm:$0xff] }
 0x5d7   : > { %15014 = vmatprep.subr.bf16.mxu1 %v17941_v0  ;;  %v19132_v62 = vpack.c.bf16 %v5534_v44, %v5533_v36  ;;  %v5689_v36 = vld [vmem:[#allocation22 + $0x50] sm:$0xff]  ;;  %v5690_v44 = vld [vmem:[#allocation22 + $0x58] sm:$0xff] }
 0x5da   : > { %15016 = vmatpush3.bf16.msra.mxu1 %v18983_v53 }
 0x5db   : > { %15041 = vmatprep.subr.bf16.mxu1 %v17941_v0 }
 0x5dd   : > { %14035 = vmatmul.mubr.msk.f32.vlgmr.msra.gmra.mrb[46].mxu1 %vm3002_vm3, %v5248_v29 }
 0x5de   : > { %15043 = vmatpush3.bf16.msra.mxu1 %v19077_v25  ;;  %14107 = vmatprep.mubr.msk.f32.mxu1 %vm17942_vm0, %v17943_v1 }
 0x5df   : > { %15044 = vmatprep.subr.bf16.mxu1 %v17941_v0 }
 0x5e2   : > { %15046 = vmatpush3.bf16.msra.mxu1 %v19086_v32 }
 0x5e3   : > { %15047 = vmatprep.subr.bf16.mxu1 %v17941_v0 }
 0x5e6   : > { %15049 = vmatpush3.bf16.msra.mxu1 %v19096_v40 }
 0x5e7   : > { %15050 = vmatprep.subr.bf16.mxu1 %v17941_v0 }
 0x5ea   : > { %15052 = vmatpush3.bf16.msra.mxu1 %v19104_v46 }
 0x5eb   : > { %15053 = vmatprep.subr.bf16.mxu1 %v17941_v0 }
 0x5ee   : > { %15055 = vmatpush3.bf16.msra.mxu1 %v19112_v51 }
 0x5ef   : > { %15056 = vmatprep.subr.bf16.mxu1 %v17941_v0 }
 0x5f2   : > { %15058 = vmatpush3.bf16.msra.mxu1 %v19120_v57 }
 0x5f3   : > { %15059 = vmatprep.subr.bf16.mxu1 %v17941_v0 }
 0x5f6   : > { %15061 = vmatpush3.bf16.msra.mxu1 %v19128_v60 }
 0x5f7   : > { %15062 = vmatprep.subr.bf16.mxu1 %v17941_v0 }
 0x5fa   : > { %15064 = vmatpush3.bf16.msra.mxu1 %v19132_v62 }
 0x5fb   : > { %15089 = vmatprep.subr.bf16.mxu1 %v17941_v0 }
 0x618   : > { %v4657_v53 = vpop.f32.mrb[42].mxu0 }
 0x619   : > { %v13884_v2 = vpop.f32.mrb[43].mxu0 }
 0x61a   : > { %v5691_v2 = vld [vmem:[#allocation22 + $0x60] sm:$0xff] }
 0x628   : > { %v4824_v56 = vpop.f32.mrb[44].mxu0 }
 0x629   : > { %v13922_v5 = vpop.f32.mrb[45].mxu0 }
 0x62a   : > { %v5174_v5 = vld [vmem:[%s21417_s6] sm:$0x1]  ;;  %s12054_s6 = sshll.u32 %s19516_s16, 4  ;;  %s21172_s6 = int_to_ptr.vmem [resolvable:$true] %s12054_s6 }
 0x62b   : > { %s17689_s17 = scalar_lea.vmem %s21172_s6, 64 }
 0x62c   : > { %p17690_p1 = scmp.ne.s32.totalorder %s21172_s6, %s17689_s17 }
 0x62e   : > { %p17691_p13 = pnand %p17690_p1, %p21428_p9 }
 0x630   : > { %p17692_p6 = pneg %p17691_p13 }
 0x648   : > { %v5159_v11 = vpop.f32.mrb[46].mxu0 }
 0x649   : > { %v17104_v6 = vadd.f32 %v5159_v11, %v5007_v9  ;;  %v13998_v12 = vpop.f32.mrb[47].mxu0 }
 0x64b   : > { %5164 = vst [vmem:[#allocation6 + $0x1] sm:$0x1] %v17104_v6 }
 0x652   : > { %v5517_v15 = vld [vmem:[#allocation6 + $0x1] sm:$0x1] }
 0x653   : > { %14108 = vmatmul.mubr.f32.vlgmr.msra.gmra.mrb[48].mxu1 %v5517_v15  ;;  %v5695_v26 = vld [vmem:[#allocation6 + $0x1] sm:$0x1]  ;;  %v5693_v15 = vld [vmem:[#allocation22 + $0x70] sm:$0xff] }
 0x654   : > { %15091 = vmatpush3.bf16.msra.mxu1 %v19064_v14  ;;  %14177 = vmatprep.mubr.msk.f32.mxu1 %vm17942_vm0, %v17943_v1 }
 0x655   : > { %15092 = vmatprep.subr.bf16.mxu1 %v17941_v0 }
 0x658   : > { %15094 = vmatpush3.bf16.msra.mxu1 %v19071_v19 }
 0x659   : > { %15095 = vmatprep.subr.bf16.mxu1 %v17941_v0 }
 0x65c   : > { %15097 = vmatpush3.bf16.msra.mxu1 %v19079_v28 }
 0x65d   : > { %15098 = vmatprep.subr.bf16.mxu1 %v17941_v0 }
 0x660   : > { %15100 = vmatpush3.bf16.msra.mxu1 %v19090_v34  ;;  %v4584_v33 = vpop.f32.mrb[40].mxu1 }
 0x661   : > { %v4658_v4 = vadd.f32 %v4657_v53, %v4584_v33  ;;  %v13865_v8 = vpop.f32.mrb[41].mxu1  ;;  %15101 = vmatprep.subr.bf16.mxu1 %v17941_v0  ;;  %v19206_v53 = vpack.c.bf16 %v5690_v44, %v5689_v36  ;;  %v5694_v33 = vld [vmem:[#allocation22 + $0x78] sm:$0xff]  ;;  %v6504_v44 = vld [vmem:[%s21419_s23 + $0x78] sm:$0xff] }
 0x662   : > { %v6502_v36 = vld [vmem:[%s21419_s23 + $0x68] sm:$0xff] }
 0x663   : > { %v4662_v61 = vadd.f32 %v4661_v63, %v4658_v4  ;;  %v19215_v63 = vpack.c.bf16 %v5694_v33, %v5693_v15  ;;  %v6505_v15 = vld [vmem:[%s21419_s23 + $0x80] sm:$0xff]  ;;  %v6507_v33 = vld [vmem:[%s21419_s23 + $0x90] sm:$0xff] }
 0x664   : > { %15103 = vmatpush3.bf16.msra.mxu1 %v19098_v41 }
 0x665   : > { %4663 = vst.msk [vmem:[%s19151_s2] sm:$0x1] %vm1265_vm2, %v4662_v61  ;;  %15104 = vmatprep.subr.bf16.mxu1 %v17941_v0 }
 0x668   : > { %15106 = vmatpush3.bf16.msra.mxu1 %v19106_v7  ;;  %v5493_v17 = vpop.f32.mrb[48].mxu0 }
 0x669   : > { %v17106_v18 = vadd.f32 %v5493_v17, %v5341_v16  ;;  %v14074_v20 = vpop.f32.mrb[49].mxu0  ;;  %15107 = vmatprep.subr.bf16.mxu1 %v17941_v0  ;;  %v5943_v16 = vld [vmem:[#allocation6 + $0x1] sm:$0x1] }
 0x66a   : > { %v6397_v17 = vld [vmem:[#allocation16 + $0x58] sm:$0xff]  ;;  %v6396_v20 = vld [vmem:[#allocation16 + $0x50] sm:$0xff] }
 0x66b   : > { %5498 = vst [vmem:[#allocation6 + $0x3] sm:$0x1] %v17106_v18  ;;  %v6394_v18 = vld [vmem:[#allocation16 + $0x40] sm:$0xff] }
 0x66c   : > { %15109 = vmatpush3.bf16.msra.mxu1 %v19114_v10 }
 0x66d   : > { %15110 = vmatprep.subr.bf16.mxu1 %v17941_v0 }
 0x670   : > { %15112 = vmatpush3.bf16.msra.mxu1 %v19122_v58  ;;  %v4751_v21 = vpop.f32.mrb[42].mxu1 }
 0x671   : > { %v4825_v24 = vadd.f32 %v4824_v56, %v4751_v21  ;;  %v13903_v23 = vpop.f32.mrb[43].mxu1  ;;  %15137 = vmatprep.subr.bf16.mxu1 %v17941_v0  ;;  %v5692_v56 = vld [vmem:[#allocation22 + $0x68] sm:$0xff] }
 0x672   : > { %v19211_v11 = vpack.c.bf16 %v5692_v56, %v5691_v2  ;;  %v6399_v21 = vld [vmem:[#allocation16 + $0x68] sm:$0xff]  ;;  %v19363_v2 = vpack.c.bf16 %v6504_v44, %v6502_v36 }
 0x673   : > { %v4829_v29 = vadd.f32 %v4828_v22, %v4825_v24  ;;  %14178 = vmatmul.mubr.f32.vlgmr.msra.gmra.mrb[50].mxu1 %v5695_v26  ;;  %v6401_v22 = vld [vmem:[#allocation16 + $0x78] sm:$0xff]  ;;  %v19311_v24 = vpack.c.bf16 %v6396_v20, %v6394_v18  ;;  %v6398_v26 = vld [vmem:[#allocation16 + $0x60] sm:$0xff]  ;;  %v6501_v56 = vld [vmem:[%s21419_s23 + $0x60] sm:$0xff] }
 0x674   : > { %15139 = vmatpush3.bf16.msra.mxu1 %v19077_v25  ;;  %14247 = vmatprep.mubr.msk.f32.mxu1 %vm17942_vm0, %v17943_v1  ;;  %v19315_v23 = vpack.c.bf16 %v6401_v22, %v6399_v21  ;;  %v6519_v18 = vld [vmem:[%s21419_s23 + $0xf0] sm:$0xff] }
 0x675   : > { %4830 = vst.msk [vmem:[%s19151_s2 + $0x1] sm:$0x1] %vm1265_vm2, %v4829_v29  ;;  %15140 = vmatprep.subr.bf16.mxu1 %v17941_v0  ;;  %v6400_v29 = vld [vmem:[#allocation16 + $0x70] sm:$0xff] }
 0x678   : > { %15142 = vmatpush3.bf16.msra.mxu1 %v19086_v32 }
 0x679   : > { %15143 = vmatprep.subr.bf16.mxu1 %v17941_v0 }
 0x67c   : > { %15145 = vmatpush3.bf16.msra.mxu1 %v19096_v40 }
 0x67d   : > { %15146 = vmatprep.subr.bf16.mxu1 %v17941_v0 }
 0x680   : > { %15148 = vmatpush3.bf16.msra.mxu1 %v19104_v46 }
 0x681   : > { %15149 = vmatprep.subr.bf16.mxu1 %v17941_v0 }
 0x684   : > { %15151 = vmatpush3.bf16.msra.mxu1 %v19112_v51 }
 0x685   : > { %15152 = vmatprep.subr.bf16.mxu1 %v17941_v0 }
 0x688   : > { %15154 = vmatpush3.bf16.msra.mxu1 %v19120_v57 }
 0x689   : > { %15155 = vmatprep.subr.bf16.mxu1 %v17941_v0 }
 0x68c   : > { %15157 = vmatpush3.bf16.msra.mxu1 %v19128_v60 }
 0x68d   : > { %15158 = vmatprep.subr.bf16.mxu1 %v17941_v0 }
 0x690   : > { %v4992_v31 = vpop.f32.mrb[44].mxu1  ;;  %15160 = vmatpush3.bf16.msra.mxu1 %v19132_v62 }
 0x691   : > { %v17103_v35 = vadd.f32 %v4992_v31, %v4840_v30  ;;  %v13960_v37 = vpop.f32.mrb[45].mxu1  ;;  %15185 = vmatprep.subr.bf16.mxu1 %v17941_v0  ;;  %v6490_v30 = vld [vmem:[%s21419_s23 + $0x8] sm:$0xff]  ;;  %v6492_v31 = vld [vmem:[%s21419_s23 + $0x18] sm:$0xff] }
 0x692   : > { %v19325_v37 = vpack.c.bf16 %v6492_v31, %v6490_v30  ;;  %v6848_v30 = vld [vmem:[#allocation2 + $0x2] sm:$0x1] }
 0x693   : > { %4997 = vst [vmem:[#allocation6] sm:$0x1] %v17103_v35  ;;  %v19321_v35 = vpack.c.bf16 %v6400_v29, %v6398_v26  ;;  %v6618_v29 = vld [vmem:[#allocation2 + $0x1] sm:$0x1] }
 0x69a   : > { %v5499_v45 = vld [vmem:[#allocation6] sm:$0x1] }
 0x69b   : > { %14143 = vmatmul.mubr.f32.vlgmr.msra.gmra.mrb[50].mxu0 %v5499_v45  ;;  %v5678_v4 = vld [vmem:[#allocation6] sm:$0x1] }
 0x69c   : > { %15115 = vmatpush3.bf16.msra.mxu0 %v19185_v42  ;;  %14212 = vmatprep.mubr.msk.f32.mxu0 %vm17942_vm0, %v17943_v1  ;;  %v6488_v26 = vld [vmem:[#allocation6] sm:$0x1] }
 0x69d   : > { %15116 = vmatprep.subr.bf16.mxu0 %v17941_v0  ;;  %v6721_v39 = vld [vmem:[#allocation6] sm:$0x1] }
 0x6a0   : > { %15118 = vmatpush3.bf16.msra.mxu0 %v19188_v47 }
 0x6a1   : > { %15119 = vmatprep.subr.bf16.mxu0 %v17941_v0 }
 0x6a4   : > { %15121 = vmatpush3.bf16.msra.mxu0 %v19194_v50 }
 0x6a5   : > { %15122 = vmatprep.subr.bf16.mxu0 %v17941_v0 }
 0x6a8   : > { %15124 = vmatpush3.bf16.msra.mxu0 %v19198_v13 }
 0x6a9   : > { %15125 = vmatprep.subr.bf16.mxu0 %v17941_v0 }
 0x6ac   : > { %15127 = vmatpush3.bf16.msra.mxu0 %v19202_v59 }
 0x6ad   : > { %15128 = vmatprep.subr.bf16.mxu0 %v17941_v0 }
 0x6b0   : > { %15130 = vmatpush3.bf16.msra.mxu0 %v19206_v53  ;;  %v5326_v9 = vpop.f32.mrb[46].mxu1 }
 0x6b1   : > { %v17105_v6 = vadd.f32 %v5326_v9, %v5174_v5  ;;  %v14036_v12 = vpop.f32.mrb[47].mxu1  ;;  %15131 = vmatprep.subr.bf16.mxu0 %v17941_v0  ;;  %v6503_v5 = vld [vmem:[%s21419_s23 + $0x70] sm:$0xff]  ;;  %v6506_v9 = vld [vmem:[%s21419_s23 + $0x88] sm:$0xff] }
 0x6b3   : > { %5331 = vst [vmem:[#allocation6 + $0x2] sm:$0x1] %v17105_v6  ;;  %v6508_v6 = vld [vmem:[%s21419_s23 + $0x98] sm:$0xff] }
 0x6b4   : > { %15133 = vmatpush3.bf16.msra.mxu0 %v19211_v11  ;;  %v19375_v12 = vpack.c.bf16 %v6508_v6, %v6506_v9 }
 0x6b5   : > { %15134 = vmatprep.subr.bf16.mxu0 %v17941_v0 }
 0x6b8   : > { %15136 = vmatpush3.bf16.msra.mxu0 %v19215_v63 }
 0x6b9   : > { %15161 = vmatprep.subr.bf16.mxu0 %v17941_v0 }
 0x6ba   : > { %v5852_v8 = vld [vmem:[#allocation6 + $0x2] sm:$0x1] }
 0x6bb   : > { %14213 = vmatmul.mubr.f32.vlgmr.msra.gmra.mrb[52].mxu0 %v5678_v4  ;;  %14248 = vmatmul.mubr.f32.vlgmr.msra.gmra.mrb[52].mxu1 %v5852_v8  ;;  %v5960_v61 = vld [vmem:[#allocation6 + $0x2] sm:$0x1]  ;;  %v6510_v4 = vld [vmem:[%s21419_s23 + $0xa8] sm:$0xff]  ;;  %v6512_v8 = vld [vmem:[%s21419_s23 + $0xb8] sm:$0xff] }
 0x6bc   : > { %15163 = vmatpush3.bf16.msra.mxu0 %v19064_v14  ;;  %15187 = vmatpush3.bf16.msra.mxu1 %v19185_v42 }
 0x6bd   : > { %15164 = vmatprep.subr.bf16.mxu0 %v17941_v0  ;;  %15188 = vmatprep.subr.bf16.mxu1 %v17941_v0 }
 0x6be   : > { %14282 = vmatprep.mubr.msk.f32.mxu0 %vm17942_vm0, %v17943_v1  ;;  %14317 = vmatprep.mubr.msk.f32.mxu1 %vm17942_vm0, %v17943_v1 }
 0x6c0   : > { %15166 = vmatpush3.bf16.msra.mxu0 %v19071_v19  ;;  %15190 = vmatpush3.bf16.msra.mxu1 %v19188_v47 }
 0x6c1   : > { %15167 = vmatprep.subr.bf16.mxu0 %v17941_v0  ;;  %15191 = vmatprep.subr.bf16.mxu1 %v17941_v0 }
 0x6c4   : > { %15169 = vmatpush3.bf16.msra.mxu0 %v19079_v28  ;;  %15193 = vmatpush3.bf16.msra.mxu1 %v19194_v50 }
 0x6c5   : > { %15170 = vmatprep.subr.bf16.mxu0 %v17941_v0  ;;  %15194 = vmatprep.subr.bf16.mxu1 %v17941_v0 }
 0x6c8   : > { %15172 = vmatpush3.bf16.msra.mxu0 %v19090_v34  ;;  %15196 = vmatpush3.bf16.msra.mxu1 %v19198_v13 }
 0x6c9   : > { %15173 = vmatprep.subr.bf16.mxu0 %v17941_v0  ;;  %15197 = vmatprep.subr.bf16.mxu1 %v17941_v0 }
 0x6cc   : > { %15175 = vmatpush3.bf16.msra.mxu0 %v19098_v41  ;;  %15199 = vmatpush3.bf16.msra.mxu1 %v19202_v59 }
 0x6cd   : > { %15176 = vmatprep.subr.bf16.mxu0 %v17941_v0  ;;  %15200 = vmatprep.subr.bf16.mxu1 %v17941_v0 }
 0x6d0   : > { %15178 = vmatpush3.bf16.msra.mxu0 %v19106_v7  ;;  %15202 = vmatpush3.bf16.msra.mxu1 %v19206_v53 }
 0x6d1   : > { %15179 = vmatprep.subr.bf16.mxu0 %v17941_v0  ;;  %15203 = vmatprep.subr.bf16.mxu1 %v17941_v0 }
 0x6d4   : > { %15181 = vmatpush3.bf16.msra.mxu0 %v19114_v10  ;;  %15205 = vmatpush3.bf16.msra.mxu1 %v19211_v11 }
 0x6d5   : > { %15182 = vmatprep.subr.bf16.mxu0 %v17941_v0  ;;  %15206 = vmatprep.subr.bf16.mxu1 %v17941_v0 }
 0x6d8   : > { %15184 = vmatpush3.bf16.msra.mxu0 %v19122_v58  ;;  %15208 = vmatpush3.bf16.msra.mxu1 %v19215_v63 }
 0x6d9   : > { %15209 = vmatprep.subr.bf16.mxu0 %v17941_v0  ;;  %15233 = vmatprep.subr.bf16.mxu1 %v17941_v0 }
 0x6db   : > { %14283 = vmatmul.mubr.f32.vlgmr.msra.gmra.mrb[54].mxu0 %v5960_v61  ;;  %14318 = vmatmul.mubr.f32.vlgmr.msra.gmra.mrb[54].mxu1 %v5943_v16  ;;  %v19387_v61 = vpack.c.bf16 %v6512_v8, %v6510_v4  ;;  %v6509_v16 = vld [vmem:[%s21419_s23 + $0xa0] sm:$0xff] }
 0x6dc   : > { %15211 = vmatpush3.bf16.msra.mxu0 %v19077_v25  ;;  %15235 = vmatpush3.bf16.msra.mxu1 %v19064_v14  ;;  %v6387_v14 = vld [vmem:[#allocation16 + $0x8] sm:$0xff] }
 0x6dd   : > { %15212 = vmatprep.subr.bf16.mxu0 %v17941_v0  ;;  %15236 = vmatprep.subr.bf16.mxu1 %v17941_v0 }
 0x6de   : > { %14352 = vmatprep.mubr.msk.f32.mxu0 %vm17942_vm0, %v17943_v1  ;;  %14387 = vmatprep.mubr.msk.f32.mxu1 %vm17942_vm0, %v17943_v1 }
 0x6e0   : > { %15214 = vmatpush3.bf16.msra.mxu0 %v19086_v32  ;;  %15238 = vmatpush3.bf16.msra.mxu1 %v19071_v19  ;;  %v6389_v19 = vld [vmem:[#allocation16 + $0x18] sm:$0xff]  ;;  %v6388_v32 = vld [vmem:[#allocation16 + $0x10] sm:$0xff] }
 0x6e1   : > { %15215 = vmatprep.subr.bf16.mxu0 %v17941_v0  ;;  %15239 = vmatprep.subr.bf16.mxu1 %v17941_v0  ;;  %v19288_v25 = vpack.c.bf16 %v6389_v19, %v6387_v14  ;;  %v6511_v14 = vld [vmem:[%s21419_s23 + $0xb0] sm:$0xff] }
 0x6e2   : > { %v6208_v19 = vld [vmem:[#allocation6 + $0x2] sm:$0x1] }
 0x6e4   : > { %15217 = vmatpush3.bf16.msra.mxu0 %v19096_v40  ;;  %15241 = vmatpush3.bf16.msra.mxu1 %v19079_v28  ;;  %v6386_v28 = vld [vmem:[#allocation16] sm:$0xff]  ;;  %v6393_v40 = vld [vmem:[#allocation16 + $0x38] sm:$0xff] }
 0x6e5   : > { %15218 = vmatprep.subr.bf16.mxu0 %v17941_v0  ;;  %15242 = vmatprep.subr.bf16.mxu1 %v17941_v0 }
 0x6e8   : > { %15220 = vmatpush3.bf16.msra.mxu0 %v19104_v46  ;;  %15244 = vmatpush3.bf16.msra.mxu1 %v19090_v34  ;;  %v6391_v34 = vld [vmem:[#allocation16 + $0x28] sm:$0xff]  ;;  %v6117_v46 = vld [vmem:[#allocation6 + $0x3] sm:$0x1] }
 0x6e9   : > { %15221 = vmatprep.subr.bf16.mxu0 %v17941_v0  ;;  %15245 = vmatprep.subr.bf16.mxu1 %v17941_v0 }
 0x6ec   : > { %15223 = vmatpush3.bf16.msra.mxu0 %v19112_v51  ;;  %15247 = vmatpush3.bf16.msra.mxu1 %v19098_v41  ;;  %v19292_v41 = vpack.c.bf16 %v6388_v32, %v6386_v28  ;;  %v6390_v51 = vld [vmem:[#allocation16 + $0x20] sm:$0xff]  ;;  %v6514_v28 = vld [vmem:[%s21419_s23 + $0xc8] sm:$0xff] }
 0x6ed   : > { %15224 = vmatprep.subr.bf16.mxu0 %v17941_v0  ;;  %15248 = vmatprep.subr.bf16.mxu1 %v17941_v0  ;;  %v6516_v32 = vld [vmem:[%s21419_s23 + $0xd8] sm:$0xff] }
 0x6f0   : > { %15226 = vmatpush3.bf16.msra.mxu0 %v19120_v57  ;;  %15250 = vmatpush3.bf16.msra.mxu1 %v19106_v7  ;;  %v19296_v7 = vpack.c.bf16 %v6393_v40, %v6391_v34  ;;  %v6225_v57 = vld [vmem:[#allocation6 + $0x3] sm:$0x1]  ;;  %v19399_v34 = vpack.c.bf16 %v6516_v32, %v6514_v28  ;;  %v6513_v40 = vld [vmem:[%s21419_s23 + $0xc0] sm:$0xff] }
 0x6f1   : > { %15227 = vmatprep.subr.bf16.mxu0 %v17941_v0  ;;  %15251 = vmatprep.subr.bf16.mxu1 %v17941_v0  ;;  %v7538_v28 = vld [vmem:[#allocation2 + $0x5] sm:$0x1] }
 0x6f4   : > { %15229 = vmatpush3.bf16.msra.mxu0 %v19128_v60  ;;  %15253 = vmatpush3.bf16.msra.mxu1 %v19114_v10  ;;  %v6392_v10 = vld [vmem:[#allocation16 + $0x30] sm:$0xff]  ;;  %v6395_v60 = vld [vmem:[#allocation16 + $0x48] sm:$0xff] }
 0x6f5   : > { %15230 = vmatprep.subr.bf16.mxu0 %v17941_v0  ;;  %15254 = vmatprep.subr.bf16.mxu1 %v17941_v0 }
 0x6f8   : > { %15232 = vmatpush3.bf16.msra.mxu0 %v19132_v62  ;;  %15256 = vmatpush3.bf16.msra.mxu1 %v19122_v58  ;;  %v19300_v58 = vpack.c.bf16 %v6392_v10, %v6390_v51  ;;  %v19304_v62 = vpack.c.bf16 %v6397_v17, %v6395_v60  ;;  %v6518_v51 = vld [vmem:[%s21419_s23 + $0xe8] sm:$0xff]  ;;  %v6520_v10 = vld [vmem:[%s21419_s23 + $0xf8] sm:$0xff]  ;;  %v6517_v17 = vld [vmem:[%s21419_s23 + $0xe0] sm:$0xff] }
 0x6f9   : > { %15257 = vmatprep.subr.bf16.mxu0 %v17941_v0  ;;  %15282 = vmatprep.subr.bf16.mxu1 %v19288_v25  ;;  %v19412_v60 = vpack.c.bf16 %v6520_v10, %v6518_v51  ;;  %v19418_v20 = vpack.c.bf16 %v6519_v18, %v6517_v17  ;;  %v7653_v51 = vld [vmem:[%s21419_s23 + $0x58] sm:$0xff]  ;;  %v7652_v17 = vld [vmem:[%s21419_s23 + $0x50] sm:$0xff] }
 0x6fb   : > { %14353 = vmatmul.mubr.f32.vlgmr.msra.gmra.mrb[56].mxu0 %v6117_v46  ;;  %14388 = vmatmul.mubr.f32.vlgmr.msra.gmra.mrb[56].mxu1 %v6225_v57  ;;  %v6515_v46 = vld [vmem:[%s21419_s23 + $0xd0] sm:$0xff] }
 0x6fc   : > { %15259 = vmatpush3.bf16.msra.mxu0 %v19185_v42  ;;  %15284 = vmatpush1.bf16.msra.mxu1 %v19292_v41  ;;  %v6494_v42 = vld [vmem:[%s21419_s23 + $0x28] sm:$0xff]  ;;  %v19408_v57 = vpack.c.bf16 %v6515_v46, %v6513_v40  ;;  %v7411_v40 = vld [vmem:[#allocation6 + $0x2] sm:$0x1] }
 0x6fd   : > { %15260 = vmatprep.subr.bf16.mxu0 %v17941_v0  ;;  %15286 = vmatprep.subr.bf16.mxu1 %v19296_v7  ;;  %v19337_v45 = vpack.c.bf16 %v6496_v43, %v6494_v42  ;;  %v6951_v42 = vld [vmem:[#allocation6 + $0x1] sm:$0x1]  ;;  %v7078_v43 = vld [vmem:[#allocation2 + $0x3] sm:$0x1]  ;;  %v7651_v46 = vld [vmem:[%s21419_s23 + $0x48] sm:$0xff] }
 0x6fe   : > { %6481 = vmatprep.mubr.f32.mxu1 %v17943_v1  ;;  %14422 = vmatprep.mubr.msk.f32.mxu0 %vm17942_vm0, %v17943_v1 }
 0x700   : > { %15262 = vmatpush3.bf16.msra.mxu0 %v19188_v47  ;;  %15288 = vmatpush1.bf16.msra.mxu1 %v19300_v58  ;;  %v6493_v47 = vld [vmem:[%s21419_s23 + $0x20] sm:$0xff] }
 0x701   : > { %15263 = vmatprep.subr.bf16.mxu0 %v17941_v0  ;;  %15290 = vmatprep.subr.bf16.mxu1 %v19304_v62  ;;  %v19346_v54 = vpack.c.bf16 %v6495_v48, %v6493_v47  ;;  %v7544_v47 = vld [vmem:[#allocation16 + $0x28] sm:$0xff]  ;;  %v7546_v48 = vld [vmem:[#allocation16 + $0x38] sm:$0xff] }
 0x704   : > { %15265 = vmatpush3.bf16.msra.mxu0 %v19194_v50  ;;  %15292 = vmatpush1.bf16.msra.mxu1 %v19311_v24  ;;  %v6498_v50 = vld [vmem:[%s21419_s23 + $0x48] sm:$0xff] }
 0x705   : > { %15266 = vmatprep.subr.bf16.mxu0 %v17941_v0  ;;  %15294 = vmatprep.subr.bf16.mxu1 %v19315_v23 }
 0x708   : > { %15268 = vmatpush3.bf16.msra.mxu0 %v19198_v13  ;;  %15296 = vmatpush1.bf16.msra.mxu1 %v19321_v35  ;;  %v19350_v13 = vpack.c.bf16 %v6500_v52, %v6498_v50  ;;  %v19531_v50 = vpack.c.bf16 %v7546_v48, %v7544_v47  ;;  %v7543_v52 = vld [vmem:[#allocation16 + $0x20] sm:$0xff] }
 0x709   : > { %15269 = vmatprep.subr.bf16.mxu0 %v17941_v0  ;;  %15298 = vmatprep.subr.bf16.mxu1 %v19325_v37 }
 0x70b   : > { %12485 = vmatmul.mubr.msk.f32.vlgmr.msra.gmra.mrb[58].mxu1 %vm3002_vm3, %v6385_v49 }
 0x70c   : > { %15271 = vmatpush3.bf16.msra.mxu0 %v19202_v59  ;;  %15300 = vmatpush1.bf16.msra.mxu1 %v19333_v3  ;;  %v19359_v59 = vpack.c.bf16 %v6499_v27, %v6497_v55  ;;  %v7548_v55 = vld [vmem:[#allocation16 + $0x48] sm:$0xff]  ;;  %v7550_v27 = vld [vmem:[#allocation16 + $0x58] sm:$0xff] }
 0x70d   : > { %15272 = vmatprep.subr.bf16.mxu0 %v17941_v0  ;;  %15302 = vmatprep.subr.bf16.mxu1 %v19337_v45  ;;  %v19539_v44 = vpack.c.bf16 %v7550_v27, %v7548_v55  ;;  %v7667_v55 = vld [vmem:[%s21419_s23 + $0xc8] sm:$0xff]  ;;  %v7669_v27 = vld [vmem:[%s21419_s23 + $0xd8] sm:$0xff] }
 0x70e   : > { %6585 = vmatprep.mubr.f32.mxu1 %v17943_v1 }
 0x710   : > { %15274 = vmatpush3.bf16.msra.mxu0 %v19206_v53  ;;  %15304 = vmatpush1.bf16.msra.mxu1 %v19346_v54  ;;  %v19371_v53 = vpack.c.bf16 %v6503_v5, %v6501_v56  ;;  %v7552_v56 = vld [vmem:[#allocation16 + $0x68] sm:$0xff]  ;;  %v7554_v5 = vld [vmem:[#allocation16 + $0x78] sm:$0xff] }
 0x711   : > { %15275 = vmatprep.subr.bf16.mxu0 %v17941_v0  ;;  %15306 = vmatprep.subr.bf16.mxu1 %v19350_v13  ;;  %v19548_v6 = vpack.c.bf16 %v7554_v5, %v7552_v56  ;;  %v7666_v56 = vld [vmem:[%s21419_s23 + $0xc0] sm:$0xff]  ;;  %v7668_v5 = vld [vmem:[%s21419_s23 + $0xd0] sm:$0xff] }
 0x714   : > { %15277 = vmatpush3.bf16.msra.mxu0 %v19211_v11  ;;  %15308 = vmatpush1.bf16.msra.mxu1 %v19359_v59  ;;  %v19383_v11 = vpack.c.bf16 %v6507_v33, %v6505_v15  ;;  %v7643_v15 = vld [vmem:[%s21419_s23 + $0x8] sm:$0xff]  ;;  %v7645_v33 = vld [vmem:[%s21419_s23 + $0x18] sm:$0xff] }
 0x715   : > { %15278 = vmatprep.subr.bf16.mxu0 %v17941_v0  ;;  %15310 = vmatprep.subr.bf16.mxu1 %v19363_v2  ;;  %v19558_v8 = vpack.c.bf16 %v7645_v33, %v7643_v15  ;;  %v19646_v15 = vpack.c.bf16 %v7668_v5, %v7666_v56  ;;  %v6205_v56 = vld [vmem:[%s21420_s25] sm:$0x1] }
 0x718   : > { %15280 = vmatpush3.bf16.msra.mxu0 %v19215_v63  ;;  %15312 = vmatpush1.bf16.msra.mxu1 %v19371_v53  ;;  %v19395_v63 = vpack.c.bf16 %v6511_v14, %v6509_v16  ;;  %v7647_v16 = vld [vmem:[%s21419_s23 + $0x28] sm:$0xff]  ;;  %v7649_v14 = vld [vmem:[%s21419_s23 + $0x38] sm:$0xff] }
 0x719   : > { %15314 = vmatprep.subr.bf16.mxu1 %v19375_v12  ;;  %15330 = vmatprep.subr.bf16.mxu0 %v19288_v25  ;;  %v19570_v32 = vpack.c.bf16 %v7649_v14, %v7647_v16  ;;  %v7641_v14 = vld [vmem:[#allocation6 + $0x2] sm:$0x1] }
 0x71b   : > { %14423 = vmatmul.mubr.f32.vlgmr.msra.gmra.mrb[58].mxu0 %v6208_v19 }
 0x71c   : > { %15316 = vmatpush1.bf16.msra.mxu1 %v19383_v11  ;;  %15332 = vmatpush1.bf16.msra.mxu0 %v19292_v41 }
 0x71d   : > { %15318 = vmatprep.subr.bf16.mxu1 %v19387_v61  ;;  %15334 = vmatprep.subr.bf16.mxu0 %v19296_v7 }
 0x71e   : > { %6714 = vmatprep.mubr.f32.mxu0 %v17943_v1 }
 0x720   : > { %15320 = vmatpush1.bf16.msra.mxu1 %v19395_v63  ;;  %15336 = vmatpush1.bf16.msra.mxu0 %v19300_v58 }
 0x721   : > { %15322 = vmatprep.subr.bf16.mxu1 %v19399_v34  ;;  %15338 = vmatprep.subr.bf16.mxu0 %v19304_v62 }
 0x724   : > { %15324 = vmatpush1.bf16.msra.mxu1 %v19408_v57  ;;  %15340 = vmatpush1.bf16.msra.mxu0 %v19311_v24 }
 0x725   : > { %15326 = vmatprep.subr.bf16.mxu1 %v19412_v60  ;;  %15342 = vmatprep.subr.bf16.mxu0 %v19315_v23 }
 0x726   : > { %v19422_v21 = vpop.f32.mrb[48].mxu1 }
 0x727   : > { %v14109_v22 = vpop.f32.mrb[49].mxu1 }
 0x728   : > { %15328 = vmatpush1.bf16.msra.mxu1 %v19418_v20  ;;  %15344 = vmatpush1.bf16.msra.mxu0 %v19321_v35  ;;  %v7657_v22 = vld [vmem:[%s21419_s23 + $0x78] sm:$0xff] }
 0x729   : > { %15346 = vmatprep.subr.bf16.mxu0 %v19325_v37  ;;  %15378 = vmatprep.subr.bf16.mxu1 %v19288_v25 }
 0x72b   : > { %6586 = vmatmul.mubr.f32.vlgmr.msra.gmra.mrb[58].mxu1 %v6488_v26  ;;  %12486 = vmatmul.mubr.msk.f32.vlgmr.msra.gmra.mrb[60].mxu0 %vm3002_vm3, %v6618_v29 }
 0x72c   : > { %15348 = vmatpush1.bf16.msra.mxu0 %v19333_v3  ;;  %15380 = vmatpush1.bf16.msra.mxu1 %v19292_v41 }
 0x72d   : > { %15350 = vmatprep.subr.bf16.mxu0 %v19337_v45  ;;  %15382 = vmatprep.subr.bf16.mxu1 %v19296_v7 }
 0x72e   : > { %6944 = vmatprep.mubr.f32.mxu1 %v17943_v1  ;;  %6818 = vmatprep.mubr.f32.mxu0 %v17943_v1 }
 0x730   : > { %15352 = vmatpush1.bf16.msra.mxu0 %v19346_v54  ;;  %15384 = vmatpush1.bf16.msra.mxu1 %v19300_v58 }
 0x731   : > { %15354 = vmatprep.subr.bf16.mxu0 %v19350_v13  ;;  %15386 = vmatprep.subr.bf16.mxu1 %v19304_v62 }
 0x734   : > { %15356 = vmatpush1.bf16.msra.mxu0 %v19359_v59  ;;  %15388 = vmatpush1.bf16.msra.mxu1 %v19311_v24 }
 0x735   : > { %15358 = vmatprep.subr.bf16.mxu0 %v19363_v2  ;;  %15390 = vmatprep.subr.bf16.mxu1 %v19315_v23 }
 0x738   : > { %15360 = vmatpush1.bf16.msra.mxu0 %v19371_v53  ;;  %15392 = vmatpush1.bf16.msra.mxu1 %v19321_v35 }
 0x739   : > { %15362 = vmatprep.subr.bf16.mxu0 %v19375_v12  ;;  %15394 = vmatprep.subr.bf16.mxu1 %v19325_v37 }
 0x73b   : > { %12487 = vmatmul.mubr.msk.f32.vlgmr.msra.gmra.mrb[60].mxu1 %vm3002_vm3, %v6848_v30 }
 0x73c   : > { %15364 = vmatpush1.bf16.msra.mxu0 %v19383_v11  ;;  %15396 = vmatpush1.bf16.msra.mxu1 %v19333_v3 }
 0x73d   : > { %15366 = vmatprep.subr.bf16.mxu0 %v19387_v61  ;;  %15398 = vmatprep.subr.bf16.mxu1 %v19337_v45 }
 0x73e   : > { %7048 = vmatprep.mubr.f32.mxu1 %v17943_v1 }
 0x740   : > { %15368 = vmatpush1.bf16.msra.mxu0 %v19395_v63  ;;  %15400 = vmatpush1.bf16.msra.mxu1 %v19346_v54 }
 0x741   : > { %15370 = vmatprep.subr.bf16.mxu0 %v19399_v34  ;;  %15402 = vmatprep.subr.bf16.mxu1 %v19350_v13 }
 0x744   : > { %15372 = vmatpush1.bf16.msra.mxu0 %v19408_v57  ;;  %15404 = vmatpush1.bf16.msra.mxu1 %v19359_v59 }
 0x745   : > { %15374 = vmatprep.subr.bf16.mxu0 %v19412_v60  ;;  %15406 = vmatprep.subr.bf16.mxu1 %v19363_v2 }
 0x746   : > { %v19461_v31 = vpop.f32.mrb[50].mxu1 }
 0x747   : > { %v14179_v38 = vpop.f32.mrb[51].mxu1 }
 0x748   : > { %15376 = vmatpush1.bf16.msra.mxu0 %v19418_v20  ;;  %15408 = vmatpush1.bf16.msra.mxu1 %v19371_v53  ;;  %v5940_v38 = vld [vmem:[%s21420_s25] sm:$0x1] }
 0x749   : > { %15410 = vmatprep.subr.bf16.mxu1 %v19375_v12  ;;  %15426 = vmatprep.subr.bf16.mxu0 %v19288_v25 }
 0x74b   : > { %6819 = vmatmul.mubr.f32.vlgmr.msra.gmra.mrb[60].mxu0 %v6721_v39 }
 0x74c   : > { %15412 = vmatpush1.bf16.msra.mxu1 %v19383_v11  ;;  %15428 = vmatpush1.bf16.msra.mxu0 %v19292_v41 }
 0x74d   : > { %15414 = vmatprep.subr.bf16.mxu1 %v19387_v61  ;;  %15430 = vmatprep.subr.bf16.mxu0 %v19296_v7 }
 0x74e   : > { %7174 = vmatprep.mubr.f32.mxu0 %v17943_v1 }
 0x750   : > { %15416 = vmatpush1.bf16.msra.mxu1 %v19395_v63  ;;  %15432 = vmatpush1.bf16.msra.mxu0 %v19300_v58 }
 0x751   : > { %15418 = vmatprep.subr.bf16.mxu1 %v19399_v34  ;;  %15434 = vmatprep.subr.bf16.mxu0 %v19304_v62 }
 0x754   : > { %15420 = vmatpush1.bf16.msra.mxu1 %v19408_v57  ;;  %15436 = vmatpush1.bf16.msra.mxu0 %v19311_v24 }
 0x755   : > { %15422 = vmatprep.subr.bf16.mxu1 %v19412_v60  ;;  %15438 = vmatprep.subr.bf16.mxu0 %v19315_v23 }
 0x758   : > { %15424 = vmatpush1.bf16.msra.mxu1 %v19418_v20  ;;  %15440 = vmatpush1.bf16.msra.mxu0 %v19321_v35 }
 0x759   : > { %15442 = vmatprep.subr.bf16.mxu0 %v19325_v37  ;;  %15474 = vmatprep.subr.bf16.mxu1 %v19288_v25  ;;  %v7308_v25 = vld [vmem:[#allocation2 + $0x4] sm:$0x1] }
 0x75b   : > { %7049 = vmatmul.mubr.f32.vlgmr.msra.gmra.mrb[60].mxu1 %v6951_v42  ;;  %12488 = vmatmul.mubr.msk.f32.vlgmr.msra.gmra.mrb[62].mxu0 %vm3002_vm3, %v7078_v43 }
 0x75c   : > { %15444 = vmatpush1.bf16.msra.mxu0 %v19333_v3  ;;  %15476 = vmatpush1.bf16.msra.mxu1 %v19292_v41 }
 0x75d   : > { %15446 = vmatprep.subr.bf16.mxu0 %v19337_v45  ;;  %15478 = vmatprep.subr.bf16.mxu1 %v19296_v7  ;;  %v5675_v7 = vld [vmem:[%s21420_s25] sm:$0x1] }
 0x75e   : > { %7404 = vmatprep.mubr.f32.mxu1 %v17943_v1  ;;  %7278 = vmatprep.mubr.f32.mxu0 %v17943_v1 }
 0x760   : > { %15448 = vmatpush1.bf16.msra.mxu0 %v19346_v54  ;;  %15480 = vmatpush1.bf16.msra.mxu1 %v19300_v58 }
 0x761   : > { %15450 = vmatprep.subr.bf16.mxu0 %v19350_v13  ;;  %15482 = vmatprep.subr.bf16.mxu1 %v19304_v62 }
 0x764   : > { %15452 = vmatpush1.bf16.msra.mxu0 %v19359_v59  ;;  %15484 = vmatpush1.bf16.msra.mxu1 %v19311_v24 }
 0x765   : > { %15454 = vmatprep.subr.bf16.mxu0 %v19363_v2  ;;  %15486 = vmatprep.subr.bf16.mxu1 %v19315_v23  ;;  %v7540_v23 = vld [vmem:[#allocation16 + $0x8] sm:$0xff] }
 0x768   : > { %15456 = vmatpush1.bf16.msra.mxu0 %v19371_v53  ;;  %15488 = vmatpush1.bf16.msra.mxu1 %v19321_v35  ;;  %v7542_v35 = vld [vmem:[#allocation16 + $0x18] sm:$0xff] }
 0x769   : > { %15458 = vmatprep.subr.bf16.mxu0 %v19375_v12  ;;  %15490 = vmatprep.subr.bf16.mxu1 %v19325_v37  ;;  %v19523_v37 = vpack.c.bf16 %v7542_v35, %v7540_v23  ;;  %v7658_v23 = vld [vmem:[%s21419_s23 + $0x80] sm:$0xff]  ;;  %v7660_v35 = vld [vmem:[%s21419_s23 + $0x90] sm:$0xff] }
 0x76a   : > { %v19620_v47 = vpack.c.bf16 %v7660_v35, %v7658_v23  ;;  %v8312_v35 = vld [vmem:[#allocation20 + $0x480] sm:$0xff] }
 0x76b   : > { %12489 = vmatmul.mubr.msk.f32.vlgmr.msra.gmra.mrb[62].mxu1 %vm3002_vm3, %v7308_v25  ;;  %v7656_v25 = vld [vmem:[%s21419_s23 + $0x70] sm:$0xff] }
 0x76c   : > { %15460 = vmatpush1.bf16.msra.mxu0 %v19383_v11  ;;  %15492 = vmatpush1.bf16.msra.mxu1 %v19333_v3  ;;  %v7539_v3 = vld [vmem:[#allocation16] sm:$0xff] }
 0x76d   : > { %15462 = vmatprep.subr.bf16.mxu0 %v19387_v61  ;;  %15494 = vmatprep.subr.bf16.mxu1 %v19337_v45  ;;  %v7541_v45 = vld [vmem:[#allocation16 + $0x10] sm:$0xff] }
 0x76e   : > { %v5671_v41 = vpop.f32.mrb[50].mxu0  ;;  %7508 = vmatprep.mubr.f32.mxu1 %v17943_v1  ;;  %v19527_v49 = vpack.c.bf16 %v7541_v45, %v7539_v3  ;;  %v7663_v3 = vld [vmem:[%s21419_s23 + $0xa8] sm:$0xff]  ;;  %v7665_v45 = vld [vmem:[%s21419_s23 + $0xb8] sm:$0xff] }
 0x76f   : > { %v5672_v58 = vadd.f32 %v5671_v41, %v19422_v21  ;;  %v14144_v62 = vpop.f32.mrb[51].mxu0  ;;  %v7655_v21 = vld [vmem:[%s21419_s23 + $0x68] sm:$0xff]  ;;  %v19624_v48 = vpack.c.bf16 %v7665_v45, %v7663_v3  ;;  %v8317_v3 = vld [vmem:[#allocation20 + $0x4a8] sm:$0xff] }
 0x770   : > { %15464 = vmatpush1.bf16.msra.mxu0 %v19395_v63  ;;  %15496 = vmatpush1.bf16.msra.mxu1 %v19346_v54  ;;  %v7545_v54 = vld [vmem:[#allocation16 + $0x30] sm:$0xff]  ;;  %v19599_v43 = vpack.c.bf16 %v7657_v22, %v7655_v21  ;;  %v8300_v21 = vld [vmem:[#allocation20 + $0x420] sm:$0xff] }
 0x771   : > { %v5676_v24 = vadd.f32 %v5675_v7, %v5672_v58  ;;  %15466 = vmatprep.subr.bf16.mxu0 %v19399_v34  ;;  %15498 = vmatprep.subr.bf16.mxu1 %v19350_v13  ;;  %v7181_v13 = vld [vmem:[#allocation6 + $0x1] sm:$0x1]  ;;  %v19535_v36 = vpack.c.bf16 %v7545_v54, %v7543_v52  ;;  %v7659_v41 = vld [vmem:[%s21419_s23 + $0x88] sm:$0xff]  ;;  %v7661_v7 = vld [vmem:[%s21419_s23 + $0x98] sm:$0xff] }
 0x772   : > { %v7662_v52 = vld [vmem:[%s21419_s23 + $0xa0] sm:$0xff]  ;;  %v7664_v54 = vld [vmem:[%s21419_s23 + $0xb0] sm:$0xff] }
 0x773   : > { %5677 = vst [vmem:[%s19516_s16] sm:$0x1] %v5676_v24  ;;  %v19612_v24 = vpack.c.bf16 %v7661_v7, %v7659_v41  ;;  %v8302_v22 = vld [vmem:[#allocation20 + $0x430] sm:$0xff]  ;;  %v8313_v7 = vld [vmem:[#allocation20 + $0x488] sm:$0xff] }
 0x774   : > { %15468 = vmatpush1.bf16.msra.mxu0 %v19408_v57  ;;  %15500 = vmatpush1.bf16.msra.mxu1 %v19359_v59  ;;  %v7547_v59 = vld [vmem:[#allocation16 + $0x40] sm:$0xff]  ;;  %v8310_v41 = vld [vmem:[#allocation20 + $0x470] sm:$0xff] }
 0x775   : > { %15470 = vmatprep.subr.bf16.mxu0 %v19412_v60  ;;  %15502 = vmatprep.subr.bf16.mxu1 %v19363_v2  ;;  %v7549_v2 = vld [vmem:[#allocation16 + $0x50] sm:$0xff] }
 0x776   : > { %v19544_v9 = vpack.c.bf16 %v7549_v2, %v7547_v59  ;;  %v19633_v59 = vpack.c.bf16 %v7664_v54, %v7662_v52  ;;  %v19637_v2 = vpack.c.bf16 %v7669_v27, %v7667_v55  ;;  %v8318_v54 = vld [vmem:[#allocation20 + $0x4b0] sm:$0xff] }
 0x778   : > { %15472 = vmatpush1.bf16.msra.mxu0 %v19418_v20  ;;  %15504 = vmatpush1.bf16.msra.mxu1 %v19371_v53  ;;  %v7551_v53 = vld [vmem:[#allocation16 + $0x60] sm:$0xff] }
 0x779   : > { %15506 = vmatprep.subr.bf16.mxu1 %v19375_v12  ;;  %15522 = vmatprep.subr.bf16.mxu0 %v19523_v37  ;;  %v7553_v12 = vld [vmem:[#allocation16 + $0x70] sm:$0xff] }
 0x77a   : > { %v19554_v4 = vpack.c.bf16 %v7553_v12, %v7551_v53  ;;  %v7671_v53 = vld [vmem:[%s21419_s23 + $0xe8] sm:$0xff]  ;;  %v7673_v12 = vld [vmem:[%s21419_s23 + $0xf8] sm:$0xff] }
 0x77b   : > { %7279 = vmatmul.mubr.f32.vlgmr.msra.gmra.mrb[62].mxu0 %v7181_v13  ;;  %v7768_v13 = vld [vmem:[#allocation2 + $0x6] sm:$0x1]  ;;  %v19650_v33 = vpack.c.bf16 %v7673_v12, %v7671_v53 }
 0x77c   : > { %15508 = vmatpush1.bf16.msra.mxu1 %v19383_v11  ;;  %15524 = vmatpush1.bf16.msra.mxu0 %v19527_v49  ;;  %v7642_v11 = vld [vmem:[%s21419_s23] sm:$0xff] }
 0x77d   : > { %15510 = vmatprep.subr.bf16.mxu1 %v19387_v61  ;;  %15526 = vmatprep.subr.bf16.mxu0 %v19531_v50  ;;  %v7644_v61 = vld [vmem:[%s21419_s23 + $0x10] sm:$0xff]  ;;  %v8322_v53 = vld [vmem:[#allocation20 + $0x4d0] sm:$0xff] }
 0x77e   : > { %7634 = vmatprep.mubr.f32.mxu0 %v17943_v1  ;;  %v19566_v19 = vpack.c.bf16 %v7644_v61, %v7642_v11  ;;  %v7670_v11 = vld [vmem:[%s21419_s23 + $0xe0] sm:$0xff]  ;;  %v7672_v61 = vld [vmem:[%s21419_s23 + $0xf0] sm:$0xff] }
 0x77f   : > { %v19656_v16 = vpack.c.bf16 %v7672_v61, %v7670_v11 }
 0x780   : > { %15512 = vmatpush1.bf16.msra.mxu1 %v19395_v63  ;;  %15528 = vmatpush1.bf16.msra.mxu0 %v19535_v36  ;;  %v7646_v63 = vld [vmem:[%s21419_s23 + $0x20] sm:$0xff] }
 0x781   : > { %15514 = vmatprep.subr.bf16.mxu1 %v19399_v34  ;;  %15530 = vmatprep.subr.bf16.mxu0 %v19539_v44  ;;  %v7648_v34 = vld [vmem:[%s21419_s23 + $0x30] sm:$0xff] }
 0x782   : > { %v19579_v10 = vpack.c.bf16 %v7648_v34, %v7646_v63 }
 0x784   : > { %15516 = vmatpush1.bf16.msra.mxu1 %v19408_v57  ;;  %15532 = vmatpush1.bf16.msra.mxu0 %v19544_v9  ;;  %v19583_v57 = vpack.c.bf16 %v7653_v51, %v7651_v46  ;;  %v8296_v51 = vld [vmem:[#allocation20 + $0x400] sm:$0xff] }
 0x785   : > { %15518 = vmatprep.subr.bf16.mxu1 %v19412_v60  ;;  %15534 = vmatprep.subr.bf16.mxu0 %v19548_v6  ;;  %v7650_v60 = vld [vmem:[%s21419_s23 + $0x40] sm:$0xff] }
 0x786   : > { %v19595_v39 = vpack.c.bf16 %v7652_v17, %v7650_v60  ;;  %v8298_v60 = vld [vmem:[#allocation20 + $0x410] sm:$0xff]  ;;  %v8301_v17 = vld [vmem:[#allocation20 + $0x428] sm:$0xff] }
 0x788   : > { %15520 = vmatpush1.bf16.msra.mxu1 %v19418_v20  ;;  %15536 = vmatpush1.bf16.msra.mxu0 %v19554_v4 }
 0x789   : > { %15538 = vmatprep.subr.bf16.mxu0 %v19558_v8  ;;  %15570 = vmatprep.subr.bf16.mxu1 %v19523_v37 }
 0x78b   : > { %7509 = vmatmul.mubr.f32.vlgmr.msra.gmra.mrb[62].mxu1 %v7411_v40  ;;  %12490 = vmatmul.mubr.msk.f32.vlgmr.msra.gmra.mrb[64].mxu0 %vm3002_vm3, %v7538_v28 }
 0x78c   : > { %15540 = vmatpush1.bf16.msra.mxu0 %v19566_v19  ;;  %15572 = vmatpush1.bf16.msra.mxu1 %v19527_v49 }
 0x78d   : > { %15542 = vmatprep.subr.bf16.mxu0 %v19570_v32  ;;  %15574 = vmatprep.subr.bf16.mxu1 %v19531_v50 }
 0x78e   : > { %v5848_v18 = vpop.f32.mrb[52].mxu0  ;;  %v5935_v20 = vpop.f32.mrb[52].mxu1  ;;  %7864 = vmatprep.mubr.f32.mxu1 %v17943_v1  ;;  %7738 = vmatprep.mubr.f32.mxu0 %v17943_v1 }
 0x78f   : > { %v5849_v26 = vadd.f32 %v5848_v18, %v19461_v31  ;;  %v14214_v29 = vpop.f32.mrb[53].mxu0  ;;  %v14249_v30 = vpop.f32.mrb[53].mxu1  ;;  %v7654_v31 = vld [vmem:[%s21419_s23 + $0x60] sm:$0xff]  ;;  %v8303_v18 = vld [vmem:[#allocation20 + $0x438] sm:$0xff] }
 0x790   : > { %15544 = vmatpush1.bf16.msra.mxu0 %v19579_v10  ;;  %15576 = vmatpush1.bf16.msra.mxu1 %v19535_v36  ;;  %v19607_v62 = vpack.c.bf16 %v7656_v25, %v7654_v31  ;;  %v8304_v29 = vld [vmem:[#allocation20 + $0x440] sm:$0xff]  ;;  %v8306_v30 = vld [vmem:[#allocation20 + $0x450] sm:$0xff] }
 0x791   : > { %v5939_v42 = vadd.f32 %v5935_v20, %v5849_v26  ;;  %15546 = vmatprep.subr.bf16.mxu0 %v19583_v57  ;;  %15578 = vmatprep.subr.bf16.mxu1 %v19539_v44  ;;  %v7871_v20 = vld [vmem:[#allocation6 + $0x3] sm:$0x1]  ;;  %v15675_v31 = vpack.c.bf16 %v8306_v30, %v8304_v29  ;;  %v8308_v25 = vld [vmem:[#allocation20 + $0x460] sm:$0xff] }
 0x792   : > { %v8307_v26 = vld [vmem:[#allocation20 + $0x458] sm:$0xff] }
 0x793   : > { %v5941_v58 = vadd.f32 %v5940_v38, %v5939_v42  ;;  %v8309_v38 = vld [vmem:[#allocation20 + $0x468] sm:$0xff]  ;;  %v8311_v42 = vld [vmem:[#allocation20 + $0x478] sm:$0xff] }
 0x794   : > { %15548 = vmatpush1.bf16.msra.mxu0 %v19595_v39  ;;  %15580 = vmatpush1.bf16.msra.mxu1 %v19544_v9  ;;  %v8635_v29 = vld [vmem:[#allocation20 + $0x258] sm:$0xff] }
 0x795   : > { %5942 = vst [vmem:[%s19516_s16 + $0x1] sm:$0x1] %v5941_v58  ;;  %15550 = vmatprep.subr.bf16.mxu0 %v19599_v43  ;;  %15582 = vmatprep.subr.bf16.mxu1 %v19548_v6  ;;  %v15679_v58 = vpack.c.bf16 %v8310_v41, %v8308_v25  ;;  %v8632_v41 = vld [vmem:[#allocation20 + $0x240] sm:$0xff] }
 0x798   : > { %15552 = vmatpush1.bf16.msra.mxu0 %v19607_v62  ;;  %15584 = vmatpush1.bf16.msra.mxu1 %v19554_v4 }
 0x799   : > { %15554 = vmatprep.subr.bf16.mxu0 %v19612_v24  ;;  %15586 = vmatprep.subr.bf16.mxu1 %v19558_v8 }
 0x79b   : > { %12491 = vmatmul.mubr.msk.f32.vlgmr.msra.gmra.mrb[64].mxu1 %vm3002_vm3, %v7768_v13  ;;  %v8323_v13 = vld [vmem:[#allocation20 + $0x4d8] sm:$0xff] }
 0x79c   : > { %15556 = vmatpush1.bf16.msra.mxu0 %v19620_v47  ;;  %15588 = vmatpush1.bf16.msra.mxu1 %v19566_v19 }
 0x79d   : > { %15558 = vmatprep.subr.bf16.mxu0 %v19624_v48  ;;  %15590 = vmatprep.subr.bf16.mxu1 %v19570_v32 }
 0x79e   : > { %7968 = vmatprep.mubr.f32.mxu1 %v17943_v1 }
 0x7a0   : > { %15560 = vmatpush1.bf16.msra.mxu0 %v19633_v59  ;;  %15592 = vmatpush1.bf16.msra.mxu1 %v19579_v10 }
 0x7a1   : > { %15562 = vmatprep.subr.bf16.mxu0 %v19637_v2  ;;  %15594 = vmatprep.subr.bf16.mxu1 %v19583_v57 }
 0x7a4   : > { %15564 = vmatpush1.bf16.msra.mxu0 %v19646_v15  ;;  %15596 = vmatpush1.bf16.msra.mxu1 %v19595_v39 }
 0x7a5   : > { %15566 = vmatprep.subr.bf16.mxu0 %v19650_v33  ;;  %15598 = vmatprep.subr.bf16.mxu1 %v19599_v43 }
 0x7a8   : > { %15568 = vmatpush1.bf16.msra.mxu0 %v19656_v16  ;;  %15600 = vmatpush1.bf16.msra.mxu1 %v19607_v62 }
 0x7a9   : > { %15602 = vmatprep.subr.bf16.mxu1 %v19612_v24  ;;  %15618 = vmatprep.subr.bf16.mxu0 %v19523_v37  ;;  %v8297_v37 = vld [vmem:[#allocation20 + $0x408] sm:$0xff] }
 0x7ab   : > { %7739 = vmatmul.mubr.f32.vlgmr.msra.gmra.mrb[64].mxu0 %v7641_v14  ;;  %v8325_v14 = vld [vmem:[#allocation20 + $0x4e8] sm:$0xff] }
 0x7ac   : > { %15604 = vmatpush1.bf16.msra.mxu1 %v19620_v47  ;;  %15620 = vmatpush1.bf16.msra.mxu0 %v19527_v49  ;;  %v8299_v49 = vld [vmem:[#allocation20 + $0x418] sm:$0xff] }
 0x7ad   : > { %15606 = vmatprep.subr.bf16.mxu1 %v19624_v48  ;;  %15622 = vmatprep.subr.bf16.mxu0 %v19531_v50  ;;  %v15665_v50 = vpack.c.bf16 %v8299_v49, %v8297_v37  ;;  %v8324_v37 = vld [vmem:[#allocation20 + $0x4e0] sm:$0xff]  ;;  %v8326_v49 = vld [vmem:[#allocation20 + $0x4f0] sm:$0xff] }
 0x7ae   : > { %v6043_v28 = vpop.f32.mrb[54].mxu0  ;;  %v6113_v63 = vpop.f32.mrb[54].mxu1  ;;  %8094 = vmatprep.mubr.f32.mxu0 %v17943_v1 }
 0x7af   : > { %v19669_v34 = vadd.f32 %v6113_v63, %v6043_v28  ;;  %v14284_v40 = vpop.f32.mrb[55].mxu0  ;;  %v14319_v46 = vpop.f32.mrb[55].mxu1  ;;  %v8327_v28 = vld [vmem:[#allocation20 + $0x4f8] sm:$0xff] }
 0x7b0   : > { %15608 = vmatpush1.bf16.msra.mxu1 %v19633_v59  ;;  %15624 = vmatpush1.bf16.msra.mxu0 %v19535_v36  ;;  %v7998_v36 = vld [vmem:[#allocation2 + $0x7] sm:$0x1]  ;;  %v8627_v40 = vld [vmem:[#allocation20 + $0x218] sm:$0xff]  ;;  %v15693_v46 = vpack.c.bf16 %v8327_v28, %v8325_v14  ;;  %v8640_v14 = vld [vmem:[#allocation20 + $0x280] sm:$0xff] }
 0x7b1   : > { %15610 = vmatprep.subr.bf16.mxu1 %v19637_v2  ;;  %15626 = vmatprep.subr.bf16.mxu0 %v19539_v44  ;;  %v15667_v44 = vpack.c.bf16 %v8298_v60, %v8296_v51  ;;  %v8626_v60 = vld [vmem:[#allocation20 + $0x210] sm:$0xff] }
 0x7b2   : > { %v8642_v28 = vld [vmem:[#allocation20 + $0x290] sm:$0xff] }
 0x7b4   : > { %15612 = vmatpush1.bf16.msra.mxu1 %v19646_v15  ;;  %15628 = vmatpush1.bf16.msra.mxu0 %v19544_v9  ;;  %v15669_v9 = vpack.c.bf16 %v8303_v18, %v8301_v17  ;;  %v15695_v17 = vpack.c.bf16 %v8326_v49, %v8324_v37  ;;  %v8631_v18 = vld [vmem:[#allocation20 + $0x238] sm:$0xff]  ;;  %v8346_v37 = vld [vmem:[#allocation20 + $0x590] sm:$0xff]  ;;  %v8349_v49 = vld [vmem:[#allocation20 + $0x5a8] sm:$0xff] }
 0x7b5   : > { %15614 = vmatprep.subr.bf16.mxu1 %v19650_v33  ;;  %15630 = vmatprep.subr.bf16.mxu0 %v19548_v6  ;;  %v8305_v6 = vld [vmem:[#allocation20 + $0x448] sm:$0xff] }
 0x7b8   : > { %15616 = vmatpush1.bf16.msra.mxu1 %v19656_v16  ;;  %15632 = vmatpush1.bf16.msra.mxu0 %v19554_v4  ;;  %v15671_v4 = vpack.c.bf16 %v8302_v22, %v8300_v21  ;;  %v8335_v21 = vld [vmem:[#allocation20 + $0x538] sm:$0xff] }
 0x7b9   : > { %15634 = vmatprep.subr.bf16.mxu0 %v19558_v8  ;;  %15666 = vmatprep.subr.bf16.mxu1 %v15665_v50  ;;  %v15673_v8 = vpack.c.bf16 %v8307_v26, %v8305_v6  ;;  %v8331_v50 = vld [vmem:[#allocation20 + $0x518] sm:$0xff]  ;;  %v8628_v6 = vld [vmem:[#allocation20 + $0x220] sm:$0xff]  ;;  %v8630_v26 = vld [vmem:[#allocation20 + $0x230] sm:$0xff] }
 0x7ba   : > { %v8101_v22 = vld [vmem:[#allocation6 + $0x3] sm:$0x1] }
 0x7bb   : > { %7969 = vmatmul.mubr.f32.vlgmr.msra.gmra.mrb[64].mxu1 %v7871_v20  ;;  %12492 = vmatmul.mubr.msk.f32.vlgmr.msra.gmra.mrb[66].mxu0 %vm3002_vm3, %v7998_v36  ;;  %v8330_v20 = vld [vmem:[#allocation20 + $0x510] sm:$0xff] }
 0x7bc   : > { %15636 = vmatpush1.bf16.msra.mxu0 %v19566_v19  ;;  %8198 = vmatprep.mubr.f32.mxu0 %v17943_v1  ;;  %v15677_v19 = vpack.c.bf16 %v8311_v42, %v8309_v38  ;;  %v8332_v38 = vld [vmem:[#allocation20 + $0x520] sm:$0xff]  ;;  %v8334_v42 = vld [vmem:[#allocation20 + $0x530] sm:$0xff] }
 0x7bd   : > { %15638 = vmatprep.subr.bf16.mxu0 %v19570_v32  ;;  %15668 = vmatpush1.bf16.msra.mxu1 %v15667_v44  ;;  %v8315_v32 = vld [vmem:[#allocation20 + $0x498] sm:$0xff]  ;;  %v8328_v44 = vld [vmem:[#allocation20 + $0x500] sm:$0xff] }
 0x7be   : > { %15670 = vmatprep.subr.bf16.mxu1 %v15669_v9  ;;  %v15681_v23 = vpack.c.bf16 %v8315_v32, %v8313_v7  ;;  %v8333_v9 = vld [vmem:[#allocation20 + $0x528] sm:$0xff]  ;;  %v8634_v7 = vld [vmem:[#allocation20 + $0x250] sm:$0xff] }
 0x7bf   : > { %v15701_v30 = vpack.c.bf16 %v8335_v21, %v8333_v9  ;;  %v8637_v32 = vld [vmem:[#allocation20 + $0x268] sm:$0xff]  ;;  %v8350_v9 = vld [vmem:[#allocation20 + $0x5b0] sm:$0xff] }
 0x7c0   : > { %15640 = vmatpush1.bf16.msra.mxu0 %v19579_v10  ;;  %v8314_v10 = vld [vmem:[#allocation20 + $0x490] sm:$0xff]  ;;  %v8353_v21 = vld [vmem:[#allocation20 + $0x5c8] sm:$0xff] }
 0x7c1   : > { %15642 = vmatprep.subr.bf16.mxu0 %v19583_v57  ;;  %15672 = vmatpush1.bf16.msra.mxu1 %v15671_v4  ;;  %v8319_v57 = vld [vmem:[#allocation20 + $0x4b8] sm:$0xff]  ;;  %v15683_v45 = vpack.c.bf16 %v8314_v10, %v8312_v35  ;;  %v8633_v4 = vld [vmem:[#allocation20 + $0x248] sm:$0xff]  ;;  %v8336_v10 = vld [vmem:[#allocation20 + $0x540] sm:$0xff] }
 0x7c2   : > { %15674 = vmatprep.subr.bf16.mxu1 %v15673_v8  ;;  %v15685_v52 = vpack.c.bf16 %v8319_v57, %v8317_v3  ;;  %v15699_v8 = vpack.c.bf16 %v8330_v20, %v8328_v44  ;;  %v19715_v25 = vpack.c.bf16 %v8635_v29, %v8633_v4  ;;  %v8338_v3 = vld [vmem:[#allocation20 + $0x550] sm:$0xff]  ;;  %v8341_v57 = vld [vmem:[#allocation20 + $0x568] sm:$0xff]  ;;  %v8348_v20 = vld [vmem:[#allocation20 + $0x5a0] sm:$0xff] }
 0x7c3   : > { %v8650_v29 = vld [vmem:[#allocation20 + $0x2d0] sm:$0xff] }
 0x7c4   : > { %15644 = vmatpush1.bf16.msra.mxu0 %v19595_v39  ;;  %v8316_v39 = vld [vmem:[#allocation20 + $0x4a0] sm:$0xff] }
 0x7c5   : > { %15646 = vmatprep.subr.bf16.mxu0 %v19599_v43  ;;  %15676 = vmatpush1.bf16.msra.mxu1 %v15675_v31  ;;  %v8321_v43 = vld [vmem:[#allocation20 + $0x4c8] sm:$0xff]  ;;  %v15687_v55 = vpack.c.bf16 %v8318_v54, %v8316_v39  ;;  %v8636_v54 = vld [vmem:[#allocation20 + $0x260] sm:$0xff] }
 0x7c6   : > { %15678 = vmatprep.subr.bf16.mxu1 %v15677_v19  ;;  %v8337_v31 = vld [vmem:[#allocation20 + $0x548] sm:$0xff]  ;;  %v19712_v19 = vpack.c.bf16 %v8630_v26, %v8628_v6 }
 0x7c7   : > { %v6382_v6 = vld [vmem:[%s21420_s25] sm:$0x1] }
 0x7c8   : > { %15648 = vmatpush1.bf16.msra.mxu0 %v19607_v62  ;;  %v15689_v62 = vpack.c.bf16 %v8323_v13, %v8321_v43  ;;  %v8638_v43 = vld [vmem:[#allocation20 + $0x270] sm:$0xff]  ;;  %v8641_v13 = vld [vmem:[#allocation20 + $0x288] sm:$0xff] }
 0x7c9   : > { %15650 = vmatprep.subr.bf16.mxu0 %v19612_v24  ;;  %15680 = vmatpush1.bf16.msra.mxu1 %v15679_v58  ;;  %v8320_v24 = vld [vmem:[#allocation20 + $0x4c0] sm:$0xff]  ;;  %v15703_v58 = vpack.c.bf16 %v8334_v42, %v8332_v38  ;;  %v15719_v38 = vpack.c.bf16 %v8350_v9, %v8348_v20 }
 0x7ca   : > { %15682 = vmatprep.subr.bf16.mxu1 %v15681_v23  ;;  %v15691_v63 = vpack.c.bf16 %v8322_v53, %v8320_v24  ;;  %v8639_v23 = vld [vmem:[#allocation20 + $0x278] sm:$0xff]  ;;  %v8342_v24 = vld [vmem:[#allocation20 + $0x570] sm:$0xff]  ;;  %v8345_v53 = vld [vmem:[#allocation20 + $0x588] sm:$0xff] }
 0x7cb   : > { %v19721_v39 = vpack.c.bf16 %v8639_v23, %v8637_v32  ;;  %v6404_v23 = vlaneseq }
 0x7cc   : > { %15652 = vmatpush1.bf16.msra.mxu0 %v19620_v47 }
 0x7cd   : > { %15654 = vmatprep.subr.bf16.mxu0 %v19624_v48  ;;  %15684 = vmatpush1.bf16.msra.mxu1 %v15683_v45  ;;  %v8625_v48 = vld [vmem:[#allocation20 + $0x208] sm:$0xff]  ;;  %v8343_v45 = vld [vmem:[#allocation20 + $0x578] sm:$0xff]  ;;  %vm19790_vm4 = vcmp.lt.s32.totalorder %v6404_v23, 256 }
 0x7ce   : > { %v6200_v27 = vpop.f32.mrb[56].mxu0  ;;  %v19695_v5 = vpop.f32.mrb[56].mxu1  ;;  %15686 = vmatprep.subr.bf16.mxu1 %v15685_v52  ;;  %v19703_v51 = vpack.c.bf16 %v8627_v40, %v8625_v48  ;;  %v19718_v52 = vpack.c.bf16 %v8634_v7, %v8632_v41  ;;  %v8352_v41 = vld [vmem:[#allocation20 + $0x5c0] sm:$0xff]  ;;  %v8354_v7 = vld [vmem:[#allocation20 + $0x5d0] sm:$0xff] }
 0x7cf   : > { %v6204_v12 = vadd.f32 %v6200_v27, %v19669_v34  ;;  %v14354_v11 = vpop.f32.mrb[57].mxu0  ;;  %v14389_v61 = vpop.f32.mrb[57].mxu1  ;;  %v8329_v34 = vld [vmem:[#allocation20 + $0x508] sm:$0xff]  ;;  %v8643_v27 = vld [vmem:[#allocation20 + $0x298] sm:$0xff] }
 0x7d0   : > { %15656 = vmatpush1.bf16.msra.mxu0 %v19633_v59  ;;  %v8624_v59 = vld [vmem:[#allocation20 + $0x200] sm:$0xff]  ;;  %v15697_v36 = vpack.c.bf16 %v8331_v50, %v8329_v34  ;;  %v19724_v11 = vpack.c.bf16 %v8638_v43, %v8636_v54  ;;  %v19727_v61 = vpack.c.bf16 %v8643_v27, %v8641_v13  ;;  %v8351_v34 = vld [vmem:[#allocation20 + $0x5b8] sm:$0xff]  ;;  %v19730_v50 = vpack.c.bf16 %v8642_v28, %v8640_v14  ;;  %v8654_v43 = vld [vmem:[#allocation20 + $0x2f0] sm:$0xff] }
 0x7d1   : > { %v6206_v47 = vadd.f32 %v6205_v56, %v6204_v12  ;;  %15658 = vmatprep.subr.bf16.mxu0 %v19637_v2  ;;  %15688 = vmatpush1.bf16.msra.mxu1 %v15687_v55  ;;  %v8629_v2 = vld [vmem:[#allocation20 + $0x228] sm:$0xff]  ;;  %v15707_v55 = vpack.c.bf16 %v8338_v3, %v8336_v10  ;;  %v15709_v56 = vpack.c.bf16 %v8343_v45, %v8341_v57  ;;  %v8347_v12 = vld [vmem:[#allocation20 + $0x598] sm:$0xff]  ;;  %v8652_v54 = vld [vmem:[#allocation20 + $0x2e0] sm:$0xff] }
 0x7d2   : > { %15690 = vmatprep.subr.bf16.mxu1 %v15689_v62  ;;  %v8340_v62 = vld [vmem:[#allocation20 + $0x560] sm:$0xff]  ;;  %v15713_v40 = vpack.c.bf16 %v8347_v12, %v8345_v53  ;;  %v15717_v44 = vpack.c.bf16 %v8351_v34, %v8349_v49  ;;  %v8359_v10 = vld [vmem:[#allocation20 + $0x5f8] sm:$0xff]  ;;  %v8657_v13 = vld [vmem:[#allocation20 + $0x308] sm:$0xff]  ;;  %v19752_v53 = vpack.c.bf16 %v8654_v43, %v8652_v54  ;;  %v17944_v49 = vmov 1966171168  }
 0x7d3   : > { %6207 = vst [vmem:[%s19516_s16 + $0x2] sm:$0x1] %v6206_v47  ;;  %v8645_v47 = vld [vmem:[#allocation20 + $0x2a8] sm:$0xff]  ;;  %v15711_v48 = vpack.c.bf16 %v8342_v24, %v8340_v62  ;;  %v8358_v62 = vld [vmem:[#allocation20 + $0x5f0] sm:$0xff]  ;;  %v6405_v24 = vshrl.u32 %v6404_v23, 7  ;;  %v8656_v14 = vld [vmem:[#allocation20 + $0x300] sm:$0xff]  ;;  %v6598_v34 = vunpack.c.l.s4 %v17944_v49 }
 0x7d4   : > { %15660 = vmatpush1.bf16.msra.mxu0 %v19646_v15  ;;  %v19706_v15 = vpack.c.bf16 %v8626_v60, %v8624_v59  ;;  %v8644_v60 = vld [vmem:[#allocation20 + $0x2a0] sm:$0xff]  ;;  %v8658_v28 = vld [vmem:[#allocation20 + $0x310] sm:$0xff]  ;;  %v8675_v54 = vld [vmem:[#allocation20 + $0x398] sm:$0xff] }
 0x7d5   : > { %15662 = vmatprep.subr.bf16.mxu0 %v19650_v33  ;;  %15692 = vmatpush1.bf16.msra.mxu1 %v15691_v63  ;;  %v19709_v33 = vpack.c.bf16 %v8631_v18, %v8629_v2  ;;  %v8647_v63 = vld [vmem:[#allocation20 + $0x2b8] sm:$0xff]  ;;  %v8646_v2 = vld [vmem:[#allocation20 + $0x2b0] sm:$0xff] }
 0x7d6   : > { %15694 = vmatprep.subr.bf16.mxu1 %v15693_v46  ;;  %v8344_v46 = vld [vmem:[#allocation20 + $0x580] sm:$0xff]  ;;  %v19733_v59 = vpack.c.bf16 %v8647_v63, %v8645_v47  ;;  %v19737_v26 = vpack.c.bf16 %v8646_v2, %v8644_v60  ;;  %v8663_v63 = vld [vmem:[#allocation20 + $0x338] sm:$0xff]  ;;  %v19763_v60 = vpack.c.bf16 %v8658_v28, %v8656_v14 }
 0x7d7   : > { %v15715_v18 = vpack.c.bf16 %v8346_v37, %v8344_v46  ;;  %v6402_v46 = vld [vmem:[%s21421_s8] sm:$0x3]  ;;  %v19760_v37 = vsub.s32 1, %v6405_v24  ;;  %v8679_v14 = vld [vmem:[#allocation20 + $0x3b8] sm:$0xff] }
 0x7d8   : > { %15664 = vmatpush1.bf16.msra.mxu0 %v19656_v16  ;;  %v8339_v16 = vld [vmem:[#allocation20 + $0x558] sm:$0xff] }
 0x7d9   : > { %15794 = vmatprep.subr.bf16.mxu0 %v19703_v51  ;;  %15696 = vmatpush1.bf16.msra.mxu1 %v15695_v17  ;;  %v15705_v35 = vpack.c.bf16 %v8339_v16, %v8337_v31  ;;  %v8649_v17 = vld [vmem:[#allocation20 + $0x2c8] sm:$0xff]  ;;  %v8655_v31 = vld [vmem:[#allocation20 + $0x2f8] sm:$0xff]  ;;  %v6411_v9 = vrot.slane %v6402_v46, %v19760_v37 }
 0x7da   : > { %15698 = vmatprep.subr.bf16.mxu1 %v15697_v36  ;;  %v8651_v36 = vld [vmem:[#allocation20 + $0x2d8] sm:$0xff] }
 0x7db   : > { %8199 = vmatmul.mubr.f32.vlgmr.msra.gmra.mrb[66].mxu0 %v8101_v22  ;;  %v8355_v22 = vld [vmem:[#allocation20 + $0x5d8] sm:$0xff]  ;;  %v19740_v4 = vpack.c.bf16 %v8651_v36, %v8649_v17  ;;  %v8660_v17 = vld [vmem:[#allocation20 + $0x320] sm:$0xff]  ;;  %v8665_v36 = vld [vmem:[#allocation20 + $0x348] sm:$0xff] }
 0x7dc   : > { %15796 = vmatpush1.bf16.msra.mxu0 %v19706_v15  ;;  %v15721_v16 = vpack.c.bf16 %v8355_v22, %v8353_v21  ;;  %v6599_v21 = vunpack.c.0.s8 %v6598_v34 }
 0x7dd   : > { %15798 = vmatprep.subr.bf16.mxu0 %v19709_v33  ;;  %15700 = vmatpush1.bf16.msra.mxu1 %v15699_v8  ;;  %v8648_v8 = vld [vmem:[#allocation20 + $0x2c0] sm:$0xff] }
 0x7de   : > { %15702 = vmatprep.subr.bf16.mxu1 %v15701_v30  ;;  %v8653_v30 = vld [vmem:[#allocation20 + $0x2e8] sm:$0xff]  ;;  %v19744_v3 = vpack.c.bf16 %v8650_v29, %v8648_v8  ;;  %v8664_v8 = vld [vmem:[#allocation20 + $0x340] sm:$0xff]  ;;  %v8666_v29 = vld [vmem:[#allocation20 + $0x350] sm:$0xff] }
 0x7df   : > { %v19747_v45 = vpack.c.bf16 %v8655_v31, %v8653_v30 }
 0x7e0   : > { %15800 = vmatpush1.bf16.msra.mxu0 %v19712_v19 }
 0x7e1   : > { %15802 = vmatprep.subr.bf16.mxu0 %v19715_v25  ;;  %15704 = vmatpush1.bf16.msra.mxu1 %v15703_v58 }
 0x7e2   : > { %15706 = vmatprep.subr.bf16.mxu1 %v15705_v35  ;;  %v8357_v35 = vld [vmem:[#allocation20 + $0x5e8] sm:$0xff] }
 0x7e3   : > { %v15725_v27 = vpack.c.bf16 %v8359_v10, %v8357_v35  ;;  %v8670_v35 = vld [vmem:[#allocation20 + $0x370] sm:$0xff] }
 0x7e4   : > { %15804 = vmatpush1.bf16.msra.mxu0 %v19718_v52 }
 0x7e5   : > { %15806 = vmatprep.subr.bf16.mxu0 %v19721_v39  ;;  %15708 = vmatpush1.bf16.msra.mxu1 %v15707_v55  ;;  %v15723_v55 = vpack.c.bf16 %v8354_v7, %v8352_v41  ;;  %v19777_v41 = vsub.s32 %v6599_v21, %v6405_v24  ;;  %v19780_v7 = vpack.c.bf16 %v8666_v29, %v8664_v8  ;;  %v8684_v21 = vld [vmem:[#allocation20 + $0x3e0] sm:$0xff]  ;;  %v8686_v8 = vld [vmem:[#allocation20 + $0x3f0] sm:$0xff]  ;;  %v8560_v29 = vld [vmem:[#allocation20 + $0x8] sm:$0xff] }
 0x7e6   : > { %15710 = vmatprep.subr.bf16.mxu1 %v15709_v56  ;;  %v8356_v56 = vld [vmem:[#allocation20 + $0x5e0] sm:$0xff] }
 0x7e7   : > { %v15727_v47 = vpack.c.bf16 %v8358_v62, %v8356_v56  ;;  %v8674_v56 = vld [vmem:[#allocation20 + $0x390] sm:$0xff] }
 0x7e8   : > { %15808 = vmatpush1.bf16.msra.mxu0 %v19724_v11 }
 0x7e9   : > { %15810 = vmatprep.subr.bf16.mxu0 %v19727_v61  ;;  %15712 = vmatpush1.bf16.msra.mxu1 %v15711_v48  ;;  %v8661_v48 = vld [vmem:[#allocation20 + $0x328] sm:$0xff] }
 0x7ea   : > { %15714 = vmatprep.subr.bf16.mxu1 %v15713_v40  ;;  %v19757_v40 = vsub.s32 0, %v6405_v24  ;;  %v19766_v2 = vpack.c.bf16 %v8663_v63, %v8661_v48  ;;  %v8677_v24 = vld [vmem:[#allocation20 + $0x3a8] sm:$0xff]  ;;  %v8678_v48 = vld [vmem:[#allocation20 + $0x3b0] sm:$0xff] }
 0x7eb   : > { %v19804_v23 = vpack.c.bf16 %v8679_v14, %v8677_v24  ;;  %v8681_v63 = vld [vmem:[#allocation20 + $0x3c8] sm:$0xff] }
 0x7ec   : > { %15812 = vmatpush1.bf16.msra.mxu0 %v19730_v50  ;;  %v6407_v20 = vrot.slane %v6402_v46, %v19757_v40  ;;  %v8683_v46 = vld [vmem:[#allocation20 + $0x3d8] sm:$0xff] }
 0x7ed   : > { %15814 = vmatprep.subr.bf16.mxu0 %v19733_v59  ;;  %15716 = vmatpush1.bf16.msra.mxu1 %v15715_v18  ;;  %v8662_v18 = vld [vmem:[#allocation20 + $0x330] sm:$0xff]  ;;  %v19810_v34 = vpack.c.bf16 %v8683_v46, %v8681_v63 }
 0x7ee   : > { %v6378_v42 = vpop.f32.mrb[58].mxu0  ;;  %15718 = vmatprep.subr.bf16.mxu1 %v15717_v44  ;;  %v8667_v44 = vld [vmem:[#allocation20 + $0x358] sm:$0xff]  ;;  %v19772_v22 = vpack.c.bf16 %v8662_v18, %v8660_v17  ;;  %v8680_v17 = vld [vmem:[#allocation20 + $0x3c0] sm:$0xff]  ;;  %v8682_v18 = vld [vmem:[#allocation20 + $0x3d0] sm:$0xff] }
 0x7ef   : > { %v6379_v32 = vadd.f32 %v6378_v42, %v19695_v5  ;;  %v14424_v58 = vpop.f32.mrb[59].mxu0  ;;  %v8659_v5 = vld [vmem:[#allocation20 + $0x318] sm:$0xff] }
 0x7f0   : > { %15816 = vmatpush1.bf16.msra.mxu0 %v19737_v26  ;;  %v19755_v12 = vpack.c.bf16 %v8659_v5, %v8657_v13  ;;  %v8671_v42 = vld [vmem:[#allocation20 + $0x378] sm:$0xff]  ;;  %v8668_v58 = vld [vmem:[#allocation20 + $0x360] sm:$0xff] }
 0x7f1   : > { %v6383_v57 = vadd.f32 %v6382_v6, %v6379_v32  ;;  %15818 = vmatprep.subr.bf16.mxu0 %v19740_v4  ;;  %15720 = vmatpush1.bf16.msra.mxu1 %v15719_v38  ;;  %v19775_v6 = vpack.c.bf16 %v8667_v44, %v8665_v36  ;;  %v8669_v38 = vld [vmem:[#allocation20 + $0x368] sm:$0xff]  ;;  %v19787_v13 = vpack.c.bf16 %v8670_v35, %v8668_v58  ;;  %v8687_v44 = vld [vmem:[#allocation20 + $0x3f8] sm:$0xff] }
 0x7f2   : > { %15722 = vmatprep.subr.bf16.mxu1 %v15721_v16  ;;  %v19783_v32 = vpack.c.bf16 %v8671_v42, %v8669_v38  ;;  %v8685_v36 = vld [vmem:[#allocation20 + $0x3e8] sm:$0xff]  ;;  %v19819_v38 = vpack.c.bf16 %v8686_v8, %v8684_v21 }
 0x7f3   : > { %6384 = vst [vmem:[%s19516_s16 + $0x3] sm:$0x1] %v6383_v57  ;;  %v8673_v57 = vld [vmem:[#allocation20 + $0x388] sm:$0xff] }
 0x7f4   : > { %15820 = vmatpush1.bf16.msra.mxu0 %v19744_v3  ;;  %v19795_v5 = vpack.c.bf16 %v8675_v54, %v8673_v57 }
 0x7f5   : > { %15822 = vmatprep.subr.bf16.mxu0 %v19747_v45  ;;  %15724 = vmatpush1.bf16.msra.mxu1 %v15723_v55 }
 0x7f6   : > { %15726 = vmatprep.subr.bf16.mxu1 %v15725_v27  ;;  %v8672_v27 = vld [vmem:[#allocation20 + $0x380] sm:$0xff] }
 0x7f7   : > { %v19801_v28 = vpack.c.bf16 %v8674_v56, %v8672_v27  ;;  %v6865_v56 = vld [vmem:[%s21421_s8] sm:$0x3] }
 0x7f8   : > { %15824 = vmatpush1.bf16.msra.mxu0 %v19752_v53  ;;  %v6874_v24 = vrot.slane %v6865_v56, %v19760_v37 }
 0x7f9   : > { %15826 = vmatprep.subr.bf16.mxu0 %v19755_v12  ;;  %15728 = vmatpush1.bf16.msra.mxu1 %v15727_v47  ;;  %v8676_v47 = vld [vmem:[#allocation20 + $0x3a0] sm:$0xff] }
 0x7fa   : > { %15730 = vmatprep.subr.bf16.mxu1 %v19703_v51  ;;  %v19807_v49 = vpack.c.bf16 %v8678_v48, %v8676_v47  ;;  %v8559_v47 = vld [vmem:[#allocation20] sm:$0xff]  ;;  %v8561_v48 = vld [vmem:[#allocation20 + $0x10] sm:$0xff] }
 0x7fc   : > { %15828 = vmatpush1.bf16.msra.mxu0 %v19763_v60 }
 0x7fd   : > { %15830 = vmatprep.subr.bf16.mxu0 %v19766_v2 }
 0x7fe   : > { %v6587_v30 = vpop.f32.mrb[58].mxu1 }
 0x7ff   : > { %v17107_v31 = vadd.f32 %v6587_v30, %v6407_v20  ;;  %v6589_v51 = vpop.f32.mrb[59].mxu1  ;;  %v19813_v20 = vpack.c.bf16 %v8682_v18, %v8680_v17  ;;  %v8562_v30 = vld [vmem:[#allocation20 + $0x18] sm:$0xff]  ;;  %v8564_v18 = vld [vmem:[#allocation20 + $0x28] sm:$0xff] }
 0x800   : > { %v17108_v16 = vadd.f32 %v6589_v51, %v6411_v9  ;;  %15832 = vmatpush1.bf16.msra.mxu0 %v19772_v22  ;;  %v19816_v9 = vpack.c.bf16 %v8687_v44, %v8685_v36  ;;  %v15857_v42 = vpack.c.bf16 %v8562_v30, %v8560_v29  ;;  %v8566_v36 = vld [vmem:[#allocation20 + $0x38] sm:$0xff] }
 0x801   : > { %15834 = vmatprep.subr.bf16.mxu0 %v19775_v6 }
 0x802   : > { %v6596_v10 = vcombine.low %v17107_v31, %v17108_v16  ;;  %v6635_v31 = vld [vmem:[%s21421_s8] sm:$0x3] }
 0x803   : > { %v6640_v51 = vrot.slane %v6635_v31, %v19757_v40  ;;  %v6644_v16 = vrot.slane %v6635_v31, %v19760_v37 }
 0x804   : > { %v6603_v43 = vrot.slane %v6596_v10, %v19777_v41  ;;  %15836 = vmatpush1.bf16.msra.mxu0 %v19780_v7 }
 0x805   : > { %15838 = vmatprep.subr.bf16.mxu0 %v19783_v32 }
 0x806   : > { %v6610_v62 = vrot.slane %v6603_v43, %v19777_v41 }
 0x808   : > { %6616 = vst.msk [vmem:[#allocation7] ss:$8 sm:$0x3] %vm19790_vm4, %v6610_v62  ;;  %15840 = vmatpush1.bf16.msra.mxu0 %v19787_v13  ;;  %v6870_v62 = vrot.slane %v6865_v56, %v19757_v40 }
 0x809   : > { %15842 = vmatprep.subr.bf16.mxu0 %v19795_v5 }
 0x80c   : > { %15844 = vmatpush1.bf16.msra.mxu0 %v19801_v28 }
 0x80d   : > { %15846 = vmatprep.subr.bf16.mxu0 %v19804_v23 }
 0x80f   : > { %v19835_v30 = vld [vmem:[#allocation7] ss:$8 sm:$0x3] }
 0x810   : > { %15848 = vmatpush1.bf16.msra.mxu0 %v19807_v49 }
 0x811   : > { %15850 = vmatprep.subr.bf16.mxu0 %v19810_v34 }
 0x814   : > { %15852 = vmatpush1.bf16.msra.mxu0 %v19813_v20 }
 0x815   : > { %15854 = vmatprep.subr.bf16.mxu0 %v19816_v9 }
 0x818   : > { %15856 = vmatpush1.bf16.msra.mxu0 %v19819_v38 }
 0x819   : > { %15858 = vmatprep.subr.bf16.mxu0 %v15857_v42 }
 0x81e   : > { %v6820_v58 = vpop.f32.mrb[60].mxu0 }
 0x81f   : > { %v17109_v35 = vadd.f32 %v6820_v58, %v6640_v51  ;;  %v6822_v10 = vpop.f32.mrb[61].mxu0  ;;  %v15859_v51 = vpack.c.bf16 %v8561_v48, %v8559_v47  ;;  %v8567_v48 = vld [vmem:[#allocation20 + $0x40] sm:$0xff] }
 0x820   : > { %v17110_v57 = vadd.f32 %v6822_v10, %v6644_v16  ;;  %v19839_v16 = vld [vmem:[#allocation7] ss:$8 sm:$0x3]  ;;  %v8565_v10 = vld [vmem:[#allocation20 + $0x30] sm:$0xff] }
 0x822   : > { %v6829_v54 = vcombine.low %v17109_v35, %v17110_v57  ;;  %v8563_v35 = vld [vmem:[#allocation20 + $0x20] sm:$0xff]  ;;  %v8450_v57 = vrot.slane %v19835_v30, %v19760_v37 }
 0x824   : > { %v6836_v43 = vrot.slane %v6829_v54, %v19777_v41  ;;  %v15861_v54 = vpack.c.bf16 %v8566_v36, %v8564_v18  ;;  %v8571_v36 = vld [vmem:[#allocation20 + $0x60] sm:$0xff] }
 0x826   : > { %v6843_v27 = vrot.slane %v6836_v43, %v19777_v41  ;;  %v8568_v43 = vld [vmem:[#allocation20 + $0x48] sm:$0xff] }
 0x828   : > { %6846 = vst.msk [vmem:[#allocation7 + $0x1] ss:$8 sm:$0x3] %vm19790_vm4, %v6843_v27  ;;  %v8570_v27 = vld [vmem:[#allocation20 + $0x58] sm:$0xff] }
 0x829   : > { %v15865_v47 = vpack.c.bf16 %v8570_v27, %v8568_v43  ;;  %v8585_v43 = vld [vmem:[#allocation20 + $0xd0] sm:$0xff]  ;;  %v8588_v27 = vld [vmem:[#allocation20 + $0xe8] sm:$0xff] }
 0x82e   : > { %v7050_v14 = vpop.f32.mrb[60].mxu1 }
 0x82f   : > { %v17111_v63 = vadd.f32 %v7050_v14, %v6870_v62  ;;  %v7052_v46 = vpop.f32.mrb[61].mxu1  ;;  %v8294_v17 = vld [vmem:[#allocation7 + $0x1] ss:$8 sm:$0x3]  ;;  %v8778_v62 = vrot.slane %v19839_v16, %v19760_v37 }
 0x830   : > { %v17112_v44 = vadd.f32 %v7052_v46, %v6874_v24  ;;  %v8364_v21 = vrot.slane %v8294_v17, %v19757_v40  ;;  %v8368_v8 = vrot.slane %v8294_v17, %v19760_v37  ;;  %v8623_v29 = vld [vmem:[#allocation7 + $0x1] ss:$8 sm:$0x3]  ;;  %v15863_v24 = vpack.c.bf16 %v8565_v10, %v8563_v35  ;;  %v8574_v17 = vld [vmem:[#allocation20 + $0x78] sm:$0xff]  ;;  %v8581_v35 = vld [vmem:[#allocation20 + $0xb0] sm:$0xff] }
 0x831   : > { %v8692_v42 = vrot.slane %v8623_v29, %v19757_v40  ;;  %v8696_v31 = vrot.slane %v8623_v29, %v19760_v37  ;;  %v8572_v46 = vld [vmem:[#allocation20 + $0x68] sm:$0xff] }
 0x832   : > { %v7059_v58 = vcombine.low %v17111_v63, %v17112_v44  ;;  %8435 = vmatprep.mubr.f32.mxu1 %v8368_v8  ;;  %v8569_v63 = vld [vmem:[#allocation20 + $0x50] sm:$0xff]  ;;  %v15869_v18 = vpack.c.bf16 %v8574_v17, %v8572_v46  ;;  %v8584_v10 = vld [vmem:[#allocation20 + $0xc8] sm:$0xff]  ;;  %v8591_v17 = vld [vmem:[#allocation20 + $0x100] sm:$0xff] }
 0x833   : > { %8763 = vmatprep.mubr.f32.mxu0 %v8696_v31  ;;  %8436 = vmatmul.mubr.f32.vlgmr.msra.gmra.mrb[66].mxu1 %v8364_v21  ;;  %v8573_v44 = vld [vmem:[#allocation20 + $0x70] sm:$0xff]  ;;  %v8578_v21 = vld [vmem:[#allocation20 + $0x98] sm:$0xff]  ;;  %v8580_v31 = vld [vmem:[#allocation20 + $0xa8] sm:$0xff] }
 0x834   : > { %v7066_v56 = vrot.slane %v7059_v58, %v19777_v41  ;;  %15732 = vmatpush1.bf16.msra.mxu1 %v19706_v15  ;;  %8764 = vmatmul.mubr.f32.vlgmr.msra.gmra.mrb[68].mxu0 %v8692_v42  ;;  %v15867_v15 = vpack.c.bf16 %v8569_v63, %v8567_v48  ;;  %v15871_v8 = vpack.c.bf16 %v8573_v44, %v8571_v36  ;;  %v8575_v42 = vld [vmem:[#allocation20 + $0x80] sm:$0xff]  ;;  %v8594_v48 = vld [vmem:[#allocation20 + $0x118] sm:$0xff]  ;;  %v8596_v44 = vld [vmem:[#allocation20 + $0x128] sm:$0xff] }
 0x835   : > { %15860 = vmatpush1.bf16.msra.mxu0 %v15859_v51  ;;  %8517 = vmatprep.mubr.f32.mxu1 %v8450_v57  ;;  %v8582_v51 = vld [vmem:[#allocation20 + $0xb8] sm:$0xff] }
 0x836   : > { %v7073_v14 = vrot.slane %v7066_v56, %v19777_v41  ;;  %8845 = vmatprep.mubr.f32.mxu0 %v8778_v62  ;;  %15734 = vmatprep.subr.bf16.mxu1 %v19709_v33  ;;  %v8576_v33 = vld [vmem:[#allocation20 + $0x88] sm:$0xff]  ;;  %v15877_v58 = vpack.c.bf16 %v8582_v51, %v8580_v31  ;;  %v8602_v31 = vld [vmem:[#allocation20 + $0x158] sm:$0xff] }
 0x837   : > { %15862 = vmatprep.subr.bf16.mxu0 %v15861_v54  ;;  %v15873_v29 = vpack.c.bf16 %v8578_v21, %v8576_v33  ;;  %v7095_v56 = vld [vmem:[%s21421_s8] sm:$0x3]  ;;  %v8598_v33 = vld [vmem:[#allocation20 + $0x138] sm:$0xff] }
 0x838   : > { %7076 = vst.msk [vmem:[#allocation7 + $0x2] ss:$8 sm:$0x3] %vm19790_vm4, %v7073_v14  ;;  %15736 = vmatpush1.bf16.msra.mxu1 %v19712_v19  ;;  %v8577_v19 = vld [vmem:[#allocation20 + $0x90] sm:$0xff]  ;;  %v7104_v63 = vrot.slane %v7095_v56, %v19760_v37 }
 0x839   : > { %15864 = vmatpush1.bf16.msra.mxu0 %v15863_v24  ;;  %15738 = vmatprep.subr.bf16.mxu1 %v19715_v25  ;;  %v15875_v25 = vpack.c.bf16 %v8577_v19, %v8575_v42  ;;  %v8589_v14 = vld [vmem:[#allocation20 + $0xf0] sm:$0xff]  ;;  %v8600_v19 = vld [vmem:[#allocation20 + $0x148] sm:$0xff] }
 0x83a   : > { %15866 = vmatprep.subr.bf16.mxu0 %v15865_v47  ;;  %v8592_v47 = vld [vmem:[#allocation20 + $0x108] sm:$0xff]  ;;  %v8597_v42 = vld [vmem:[#allocation20 + $0x130] sm:$0xff] }
 0x83c   : > { %15740 = vmatpush1.bf16.msra.mxu1 %v19718_v52  ;;  %v8579_v52 = vld [vmem:[#allocation20 + $0xa0] sm:$0xff] }
 0x83d   : > { %15868 = vmatpush1.bf16.msra.mxu0 %v15867_v15  ;;  %15742 = vmatprep.subr.bf16.mxu1 %v19721_v39  ;;  %v8586_v39 = vld [vmem:[#allocation20 + $0xd8] sm:$0xff]  ;;  %v15879_v57 = vpack.c.bf16 %v8581_v35, %v8579_v52  ;;  %v8593_v15 = vld [vmem:[#allocation20 + $0x110] sm:$0xff]  ;;  %v8604_v35 = vld [vmem:[#allocation20 + $0x168] sm:$0xff] }
 0x83e   : > { %15870 = vmatprep.subr.bf16.mxu0 %v15869_v18  ;;  %v15881_v54 = vpack.c.bf16 %v8586_v39, %v8584_v10  ;;  %v8601_v52 = vld [vmem:[#allocation20 + $0x150] sm:$0xff]  ;;  %v8606_v10 = vld [vmem:[#allocation20 + $0x178] sm:$0xff]  ;;  %v7325_v39 = vld [vmem:[%s21421_s8] sm:$0x3] }
 0x840   : > { %15744 = vmatpush1.bf16.msra.mxu1 %v19724_v11  ;;  %v8583_v11 = vld [vmem:[#allocation20 + $0xc0] sm:$0xff] }
 0x841   : > { %15872 = vmatpush1.bf16.msra.mxu0 %v15871_v8  ;;  %15746 = vmatprep.subr.bf16.mxu1 %v19727_v61  ;;  %v8590_v61 = vld [vmem:[#allocation20 + $0xf8] sm:$0xff]  ;;  %v15883_v62 = vpack.c.bf16 %v8585_v43, %v8583_v11  ;;  %v7330_v11 = vrot.slane %v7325_v39, %v19757_v40  ;;  %v8608_v43 = vld [vmem:[#allocation20 + $0x188] sm:$0xff] }
 0x842   : > { %15874 = vmatprep.subr.bf16.mxu0 %v15873_v29  ;;  %v15885_v24 = vpack.c.bf16 %v8590_v61, %v8588_v27  ;;  %v8595_v29 = vld [vmem:[#allocation20 + $0x120] sm:$0xff]  ;;  %v8610_v27 = vld [vmem:[#allocation20 + $0x198] sm:$0xff]  ;;  %v7334_v61 = vrot.slane %v7325_v39, %v19760_v37 }
 0x843   : > { %v9109_v39 = vld [vmem:[#allocation20 + $0x238] sm:$0xff] }
 0x844   : > { %15748 = vmatpush1.bf16.msra.mxu1 %v19730_v50  ;;  %v8587_v50 = vld [vmem:[#allocation20 + $0xe0] sm:$0xff] }
 0x845   : > { %15876 = vmatpush1.bf16.msra.mxu0 %v15875_v25  ;;  %15750 = vmatprep.subr.bf16.mxu1 %v19733_v59  ;;  %v7100_v59 = vrot.slane %v7095_v56, %v19757_v40 }
 0x846   : > { %15878 = vmatprep.subr.bf16.mxu0 %v15877_v58  ;;  %v8599_v58 = vld [vmem:[#allocation20 + $0x140] sm:$0xff] }
 0x848   : > { %15752 = vmatpush1.bf16.msra.mxu1 %v19737_v26  ;;  %v15887_v26 = vpack.c.bf16 %v8589_v14, %v8587_v50 }
 0x849   : > { %15880 = vmatpush1.bf16.msra.mxu0 %v15879_v57  ;;  %15754 = vmatprep.subr.bf16.mxu1 %v19740_v4  ;;  %v15889_v4 = vpack.c.bf16 %v8594_v48, %v8592_v47  ;;  %v8603_v57 = vld [vmem:[#allocation20 + $0x160] sm:$0xff]  ;;  %v8614_v47 = vld [vmem:[#allocation20 + $0x1b8] sm:$0xff] }
 0x84a   : > { %15882 = vmatprep.subr.bf16.mxu0 %v15881_v54  ;;  %v8605_v54 = vld [vmem:[#allocation20 + $0x170] sm:$0xff] }
 0x84c   : > { %15756 = vmatpush1.bf16.msra.mxu1 %v19744_v3  ;;  %v15891_v3 = vpack.c.bf16 %v8593_v15, %v8591_v17  ;;  %v8618_v17 = vld [vmem:[#allocation20 + $0x1d8] sm:$0xff] }
 0x84d   : > { %15884 = vmatpush1.bf16.msra.mxu0 %v15883_v62  ;;  %15758 = vmatprep.subr.bf16.mxu1 %v19747_v45  ;;  %v15893_v45 = vpack.c.bf16 %v8598_v33, %v8596_v44  ;;  %v8607_v62 = vld [vmem:[#allocation20 + $0x180] sm:$0xff]  ;;  %v8617_v44 = vld [vmem:[#allocation20 + $0x1d0] sm:$0xff]  ;;  %v8620_v33 = vld [vmem:[#allocation20 + $0x1e8] sm:$0xff] }
 0x84e   : > { %v7280_v46 = vpop.f32.mrb[62].mxu0  ;;  %15886 = vmatprep.subr.bf16.mxu0 %v15885_v24  ;;  %v8609_v24 = vld [vmem:[#allocation20 + $0x190] sm:$0xff] }
 0x84f   : > { %v17113_v18 = vadd.f32 %v7280_v46, %v7100_v59  ;;  %v7282_v36 = vpop.f32.mrb[63].mxu0  ;;  %v8612_v59 = vld [vmem:[#allocation20 + $0x1a8] sm:$0xff]  ;;  %v8613_v46 = vld [vmem:[#allocation20 + $0x1b0] sm:$0xff] }
 0x850   : > { %v17114_v21 = vadd.f32 %v7282_v36, %v7104_v63  ;;  %15760 = vmatpush1.bf16.msra.mxu1 %v19752_v53  ;;  %v15895_v53 = vpack.c.bf16 %v8597_v42, %v8595_v29  ;;  %v8615_v36 = vld [vmem:[#allocation20 + $0x1c0] sm:$0xff]  ;;  %v9105_v29 = vld [vmem:[#allocation20 + $0x218] sm:$0xff]  ;;  %v8854_v42 = vld [vmem:[#allocation20 + $0x408] sm:$0xff] }
 0x851   : > { %15888 = vmatpush1.bf16.msra.mxu0 %v15887_v26  ;;  %15762 = vmatprep.subr.bf16.mxu1 %v19755_v12  ;;  %v15897_v12 = vpack.c.bf16 %v8602_v31, %v8600_v19  ;;  %v8611_v26 = vld [vmem:[#allocation20 + $0x1a0] sm:$0xff]  ;;  %v8856_v19 = vld [vmem:[#allocation20 + $0x418] sm:$0xff] }
 0x852   : > { %v7289_v8 = vcombine.low %v17113_v18, %v17114_v21  ;;  %15890 = vmatprep.subr.bf16.mxu0 %v15889_v4  ;;  %v8616_v4 = vld [vmem:[#allocation20 + $0x1c8] sm:$0xff]  ;;  %v15911_v18 = vpack.c.bf16 %v8613_v46, %v8611_v26  ;;  %v8622_v21 = vld [vmem:[#allocation20 + $0x1f8] sm:$0xff] }
 0x853   : > { %v9117_v26 = vld [vmem:[#allocation20 + $0x278] sm:$0xff]  ;;  %v8866_v46 = vld [vmem:[#allocation20 + $0x468] sm:$0xff] }
 0x854   : > { %v7296_v51 = vrot.slane %v7289_v8, %v19777_v41  ;;  %15764 = vmatpush1.bf16.msra.mxu1 %v19763_v60  ;;  %v15899_v60 = vpack.c.bf16 %v8601_v52, %v8599_v58  ;;  %v8621_v8 = vld [vmem:[#allocation20 + $0x1f0] sm:$0xff]  ;;  %v8858_v58 = vld [vmem:[#allocation20 + $0x428] sm:$0xff]  ;;  %v8860_v52 = vld [vmem:[#allocation20 + $0x438] sm:$0xff] }
 0x855   : > { %15892 = vmatpush1.bf16.msra.mxu0 %v15891_v3  ;;  %15766 = vmatprep.subr.bf16.mxu1 %v19766_v2  ;;  %v15901_v2 = vpack.c.bf16 %v8606_v10, %v8604_v35  ;;  %v8619_v3 = vld [vmem:[#allocation20 + $0x1e0] sm:$0xff]  ;;  %v9107_v35 = vld [vmem:[#allocation20 + $0x228] sm:$0xff] }
 0x856   : > { %v7303_v25 = vrot.slane %v7296_v51, %v19777_v41  ;;  %15894 = vmatprep.subr.bf16.mxu0 %v15893_v45  ;;  %v9103_v45 = vld [vmem:[#allocation20 + $0x208] sm:$0xff]  ;;  %v15919_v31 = vpack.c.bf16 %v8621_v8, %v8619_v3  ;;  %v9121_v3 = vld [vmem:[#allocation20 + $0x298] sm:$0xff] }
 0x857   : > { %v19893_v51 = vpack.c.bf16 %v9105_v29, %v9103_v45  ;;  %v19896_v10 = vld [vmem:[#allocation7 + $0x2] ss:$8 sm:$0x3]  ;;  %v8872_v45 = vld [vmem:[#allocation20 + $0x498] sm:$0xff] }
 0x858   : > { %7306 = vst.msk [vmem:[#allocation7 + $0x3] ss:$8 sm:$0x3] %vm19790_vm4, %v7303_v25  ;;  %15768 = vmatpush1.bf16.msra.mxu1 %v19772_v22  ;;  %v15903_v22 = vpack.c.bf16 %v8605_v54, %v8603_v57  ;;  %v8853_v25 = vld [vmem:[#allocation20 + $0x400] sm:$0xff]  ;;  %v8870_v8 = vld [vmem:[#allocation20 + $0x488] sm:$0xff] }
 0x859   : > { %15896 = vmatpush1.bf16.msra.mxu0 %v15895_v53  ;;  %15770 = vmatprep.subr.bf16.mxu1 %v19775_v6  ;;  %v15905_v6 = vpack.c.bf16 %v8610_v27, %v8608_v43  ;;  %v9104_v53 = vld [vmem:[#allocation20 + $0x210] sm:$0xff]  ;;  %v19903_v57 = vld [vmem:[#allocation7 + $0x2] ss:$8 sm:$0x3]  ;;  %v15925_v43 = vpack.c.bf16 %v8860_v52, %v8858_v58 }
 0x85a   : > { %15898 = vmatprep.subr.bf16.mxu0 %v15897_v12  ;;  %v8855_v12 = vld [vmem:[#allocation20 + $0x410] sm:$0xff]  ;;  %v9106_v54 = vld [vmem:[#allocation20 + $0x220] sm:$0xff]  ;;  %v9123_v52 = vld [vmem:[#allocation20 + $0x2a8] sm:$0xff] }
 0x85b   : > { %v8859_v27 = vld [vmem:[#allocation20 + $0x430] sm:$0xff] }
 0x85c   : > { %15772 = vmatpush1.bf16.msra.mxu1 %v19780_v7  ;;  %v15907_v7 = vpack.c.bf16 %v8609_v24, %v8607_v62  ;;  %v8864_v62 = vld [vmem:[#allocation20 + $0x458] sm:$0xff]  ;;  %v9174_v24 = vrot.slane %v19903_v57, %v19760_v37  ;;  %v8871_v58 = vld [vmem:[#allocation20 + $0x490] sm:$0xff] }
 0x85d   : > { %15900 = vmatpush1.bf16.msra.mxu0 %v15899_v60  ;;  %15774 = vmatprep.subr.bf16.mxu1 %v19783_v32  ;;  %v15909_v32 = vpack.c.bf16 %v8614_v47, %v8612_v59  ;;  %v8446_v60 = vrot.slane %v19835_v30, %v19757_v40  ;;  %v8925_v30 = vrot.slane %v19896_v10, %v19760_v37  ;;  %v8861_v59 = vld [vmem:[#allocation20 + $0x440] sm:$0xff] }
 0x85e   : > { %v7510_v56 = vpop.f32.mrb[62].mxu1  ;;  %15902 = vmatprep.subr.bf16.mxu0 %v15901_v2  ;;  %v15923_v2 = vpack.c.bf16 %v8855_v12, %v8853_v25  ;;  %v9110_v47 = vld [vmem:[#allocation20 + $0x240] sm:$0xff]  ;;  %v15937_v12 = vpack.c.bf16 %v8872_v45, %v8870_v8 }
 0x85f   : > { %v17115_v50 = vadd.f32 %v7510_v56, %v7330_v11  ;;  %v7512_v14 = vpop.f32.mrb[63].mxu1  ;;  %v9108_v11 = vld [vmem:[#allocation20 + $0x230] sm:$0xff]  ;;  %v19909_v56 = vpack.c.bf16 %v9109_v39, %v9107_v35  ;;  %v9125_v35 = vld [vmem:[#allocation20 + $0x2b8] sm:$0xff]  ;;  %v8881_v45 = vld [vmem:[#allocation20 + $0x4e0] sm:$0xff] }
 0x860   : > { %v17116_v48 = vadd.f32 %v7512_v14, %v7334_v61  ;;  %15776 = vmatpush1.bf16.msra.mxu1 %v19787_v13  ;;  %v9111_v61 = vld [vmem:[#allocation20 + $0x248] sm:$0xff] }
 0x861   : > { %15904 = vmatpush1.bf16.msra.mxu0 %v15903_v22  ;;  %15778 = vmatprep.subr.bf16.mxu1 %v19795_v5  ;;  %v15913_v5 = vpack.c.bf16 %v8618_v17, %v8616_v4  ;;  %v9113_v22 = vld [vmem:[#allocation20 + $0x258] sm:$0xff] }
 0x862   : > { %v7519_v63 = vcombine.low %v17115_v50, %v17116_v48  ;;  %15906 = vmatprep.subr.bf16.mxu0 %v15905_v6  ;;  %v8862_v6 = vld [vmem:[#allocation20 + $0x448] sm:$0xff]  ;;  %v19916_v14 = vpack.c.bf16 %v9113_v22, %v9111_v61  ;;  %v9112_v48 = vld [vmem:[#allocation20 + $0x250] sm:$0xff]  ;;  %v8868_v4 = vld [vmem:[#allocation20 + $0x478] sm:$0xff] }
 0x863   : > { %v19920_v17 = vpack.c.bf16 %v9112_v48, %v9110_v47  ;;  %v9122_v61 = vld [vmem:[#allocation20 + $0x2a0] sm:$0xff]  ;;  %v9124_v22 = vld [vmem:[#allocation20 + $0x2b0] sm:$0xff]  ;;  %v8880_v47 = vld [vmem:[#allocation20 + $0x4d8] sm:$0xff] }
 0x864   : > { %v7526_v15 = vrot.slane %v7519_v63, %v19777_v41  ;;  %15780 = vmatpush1.bf16.msra.mxu1 %v19801_v28  ;;  %v15915_v28 = vpack.c.bf16 %v8617_v44, %v8615_v36  ;;  %v8863_v63 = vld [vmem:[#allocation20 + $0x450] sm:$0xff]  ;;  %v9114_v36 = vld [vmem:[#allocation20 + $0x260] sm:$0xff] }
 0x865   : > { %15908 = vmatpush1.bf16.msra.mxu0 %v15907_v7  ;;  %15782 = vmatprep.subr.bf16.mxu1 %v19804_v23  ;;  %v15917_v23 = vpack.c.bf16 %v8622_v21, %v8620_v33  ;;  %v15929_v7 = vpack.c.bf16 %v8864_v62, %v8862_v6  ;;  %v9116_v44 = vld [vmem:[#allocation20 + $0x270] sm:$0xff]  ;;  %v15933_v33 = vpack.c.bf16 %v8868_v4, %v8866_v46  ;;  %v9126_v46 = vld [vmem:[#allocation20 + $0x2c0] sm:$0xff] }
 0x866   : > { %v7533_v13 = vrot.slane %v7526_v15, %v19777_v41  ;;  %15910 = vmatprep.subr.bf16.mxu0 %v15909_v32  ;;  %v9115_v32 = vld [vmem:[#allocation20 + $0x268] sm:$0xff]  ;;  %v8867_v21 = vld [vmem:[#allocation20 + $0x470] sm:$0xff] }
 0x867   : > { %v7555_v15 = vld [vmem:[%s21421_s8] sm:$0x3]  ;;  %v8875_v62 = vld [vmem:[#allocation20 + $0x4b0] sm:$0xff] }
 0x868   : > { %7536 = vst.msk [vmem:[#allocation7 + $0x4] ss:$8 sm:$0x3] %vm19790_vm4, %v7533_v13  ;;  %15784 = vmatpush1.bf16.msra.mxu1 %v19807_v49  ;;  %v9102_v49 = vld [vmem:[#allocation20 + $0x200] sm:$0xff]  ;;  %v19924_v13 = vpack.c.bf16 %v9117_v26, %v9115_v32  ;;  %v7564_v29 = vrot.slane %v7555_v15, %v19760_v37  ;;  %v9128_v4 = vld [vmem:[#allocation20 + $0x2d0] sm:$0xff] }
 0x869   : > { %15912 = vmatpush1.bf16.msra.mxu0 %v15911_v18  ;;  %15786 = vmatprep.subr.bf16.mxu1 %v19810_v34  ;;  %v15921_v34 = vpack.c.bf16 %v8856_v19, %v8854_v42  ;;  %v15931_v18 = vpack.c.bf16 %v8863_v63, %v8861_v59  ;;  %v19929_v42 = vpack.c.bf16 %v9116_v44, %v9114_v36  ;;  %v8878_v59 = vld [vmem:[#allocation20 + $0x4c8] sm:$0xff]  ;;  %v8877_v26 = vld [vmem:[#allocation20 + $0x4c0] sm:$0xff]  ;;  %v9133_v44 = vld [vmem:[#allocation20 + $0x2f8] sm:$0xff] }
 0x86a   : > { %15914 = vmatprep.subr.bf16.mxu0 %v15913_v5  ;;  %v8865_v5 = vld [vmem:[#allocation20 + $0x460] sm:$0xff]  ;;  %v9131_v36 = vld [vmem:[#allocation20 + $0x2e8] sm:$0xff] }
 0x86b   : > { %v15935_v19 = vpack.c.bf16 %v8867_v21, %v8865_v5  ;;  %v8879_v5 = vld [vmem:[#allocation20 + $0x4d0] sm:$0xff]  ;;  %v8884_v21 = vld [vmem:[#allocation20 + $0x4f8] sm:$0xff]  ;;  %v19955_v8 = vpack.c.bf16 %v9133_v44, %v9131_v36  ;;  %v9143_v44 = vld [vmem:[#allocation20 + $0x348] sm:$0xff] }
 0x86c   : > { %15788 = vmatpush1.bf16.msra.mxu1 %v19813_v20  ;;  %v19898_v20 = vpack.c.bf16 %v9104_v53, %v9102_v49  ;;  %v8869_v49 = vld [vmem:[#allocation20 + $0x480] sm:$0xff]  ;;  %v8891_v36 = vld [vmem:[#allocation20 + $0x530] sm:$0xff] }
 0x86d   : > { %15916 = vmatpush1.bf16.msra.mxu0 %v15915_v28  ;;  %15790 = vmatprep.subr.bf16.mxu1 %v19816_v9  ;;  %v8857_v9 = vld [vmem:[#allocation20 + $0x420] sm:$0xff]  ;;  %v9119_v28 = vld [vmem:[#allocation20 + $0x288] sm:$0xff] }
 0x86e   : > { %15918 = vmatprep.subr.bf16.mxu0 %v15917_v23  ;;  %v15927_v50 = vpack.c.bf16 %v8859_v27, %v8857_v9  ;;  %v7560_v23 = vrot.slane %v7555_v15, %v19757_v40  ;;  %v9118_v53 = vld [vmem:[#allocation20 + $0x280] sm:$0xff] }
 0x86f   : > { %v8873_v27 = vld [vmem:[#allocation20 + $0x4a0] sm:$0xff] }
 0x870   : > { %15792 = vmatpush1.bf16.msra.mxu1 %v19819_v38  ;;  %v8774_v38 = vrot.slane %v19839_v16, %v19757_v40  ;;  %v19914_v16 = vpack.c.bf16 %v9108_v11, %v9106_v54  ;;  %v15943_v63 = vpack.c.bf16 %v8875_v62, %v8873_v27 }
 0x871   : > { %15920 = vmatpush1.bf16.msra.mxu0 %v15919_v31  ;;  %15986 = vmatprep.subr.bf16.mxu1 %v19893_v51  ;;  %v19932_v31 = vpack.c.bf16 %v9121_v3, %v9119_v28  ;;  %v19951_v28 = vpack.c.bf16 %v9128_v4, %v9126_v46  ;;  %v7785_v3 = vld [vmem:[%s21421_s8] sm:$0x3]  ;;  %v8889_v46 = vld [vmem:[#allocation20 + $0x520] sm:$0xff] }
 0x872   : > { %15922 = vmatprep.subr.bf16.mxu0 %v15921_v34  ;;  %v9120_v34 = vld [vmem:[#allocation20 + $0x290] sm:$0xff]  ;;  %v9138_v4 = vld [vmem:[#allocation20 + $0x320] sm:$0xff] }
 0x873   : > { %8518 = vmatmul.mubr.f32.vlgmr.msra.gmra.mrb[66].mxu1 %v8446_v60  ;;  %v8874_v60 = vld [vmem:[#allocation20 + $0x4a8] sm:$0xff]  ;;  %v19935_v11 = vpack.c.bf16 %v9120_v34, %v9118_v53  ;;  %v8883_v53 = vld [vmem:[#allocation20 + $0x4f0] sm:$0xff] }
 0x874   : > { %8846 = vmatmul.mubr.f32.vlgmr.msra.gmra.mrb[68].mxu0 %v8774_v38  ;;  %15988 = vmatpush1.bf16.msra.mxu1 %v19898_v20  ;;  %v15939_v38 = vpack.c.bf16 %v8871_v58, %v8869_v49  ;;  %v9135_v34 = vld [vmem:[#allocation20 + $0x308] sm:$0xff] }
 0x875   : > { %15924 = vmatpush1.bf16.msra.mxu0 %v15923_v2  ;;  %8992 = vmatprep.mubr.f32.mxu0 %v8925_v30  ;;  %v8876_v2 = vld [vmem:[#allocation20 + $0x4b8] sm:$0xff]  ;;  %v8886_v58 = vld [vmem:[#allocation20 + $0x508] sm:$0xff] }
 0x876   : > { %9241 = vmatprep.mubr.f32.mxu1 %v9174_v24  ;;  %15926 = vmatprep.subr.bf16.mxu0 %v15925_v43  ;;  %v19938_v43 = vpack.c.bf16 %v9125_v35, %v9123_v52  ;;  %v15941_v6 = vpack.c.bf16 %v8876_v2, %v8874_v60  ;;  %v9127_v24 = vld [vmem:[#allocation20 + $0x2c8] sm:$0xff]  ;;  %v8888_v52 = vld [vmem:[#allocation20 + $0x518] sm:$0xff]  ;;  %v7794_v35 = vrot.slane %v7785_v3, %v19760_v37  ;;  %v8885_v2 = vld [vmem:[#allocation20 + $0x500] sm:$0xff] }
 0x877   : > { %15990 = vmatprep.subr.bf16.mxu1 %v19909_v56 }
 0x878   : > { %15992 = vmatpush1.bf16.msra.mxu1 %v19914_v16 }
 0x879   : > { %15928 = vmatpush1.bf16.msra.mxu0 %v15927_v50  ;;  %15994 = vmatprep.subr.bf16.mxu1 %v19916_v14  ;;  %v9129_v50 = vld [vmem:[#allocation20 + $0x2d8] sm:$0xff] }
 0x87a   : > { %15930 = vmatprep.subr.bf16.mxu0 %v15929_v7  ;;  %v19942_v7 = vpack.c.bf16 %v9124_v22, %v9122_v61  ;;  %v19945_v32 = vpack.c.bf16 %v9129_v50, %v9127_v24  ;;  %v15953_v61 = vpack.c.bf16 %v8888_v52, %v8886_v58  ;;  %v8887_v22 = vld [vmem:[#allocation20 + $0x510] sm:$0xff]  ;;  %v8890_v50 = vld [vmem:[#allocation20 + $0x528] sm:$0xff] }
 0x87b   : > { %v8895_v58 = vld [vmem:[#allocation20 + $0x550] sm:$0xff]  ;;  %v9147_v52 = vld [vmem:[#allocation20 + $0x368] sm:$0xff] }
 0x87c   : > { %15996 = vmatpush1.bf16.msra.mxu1 %v19920_v17 }
 0x87d   : > { %15932 = vmatpush1.bf16.msra.mxu0 %v15931_v18  ;;  %15998 = vmatprep.subr.bf16.mxu1 %v19924_v13  ;;  %v15945_v18 = vpack.c.bf16 %v8880_v47, %v8878_v59  ;;  %v8892_v59 = vld [vmem:[#allocation20 + $0x538] sm:$0xff] }
 0x87e   : > { %v7740_v25 = vpop.f32.mrb[64].mxu0  ;;  %15934 = vmatprep.subr.bf16.mxu0 %v15933_v33  ;;  %v8882_v33 = vld [vmem:[#allocation20 + $0x4e8] sm:$0xff] }
 0x87f   : > { %v17117_v39 = vadd.f32 %v7740_v25, %v7560_v23  ;;  %v7742_v9 = vpop.f32.mrb[65].mxu0  ;;  %v15947_v23 = vpack.c.bf16 %v8879_v5, %v8877_v26  ;;  %v15949_v49 = vpack.c.bf16 %v8884_v21, %v8882_v33  ;;  %v9137_v25 = vld [vmem:[#allocation20 + $0x318] sm:$0xff]  ;;  %v15957_v5 = vpack.c.bf16 %v8892_v59, %v8890_v50  ;;  %v8894_v21 = vld [vmem:[#allocation20 + $0x548] sm:$0xff] }
 0x880   : > { %v17118_v54 = vadd.f32 %v7742_v9, %v7564_v29  ;;  %16000 = vmatpush1.bf16.msra.mxu1 %v19929_v42  ;;  %v9130_v29 = vld [vmem:[#allocation20 + $0x2e0] sm:$0xff]  ;;  %v15951_v9 = vpack.c.bf16 %v8883_v53, %v8881_v45  ;;  %v19963_v60 = vpack.c.bf16 %v9137_v25, %v9135_v34  ;;  %v9145_v33 = vld [vmem:[#allocation20 + $0x358] sm:$0xff]  ;;  %v9144_v34 = vld [vmem:[#allocation20 + $0x350] sm:$0xff] }
 0x881   : > { %15936 = vmatpush1.bf16.msra.mxu0 %v15935_v19  ;;  %16002 = vmatprep.subr.bf16.mxu1 %v19932_v31  ;;  %v9132_v19 = vld [vmem:[#allocation20 + $0x2f0] sm:$0xff]  ;;  %v9142_v53 = vld [vmem:[#allocation20 + $0x340] sm:$0xff]  ;;  %v9153_v50 = vld [vmem:[#allocation20 + $0x398] sm:$0xff] }
 0x882   : > { %v7749_v30 = vcombine.low %v17117_v39, %v17118_v54  ;;  %15938 = vmatprep.subr.bf16.mxu0 %v15937_v12  ;;  %v7790_v12 = vrot.slane %v7785_v3, %v19757_v40  ;;  %v19960_v39 = vpack.c.bf16 %v9132_v19, %v9130_v29  ;;  %v9134_v54 = vld [vmem:[#allocation20 + $0x300] sm:$0xff]  ;;  %v8896_v3 = vld [vmem:[#allocation20 + $0x558] sm:$0xff]  ;;  %v15959_v29 = vpack.c.bf16 %v8891_v36, %v8889_v46  ;;  %v8902_v59 = vld [vmem:[#allocation20 + $0x588] sm:$0xff] }
 0x883   : > { %v19976_v19 = vpack.c.bf16 %v9145_v33, %v9143_v44  ;;  %v8903_v44 = vld [vmem:[#allocation20 + $0x590] sm:$0xff]  ;;  %v9155_v33 = vld [vmem:[#allocation20 + $0x3a8] sm:$0xff] }
 0x884   : > { %v7756_v48 = vrot.slane %v7749_v30, %v19777_v41  ;;  %16004 = vmatpush1.bf16.msra.mxu1 %v19935_v11  ;;  %v9139_v30 = vld [vmem:[#allocation20 + $0x328] sm:$0xff] }
 0x885   : > { %15940 = vmatpush1.bf16.msra.mxu0 %v15939_v38  ;;  %16006 = vmatprep.subr.bf16.mxu1 %v19938_v43  ;;  %v9136_v38 = vld [vmem:[#allocation20 + $0x310] sm:$0xff] }
 0x886   : > { %v7763_v15 = vrot.slane %v7756_v48, %v19777_v41  ;;  %15942 = vmatprep.subr.bf16.mxu0 %v15941_v6  ;;  %v9141_v6 = vld [vmem:[#allocation20 + $0x338] sm:$0xff]  ;;  %v19966_v48 = vpack.c.bf16 %v9136_v38, %v9134_v54  ;;  %v19982_v54 = vpack.c.bf16 %v9144_v34, %v9142_v53  ;;  %v8905_v34 = vld [vmem:[#allocation20 + $0x5a0] sm:$0xff] }
 0x887   : > { %v19969_v26 = vpack.c.bf16 %v9141_v6, %v9139_v30  ;;  %v9148_v30 = vld [vmem:[#allocation20 + $0x370] sm:$0xff] }
 0x888   : > { %7766 = vst.msk [vmem:[#allocation7 + $0x5] ss:$8 sm:$0x3] %vm19790_vm4, %v7763_v15  ;;  %16008 = vmatpush1.bf16.msra.mxu1 %v19942_v7  ;;  %v9140_v15 = vld [vmem:[#allocation20 + $0x330] sm:$0xff] }
 0x889   : > { %15944 = vmatpush1.bf16.msra.mxu0 %v15943_v63  ;;  %16010 = vmatprep.subr.bf16.mxu1 %v19945_v32  ;;  %v15955_v63 = vpack.c.bf16 %v8887_v22, %v8885_v2  ;;  %v19973_v45 = vpack.c.bf16 %v9140_v15, %v9138_v4  ;;  %v8900_v2 = vld [vmem:[#allocation20 + $0x578] sm:$0xff]  ;;  %v9146_v22 = vld [vmem:[#allocation20 + $0x360] sm:$0xff] }
 0x88a   : > { %15946 = vmatprep.subr.bf16.mxu0 %v15945_v18  ;;  %v8901_v15 = vld [vmem:[#allocation20 + $0x580] sm:$0xff] }
 0x88c   : > { %16012 = vmatpush1.bf16.msra.mxu1 %v19951_v28 }
 0x88d   : > { %15948 = vmatpush1.bf16.msra.mxu0 %v15947_v23  ;;  %16014 = vmatprep.subr.bf16.mxu1 %v19955_v8 }
 0x88e   : > { %v7970_v27 = vpop.f32.mrb[64].mxu1  ;;  %15950 = vmatprep.subr.bf16.mxu0 %v15949_v49  ;;  %v8893_v49 = vld [vmem:[#allocation20 + $0x540] sm:$0xff] }
 0x88f   : > { %v17119_v62 = vadd.f32 %v7970_v27, %v7790_v12  ;;  %v7972_v24 = vpop.f32.mrb[65].mxu1  ;;  %v15961_v12 = vpack.c.bf16 %v8896_v3, %v8894_v21  ;;  %v15963_v38 = vpack.c.bf16 %v8895_v58, %v8893_v49  ;;  %v9157_v21 = vld [vmem:[#allocation20 + $0x3b8] sm:$0xff]  ;;  %v8906_v3 = vld [vmem:[#allocation20 + $0x5a8] sm:$0xff]  ;;  %v15971_v49 = vpack.c.bf16 %v8903_v44, %v8901_v15 }
 0x890   : > { %v17120_v47 = vadd.f32 %v7972_v24, %v7794_v35  ;;  %16016 = vmatpush1.bf16.msra.mxu1 %v19960_v39  ;;  %v9149_v35 = vld [vmem:[#allocation20 + $0x378] sm:$0xff]  ;;  %v9151_v24 = vld [vmem:[#allocation20 + $0x388] sm:$0xff]  ;;  %v19997_v53 = vpack.c.bf16 %v9157_v21, %v9155_v33  ;;  %v8913_v21 = vld [vmem:[#allocation20 + $0x5e0] sm:$0xff] }
 0x891   : > { %15952 = vmatpush1.bf16.msra.mxu0 %v15951_v9  ;;  %16018 = vmatprep.subr.bf16.mxu1 %v19963_v60  ;;  %v8898_v9 = vld [vmem:[#allocation20 + $0x568] sm:$0xff]  ;;  %v19985_v27 = vpack.c.bf16 %v9149_v35, %v9147_v52  ;;  %v19991_v4 = vpack.c.bf16 %v9153_v50, %v9151_v24  ;;  %v8907_v52 = vld [vmem:[#allocation20 + $0x5b0] sm:$0xff] }
 0x892   : > { %v7979_v18 = vcombine.low %v17119_v62, %v17120_v47  ;;  %15954 = vmatprep.subr.bf16.mxu0 %v15953_v61  ;;  %v8897_v61 = vld [vmem:[#allocation20 + $0x560] sm:$0xff]  ;;  %v15965_v6 = vpack.c.bf16 %v8900_v2, %v8898_v9  ;;  %v8899_v62 = vld [vmem:[#allocation20 + $0x570] sm:$0xff]  ;;  %v8904_v47 = vld [vmem:[#allocation20 + $0x598] sm:$0xff] }
 0x893   : > { %v15967_v46 = vpack.c.bf16 %v8899_v62, %v8897_v61  ;;  %v15969_v36 = vpack.c.bf16 %v8904_v47, %v8902_v59  ;;  %v9159_v35 = vld [vmem:[#allocation20 + $0x3c8] sm:$0xff]  ;;  %v9161_v9 = vld [vmem:[#allocation20 + $0x3d8] sm:$0xff]  ;;  %v9158_v62 = vld [vmem:[#allocation20 + $0x3c0] sm:$0xff] }
 0x894   : > { %v7986_v23 = vrot.slane %v7979_v18, %v19777_v41  ;;  %16020 = vmatpush1.bf16.msra.mxu1 %v19966_v48  ;;  %v9150_v18 = vld [vmem:[#allocation20 + $0x380] sm:$0xff]  ;;  %v8910_v2 = vld [vmem:[#allocation20 + $0x5c8] sm:$0xff]  ;;  %v9160_v24 = vld [vmem:[#allocation20 + $0x3d0] sm:$0xff] }
 0x895   : > { %15956 = vmatpush1.bf16.msra.mxu0 %v15955_v63  ;;  %16022 = vmatprep.subr.bf16.mxu1 %v19969_v26  ;;  %v19988_v63 = vpack.c.bf16 %v9148_v30, %v9146_v22  ;;  %v15975_v22 = vpack.c.bf16 %v8907_v52, %v8905_v34  ;;  %v20003_v30 = vpack.c.bf16 %v9161_v9, %v9159_v35  ;;  %v8911_v59 = vld [vmem:[#allocation20 + $0x5d0] sm:$0xff]  ;;  %v9163_v47 = vld [vmem:[#allocation20 + $0x3e8] sm:$0xff] }
 0x896   : > { %v7993_v25 = vrot.slane %v7986_v23, %v19777_v41  ;;  %15958 = vmatprep.subr.bf16.mxu0 %v15957_v5  ;;  %v9152_v5 = vld [vmem:[#allocation20 + $0x390] sm:$0xff]  ;;  %v8908_v23 = vld [vmem:[#allocation20 + $0x5b8] sm:$0xff]  ;;  %v8914_v15 = vld [vmem:[#allocation20 + $0x5e8] sm:$0xff] }
 0x897   : > { %v15973_v58 = vpack.c.bf16 %v8908_v23, %v8906_v3  ;;  %v9162_v3 = vld [vmem:[#allocation20 + $0x3e0] sm:$0xff]  ;;  %v9164_v23 = vld [vmem:[#allocation20 + $0x3f0] sm:$0xff] }
 0x898   : > { %7996 = vst.msk [vmem:[#allocation7 + $0x6] ss:$8 sm:$0x3] %vm19790_vm4, %v7993_v25  ;;  %16024 = vmatpush1.bf16.msra.mxu1 %v19973_v45  ;;  %v9154_v25 = vld [vmem:[#allocation20 + $0x3a0] sm:$0xff]  ;;  %v8915_v34 = vld [vmem:[#allocation20 + $0x5f0] sm:$0xff]  ;;  %v20015_v35 = vpack.c.bf16 %v9164_v23, %v9162_v3  ;;  %v8921_v3 = vrot.slane %v19896_v10, %v19757_v40 }
 0x899   : > { %15960 = vmatpush1.bf16.msra.mxu0 %v15959_v29  ;;  %16026 = vmatprep.subr.bf16.mxu1 %v19976_v19  ;;  %v19994_v29 = vpack.c.bf16 %v9152_v5, %v9150_v18  ;;  %v8916_v18 = vld [vmem:[#allocation20 + $0x5f8] sm:$0xff]  ;;  %v20006_v5 = vpack.c.bf16 %v9160_v24, %v9158_v62  ;;  %v15983_v9 = vpack.c.bf16 %v8915_v34, %v8913_v21  ;;  %v9043_v21 = vld [vmem:[#allocation20 + $0x30] sm:$0xff]  ;;  %v9046_v34 = vld [vmem:[#allocation20 + $0x48] sm:$0xff] }
 0x89a   : > { %15962 = vmatprep.subr.bf16.mxu0 %v15961_v12  ;;  %v9156_v12 = vld [vmem:[#allocation20 + $0x3b0] sm:$0xff] }
 0x89b   : > { %v20000_v61 = vpack.c.bf16 %v9156_v12, %v9154_v25  ;;  %v9038_v25 = vld [vmem:[#allocation20 + $0x8] sm:$0xff]  ;;  %v9040_v12 = vld [vmem:[#allocation20 + $0x18] sm:$0xff] }
 0x89c   : > { %16028 = vmatpush1.bf16.msra.mxu1 %v19982_v54 }
 0x89d   : > { %15964 = vmatpush1.bf16.msra.mxu0 %v15963_v38  ;;  %16030 = vmatprep.subr.bf16.mxu1 %v19985_v27  ;;  %v8912_v38 = vld [vmem:[#allocation20 + $0x5d8] sm:$0xff] }
 0x89e   : > { %15966 = vmatprep.subr.bf16.mxu0 %v15965_v6  ;;  %v8909_v6 = vld [vmem:[#allocation20 + $0x5c0] sm:$0xff]  ;;  %v15977_v50 = vpack.c.bf16 %v8912_v38, %v8910_v2  ;;  %v20018_v2 = vpack.c.bf16 %v9040_v12, %v9038_v25  ;;  %v9048_v25 = vld [vmem:[#allocation20 + $0x58] sm:$0xff] }
 0x89f   : > { %v15979_v44 = vpack.c.bf16 %v8911_v59, %v8909_v6  ;;  %v9037_v38 = vld [vmem:[#allocation20] sm:$0xff]  ;;  %v9044_v59 = vld [vmem:[#allocation20 + $0x38] sm:$0xff] }
 0x8a0   : > { %16032 = vmatpush1.bf16.msra.mxu1 %v19988_v63 }
 0x8a1   : > { %15968 = vmatpush1.bf16.msra.mxu0 %v15967_v46  ;;  %16034 = vmatprep.subr.bf16.mxu1 %v19991_v4  ;;  %v9165_v46 = vld [vmem:[#allocation20 + $0x3f8] sm:$0xff] }
 0x8a2   : > { %15970 = vmatprep.subr.bf16.mxu0 %v15969_v36  ;;  %v8015_v36 = vld [vmem:[%s21421_s8] sm:$0x3]  ;;  %v20010_v33 = vpack.c.bf16 %v9165_v46, %v9163_v47  ;;  %s21352_s8 = sshll.u32 %s18126_s18, 4 }
 0x8a3   : > { %v8024_v52 = vrot.slane %v8015_v36, %v19760_v37 }
 0x8a4   : > { %16036 = vmatpush1.bf16.msra.mxu1 %v19994_v29 }
 0x8a5   : > { %15972 = vmatpush1.bf16.msra.mxu0 %v15971_v49  ;;  %16038 = vmatprep.subr.bf16.mxu1 %v19997_v53  ;;  %v15981_v49 = vpack.c.bf16 %v8916_v18, %v8914_v15  ;;  %v20023_v15 = vld [vmem:[#allocation7 + $0x1] ss:$8 sm:$0x3]  ;;  %v9170_v18 = vrot.slane %v19903_v57, %v19757_v40 }
 0x8a6   : > { %15974 = vmatprep.subr.bf16.mxu0 %v15973_v58  ;;  %v8020_v58 = vrot.slane %v8015_v36, %v19757_v40  ;;  %v20028_v36 = vld [vmem:[#allocation7 + $0x3] ss:$8 sm:$0x3]  ;;  %v9256_v57 = vrot.slane %v20023_v15, %v19760_v37 }
 0x8a8   : > { %16040 = vmatpush1.bf16.msra.mxu1 %v20000_v61 }
 0x8a9   : > { %15976 = vmatpush1.bf16.msra.mxu0 %v15975_v22  ;;  %16042 = vmatprep.subr.bf16.mxu1 %v20003_v30  ;;  %v9039_v22 = vld [vmem:[#allocation20 + $0x10] sm:$0xff] }
 0x8aa   : > { %15978 = vmatprep.subr.bf16.mxu0 %v15977_v50  ;;  %v9042_v50 = vld [vmem:[#allocation20 + $0x28] sm:$0xff]  ;;  %v20021_v46 = vpack.c.bf16 %v9039_v22, %v9037_v38 }
 0x8ab   : > { %v9050_v22 = vld [vmem:[#allocation20 + $0x68] sm:$0xff] }
 0x8ac   : > { %16044 = vmatpush1.bf16.msra.mxu1 %v20006_v5 }
 0x8ad   : > { %15980 = vmatpush1.bf16.msra.mxu0 %v15979_v44  ;;  %16046 = vmatprep.subr.bf16.mxu1 %v20010_v33  ;;  %v9041_v44 = vld [vmem:[#allocation20 + $0x20] sm:$0xff] }
 0x8ae   : > { %v8200_v6 = vpop.f32.mrb[66].mxu0  ;;  %15982 = vmatprep.subr.bf16.mxu0 %v15981_v49  ;;  %v20033_v49 = vpack.c.bf16 %v9044_v59, %v9042_v50  ;;  %v20041_v10 = vpack.c.bf16 %v9043_v21, %v9041_v44  ;;  %v9051_v50 = vld [vmem:[#allocation20 + $0x70] sm:$0xff]  ;;  %v9054_v59 = vld [vmem:[#allocation20 + $0x88] sm:$0xff] }
 0x8af   : > { %v17121_v62 = vadd.f32 %v8200_v6, %v8020_v58  ;;  %v8202_v24 = vpop.f32.mrb[67].mxu0  ;;  %v9652_v58 = vrot.slane %v20028_v36, %v19760_v37  ;;  %v9052_v6 = vld [vmem:[#allocation20 + $0x78] sm:$0xff]  ;;  %v9055_v44 = vld [vmem:[#allocation20 + $0x90] sm:$0xff]  ;;  %v9058_v21 = vld [vmem:[#allocation20 + $0xa8] sm:$0xff] }
 0x8b0   : > { %v17122_v47 = vadd.f32 %v8202_v24, %v8024_v52  ;;  %16048 = vmatpush1.bf16.msra.mxu1 %v20015_v35  ;;  %v9045_v52 = vld [vmem:[#allocation20 + $0x40] sm:$0xff] }
 0x8b1   : > { %15984 = vmatpush1.bf16.msra.mxu0 %v15983_v9  ;;  %16050 = vmatprep.subr.bf16.mxu1 %v20018_v2  ;;  %v9047_v9 = vld [vmem:[#allocation20 + $0x50] sm:$0xff]  ;;  %v9049_v24 = vld [vmem:[#allocation20 + $0x60] sm:$0xff] }
 0x8b2   : > { %v8209_v23 = vcombine.low %v17121_v62, %v17122_v47  ;;  %16178 = vmatprep.subr.bf16.mxu0 %v19893_v51  ;;  %v20044_v51 = vpack.c.bf16 %v9048_v25, %v9046_v34  ;;  %v20052_v62 = vpack.c.bf16 %v9047_v9, %v9045_v52  ;;  %v9056_v47 = vld [vmem:[#allocation20 + $0x98] sm:$0xff]  ;;  %v9059_v34 = vld [vmem:[#allocation20 + $0xb0] sm:$0xff]  ;;  %v9062_v25 = vld [vmem:[#allocation20 + $0xc8] sm:$0xff] }
 0x8b3   : > { %9242 = vmatmul.mubr.f32.vlgmr.msra.gmra.mrb[68].mxu1 %v9170_v18  ;;  %v20064_v18 = vpack.c.bf16 %v9056_v47, %v9054_v59  ;;  %v9066_v52 = vld [vmem:[#allocation20 + $0xe8] sm:$0xff]  ;;  %v9068_v9 = vld [vmem:[#allocation20 + $0xf8] sm:$0xff]  ;;  %v9071_v59 = vld [vmem:[#allocation20 + $0x110] sm:$0xff] }
 0x8b4   : > { %v8216_v12 = vrot.slane %v8209_v23, %v19777_v41  ;;  %8993 = vmatmul.mubr.f32.vlgmr.msra.gmra.mrb[68].mxu0 %v8921_v3  ;;  %16052 = vmatpush1.bf16.msra.mxu1 %v20021_v46  ;;  %v9060_v3 = vld [vmem:[#allocation20 + $0xb8] sm:$0xff]  ;;  %v9074_v47 = vld [vmem:[#allocation20 + $0x128] sm:$0xff] }
 0x8b5   : > { %9323 = vmatprep.mubr.f32.mxu1 %v9256_v57  ;;  %16180 = vmatpush1.bf16.msra.mxu0 %v19898_v20  ;;  %v20056_v20 = vpack.c.bf16 %v9052_v6, %v9050_v22  ;;  %v20072_v23 = vpack.c.bf16 %v9060_v3, %v9058_v21  ;;  %v9064_v57 = vld [vmem:[#allocation20 + $0xd8] sm:$0xff]  ;;  %v9067_v22 = vld [vmem:[#allocation20 + $0xf0] sm:$0xff]  ;;  %v9070_v6 = vld [vmem:[#allocation20 + $0x108] sm:$0xff] }
 0x8b6   : > { %v8223_v38 = vrot.slane %v8216_v12, %v19777_v41  ;;  %9719 = vmatprep.mubr.f32.mxu0 %v9652_v58  ;;  %16054 = vmatprep.subr.bf16.mxu1 %v20033_v49  ;;  %v20080_v12 = vpack.c.bf16 %v9064_v57, %v9062_v25  ;;  %v9063_v58 = vld [vmem:[#allocation20 + $0xd0] sm:$0xff]  ;;  %v9078_v3 = vld [vmem:[#allocation20 + $0x148] sm:$0xff] }
 0x8b7   : > { %16182 = vmatprep.subr.bf16.mxu0 %v19909_v56  ;;  %v20060_v56 = vpack.c.bf16 %v9051_v50, %v9049_v24  ;;  %v9072_v24 = vld [vmem:[#allocation20 + $0x118] sm:$0xff]  ;;  %v9075_v21 = vld [vmem:[#allocation20 + $0x130] sm:$0xff]  ;;  %v9082_v57 = vld [vmem:[#allocation20 + $0x168] sm:$0xff] }
 0x8b8   : > { %8226 = vst.msk [vmem:[#allocation7 + $0x7] ss:$8 sm:$0x3] %vm19790_vm4, %v8223_v38  ;;  %16056 = vmatpush1.bf16.msra.mxu1 %v20041_v10  ;;  %v20088_v38 = vpack.c.bf16 %v9068_v9, %v9066_v52  ;;  %v20096_v50 = vpack.c.bf16 %v9072_v24, %v9070_v6  ;;  %v9079_v25 = vld [vmem:[#allocation20 + $0x150] sm:$0xff]  ;;  %v9086_v9 = vld [vmem:[#allocation20 + $0x188] sm:$0xff] }
 0x8b9   : > { %16184 = vmatpush1.bf16.msra.mxu0 %v19914_v16  ;;  %16058 = vmatprep.subr.bf16.mxu1 %v20044_v51  ;;  %v9053_v16 = vld [vmem:[#allocation20 + $0x80] sm:$0xff]  ;;  %v9083_v52 = vld [vmem:[#allocation20 + $0x170] sm:$0xff]  ;;  %v9090_v24 = vld [vmem:[#allocation20 + $0x1a8] sm:$0xff] }
 0x8ba   : > { %16186 = vmatprep.subr.bf16.mxu0 %v19916_v14  ;;  %v20068_v14 = vpack.c.bf16 %v9055_v44, %v9053_v16  ;;  %v9076_v16 = vld [vmem:[#allocation20 + $0x138] sm:$0xff]  ;;  %v9087_v6 = vld [vmem:[#allocation20 + $0x190] sm:$0xff] }
 0x8bb   : > { %v20104_v44 = vpack.c.bf16 %v9076_v16, %v9074_v47  ;;  %v9091_v47 = vld [vmem:[#allocation20 + $0x1b0] sm:$0xff]  ;;  %v9094_v16 = vld [vmem:[#allocation20 + $0x1c8] sm:$0xff] }
 0x8bc   : > { %16060 = vmatpush1.bf16.msra.mxu1 %v20052_v62 }
 0x8bd   : > { %16188 = vmatpush1.bf16.msra.mxu0 %v19920_v17  ;;  %16062 = vmatprep.subr.bf16.mxu1 %v20056_v20  ;;  %v9057_v17 = vld [vmem:[#allocation20 + $0xa0] sm:$0xff] }
 0x8be   : > { %16190 = vmatprep.subr.bf16.mxu0 %v19924_v13  ;;  %v20076_v13 = vpack.c.bf16 %v9059_v34, %v9057_v17  ;;  %v9080_v17 = vld [vmem:[#allocation20 + $0x158] sm:$0xff] }
 0x8bf   : > { %v20112_v34 = vpack.c.bf16 %v9080_v17, %v9078_v3  ;;  %v9095_v3 = vld [vmem:[#allocation20 + $0x1d0] sm:$0xff]  ;;  %v9098_v17 = vld [vmem:[#allocation20 + $0x1e8] sm:$0xff] }
 0x8c0   : > { %16064 = vmatpush1.bf16.msra.mxu1 %v20060_v56 }
 0x8c1   : > { %16192 = vmatpush1.bf16.msra.mxu0 %v19929_v42  ;;  %16066 = vmatprep.subr.bf16.mxu1 %v20064_v18  ;;  %v9061_v42 = vld [vmem:[#allocation20 + $0xc0] sm:$0xff] }
 0x8c2   : > { %16194 = vmatprep.subr.bf16.mxu0 %v19932_v31  ;;  %v20084_v31 = vpack.c.bf16 %v9063_v58, %v9061_v42  ;;  %v9084_v42 = vld [vmem:[#allocation20 + $0x178] sm:$0xff] }
 0x8c3   : > { %v20120_v58 = vpack.c.bf16 %v9084_v42, %v9082_v57  ;;  %v9099_v57 = vld [vmem:[#allocation20 + $0x1f0] sm:$0xff]  ;;  %v9332_v42 = vld [vmem:[#allocation20 + $0x408] sm:$0xff] }
 0x8c4   : > { %16068 = vmatpush1.bf16.msra.mxu1 %v20068_v14 }
 0x8c5   : > { %16196 = vmatpush1.bf16.msra.mxu0 %v19935_v11  ;;  %16070 = vmatprep.subr.bf16.mxu1 %v20072_v23  ;;  %v9065_v11 = vld [vmem:[#allocation20 + $0xe0] sm:$0xff] }
 0x8c6   : > { %16198 = vmatprep.subr.bf16.mxu0 %v19938_v43  ;;  %v20092_v43 = vpack.c.bf16 %v9067_v22, %v9065_v11  ;;  %v9088_v11 = vld [vmem:[#allocation20 + $0x198] sm:$0xff] }
 0x8c7   : > { %v20128_v22 = vpack.c.bf16 %v9088_v11, %v9086_v9  ;;  %v9333_v9 = vld [vmem:[#allocation20 + $0x410] sm:$0xff]  ;;  %v9336_v11 = vld [vmem:[#allocation20 + $0x428] sm:$0xff] }
 0x8c8   : > { %16072 = vmatpush1.bf16.msra.mxu1 %v20076_v13 }
 0x8c9   : > { %16200 = vmatpush1.bf16.msra.mxu0 %v19942_v7  ;;  %16074 = vmatprep.subr.bf16.mxu1 %v20080_v12  ;;  %v9069_v7 = vld [vmem:[#allocation20 + $0x100] sm:$0xff] }
 0x8ca   : > { %16202 = vmatprep.subr.bf16.mxu0 %v19945_v32  ;;  %v20100_v32 = vpack.c.bf16 %v9071_v59, %v9069_v7  ;;  %v9092_v7 = vld [vmem:[#allocation20 + $0x1b8] sm:$0xff] }
 0x8cb   : > { %v20136_v59 = vpack.c.bf16 %v9092_v7, %v9090_v24  ;;  %v9252_v24 = vrot.slane %v20023_v15, %v19757_v40  ;;  %v9335_v7 = vld [vmem:[#allocation20 + $0x420] sm:$0xff] }
 0x8cc   : > { %16076 = vmatpush1.bf16.msra.mxu1 %v20084_v31 }
 0x8cd   : > { %16204 = vmatpush1.bf16.msra.mxu0 %v19951_v28  ;;  %16078 = vmatprep.subr.bf16.mxu1 %v20088_v38  ;;  %v9073_v28 = vld [vmem:[#allocation20 + $0x120] sm:$0xff] }
 0x8ce   : > { %16206 = vmatprep.subr.bf16.mxu0 %v19955_v8  ;;  %v20108_v8 = vpack.c.bf16 %v9075_v21, %v9073_v28  ;;  %v9096_v28 = vld [vmem:[#allocation20 + $0x1d8] sm:$0xff] }
 0x8cf   : > { %v20144_v21 = vpack.c.bf16 %v9096_v28, %v9094_v16  ;;  %v9340_v16 = vld [vmem:[#allocation20 + $0x448] sm:$0xff]  ;;  %v9342_v28 = vld [vmem:[#allocation20 + $0x458] sm:$0xff] }
 0x8d0   : > { %16080 = vmatpush1.bf16.msra.mxu1 %v20092_v43 }
 0x8d1   : > { %16208 = vmatpush1.bf16.msra.mxu0 %v19960_v39  ;;  %16082 = vmatprep.subr.bf16.mxu1 %v20096_v50  ;;  %v9077_v39 = vld [vmem:[#allocation20 + $0x140] sm:$0xff] }
 0x8d2   : > { %16210 = vmatprep.subr.bf16.mxu0 %v19963_v60  ;;  %v20116_v60 = vpack.c.bf16 %v9079_v25, %v9077_v39  ;;  %v9100_v39 = vld [vmem:[#allocation20 + $0x1f8] sm:$0xff] }
 0x8d3   : > { %v20152_v25 = vpack.c.bf16 %v9100_v39, %v9098_v17  ;;  %v9344_v17 = vld [vmem:[#allocation20 + $0x468] sm:$0xff]  ;;  %v9346_v39 = vld [vmem:[#allocation20 + $0x478] sm:$0xff] }
 0x8d4   : > { %16084 = vmatpush1.bf16.msra.mxu1 %v20100_v32 }
 0x8d5   : > { %16212 = vmatpush1.bf16.msra.mxu0 %v19966_v48  ;;  %16086 = vmatprep.subr.bf16.mxu1 %v20104_v44  ;;  %v9081_v48 = vld [vmem:[#allocation20 + $0x160] sm:$0xff] }
 0x8d6   : > { %16214 = vmatprep.subr.bf16.mxu0 %v19969_v26  ;;  %v20124_v26 = vpack.c.bf16 %v9083_v52, %v9081_v48  ;;  %v9334_v48 = vld [vmem:[#allocation20 + $0x418] sm:$0xff] }
 0x8d7   : > { %v20160_v52 = vpack.c.bf16 %v9334_v48, %v9332_v42  ;;  %v9345_v42 = vld [vmem:[#allocation20 + $0x470] sm:$0xff]  ;;  %v9348_v48 = vld [vmem:[#allocation20 + $0x488] sm:$0xff] }
 0x8d8   : > { %16088 = vmatpush1.bf16.msra.mxu1 %v20108_v8 }
 0x8d9   : > { %16216 = vmatpush1.bf16.msra.mxu0 %v19973_v45  ;;  %16090 = vmatprep.subr.bf16.mxu1 %v20112_v34  ;;  %v9085_v45 = vld [vmem:[#allocation20 + $0x180] sm:$0xff] }
 0x8da   : > { %16218 = vmatprep.subr.bf16.mxu0 %v19976_v19  ;;  %v20132_v19 = vpack.c.bf16 %v9087_v6, %v9085_v45  ;;  %v9338_v45 = vld [vmem:[#allocation20 + $0x438] sm:$0xff]  ;;  %v20166_v6 = vld [vmem:[#allocation7 + $0x3] ss:$8 sm:$0x3] }
 0x8db   : > { %v9403_v15 = vrot.slane %v20166_v6, %v19760_v37 }
 0x8dc   : > { %16092 = vmatpush1.bf16.msra.mxu1 %v20116_v60 }
 0x8dd   : > { %16220 = vmatpush1.bf16.msra.mxu0 %v19982_v54  ;;  %16094 = vmatprep.subr.bf16.mxu1 %v20120_v58  ;;  %v9089_v54 = vld [vmem:[#allocation20 + $0x1a0] sm:$0xff] }
 0x8de   : > { %16222 = vmatprep.subr.bf16.mxu0 %v19985_v27  ;;  %v20140_v27 = vpack.c.bf16 %v9091_v47, %v9089_v54  ;;  %v9337_v54 = vld [vmem:[#allocation20 + $0x430] sm:$0xff]  ;;  %v20177_v47 = vpack.c.bf16 %v9338_v45, %v9336_v11  ;;  %v9352_v45 = vld [vmem:[#allocation20 + $0x4a8] sm:$0xff] }
 0x8df   : > { %v9349_v11 = vld [vmem:[#allocation20 + $0x490] sm:$0xff] }
 0x8e0   : > { %16096 = vmatpush1.bf16.msra.mxu1 %v20124_v26 }
 0x8e1   : > { %16224 = vmatpush1.bf16.msra.mxu0 %v19988_v63  ;;  %16098 = vmatprep.subr.bf16.mxu1 %v20128_v22  ;;  %v9093_v63 = vld [vmem:[#allocation20 + $0x1c0] sm:$0xff] }
 0x8e2   : > { %16226 = vmatprep.subr.bf16.mxu0 %v19991_v4  ;;  %v20148_v4 = vpack.c.bf16 %v9095_v3, %v9093_v63  ;;  %v20184_v63 = vpack.c.bf16 %v9337_v54, %v9335_v7  ;;  %v9341_v3 = vld [vmem:[#allocation20 + $0x450] sm:$0xff] }
 0x8e3   : > { %v9353_v54 = vld [vmem:[#allocation20 + $0x4b0] sm:$0xff] }
 0x8e4   : > { %16100 = vmatpush1.bf16.msra.mxu1 %v20132_v19 }
 0x8e5   : > { %16228 = vmatpush1.bf16.msra.mxu0 %v19994_v29  ;;  %16102 = vmatprep.subr.bf16.mxu1 %v20136_v59  ;;  %v9097_v29 = vld [vmem:[#allocation20 + $0x1e0] sm:$0xff] }
 0x8e6   : > { %16230 = vmatprep.subr.bf16.mxu0 %v19997_v53  ;;  %v20156_v53 = vpack.c.bf16 %v9099_v57, %v9097_v29  ;;  %v9343_v57 = vld [vmem:[#allocation20 + $0x460] sm:$0xff] }
 0x8e8   : > { %16104 = vmatpush1.bf16.msra.mxu1 %v20140_v27 }
 0x8e9   : > { %16232 = vmatpush1.bf16.msra.mxu0 %v20000_v61  ;;  %16106 = vmatprep.subr.bf16.mxu1 %v20144_v21  ;;  %v9331_v61 = vld [vmem:[#allocation20 + $0x400] sm:$0xff] }
 0x8ea   : > { %16234 = vmatprep.subr.bf16.mxu0 %v20003_v30  ;;  %v20164_v30 = vpack.c.bf16 %v9333_v9, %v9331_v61  ;;  %v9350_v61 = vld [vmem:[#allocation20 + $0x498] sm:$0xff]  ;;  %v20200_v9 = vpack.c.bf16 %v9345_v42, %v9343_v57 }
 0x8eb   : > { %v9366_v57 = vld [vmem:[#allocation20 + $0x518] sm:$0xff] }
 0x8ec   : > { %16108 = vmatpush1.bf16.msra.mxu1 %v20148_v4 }
 0x8ed   : > { %16236 = vmatpush1.bf16.msra.mxu0 %v20006_v5  ;;  %16110 = vmatprep.subr.bf16.mxu1 %v20152_v25  ;;  %v20172_v5 = vld [vmem:[#allocation7 + $0x2] ss:$8 sm:$0x3] }
 0x8ee   : > { %16238 = vmatprep.subr.bf16.mxu0 %v20010_v33  ;;  %v9648_v33 = vrot.slane %v20028_v36, %v19757_v40  ;;  %v9339_v36 = vld [vmem:[#allocation20 + $0x440] sm:$0xff] }
 0x8ef   : > { %v20192_v29 = vpack.c.bf16 %v9341_v3, %v9339_v36  ;;  %v9362_v36 = vld [vmem:[#allocation20 + $0x4f8] sm:$0xff] }
 0x8f0   : > { %16112 = vmatpush1.bf16.msra.mxu1 %v20156_v53 }
 0x8f1   : > { %16240 = vmatpush1.bf16.msra.mxu0 %v20015_v35  ;;  %16114 = vmatprep.subr.bf16.mxu1 %v20160_v52  ;;  %v9734_v35 = vrot.slane %v20172_v5, %v19760_v37 }
 0x8f2   : > { %16242 = vmatprep.subr.bf16.mxu0 %v20018_v2  ;;  %v20187_v2 = vpack.c.bf16 %v9342_v28, %v9340_v16  ;;  %v9358_v16 = vld [vmem:[#allocation20 + $0x4d8] sm:$0xff] }
 0x8f3   : > { %9324 = vmatmul.mubr.f32.vlgmr.msra.gmra.mrb[68].mxu1 %v9252_v24  ;;  %v9354_v24 = vld [vmem:[#allocation20 + $0x4b8] sm:$0xff] }
 0x8f4   : > { %9720 = vmatmul.mubr.f32.vlgmr.msra.gmra.mrb[70].mxu0 %v9648_v33  ;;  %16116 = vmatpush1.bf16.msra.mxu1 %v20164_v30  ;;  %v20212_v7 = vpack.c.bf16 %v9354_v24, %v9352_v45  ;;  %v9356_v33 = vld [vmem:[#allocation20 + $0x4c8] sm:$0xff]  ;;  %v9369_v45 = vld [vmem:[#allocation20 + $0x530] sm:$0xff] }
 0x8f5   : > { %9470 = vmatprep.mubr.f32.mxu1 %v9403_v15  ;;  %16244 = vmatpush1.bf16.msra.mxu0 %v20021_v46  ;;  %v20196_v46 = vpack.c.bf16 %v9346_v39, %v9344_v17  ;;  %v20220_v28 = vpack.c.bf16 %v9358_v16, %v9356_v33  ;;  %v9357_v15 = vld [vmem:[#allocation20 + $0x4d0] sm:$0xff]  ;;  %v9364_v39 = vld [vmem:[#allocation20 + $0x508] sm:$0xff] }
 0x8f6   : > { %9801 = vmatprep.mubr.f32.mxu0 %v9734_v35  ;;  %16118 = vmatprep.subr.bf16.mxu1 %v20177_v47  ;;  %v9360_v35 = vld [vmem:[#allocation20 + $0x4e8] sm:$0xff]  ;;  %v9361_v17 = vld [vmem:[#allocation20 + $0x4f0] sm:$0xff]  ;;  %v20236_v42 = vpack.c.bf16 %v9366_v57, %v9364_v39 }
 0x8f7   : > { %16246 = vmatprep.subr.bf16.mxu0 %v20033_v49  ;;  %v20204_v49 = vpack.c.bf16 %v9350_v61, %v9348_v48  ;;  %v20228_v3 = vpack.c.bf16 %v9362_v36, %v9360_v35  ;;  %v9365_v48 = vld [vmem:[#allocation20 + $0x510] sm:$0xff]  ;;  %v9368_v61 = vld [vmem:[#allocation20 + $0x528] sm:$0xff] }
 0x8f8   : > { %16120 = vmatpush1.bf16.msra.mxu1 %v20184_v63  ;;  %v9372_v24 = vld [vmem:[#allocation20 + $0x548] sm:$0xff]  ;;  %v9373_v33 = vld [vmem:[#allocation20 + $0x550] sm:$0xff] }
 0x8f9   : > { %16248 = vmatpush1.bf16.msra.mxu0 %v20041_v10  ;;  %16122 = vmatprep.subr.bf16.mxu1 %v20187_v2  ;;  %v9347_v10 = vld [vmem:[#allocation20 + $0x480] sm:$0xff]  ;;  %v9376_v16 = vld [vmem:[#allocation20 + $0x568] sm:$0xff]  ;;  %v9377_v35 = vld [vmem:[#allocation20 + $0x570] sm:$0xff] }
 0x8fa   : > { %16250 = vmatprep.subr.bf16.mxu0 %v20044_v51  ;;  %v20208_v51 = vpack.c.bf16 %v9349_v11, %v9347_v10  ;;  %v9370_v10 = vld [vmem:[#allocation20 + $0x538] sm:$0xff]  ;;  %v9380_v36 = vld [vmem:[#allocation20 + $0x588] sm:$0xff]  ;;  %v9381_v39 = vld [vmem:[#allocation20 + $0x590] sm:$0xff] }
 0x8fb   : > { %v20244_v11 = vpack.c.bf16 %v9370_v10, %v9368_v61  ;;  %v9384_v57 = vld [vmem:[#allocation20 + $0x5a8] sm:$0xff]  ;;  %v9385_v61 = vld [vmem:[#allocation20 + $0x5b0] sm:$0xff] }
 0x8fc   : > { %16124 = vmatpush1.bf16.msra.mxu1 %v20192_v29  ;;  %v9388_v10 = vld [vmem:[#allocation20 + $0x5c8] sm:$0xff] }
 0x8fd   : > { %16252 = vmatpush1.bf16.msra.mxu0 %v20052_v62  ;;  %16126 = vmatprep.subr.bf16.mxu1 %v20196_v46  ;;  %v9351_v62 = vld [vmem:[#allocation20 + $0x4a0] sm:$0xff] }
 0x8fe   : > { %16254 = vmatprep.subr.bf16.mxu0 %v20056_v20  ;;  %v20216_v20 = vpack.c.bf16 %v9353_v54, %v9351_v62  ;;  %v9374_v62 = vld [vmem:[#allocation20 + $0x558] sm:$0xff] }
 0x8ff   : > { %v20252_v54 = vpack.c.bf16 %v9374_v62, %v9372_v24  ;;  %v9389_v24 = vld [vmem:[#allocation20 + $0x5d0] sm:$0xff]  ;;  %v9392_v62 = vld [vmem:[#allocation20 + $0x5e8] sm:$0xff] }
 0x900   : > { %16128 = vmatpush1.bf16.msra.mxu1 %v20200_v9 }
 0x901   : > { %16256 = vmatpush1.bf16.msra.mxu0 %v20060_v56  ;;  %16130 = vmatprep.subr.bf16.mxu1 %v20204_v49  ;;  %v9355_v56 = vld [vmem:[#allocation20 + $0x4c0] sm:$0xff] }
 0x902   : > { %16258 = vmatprep.subr.bf16.mxu0 %v20064_v18  ;;  %v20224_v18 = vpack.c.bf16 %v9357_v15, %v9355_v56  ;;  %v9378_v56 = vld [vmem:[#allocation20 + $0x578] sm:$0xff] }
 0x903   : > { %v20260_v15 = vpack.c.bf16 %v9378_v56, %v9376_v16  ;;  %v9393_v16 = vld [vmem:[#allocation20 + $0x5f0] sm:$0xff]  ;;  %v10059_v56 = vld [vmem:[#allocation20 + $0x208] sm:$0xff] }
 0x904   : > { %16132 = vmatpush1.bf16.msra.mxu1 %v20208_v51 }
 0x905   : > { %16260 = vmatpush1.bf16.msra.mxu0 %v20068_v14  ;;  %16134 = vmatprep.subr.bf16.mxu1 %v20212_v7  ;;  %v9359_v14 = vld [vmem:[#allocation20 + $0x4e0] sm:$0xff] }
 0x906   : > { %16262 = vmatprep.subr.bf16.mxu0 %v20072_v23  ;;  %v20232_v23 = vpack.c.bf16 %v9361_v17, %v9359_v14  ;;  %v9382_v14 = vld [vmem:[#allocation20 + $0x598] sm:$0xff] }
 0x907   : > { %v20268_v17 = vpack.c.bf16 %v9382_v14, %v9380_v36  ;;  %v10060_v36 = vld [vmem:[#allocation20 + $0x210] sm:$0xff]  ;;  %v20304_v14 = vld [vmem:[#allocation7 + $0x4] ss:$8 sm:$0x3] }
 0x908   : > { %16136 = vmatpush1.bf16.msra.mxu1 %v20216_v20 }
 0x909   : > { %16264 = vmatpush1.bf16.msra.mxu0 %v20076_v13  ;;  %16138 = vmatprep.subr.bf16.mxu1 %v20220_v28  ;;  %v9363_v13 = vld [vmem:[#allocation20 + $0x500] sm:$0xff] }
 0x90a   : > { %16266 = vmatprep.subr.bf16.mxu0 %v20080_v12  ;;  %v20240_v12 = vpack.c.bf16 %v9365_v48, %v9363_v13  ;;  %v9386_v13 = vld [vmem:[#allocation20 + $0x5b8] sm:$0xff] }
 0x90b   : > { %v20276_v48 = vpack.c.bf16 %v9386_v13, %v9384_v57  ;;  %v9399_v57 = vrot.slane %v20166_v6, %v19757_v40  ;;  %v10062_v13 = vld [vmem:[#allocation20 + $0x220] sm:$0xff] }
 0x90c   : > { %16140 = vmatpush1.bf16.msra.mxu1 %v20224_v18 }
 0x90d   : > { %16268 = vmatpush1.bf16.msra.mxu0 %v20084_v31  ;;  %16142 = vmatprep.subr.bf16.mxu1 %v20228_v3  ;;  %v9367_v31 = vld [vmem:[#allocation20 + $0x520] sm:$0xff] }
 0x90e   : > { %16270 = vmatprep.subr.bf16.mxu0 %v20088_v38  ;;  %v20248_v38 = vpack.c.bf16 %v9369_v45, %v9367_v31  ;;  %v9390_v31 = vld [vmem:[#allocation20 + $0x5d8] sm:$0xff] }
 0x90f   : > { %v20284_v45 = vpack.c.bf16 %v9390_v31, %v9388_v10  ;;  %v10069_v10 = vld [vmem:[#allocation20 + $0x258] sm:$0xff]  ;;  %v9881_v31 = vrot.slane %v20304_v14, %v19760_v37 }
 0x910   : > { %16144 = vmatpush1.bf16.msra.mxu1 %v20232_v23 }
 0x911   : > { %16272 = vmatpush1.bf16.msra.mxu0 %v20092_v43  ;;  %16146 = vmatprep.subr.bf16.mxu1 %v20236_v42  ;;  %v9371_v43 = vld [vmem:[#allocation20 + $0x540] sm:$0xff] }
 0x912   : > { %16274 = vmatprep.subr.bf16.mxu0 %v20096_v50  ;;  %v20256_v50 = vpack.c.bf16 %v9373_v33, %v9371_v43  ;;  %v9394_v43 = vld [vmem:[#allocation20 + $0x5f8] sm:$0xff] }
 0x913   : > { %v20292_v33 = vpack.c.bf16 %v9394_v43, %v9392_v62  ;;  %v10071_v62 = vld [vmem:[#allocation20 + $0x268] sm:$0xff]  ;;  %v10073_v43 = vld [vmem:[#allocation20 + $0x278] sm:$0xff] }
 0x914   : > { %16148 = vmatpush1.bf16.msra.mxu1 %v20240_v12 }
 0x915   : > { %16276 = vmatpush1.bf16.msra.mxu0 %v20100_v32  ;;  %16150 = vmatprep.subr.bf16.mxu1 %v20244_v11  ;;  %v9375_v32 = vld [vmem:[#allocation20 + $0x560] sm:$0xff] }
 0x916   : > { %16278 = vmatprep.subr.bf16.mxu0 %v20104_v44  ;;  %v20264_v44 = vpack.c.bf16 %v9377_v35, %v9375_v32  ;;  %v10061_v32 = vld [vmem:[#allocation20 + $0x218] sm:$0xff] }
 0x917   : > { %v20300_v35 = vpack.c.bf16 %v10061_v32, %v10059_v56  ;;  %v10072_v56 = vld [vmem:[#allocation20 + $0x270] sm:$0xff]  ;;  %v10077_v32 = vld [vmem:[#allocation20 + $0x298] sm:$0xff] }
 0x918   : > { %16152 = vmatpush1.bf16.msra.mxu1 %v20248_v38 }
 0x919   : > { %16280 = vmatpush1.bf16.msra.mxu0 %v20108_v8  ;;  %16154 = vmatprep.subr.bf16.mxu1 %v20252_v54  ;;  %v9379_v8 = vld [vmem:[#allocation20 + $0x580] sm:$0xff] }
 0x91a   : > { %16282 = vmatprep.subr.bf16.mxu0 %v20112_v34  ;;  %v20272_v34 = vpack.c.bf16 %v9381_v39, %v9379_v8  ;;  %v10063_v8 = vld [vmem:[#allocation20 + $0x228] sm:$0xff]  ;;  %v10065_v39 = vld [vmem:[#allocation20 + $0x238] sm:$0xff] }
 0x91b   : > { %v20319_v6 = vpack.c.bf16 %v10065_v39, %v10063_v8  ;;  %v10076_v8 = vld [vmem:[#allocation20 + $0x290] sm:$0xff]  ;;  %v10079_v39 = vld [vmem:[#allocation20 + $0x2a8] sm:$0xff] }
 0x91c   : > { %16156 = vmatpush1.bf16.msra.mxu1 %v20256_v50 }
 0x91d   : > { %16284 = vmatpush1.bf16.msra.mxu0 %v20116_v60  ;;  %16158 = vmatprep.subr.bf16.mxu1 %v20260_v15  ;;  %v9383_v60 = vld [vmem:[#allocation20 + $0x5a0] sm:$0xff] }
 0x91e   : > { %16286 = vmatprep.subr.bf16.mxu0 %v20120_v58  ;;  %v20280_v58 = vpack.c.bf16 %v9385_v61, %v9383_v60  ;;  %v10064_v60 = vld [vmem:[#allocation20 + $0x230] sm:$0xff]  ;;  %v10067_v61 = vld [vmem:[#allocation20 + $0x248] sm:$0xff] }
 0x920   : > { %16160 = vmatpush1.bf16.msra.mxu1 %v20264_v44 }
 0x921   : > { %16288 = vmatpush1.bf16.msra.mxu0 %v20124_v26  ;;  %16162 = vmatprep.subr.bf16.mxu1 %v20268_v17  ;;  %v9387_v26 = vld [vmem:[#allocation20 + $0x5c0] sm:$0xff] }
 0x922   : > { %16290 = vmatprep.subr.bf16.mxu0 %v20128_v22  ;;  %v20288_v22 = vpack.c.bf16 %v9389_v24, %v9387_v26  ;;  %v20324_v26 = vpack.c.bf16 %v10064_v60, %v10062_v13  ;;  %v10068_v24 = vld [vmem:[#allocation20 + $0x250] sm:$0xff]  ;;  %v8524_v13 = vld [vmem:[%s21424_s19] sm:$0x3]  ;;  %v10078_v60 = vld [vmem:[#allocation20 + $0x2a0] sm:$0xff] }
 0x924   : > { %16164 = vmatpush1.bf16.msra.mxu1 %v20272_v34 }
 0x925   : > { %16292 = vmatpush1.bf16.msra.mxu0 %v20132_v19  ;;  %16166 = vmatprep.subr.bf16.mxu1 %v20276_v48  ;;  %v9391_v19 = vld [vmem:[#allocation20 + $0x5e0] sm:$0xff] }
 0x926   : > { %16294 = vmatprep.subr.bf16.mxu0 %v20136_v59  ;;  %v20296_v59 = vpack.c.bf16 %v9393_v16, %v9391_v19  ;;  %v10070_v16 = vld [vmem:[#allocation20 + $0x260] sm:$0xff] }
 0x928   : > { %16168 = vmatpush1.bf16.msra.mxu1 %v20280_v58 }
 0x929   : > { %16296 = vmatpush1.bf16.msra.mxu0 %v20140_v27  ;;  %16170 = vmatprep.subr.bf16.mxu1 %v20284_v45  ;;  %v10058_v27 = vld [vmem:[#allocation20 + $0x200] sm:$0xff] }
 0x92a   : > { %16298 = vmatprep.subr.bf16.mxu0 %v20144_v21  ;;  %v20306_v21 = vpack.c.bf16 %v10060_v36, %v10058_v27  ;;  %v20340_v27 = vpack.c.bf16 %v10072_v56, %v10070_v16  ;;  %v10074_v36 = vld [vmem:[#allocation20 + $0x280] sm:$0xff] }
 0x92c   : > { %16172 = vmatpush1.bf16.msra.mxu1 %v20288_v22 }
 0x92d   : > { %16300 = vmatpush1.bf16.msra.mxu0 %v20148_v4  ;;  %16174 = vmatprep.subr.bf16.mxu1 %v20292_v33  ;;  %v20312_v4 = vld [vmem:[#allocation7 + $0x4] ss:$8 sm:$0x3] }
 0x92e   : > { %16302 = vmatprep.subr.bf16.mxu0 %v20152_v25  ;;  %v9730_v25 = vrot.slane %v20172_v5, %v19757_v40  ;;  %v10066_v5 = vld [vmem:[#allocation20 + $0x240] sm:$0xff] }
 0x92f   : > { %v20332_v19 = vpack.c.bf16 %v10068_v24, %v10066_v5  ;;  %v10082_v5 = vld [vmem:[#allocation20 + $0x2c0] sm:$0xff]  ;;  %v10084_v24 = vld [vmem:[#allocation20 + $0x2d0] sm:$0xff] }
 0x930   : > { %16176 = vmatpush1.bf16.msra.mxu1 %v20296_v59 }
 0x931   : > { %16304 = vmatpush1.bf16.msra.mxu0 %v20156_v53  ;;  %16370 = vmatprep.subr.bf16.mxu1 %v20300_v35  ;;  %v10130_v53 = vrot.slane %v20312_v4, %v19760_v37 }
 0x932   : > { %16306 = vmatprep.subr.bf16.mxu0 %v20160_v52  ;;  %v20327_v52 = vpack.c.bf16 %v10069_v10, %v10067_v61  ;;  %v10083_v61 = vld [vmem:[#allocation20 + $0x2c8] sm:$0xff]  ;;  %v10085_v10 = vld [vmem:[#allocation20 + $0x2d8] sm:$0xff] }
 0x933   : > { %9471 = vmatmul.mubr.f32.vlgmr.msra.gmra.mrb[68].mxu1 %v9399_v57  ;;  %v10081_v57 = vld [vmem:[#allocation20 + $0x2b8] sm:$0xff] }
 0x934   : > { %9802 = vmatmul.mubr.f32.vlgmr.msra.gmra.mrb[70].mxu0 %v9730_v25  ;;  %16372 = vmatpush1.bf16.msra.mxu1 %v20306_v21  ;;  %v10080_v25 = vld [vmem:[#allocation20 + $0x2b0] sm:$0xff] }
 0x935   : > { %16308 = vmatpush1.bf16.msra.mxu0 %v20164_v30  ;;  %9948 = vmatprep.mubr.f32.mxu0 %v9881_v31  ;;  %v20336_v30 = vpack.c.bf16 %v10073_v43, %v10071_v62  ;;  %v8533_v31 = vrot.slane %v8524_v13, %v19760_v37  ;;  %v10089_v43 = vld [vmem:[#allocation20 + $0x2f8] sm:$0xff] }
 0x936   : > { %10197 = vmatprep.mubr.f32.mxu1 %v10130_v53  ;;  %16310 = vmatprep.subr.bf16.mxu0 %v20177_v47  ;;  %v10075_v47 = vld [vmem:[#allocation20 + $0x288] sm:$0xff]  ;;  %v20359_v53 = vpack.c.bf16 %v10080_v25, %v10078_v60  ;;  %v10090_v25 = vld [vmem:[#allocation20 + $0x300] sm:$0xff] }
 0x937   : > { %16374 = vmatprep.subr.bf16.mxu1 %v20319_v6 }
 0x938   : > { %16376 = vmatpush1.bf16.msra.mxu1 %v20324_v26 }
 0x939   : > { %16312 = vmatpush1.bf16.msra.mxu0 %v20184_v63  ;;  %16378 = vmatprep.subr.bf16.mxu1 %v20327_v52  ;;  %v20344_v63 = vpack.c.bf16 %v10077_v32, %v10075_v47  ;;  %v20367_v32 = vpack.c.bf16 %v10084_v24, %v10082_v5  ;;  %v10096_v5 = vld [vmem:[#allocation20 + $0x330] sm:$0xff]  ;;  %v10099_v24 = vld [vmem:[#allocation20 + $0x348] sm:$0xff] }
 0x93a   : > { %16314 = vmatprep.subr.bf16.mxu0 %v20187_v2  ;;  %v20348_v2 = vpack.c.bf16 %v10076_v8, %v10074_v36  ;;  %v10086_v36 = vld [vmem:[#allocation20 + $0x2e0] sm:$0xff]  ;;  %v10088_v8 = vld [vmem:[#allocation20 + $0x2f0] sm:$0xff] }
 0x93b   : > { %v20376_v60 = vpack.c.bf16 %v10088_v8, %v10086_v36  ;;  %v10104_v8 = vld [vmem:[#allocation20 + $0x370] sm:$0xff] }
 0x93c   : > { %16380 = vmatpush1.bf16.msra.mxu1 %v20332_v19 }
 0x93d   : > { %16316 = vmatpush1.bf16.msra.mxu0 %v20192_v29  ;;  %16382 = vmatprep.subr.bf16.mxu1 %v20336_v30  ;;  %v20353_v29 = vpack.c.bf16 %v10081_v57, %v10079_v39  ;;  %v10093_v57 = vld [vmem:[#allocation20 + $0x318] sm:$0xff] }
 0x93e   : > { %16318 = vmatprep.subr.bf16.mxu0 %v20196_v46  ;;  %v8529_v46 = vrot.slane %v8524_v13, %v19757_v40 }
 0x940   : > { %16384 = vmatpush1.bf16.msra.mxu1 %v20340_v27 }
 0x941   : > { %16320 = vmatpush1.bf16.msra.mxu0 %v20200_v9  ;;  %16386 = vmatprep.subr.bf16.mxu1 %v20344_v63  ;;  %v20363_v9 = vpack.c.bf16 %v10085_v10, %v10083_v61  ;;  %v10092_v61 = vld [vmem:[#allocation20 + $0x310] sm:$0xff] }
 0x942   : > { %16322 = vmatprep.subr.bf16.mxu0 %v20204_v49  ;;  %v10087_v49 = vld [vmem:[#allocation20 + $0x2e8] sm:$0xff] }
 0x944   : > { %16388 = vmatpush1.bf16.msra.mxu1 %v20348_v2 }
 0x945   : > { %16324 = vmatpush1.bf16.msra.mxu0 %v20208_v51  ;;  %16390 = vmatprep.subr.bf16.mxu1 %v20353_v29  ;;  %v20371_v51 = vpack.c.bf16 %v10089_v43, %v10087_v49 }
 0x946   : > { %v8519_v62 = vpop.f32.mrb[66].mxu1  ;;  %16326 = vmatprep.subr.bf16.mxu0 %v20212_v7  ;;  %v10091_v7 = vld [vmem:[#allocation20 + $0x308] sm:$0xff] }
 0x947   : > { %v8536_v16 = vadd.f32 %v8529_v46, %v8519_v62  ;;  %v8521_v56 = vpop.f32.mrb[67].mxu1  ;;  %v10097_v46 = vld [vmem:[#allocation20 + $0x338] sm:$0xff] }
 0x948   : > { %v8537_v47 = vadd.f32 %v8533_v31, %v8521_v56  ;;  %16392 = vmatpush1.bf16.msra.mxu1 %v20359_v53  ;;  %v10101_v62 = vld [vmem:[#allocation20 + $0x358] sm:$0xff]  ;;  %v10103_v56 = vld [vmem:[#allocation20 + $0x368] sm:$0xff] }
 0x949   : > { %16328 = vmatpush1.bf16.msra.mxu0 %v20216_v20  ;;  %16394 = vmatprep.subr.bf16.mxu1 %v20363_v9  ;;  %v20380_v20 = vpack.c.bf16 %v10093_v57, %v10091_v7  ;;  %v20404_v43 = vpack.c.bf16 %v10101_v62, %v10099_v24  ;;  %v10109_v7 = vld [vmem:[#allocation20 + $0x398] sm:$0xff]  ;;  %v10116_v24 = vld [vmem:[#allocation20 + $0x3d0] sm:$0xff]  ;;  %v10119_v62 = vld [vmem:[#allocation20 + $0x3e8] sm:$0xff] }
 0x94a   : > { %v8540_v39 = vcombine.low %v8536_v16, %v8537_v47  ;;  %16330 = vmatprep.subr.bf16.mxu0 %v20220_v28  ;;  %v10095_v28 = vld [vmem:[#allocation20 + $0x328] sm:$0xff]  ;;  %v10100_v16 = vld [vmem:[#allocation20 + $0x350] sm:$0xff]  ;;  %v10105_v47 = vld [vmem:[#allocation20 + $0x378] sm:$0xff] }
 0x94b   : > { %v20396_v31 = vpack.c.bf16 %v10097_v46, %v10095_v28  ;;  %v20412_v36 = vpack.c.bf16 %v10105_v47, %v10103_v56  ;;  %v10112_v28 = vld [vmem:[#allocation20 + $0x3b0] sm:$0xff]  ;;  %v10115_v46 = vld [vmem:[#allocation20 + $0x3c8] sm:$0xff] }
 0x94c   : > { %v8547_v13 = vrot.slane %v8540_v39, %v19777_v41  ;;  %16396 = vmatpush1.bf16.msra.mxu1 %v20367_v32  ;;  %v10107_v39 = vld [vmem:[#allocation20 + $0x388] sm:$0xff]  ;;  %v10120_v56 = vld [vmem:[#allocation20 + $0x3f0] sm:$0xff] }
 0x94d   : > { %16332 = vmatpush1.bf16.msra.mxu0 %v20224_v18  ;;  %16398 = vmatprep.subr.bf16.mxu1 %v20371_v51  ;;  %v20392_v18 = vpack.c.bf16 %v10092_v61, %v10090_v25  ;;  %v20420_v57 = vpack.c.bf16 %v10109_v7, %v10107_v39  ;;  %v10111_v25 = vld [vmem:[#allocation20 + $0x3a8] sm:$0xff]  ;;  %v10113_v61 = vld [vmem:[#allocation20 + $0x3b8] sm:$0xff]  ;;  %v9995_v39 = vld [vmem:[#allocation20 + $0x10] sm:$0xff] }
 0x94e   : > { %v8554_v10 = vrot.slane %v8547_v13, %v19777_v41  ;;  %16334 = vmatprep.subr.bf16.mxu0 %v20228_v3  ;;  %v10094_v3 = vld [vmem:[#allocation20 + $0x320] sm:$0xff]  ;;  %v10108_v13 = vld [vmem:[#allocation20 + $0x390] sm:$0xff]  ;;  %v9994_v47 = vld [vmem:[#allocation20 + $0x8] sm:$0xff] }
 0x94f   : > { %v20400_v49 = vpack.c.bf16 %v10096_v5, %v10094_v3  ;;  %v10117_v3 = vld [vmem:[#allocation20 + $0x3d8] sm:$0xff]  ;;  %v9998_v7 = vld [vmem:[#allocation20 + $0x28] sm:$0xff] }
 0x950   : > { %8556 = vst.msk [vmem:[%s20386_s14] ss:$8 sm:$0x3] %vm19790_vm4, %v8554_v10  ;;  %16400 = vmatpush1.bf16.msra.mxu1 %v20376_v60  ;;  %v20428_v10 = vpack.c.bf16 %v10113_v61, %v10111_v25  ;;  %v20436_v5 = vpack.c.bf16 %v10117_v3, %v10115_v46  ;;  %v10126_v25 = vrot.slane %v20312_v4, %v19757_v40  ;;  %v9997_v61 = vld [vmem:[#allocation20 + $0x20] sm:$0xff]  ;;  %v10002_v46 = vld [vmem:[#allocation20 + $0x48] sm:$0xff]  ;;  %v10004_v3 = vld [vmem:[#allocation20 + $0x58] sm:$0xff] }
 0x951   : > { %16336 = vmatpush1.bf16.msra.mxu0 %v20232_v23  ;;  %16402 = vmatprep.subr.bf16.mxu1 %v20380_v20  ;;  %v10098_v23 = vld [vmem:[#allocation20 + $0x340] sm:$0xff] }
 0x952   : > { %16338 = vmatprep.subr.bf16.mxu0 %v20236_v42  ;;  %v20408_v42 = vpack.c.bf16 %v10100_v16, %v10098_v23  ;;  %v10121_v23 = vld [vmem:[#allocation20 + $0x3f8] sm:$0xff] }
 0x953   : > { %v20444_v16 = vpack.c.bf16 %v10121_v23, %v10119_v62  ;;  %v10006_v62 = vld [vmem:[#allocation20 + $0x68] sm:$0xff]  ;;  %v10008_v23 = vld [vmem:[#allocation20 + $0x78] sm:$0xff] }
 0x954   : > { %16404 = vmatpush1.bf16.msra.mxu1 %v20392_v18 }
 0x955   : > { %16340 = vmatpush1.bf16.msra.mxu0 %v20240_v12  ;;  %16406 = vmatprep.subr.bf16.mxu1 %v20396_v31  ;;  %v10102_v12 = vld [vmem:[#allocation20 + $0x360] sm:$0xff] }
 0x956   : > { %16342 = vmatprep.subr.bf16.mxu0 %v20244_v11  ;;  %v20416_v11 = vpack.c.bf16 %v10104_v8, %v10102_v12  ;;  %v9996_v12 = vld [vmem:[#allocation20 + $0x18] sm:$0xff] }
 0x957   : > { %v20452_v8 = vpack.c.bf16 %v9996_v12, %v9994_v47  ;;  %v10007_v47 = vld [vmem:[#allocation20 + $0x70] sm:$0xff]  ;;  %v10010_v12 = vld [vmem:[#allocation20 + $0x88] sm:$0xff] }
 0x958   : > { %16408 = vmatpush1.bf16.msra.mxu1 %v20400_v49 }
 0x959   : > { %16344 = vmatpush1.bf16.msra.mxu0 %v20248_v38  ;;  %16410 = vmatprep.subr.bf16.mxu1 %v20404_v43  ;;  %v10106_v38 = vld [vmem:[#allocation20 + $0x380] sm:$0xff] }
 0x95a   : > { %16346 = vmatprep.subr.bf16.mxu0 %v20252_v54  ;;  %v20424_v54 = vpack.c.bf16 %v10108_v13, %v10106_v38  ;;  %v10000_v38 = vld [vmem:[#allocation20 + $0x38] sm:$0xff]  ;;  %v20458_v13 = vld [vmem:[#allocation7 + $0x3] ss:$8 sm:$0x3] }
 0x95b   : > { %v10212_v4 = vrot.slane %v20458_v13, %v19760_v37 }
 0x95c   : > { %16412 = vmatpush1.bf16.msra.mxu1 %v20408_v42 }
 0x95d   : > { %16348 = vmatpush1.bf16.msra.mxu0 %v20256_v50  ;;  %16414 = vmatprep.subr.bf16.mxu1 %v20412_v36  ;;  %v10110_v50 = vld [vmem:[#allocation20 + $0x3a0] sm:$0xff] }
 0x95e   : > { %16350 = vmatprep.subr.bf16.mxu0 %v20260_v15  ;;  %v20432_v15 = vpack.c.bf16 %v10112_v28, %v10110_v50  ;;  %v9999_v50 = vld [vmem:[#allocation20 + $0x30] sm:$0xff]  ;;  %v20469_v28 = vpack.c.bf16 %v10000_v38, %v9998_v7  ;;  %v10014_v38 = vld [vmem:[#allocation20 + $0xa8] sm:$0xff] }
 0x95f   : > { %v10011_v7 = vld [vmem:[#allocation20 + $0x90] sm:$0xff] }
 0x960   : > { %16416 = vmatpush1.bf16.msra.mxu1 %v20416_v11 }
 0x961   : > { %16352 = vmatpush1.bf16.msra.mxu0 %v20264_v44  ;;  %16418 = vmatprep.subr.bf16.mxu1 %v20420_v57  ;;  %v10114_v44 = vld [vmem:[#allocation20 + $0x3c0] sm:$0xff] }
 0x962   : > { %16354 = vmatprep.subr.bf16.mxu0 %v20268_v17  ;;  %v20440_v17 = vpack.c.bf16 %v10116_v24, %v10114_v44  ;;  %v20476_v44 = vpack.c.bf16 %v9999_v50, %v9997_v61  ;;  %v10003_v24 = vld [vmem:[#allocation20 + $0x50] sm:$0xff]  ;;  %v9001_v61 = vld [vmem:[%s21424_s19] sm:$0x3]  ;;  %v10013_v50 = vld [vmem:[#allocation20 + $0xa0] sm:$0xff] }
 0x964   : > { %16420 = vmatpush1.bf16.msra.mxu1 %v20424_v54 }
 0x965   : > { %16356 = vmatpush1.bf16.msra.mxu0 %v20272_v34  ;;  %16422 = vmatprep.subr.bf16.mxu1 %v20428_v10  ;;  %v10118_v34 = vld [vmem:[#allocation20 + $0x3e0] sm:$0xff] }
 0x966   : > { %16358 = vmatprep.subr.bf16.mxu0 %v20276_v48  ;;  %v20448_v48 = vpack.c.bf16 %v10120_v56, %v10118_v34  ;;  %v10005_v56 = vld [vmem:[#allocation20 + $0x60] sm:$0xff] }
 0x968   : > { %16424 = vmatpush1.bf16.msra.mxu1 %v20432_v15 }
 0x969   : > { %16360 = vmatpush1.bf16.msra.mxu0 %v20280_v58  ;;  %16426 = vmatprep.subr.bf16.mxu1 %v20436_v5  ;;  %v9993_v58 = vld [vmem:[#allocation20] sm:$0xff] }
 0x96a   : > { %16362 = vmatprep.subr.bf16.mxu0 %v20284_v45  ;;  %v20456_v45 = vpack.c.bf16 %v9995_v39, %v9993_v58  ;;  %v10012_v58 = vld [vmem:[#allocation20 + $0x98] sm:$0xff]  ;;  %v10009_v39 = vld [vmem:[#allocation20 + $0x80] sm:$0xff] }
 0x96c   : > { %16428 = vmatpush1.bf16.msra.mxu1 %v20440_v17 }
 0x96d   : > { %16364 = vmatpush1.bf16.msra.mxu0 %v20288_v22  ;;  %16430 = vmatprep.subr.bf16.mxu1 %v20444_v16  ;;  %v20464_v22 = vld [vmem:[#allocation7 + $0x5] ss:$8 sm:$0x3] }
 0x96e   : > { %16366 = vmatprep.subr.bf16.mxu0 %v20292_v33  ;;  %v9877_v33 = vrot.slane %v20304_v14, %v19757_v40  ;;  %v10001_v14 = vld [vmem:[#allocation20 + $0x40] sm:$0xff] }
 0x96f   : > { %v20484_v34 = vpack.c.bf16 %v10003_v24, %v10001_v14  ;;  %v10017_v14 = vld [vmem:[#allocation20 + $0xc0] sm:$0xff]  ;;  %v10019_v24 = vld [vmem:[#allocation20 + $0xd0] sm:$0xff] }
 0x970   : > { %16432 = vmatpush1.bf16.msra.mxu1 %v20448_v48 }
 0x971   : > { %16368 = vmatpush1.bf16.msra.mxu0 %v20296_v59  ;;  %16434 = vmatprep.subr.bf16.mxu1 %v20452_v8  ;;  %v10608_v59 = vrot.slane %v20464_v22, %v19760_v37 }
 0x972   : > { %16562 = vmatprep.subr.bf16.mxu0 %v20300_v35  ;;  %v20479_v35 = vpack.c.bf16 %v10004_v3, %v10002_v46  ;;  %v10018_v46 = vld [vmem:[#allocation20 + $0xc8] sm:$0xff]  ;;  %v10020_v3 = vld [vmem:[#allocation20 + $0xd8] sm:$0xff] }
 0x973   : > { %10198 = vmatmul.mubr.f32.vlgmr.msra.gmra.mrb[70].mxu1 %v10126_v25  ;;  %v10016_v25 = vld [vmem:[#allocation20 + $0xb8] sm:$0xff] }
 0x974   : > { %9949 = vmatmul.mubr.f32.vlgmr.msra.gmra.mrb[70].mxu0 %v9877_v33  ;;  %16436 = vmatpush1.bf16.msra.mxu1 %v20456_v45  ;;  %v10015_v33 = vld [vmem:[#allocation20 + $0xb0] sm:$0xff] }
 0x975   : > { %10279 = vmatprep.mubr.f32.mxu1 %v10212_v4  ;;  %16564 = vmatpush1.bf16.msra.mxu0 %v20306_v21  ;;  %v20488_v21 = vpack.c.bf16 %v10008_v23, %v10006_v62  ;;  %v20510_v4 = vpack.c.bf16 %v10015_v33, %v10013_v50  ;;  %v10024_v62 = vld [vmem:[#allocation20 + $0xf8] sm:$0xff]  ;;  %v10025_v33 = vld [vmem:[#allocation20 + $0x100] sm:$0xff] }
 0x976   : > { %10675 = vmatprep.mubr.f32.mxu0 %v10608_v59  ;;  %16438 = vmatprep.subr.bf16.mxu1 %v20469_v28  ;;  %v20515_v59 = vpack.c.bf16 %v10020_v3, %v10018_v46  ;;  %v10027_v46 = vld [vmem:[#allocation20 + $0x110] sm:$0xff]  ;;  %v10032_v3 = vld [vmem:[#allocation20 + $0x138] sm:$0xff] }
 0x977   : > { %16566 = vmatprep.subr.bf16.mxu0 %v20319_v6  ;;  %v20492_v6 = vpack.c.bf16 %v10007_v47, %v10005_v56 }
 0x978   : > { %16440 = vmatpush1.bf16.msra.mxu1 %v20476_v44 }
 0x979   : > { %16568 = vmatpush1.bf16.msra.mxu0 %v20324_v26  ;;  %16442 = vmatprep.subr.bf16.mxu1 %v20479_v35  ;;  %v20496_v26 = vpack.c.bf16 %v10012_v58, %v10010_v12  ;;  %v20519_v12 = vpack.c.bf16 %v10019_v24, %v10017_v14  ;;  %v10029_v14 = vld [vmem:[#allocation20 + $0x120] sm:$0xff]  ;;  %v10031_v24 = vld [vmem:[#allocation20 + $0x130] sm:$0xff] }
 0x97a   : > { %16570 = vmatprep.subr.bf16.mxu0 %v20327_v52  ;;  %v20500_v52 = vpack.c.bf16 %v10011_v7, %v10009_v39  ;;  %v10021_v39 = vld [vmem:[#allocation20 + $0xe0] sm:$0xff]  ;;  %v10023_v7 = vld [vmem:[#allocation20 + $0xf0] sm:$0xff] }
 0x97c   : > { %16444 = vmatpush1.bf16.msra.mxu1 %v20484_v34 }
 0x97d   : > { %16572 = vmatpush1.bf16.msra.mxu0 %v20332_v19  ;;  %16446 = vmatprep.subr.bf16.mxu1 %v20488_v21  ;;  %v20505_v19 = vpack.c.bf16 %v10016_v25, %v10014_v38  ;;  %v10028_v38 = vld [vmem:[#allocation20 + $0x118] sm:$0xff] }
 0x97e   : > { %16574 = vmatprep.subr.bf16.mxu0 %v20336_v30  ;;  %v9006_v30 = vrot.slane %v9001_v61, %v19757_v40 }
 0x980   : > { %16448 = vmatpush1.bf16.msra.mxu1 %v20492_v6 }
 0x981   : > { %16576 = vmatpush1.bf16.msra.mxu0 %v20340_v27  ;;  %16450 = vmatprep.subr.bf16.mxu1 %v20496_v26  ;;  %v9010_v27 = vrot.slane %v9001_v61, %v19760_v37  ;;  %v20527_v61 = vpack.c.bf16 %v10023_v7, %v10021_v39  ;;  %v10039_v7 = vld [vmem:[#allocation20 + $0x170] sm:$0xff] }
 0x982   : > { %16578 = vmatprep.subr.bf16.mxu0 %v20344_v63  ;;  %v10022_v63 = vld [vmem:[#allocation20 + $0xe8] sm:$0xff] }
 0x983   : > { %v20523_v58 = vpack.c.bf16 %v10024_v62, %v10022_v63  ;;  %v10036_v63 = vld [vmem:[#allocation20 + $0x158] sm:$0xff]  ;;  %v20548_v62 = vpack.c.bf16 %v10031_v24, %v10029_v14 }
 0x984   : > { %16452 = vmatpush1.bf16.msra.mxu1 %v20500_v52  ;;  %v10052_v14 = vld [vmem:[#allocation20 + $0x1d8] sm:$0xff] }
 0x985   : > { %16580 = vmatpush1.bf16.msra.mxu0 %v20348_v2  ;;  %16454 = vmatprep.subr.bf16.mxu1 %v20505_v19 }
 0x986   : > { %16582 = vmatprep.subr.bf16.mxu0 %v20353_v29  ;;  %v10026_v29 = vld [vmem:[#allocation20 + $0x108] sm:$0xff] }
 0x987   : > { %v8994_v23 = vpop.f32.mrb[68].mxu0 }
 0x988   : > { %v9013_v56 = vadd.f32 %v9006_v30, %v8994_v23  ;;  %v8996_v47 = vpop.f32.mrb[69].mxu0  ;;  %16456 = vmatpush1.bf16.msra.mxu1 %v20510_v4 }
 0x989   : > { %v9014_v2 = vadd.f32 %v9010_v27, %v8996_v47  ;;  %16584 = vmatpush1.bf16.msra.mxu0 %v20359_v53  ;;  %16458 = vmatprep.subr.bf16.mxu1 %v20515_v59  ;;  %v20532_v53 = vpack.c.bf16 %v10028_v38, %v10026_v29  ;;  %v20537_v27 = vpack.c.bf16 %v10027_v46, %v10025_v33  ;;  %v10038_v47 = vld [vmem:[#allocation20 + $0x168] sm:$0xff]  ;;  %v10044_v38 = vld [vmem:[#allocation20 + $0x198] sm:$0xff] }
 0x98a   : > { %16586 = vmatprep.subr.bf16.mxu0 %v20363_v9  ;;  %v10030_v9 = vld [vmem:[#allocation20 + $0x128] sm:$0xff]  ;;  %v10048_v46 = vld [vmem:[#allocation20 + $0x1b8] sm:$0xff] }
 0x98b   : > { %v9017_v25 = vcombine.low %v9013_v56, %v9014_v2  ;;  %v10035_v56 = vld [vmem:[#allocation20 + $0x150] sm:$0xff]  ;;  %v10040_v2 = vld [vmem:[#allocation20 + $0x178] sm:$0xff]  ;;  %v10042_v29 = vld [vmem:[#allocation20 + $0x188] sm:$0xff] }
 0x98c   : > { %16460 = vmatpush1.bf16.msra.mxu1 %v20519_v12  ;;  %v20560_v39 = vpack.c.bf16 %v10040_v2, %v10038_v47  ;;  %v10046_v33 = vld [vmem:[#allocation20 + $0x1a8] sm:$0xff]  ;;  %v10055_v47 = vld [vmem:[#allocation20 + $0x1f0] sm:$0xff] }
 0x98d   : > { %v9024_v50 = vrot.slane %v9017_v25, %v19777_v41  ;;  %16588 = vmatpush1.bf16.msra.mxu0 %v20367_v32  ;;  %16462 = vmatprep.subr.bf16.mxu1 %v20523_v58  ;;  %v20544_v32 = vpack.c.bf16 %v10032_v3, %v10030_v9  ;;  %v20568_v25 = vpack.c.bf16 %v10044_v38, %v10042_v29  ;;  %v10047_v3 = vld [vmem:[#allocation20 + $0x1b0] sm:$0xff]  ;;  %v10288_v2 = vld [vmem:[#allocation20 + $0x408] sm:$0xff] }
 0x98e   : > { %16590 = vmatprep.subr.bf16.mxu0 %v20371_v51  ;;  %v10034_v51 = vld [vmem:[#allocation20 + $0x148] sm:$0xff]  ;;  %v20576_v9 = vpack.c.bf16 %v10048_v46, %v10046_v33  ;;  %v10289_v29 = vld [vmem:[#allocation20 + $0x410] sm:$0xff]  ;;  %v10208_v33 = vrot.slane %v20458_v13, %v19757_v40  ;;  %v10291_v46 = vld [vmem:[#allocation20 + $0x420] sm:$0xff] }
 0x98f   : > { %v9031_v30 = vrot.slane %v9024_v50, %v19777_v41  ;;  %v20552_v23 = vpack.c.bf16 %v10036_v63, %v10034_v51  ;;  %v10043_v50 = vld [vmem:[#allocation20 + $0x190] sm:$0xff]  ;;  %v10054_v63 = vld [vmem:[#allocation20 + $0x1e8] sm:$0xff] }
 0x990   : > { %16464 = vmatpush1.bf16.msra.mxu1 %v20527_v61  ;;  %v10051_v51 = vld [vmem:[#allocation20 + $0x1d0] sm:$0xff]  ;;  %v10292_v38 = vld [vmem:[#allocation20 + $0x428] sm:$0xff] }
 0x991   : > { %12493 = vst.msk [vmem:[%s20386_s14 + $0x1] ss:$8 sm:$0x3] %vm19790_vm4, %v9031_v30  ;;  %16592 = vmatpush1.bf16.msra.mxu0 %v20376_v60  ;;  %16466 = vmatprep.subr.bf16.mxu1 %v20532_v53  ;;  %v10033_v60 = vld [vmem:[#allocation20 + $0x140] sm:$0xff]  ;;  %v10050_v30 = vld [vmem:[#allocation20 + $0x1c8] sm:$0xff] }
 0x992   : > { %16594 = vmatprep.subr.bf16.mxu0 %v20380_v20  ;;  %v20556_v20 = vpack.c.bf16 %v10035_v56, %v10033_v60  ;;  %v20584_v24 = vpack.c.bf16 %v10052_v14, %v10050_v30  ;;  %v10056_v60 = vld [vmem:[#allocation20 + $0x1f8] sm:$0xff]  ;;  %v10296_v30 = vld [vmem:[#allocation20 + $0x448] sm:$0xff] }
 0x993   : > { %v20592_v56 = vpack.c.bf16 %v10056_v60, %v10054_v63  ;;  %v10298_v14 = vld [vmem:[#allocation20 + $0x458] sm:$0xff]  ;;  %v10300_v63 = vld [vmem:[#allocation20 + $0x468] sm:$0xff] }
 0x994   : > { %16468 = vmatpush1.bf16.msra.mxu1 %v20537_v27  ;;  %v10302_v60 = vld [vmem:[#allocation20 + $0x478] sm:$0xff] }
 0x995   : > { %16596 = vmatpush1.bf16.msra.mxu0 %v20392_v18  ;;  %16470 = vmatprep.subr.bf16.mxu1 %v20544_v32  ;;  %v10037_v18 = vld [vmem:[#allocation20 + $0x160] sm:$0xff] }
 0x996   : > { %16598 = vmatprep.subr.bf16.mxu0 %v20396_v31  ;;  %v20564_v31 = vpack.c.bf16 %v10039_v7, %v10037_v18  ;;  %v10290_v18 = vld [vmem:[#allocation20 + $0x418] sm:$0xff] }
 0x997   : > { %v20600_v7 = vpack.c.bf16 %v10290_v18, %v10288_v2  ;;  %v10301_v2 = vld [vmem:[#allocation20 + $0x470] sm:$0xff]  ;;  %v10304_v18 = vld [vmem:[#allocation20 + $0x488] sm:$0xff] }
 0x998   : > { %16472 = vmatpush1.bf16.msra.mxu1 %v20548_v62 }
 0x999   : > { %16600 = vmatpush1.bf16.msra.mxu0 %v20400_v49  ;;  %16474 = vmatprep.subr.bf16.mxu1 %v20552_v23  ;;  %v10041_v49 = vld [vmem:[#allocation20 + $0x180] sm:$0xff] }
 0x99a   : > { %16602 = vmatprep.subr.bf16.mxu0 %v20404_v43  ;;  %v20572_v43 = vpack.c.bf16 %v10043_v50, %v10041_v49  ;;  %v10294_v49 = vld [vmem:[#allocation20 + $0x438] sm:$0xff]  ;;  %v20606_v50 = vld [vmem:[#allocation7 + $0x5] ss:$8 sm:$0x3] }
 0x99b   : > { %v10359_v13 = vrot.slane %v20606_v50, %v19760_v37 }
 0x99c   : > { %16476 = vmatpush1.bf16.msra.mxu1 %v20556_v20 }
 0x99d   : > { %16604 = vmatpush1.bf16.msra.mxu0 %v20408_v42  ;;  %16478 = vmatprep.subr.bf16.mxu1 %v20560_v39  ;;  %v10045_v42 = vld [vmem:[#allocation20 + $0x1a0] sm:$0xff] }
 0x99e   : > { %16606 = vmatprep.subr.bf16.mxu0 %v20412_v36  ;;  %v20580_v36 = vpack.c.bf16 %v10047_v3, %v10045_v42  ;;  %v10293_v42 = vld [vmem:[#allocation20 + $0x430] sm:$0xff]  ;;  %v20617_v3 = vpack.c.bf16 %v10294_v49, %v10292_v38  ;;  %v10308_v49 = vld [vmem:[#allocation20 + $0x4a8] sm:$0xff] }
 0x99f   : > { %v10305_v38 = vld [vmem:[#allocation20 + $0x490] sm:$0xff] }
 0x9a0   : > { %16480 = vmatpush1.bf16.msra.mxu1 %v20564_v31 }
 0x9a1   : > { %16608 = vmatpush1.bf16.msra.mxu0 %v20416_v11  ;;  %16482 = vmatprep.subr.bf16.mxu1 %v20568_v25  ;;  %v10049_v11 = vld [vmem:[#allocation20 + $0x1c0] sm:$0xff] }
 0x9a2   : > { %16610 = vmatprep.subr.bf16.mxu0 %v20420_v57  ;;  %v20588_v57 = vpack.c.bf16 %v10051_v51, %v10049_v11  ;;  %v20624_v11 = vpack.c.bf16 %v10293_v42, %v10291_v46  ;;  %v10297_v51 = vld [vmem:[#allocation20 + $0x450] sm:$0xff] }
 0x9a3   : > { %v10309_v42 = vld [vmem:[#allocation20 + $0x4b0] sm:$0xff] }
 0x9a4   : > { %16484 = vmatpush1.bf16.msra.mxu1 %v20572_v43 }
 0x9a5   : > { %16612 = vmatpush1.bf16.msra.mxu0 %v20424_v54  ;;  %16486 = vmatprep.subr.bf16.mxu1 %v20576_v9  ;;  %v10053_v54 = vld [vmem:[#allocation20 + $0x1e0] sm:$0xff] }
 0x9a6   : > { %16614 = vmatprep.subr.bf16.mxu0 %v20428_v10  ;;  %v20596_v10 = vpack.c.bf16 %v10055_v47, %v10053_v54  ;;  %v10299_v47 = vld [vmem:[#allocation20 + $0x460] sm:$0xff] }
 0x9a8   : > { %16488 = vmatpush1.bf16.msra.mxu1 %v20580_v36 }
 0x9a9   : > { %16616 = vmatpush1.bf16.msra.mxu0 %v20432_v15  ;;  %16490 = vmatprep.subr.bf16.mxu1 %v20584_v24  ;;  %v10287_v15 = vld [vmem:[#allocation20 + $0x400] sm:$0xff] }
 0x9aa   : > { %16618 = vmatprep.subr.bf16.mxu0 %v20436_v5  ;;  %v20604_v5 = vpack.c.bf16 %v10289_v29, %v10287_v15  ;;  %v10306_v15 = vld [vmem:[#allocation20 + $0x498] sm:$0xff]  ;;  %v20640_v29 = vpack.c.bf16 %v10301_v2, %v10299_v47 }
 0x9ab   : > { %v10322_v47 = vld [vmem:[#allocation20 + $0x518] sm:$0xff] }
 0x9ac   : > { %16492 = vmatpush1.bf16.msra.mxu1 %v20588_v57 }
 0x9ad   : > { %16620 = vmatpush1.bf16.msra.mxu0 %v20440_v17  ;;  %16494 = vmatprep.subr.bf16.mxu1 %v20592_v56  ;;  %v20612_v17 = vld [vmem:[#allocation7 + $0x4] ss:$8 sm:$0x3] }
 0x9ae   : > { %16622 = vmatprep.subr.bf16.mxu0 %v20444_v16  ;;  %v10604_v16 = vrot.slane %v20464_v22, %v19757_v40  ;;  %v10295_v22 = vld [vmem:[#allocation20 + $0x440] sm:$0xff] }
 0x9af   : > { %v20632_v54 = vpack.c.bf16 %v10297_v51, %v10295_v22  ;;  %v10318_v22 = vld [vmem:[#allocation20 + $0x4f8] sm:$0xff] }
 0x9b0   : > { %16496 = vmatpush1.bf16.msra.mxu1 %v20596_v10 }
 0x9b1   : > { %16624 = vmatpush1.bf16.msra.mxu0 %v20448_v48  ;;  %16498 = vmatprep.subr.bf16.mxu1 %v20600_v7  ;;  %v10690_v48 = vrot.slane %v20612_v17, %v19760_v37 }
 0x9b2   : > { %16626 = vmatprep.subr.bf16.mxu0 %v20452_v8  ;;  %v20627_v8 = vpack.c.bf16 %v10298_v14, %v10296_v30  ;;  %v10314_v30 = vld [vmem:[#allocation20 + $0x4d8] sm:$0xff] }
 0x9b3   : > { %10280 = vmatmul.mubr.f32.vlgmr.msra.gmra.mrb[70].mxu1 %v10208_v33  ;;  %v10310_v33 = vld [vmem:[#allocation20 + $0x4b8] sm:$0xff] }
 0x9b4   : > { %10676 = vmatmul.mubr.f32.vlgmr.msra.gmra.mrb[72].mxu0 %v10604_v16  ;;  %16500 = vmatpush1.bf16.msra.mxu1 %v20604_v5  ;;  %v20652_v46 = vpack.c.bf16 %v10310_v33, %v10308_v49  ;;  %v10312_v16 = vld [vmem:[#allocation20 + $0x4c8] sm:$0xff]  ;;  %v10325_v49 = vld [vmem:[#allocation20 + $0x530] sm:$0xff] }
 0x9b5   : > { %10426 = vmatprep.mubr.f32.mxu1 %v10359_v13  ;;  %16628 = vmatpush1.bf16.msra.mxu0 %v20456_v45  ;;  %v20636_v45 = vpack.c.bf16 %v10302_v60, %v10300_v63  ;;  %v20660_v14 = vpack.c.bf16 %v10314_v30, %v10312_v16  ;;  %v10313_v13 = vld [vmem:[#allocation20 + $0x4d0] sm:$0xff]  ;;  %v10320_v60 = vld [vmem:[#allocation20 + $0x508] sm:$0xff] }
 0x9b6   : > { %10757 = vmatprep.mubr.f32.mxu0 %v10690_v48  ;;  %16502 = vmatprep.subr.bf16.mxu1 %v20617_v3  ;;  %v10316_v48 = vld [vmem:[#allocation20 + $0x4e8] sm:$0xff]  ;;  %v10317_v63 = vld [vmem:[#allocation20 + $0x4f0] sm:$0xff]  ;;  %v20676_v2 = vpack.c.bf16 %v10322_v47, %v10320_v60 }
 0x9b7   : > { %16630 = vmatprep.subr.bf16.mxu0 %v20469_v28  ;;  %v20644_v28 = vpack.c.bf16 %v10306_v15, %v10304_v18  ;;  %v20668_v51 = vpack.c.bf16 %v10318_v22, %v10316_v48  ;;  %v10321_v18 = vld [vmem:[#allocation20 + $0x510] sm:$0xff]  ;;  %v10324_v15 = vld [vmem:[#allocation20 + $0x528] sm:$0xff] }
 0x9b8   : > { %16504 = vmatpush1.bf16.msra.mxu1 %v20624_v11  ;;  %v10328_v33 = vld [vmem:[#allocation20 + $0x548] sm:$0xff]  ;;  %v10329_v16 = vld [vmem:[#allocation20 + $0x550] sm:$0xff] }
 0x9b9   : > { %16632 = vmatpush1.bf16.msra.mxu0 %v20476_v44  ;;  %16506 = vmatprep.subr.bf16.mxu1 %v20627_v8  ;;  %v10303_v44 = vld [vmem:[#allocation20 + $0x480] sm:$0xff]  ;;  %v10332_v30 = vld [vmem:[#allocation20 + $0x568] sm:$0xff]  ;;  %v10333_v48 = vld [vmem:[#allocation20 + $0x570] sm:$0xff] }
 0x9ba   : > { %16634 = vmatprep.subr.bf16.mxu0 %v20479_v35  ;;  %v20648_v35 = vpack.c.bf16 %v10305_v38, %v10303_v44  ;;  %v10326_v44 = vld [vmem:[#allocation20 + $0x538] sm:$0xff]  ;;  %v10336_v22 = vld [vmem:[#allocation20 + $0x588] sm:$0xff]  ;;  %v10337_v60 = vld [vmem:[#allocation20 + $0x590] sm:$0xff] }
 0x9bb   : > { %v20684_v38 = vpack.c.bf16 %v10326_v44, %v10324_v15  ;;  %v10340_v47 = vld [vmem:[#allocation20 + $0x5a8] sm:$0xff]  ;;  %v10341_v15 = vld [vmem:[#allocation20 + $0x5b0] sm:$0xff] }
 0x9bc   : > { %16508 = vmatpush1.bf16.msra.mxu1 %v20632_v54  ;;  %v10344_v44 = vld [vmem:[#allocation20 + $0x5c8] sm:$0xff] }
 0x9bd   : > { %16636 = vmatpush1.bf16.msra.mxu0 %v20484_v34  ;;  %16510 = vmatprep.subr.bf16.mxu1 %v20636_v45  ;;  %v10307_v34 = vld [vmem:[#allocation20 + $0x4a0] sm:$0xff] }
 0x9be   : > { %16638 = vmatprep.subr.bf16.mxu0 %v20488_v21  ;;  %v20656_v21 = vpack.c.bf16 %v10309_v42, %v10307_v34  ;;  %v10330_v34 = vld [vmem:[#allocation20 + $0x558] sm:$0xff] }
 0x9bf   : > { %v20692_v42 = vpack.c.bf16 %v10330_v34, %v10328_v33  ;;  %v10345_v33 = vld [vmem:[#allocation20 + $0x5d0] sm:$0xff]  ;;  %v10348_v34 = vld [vmem:[#allocation20 + $0x5e8] sm:$0xff] }
 0x9c0   : > { %16512 = vmatpush1.bf16.msra.mxu1 %v20640_v29 }
 0x9c1   : > { %16640 = vmatpush1.bf16.msra.mxu0 %v20492_v6  ;;  %16514 = vmatprep.subr.bf16.mxu1 %v20644_v28  ;;  %v10311_v6 = vld [vmem:[#allocation20 + $0x4c0] sm:$0xff] }
 0x9c2   : > { %16642 = vmatprep.subr.bf16.mxu0 %v20496_v26  ;;  %v20664_v26 = vpack.c.bf16 %v10313_v13, %v10311_v6  ;;  %v10334_v6 = vld [vmem:[#allocation20 + $0x578] sm:$0xff] }
 0x9c3   : > { %v20700_v13 = vpack.c.bf16 %v10334_v6, %v10332_v30  ;;  %v10349_v30 = vld [vmem:[#allocation20 + $0x5f0] sm:$0xff]  ;;  %v11015_v6 = vld [vmem:[#allocation20 + $0x208] sm:$0xff] }
 0x9c4   : > { %16516 = vmatpush1.bf16.msra.mxu1 %v20648_v35 }
 0x9c5   : > { %16644 = vmatpush1.bf16.msra.mxu0 %v20500_v52  ;;  %16518 = vmatprep.subr.bf16.mxu1 %v20652_v46  ;;  %v10315_v52 = vld [vmem:[#allocation20 + $0x4e0] sm:$0xff] }
 0x9c6   : > { %16646 = vmatprep.subr.bf16.mxu0 %v20505_v19  ;;  %v20672_v19 = vpack.c.bf16 %v10317_v63, %v10315_v52  ;;  %v10338_v52 = vld [vmem:[#allocation20 + $0x598] sm:$0xff] }
 0x9c7   : > { %v20708_v63 = vpack.c.bf16 %v10338_v52, %v10336_v22  ;;  %v11016_v22 = vld [vmem:[#allocation20 + $0x210] sm:$0xff]  ;;  %v20744_v52 = vld [vmem:[#allocation7 + $0x6] ss:$8 sm:$0x3] }
 0x9c8   : > { %16520 = vmatpush1.bf16.msra.mxu1 %v20656_v21 }
 0x9c9   : > { %16648 = vmatpush1.bf16.msra.mxu0 %v20510_v4  ;;  %16522 = vmatprep.subr.bf16.mxu1 %v20660_v14  ;;  %v10319_v4 = vld [vmem:[#allocation20 + $0x500] sm:$0xff] }
 0x9ca   : > { %16650 = vmatprep.subr.bf16.mxu0 %v20515_v59  ;;  %v20680_v59 = vpack.c.bf16 %v10321_v18, %v10319_v4  ;;  %v10342_v4 = vld [vmem:[#allocation20 + $0x5b8] sm:$0xff] }
 0x9cb   : > { %v20716_v18 = vpack.c.bf16 %v10342_v4, %v10340_v47  ;;  %v10355_v47 = vrot.slane %v20606_v50, %v19757_v40  ;;  %v11018_v4 = vld [vmem:[#allocation20 + $0x220] sm:$0xff] }
 0x9cc   : > { %16524 = vmatpush1.bf16.msra.mxu1 %v20664_v26 }
 0x9cd   : > { %16652 = vmatpush1.bf16.msra.mxu0 %v20519_v12  ;;  %16526 = vmatprep.subr.bf16.mxu1 %v20668_v51  ;;  %v10323_v12 = vld [vmem:[#allocation20 + $0x520] sm:$0xff] }
 0x9ce   : > { %16654 = vmatprep.subr.bf16.mxu0 %v20523_v58  ;;  %v20688_v58 = vpack.c.bf16 %v10325_v49, %v10323_v12  ;;  %v10346_v12 = vld [vmem:[#allocation20 + $0x5d8] sm:$0xff] }
 0x9cf   : > { %v20724_v49 = vpack.c.bf16 %v10346_v12, %v10344_v44  ;;  %v11025_v44 = vld [vmem:[#allocation20 + $0x258] sm:$0xff]  ;;  %v10837_v12 = vrot.slane %v20744_v52, %v19760_v37 }
 0x9d0   : > { %16528 = vmatpush1.bf16.msra.mxu1 %v20672_v19 }
 0x9d1   : > { %16656 = vmatpush1.bf16.msra.mxu0 %v20527_v61  ;;  %16530 = vmatprep.subr.bf16.mxu1 %v20676_v2  ;;  %v10327_v61 = vld [vmem:[#allocation20 + $0x540] sm:$0xff] }
 0x9d2   : > { %16658 = vmatprep.subr.bf16.mxu0 %v20532_v53  ;;  %v20696_v53 = vpack.c.bf16 %v10329_v16, %v10327_v61  ;;  %v10350_v61 = vld [vmem:[#allocation20 + $0x5f8] sm:$0xff] }
 0x9d3   : > { %v20732_v16 = vpack.c.bf16 %v10350_v61, %v10348_v34  ;;  %v11027_v34 = vld [vmem:[#allocation20 + $0x268] sm:$0xff]  ;;  %v11029_v61 = vld [vmem:[#allocation20 + $0x278] sm:$0xff] }
 0x9d4   : > { %16532 = vmatpush1.bf16.msra.mxu1 %v20680_v59 }
 0x9d5   : > { %16660 = vmatpush1.bf16.msra.mxu0 %v20537_v27  ;;  %16534 = vmatprep.subr.bf16.mxu1 %v20684_v38  ;;  %v10331_v27 = vld [vmem:[#allocation20 + $0x560] sm:$0xff] }
 0x9d6   : > { %16662 = vmatprep.subr.bf16.mxu0 %v20544_v32  ;;  %v20704_v32 = vpack.c.bf16 %v10333_v48, %v10331_v27  ;;  %v11017_v27 = vld [vmem:[#allocation20 + $0x218] sm:$0xff] }
 0x9d7   : > { %v20740_v48 = vpack.c.bf16 %v11017_v27, %v11015_v6  ;;  %v11028_v6 = vld [vmem:[#allocation20 + $0x270] sm:$0xff]  ;;  %v11033_v27 = vld [vmem:[#allocation20 + $0x298] sm:$0xff] }
 0x9d8   : > { %16536 = vmatpush1.bf16.msra.mxu1 %v20688_v58 }
 0x9d9   : > { %16664 = vmatpush1.bf16.msra.mxu0 %v20548_v62  ;;  %16538 = vmatprep.subr.bf16.mxu1 %v20692_v42  ;;  %v10335_v62 = vld [vmem:[#allocation20 + $0x580] sm:$0xff] }
 0x9da   : > { %16666 = vmatprep.subr.bf16.mxu0 %v20552_v23  ;;  %v20712_v23 = vpack.c.bf16 %v10337_v60, %v10335_v62  ;;  %v11019_v62 = vld [vmem:[#allocation20 + $0x228] sm:$0xff]  ;;  %v11021_v60 = vld [vmem:[#allocation20 + $0x238] sm:$0xff] }
 0x9db   : > { %v20759_v50 = vpack.c.bf16 %v11021_v60, %v11019_v62  ;;  %v11032_v62 = vld [vmem:[#allocation20 + $0x290] sm:$0xff]  ;;  %v11035_v60 = vld [vmem:[#allocation20 + $0x2a8] sm:$0xff] }
 0x9dc   : > { %16540 = vmatpush1.bf16.msra.mxu1 %v20696_v53 }
 0x9dd   : > { %16668 = vmatpush1.bf16.msra.mxu0 %v20556_v20  ;;  %16542 = vmatprep.subr.bf16.mxu1 %v20700_v13  ;;  %v10339_v20 = vld [vmem:[#allocation20 + $0x5a0] sm:$0xff] }
 0x9de   : > { %16670 = vmatprep.subr.bf16.mxu0 %v20560_v39  ;;  %v20720_v39 = vpack.c.bf16 %v10341_v15, %v10339_v20  ;;  %v11020_v20 = vld [vmem:[#allocation20 + $0x230] sm:$0xff]  ;;  %v11023_v15 = vld [vmem:[#allocation20 + $0x248] sm:$0xff] }
 0x9e0   : > { %16544 = vmatpush1.bf16.msra.mxu1 %v20704_v32 }
 0x9e1   : > { %16672 = vmatpush1.bf16.msra.mxu0 %v20564_v31  ;;  %16546 = vmatprep.subr.bf16.mxu1 %v20708_v63  ;;  %v10343_v31 = vld [vmem:[#allocation20 + $0x5c0] sm:$0xff] }
 0x9e2   : > { %16674 = vmatprep.subr.bf16.mxu0 %v20568_v25  ;;  %v20728_v25 = vpack.c.bf16 %v10345_v33, %v10343_v31  ;;  %v20764_v31 = vpack.c.bf16 %v11020_v20, %v11018_v4  ;;  %v11024_v33 = vld [vmem:[#allocation20 + $0x250] sm:$0xff]  ;;  %v9479_v4 = vld [vmem:[%s21424_s19] sm:$0x3]  ;;  %v11034_v20 = vld [vmem:[#allocation20 + $0x2a0] sm:$0xff] }
 0x9e4   : > { %16548 = vmatpush1.bf16.msra.mxu1 %v20712_v23 }
 0x9e5   : > { %16676 = vmatpush1.bf16.msra.mxu0 %v20572_v43  ;;  %16550 = vmatprep.subr.bf16.mxu1 %v20716_v18  ;;  %v10347_v43 = vld [vmem:[#allocation20 + $0x5e0] sm:$0xff] }
 0x9e6   : > { %16678 = vmatprep.subr.bf16.mxu0 %v20576_v9  ;;  %v20736_v9 = vpack.c.bf16 %v10349_v30, %v10347_v43  ;;  %v11026_v30 = vld [vmem:[#allocation20 + $0x260] sm:$0xff] }
 0x9e8   : > { %16552 = vmatpush1.bf16.msra.mxu1 %v20720_v39 }
 0x9e9   : > { %16680 = vmatpush1.bf16.msra.mxu0 %v20580_v36  ;;  %16554 = vmatprep.subr.bf16.mxu1 %v20724_v49  ;;  %v11014_v36 = vld [vmem:[#allocation20 + $0x200] sm:$0xff] }
 0x9ea   : > { %16682 = vmatprep.subr.bf16.mxu0 %v20584_v24  ;;  %v20746_v24 = vpack.c.bf16 %v11016_v22, %v11014_v36  ;;  %v20780_v36 = vpack.c.bf16 %v11028_v6, %v11026_v30  ;;  %v11030_v22 = vld [vmem:[#allocation20 + $0x280] sm:$0xff] }
 0x9ec   : > { %16556 = vmatpush1.bf16.msra.mxu1 %v20728_v25 }
 0x9ed   : > { %16684 = vmatpush1.bf16.msra.mxu0 %v20588_v57  ;;  %16558 = vmatprep.subr.bf16.mxu1 %v20732_v16  ;;  %v20752_v57 = vld [vmem:[#allocation7 + $0x6] ss:$8 sm:$0x3] }
 0x9ee   : > { %16686 = vmatprep.subr.bf16.mxu0 %v20592_v56  ;;  %v10686_v56 = vrot.slane %v20612_v17, %v19757_v40  ;;  %v11022_v17 = vld [vmem:[#allocation20 + $0x240] sm:$0xff] }
 0x9ef   : > { %v20772_v43 = vpack.c.bf16 %v11024_v33, %v11022_v17  ;;  %v11038_v17 = vld [vmem:[#allocation20 + $0x2c0] sm:$0xff]  ;;  %v11040_v33 = vld [vmem:[#allocation20 + $0x2d0] sm:$0xff] }
 0x9f0   : > { %16560 = vmatpush1.bf16.msra.mxu1 %v20736_v9 }
 0x9f1   : > { %16688 = vmatpush1.bf16.msra.mxu0 %v20596_v10  ;;  %16754 = vmatprep.subr.bf16.mxu1 %v20740_v48  ;;  %v11086_v10 = vrot.slane %v20752_v57, %v19760_v37 }
 0x9f2   : > { %16690 = vmatprep.subr.bf16.mxu0 %v20600_v7  ;;  %v20767_v7 = vpack.c.bf16 %v11025_v44, %v11023_v15  ;;  %v11039_v15 = vld [vmem:[#allocation20 + $0x2c8] sm:$0xff]  ;;  %v11041_v44 = vld [vmem:[#allocation20 + $0x2d8] sm:$0xff] }
 0x9f3   : > { %10427 = vmatmul.mubr.f32.vlgmr.msra.gmra.mrb[70].mxu1 %v10355_v47  ;;  %v11037_v47 = vld [vmem:[#allocation20 + $0x2b8] sm:$0xff] }
 0x9f4   : > { %10758 = vmatmul.mubr.f32.vlgmr.msra.gmra.mrb[72].mxu0 %v10686_v56  ;;  %16756 = vmatpush1.bf16.msra.mxu1 %v20746_v24  ;;  %v11036_v56 = vld [vmem:[#allocation20 + $0x2b0] sm:$0xff] }
 0x9f5   : > { %16692 = vmatpush1.bf16.msra.mxu0 %v20604_v5  ;;  %10904 = vmatprep.mubr.f32.mxu0 %v10837_v12  ;;  %v20776_v5 = vpack.c.bf16 %v11029_v61, %v11027_v34  ;;  %v9488_v12 = vrot.slane %v9479_v4, %v19760_v37  ;;  %v11045_v61 = vld [vmem:[#allocation20 + $0x2f8] sm:$0xff] }
 0x9f6   : > { %11153 = vmatprep.mubr.f32.mxu1 %v11086_v10  ;;  %16694 = vmatprep.subr.bf16.mxu0 %v20617_v3  ;;  %v11031_v3 = vld [vmem:[#allocation20 + $0x288] sm:$0xff]  ;;  %v20799_v10 = vpack.c.bf16 %v11036_v56, %v11034_v20  ;;  %v11046_v56 = vld [vmem:[#allocation20 + $0x300] sm:$0xff] }
 0x9f7   : > { %16758 = vmatprep.subr.bf16.mxu1 %v20759_v50 }
 0x9f8   : > { %16760 = vmatpush1.bf16.msra.mxu1 %v20764_v31 }
 0x9f9   : > { %16696 = vmatpush1.bf16.msra.mxu0 %v20624_v11  ;;  %16762 = vmatprep.subr.bf16.mxu1 %v20767_v7  ;;  %v20784_v11 = vpack.c.bf16 %v11033_v27, %v11031_v3  ;;  %v20807_v27 = vpack.c.bf16 %v11040_v33, %v11038_v17  ;;  %v11050_v17 = vld [vmem:[#allocation20 + $0x320] sm:$0xff]  ;;  %v11052_v33 = vld [vmem:[#allocation20 + $0x330] sm:$0xff] }
 0x9fa   : > { %16698 = vmatprep.subr.bf16.mxu0 %v20627_v8  ;;  %v20788_v8 = vpack.c.bf16 %v11032_v62, %v11030_v22  ;;  %v11042_v22 = vld [vmem:[#allocation20 + $0x2e0] sm:$0xff]  ;;  %v11044_v62 = vld [vmem:[#allocation20 + $0x2f0] sm:$0xff] }
 0x9fb   : > { %v20816_v20 = vpack.c.bf16 %v11044_v62, %v11042_v22  ;;  %v11060_v62 = vld [vmem:[#allocation20 + $0x370] sm:$0xff] }
 0x9fc   : > { %16764 = vmatpush1.bf16.msra.mxu1 %v20772_v43 }
 0x9fd   : > { %16700 = vmatpush1.bf16.msra.mxu0 %v20632_v54  ;;  %16766 = vmatprep.subr.bf16.mxu1 %v20776_v5  ;;  %v20793_v54 = vpack.c.bf16 %v11037_v47, %v11035_v60  ;;  %v11049_v47 = vld [vmem:[#allocation20 + $0x318] sm:$0xff] }
 0x9fe   : > { %16702 = vmatprep.subr.bf16.mxu0 %v20636_v45  ;;  %v9484_v45 = vrot.slane %v9479_v4, %v19757_v40 }
 0xa00   : > { %16768 = vmatpush1.bf16.msra.mxu1 %v20780_v36 }
 0xa01   : > { %16704 = vmatpush1.bf16.msra.mxu0 %v20640_v29  ;;  %16770 = vmatprep.subr.bf16.mxu1 %v20784_v11  ;;  %v20803_v29 = vpack.c.bf16 %v11041_v44, %v11039_v15  ;;  %v11048_v15 = vld [vmem:[#allocation20 + $0x310] sm:$0xff] }
 0xa02   : > { %16706 = vmatprep.subr.bf16.mxu0 %v20644_v28  ;;  %v11043_v28 = vld [vmem:[#allocation20 + $0x2e8] sm:$0xff] }
 0xa04   : > { %16772 = vmatpush1.bf16.msra.mxu1 %v20788_v8 }
 0xa05   : > { %16708 = vmatpush1.bf16.msra.mxu0 %v20648_v35  ;;  %16774 = vmatprep.subr.bf16.mxu1 %v20793_v54  ;;  %v20811_v35 = vpack.c.bf16 %v11045_v61, %v11043_v28  ;;  %v20836_v28 = vpack.c.bf16 %v11052_v33, %v11050_v17  ;;  %v11073_v17 = vld [vmem:[#allocation20 + $0x3d8] sm:$0xff] }
 0xa06   : > { %v9472_v34 = vpop.f32.mrb[68].mxu1  ;;  %16710 = vmatprep.subr.bf16.mxu0 %v20652_v46  ;;  %v11047_v46 = vld [vmem:[#allocation20 + $0x308] sm:$0xff] }
 0xa07   : > { %v9491_v30 = vadd.f32 %v9484_v45, %v9472_v34  ;;  %v9474_v6 = vpop.f32.mrb[69].mxu1  ;;  %v11053_v45 = vld [vmem:[#allocation20 + $0x338] sm:$0xff] }
 0xa08   : > { %v9492_v3 = vadd.f32 %v9488_v12, %v9474_v6  ;;  %16776 = vmatpush1.bf16.msra.mxu1 %v20799_v10  ;;  %v20828_v12 = vpack.c.bf16 %v11048_v15, %v11046_v56  ;;  %v11057_v34 = vld [vmem:[#allocation20 + $0x358] sm:$0xff]  ;;  %v11059_v6 = vld [vmem:[#allocation20 + $0x368] sm:$0xff] }
 0xa09   : > { %16712 = vmatpush1.bf16.msra.mxu0 %v20656_v21  ;;  %16778 = vmatprep.subr.bf16.mxu1 %v20803_v29  ;;  %v20820_v21 = vpack.c.bf16 %v11049_v47, %v11047_v46  ;;  %v11065_v46 = vld [vmem:[#allocation20 + $0x398] sm:$0xff]  ;;  %v11067_v56 = vld [vmem:[#allocation20 + $0x3a8] sm:$0xff] }
 0xa0a   : > { %v9495_v60 = vcombine.low %v9491_v30, %v9492_v3  ;;  %16714 = vmatprep.subr.bf16.mxu0 %v20660_v14  ;;  %v11051_v14 = vld [vmem:[#allocation20 + $0x328] sm:$0xff]  ;;  %v11056_v30 = vld [vmem:[#allocation20 + $0x350] sm:$0xff]  ;;  %v11061_v3 = vld [vmem:[#allocation20 + $0x378] sm:$0xff] }
 0xa0b   : > { %v20848_v22 = vpack.c.bf16 %v11061_v3, %v11059_v6  ;;  %v11069_v15 = vld [vmem:[#allocation20 + $0x3b8] sm:$0xff]  ;;  %v11076_v6 = vld [vmem:[#allocation20 + $0x3f0] sm:$0xff]  ;;  %v10950_v3 = vld [vmem:[#allocation20 + $0x8] sm:$0xff] }
 0xa0c   : > { %v9502_v4 = vrot.slane %v9495_v60, %v19777_v41  ;;  %16780 = vmatpush1.bf16.msra.mxu1 %v20807_v27  ;;  %v11063_v60 = vld [vmem:[#allocation20 + $0x388] sm:$0xff] }
 0xa0d   : > { %16716 = vmatpush1.bf16.msra.mxu0 %v20664_v26  ;;  %16782 = vmatprep.subr.bf16.mxu1 %v20811_v35  ;;  %v20832_v26 = vpack.c.bf16 %v11053_v45, %v11051_v14  ;;  %v20856_v47 = vpack.c.bf16 %v11065_v46, %v11063_v60  ;;  %v11068_v14 = vld [vmem:[#allocation20 + $0x3b0] sm:$0xff]  ;;  %v11071_v45 = vld [vmem:[#allocation20 + $0x3c8] sm:$0xff] }
 0xa0e   : > { %v9509_v44 = vrot.slane %v9502_v4, %v19777_v41  ;;  %16718 = vmatprep.subr.bf16.mxu0 %v20668_v51  ;;  %v11055_v51 = vld [vmem:[#allocation20 + $0x348] sm:$0xff]  ;;  %v11064_v4 = vld [vmem:[#allocation20 + $0x390] sm:$0xff]  ;;  %v20872_v33 = vpack.c.bf16 %v11073_v17, %v11071_v45  ;;  %v10960_v17 = vld [vmem:[#allocation20 + $0x58] sm:$0xff] }
 0xa0f   : > { %v20840_v61 = vpack.c.bf16 %v11057_v34, %v11055_v51  ;;  %v11072_v51 = vld [vmem:[#allocation20 + $0x3d0] sm:$0xff]  ;;  %v11075_v34 = vld [vmem:[#allocation20 + $0x3e8] sm:$0xff] }
 0xa10   : > { %12494 = vst.msk [vmem:[%s20386_s14 + $0x2] ss:$8 sm:$0x3] %vm19790_vm4, %v9509_v44  ;;  %16784 = vmatpush1.bf16.msra.mxu1 %v20816_v20  ;;  %v20864_v44 = vpack.c.bf16 %v11069_v15, %v11067_v56  ;;  %v10951_v60 = vld [vmem:[#allocation20 + $0x10] sm:$0xff]  ;;  %v10954_v46 = vld [vmem:[#allocation20 + $0x28] sm:$0xff]  ;;  %v11082_v56 = vrot.slane %v20752_v57, %v19757_v40  ;;  %v10953_v15 = vld [vmem:[#allocation20 + $0x20] sm:$0xff] }
 0xa11   : > { %16720 = vmatpush1.bf16.msra.mxu0 %v20672_v19  ;;  %16786 = vmatprep.subr.bf16.mxu1 %v20820_v21  ;;  %v11054_v19 = vld [vmem:[#allocation20 + $0x340] sm:$0xff]  ;;  %v10958_v45 = vld [vmem:[#allocation20 + $0x48] sm:$0xff] }
 0xa12   : > { %16722 = vmatprep.subr.bf16.mxu0 %v20676_v2  ;;  %v20844_v2 = vpack.c.bf16 %v11056_v30, %v11054_v19  ;;  %v11077_v19 = vld [vmem:[#allocation20 + $0x3f8] sm:$0xff] }
 0xa13   : > { %v20880_v30 = vpack.c.bf16 %v11077_v19, %v11075_v34  ;;  %v10962_v34 = vld [vmem:[#allocation20 + $0x68] sm:$0xff]  ;;  %v10964_v19 = vld [vmem:[#allocation20 + $0x78] sm:$0xff] }
 0xa14   : > { %16788 = vmatpush1.bf16.msra.mxu1 %v20828_v12 }
 0xa15   : > { %16724 = vmatpush1.bf16.msra.mxu0 %v20680_v59  ;;  %16790 = vmatprep.subr.bf16.mxu1 %v20832_v26  ;;  %v11058_v59 = vld [vmem:[#allocation20 + $0x360] sm:$0xff] }
 0xa16   : > { %16726 = vmatprep.subr.bf16.mxu0 %v20684_v38  ;;  %v20852_v38 = vpack.c.bf16 %v11060_v62, %v11058_v59  ;;  %v10952_v59 = vld [vmem:[#allocation20 + $0x18] sm:$0xff] }
 0xa17   : > { %v20888_v62 = vpack.c.bf16 %v10952_v59, %v10950_v3  ;;  %v10963_v3 = vld [vmem:[#allocation20 + $0x70] sm:$0xff]  ;;  %v10966_v59 = vld [vmem:[#allocation20 + $0x88] sm:$0xff] }
 0xa18   : > { %16792 = vmatpush1.bf16.msra.mxu1 %v20836_v28 }
 0xa19   : > { %16728 = vmatpush1.bf16.msra.mxu0 %v20688_v58  ;;  %16794 = vmatprep.subr.bf16.mxu1 %v20840_v61  ;;  %v11062_v58 = vld [vmem:[#allocation20 + $0x380] sm:$0xff] }
 0xa1a   : > { %16730 = vmatprep.subr.bf16.mxu0 %v20692_v42  ;;  %v20860_v42 = vpack.c.bf16 %v11064_v4, %v11062_v58  ;;  %v10956_v58 = vld [vmem:[#allocation20 + $0x38] sm:$0xff]  ;;  %v20894_v4 = vld [vmem:[#allocation7 + $0x5] ss:$8 sm:$0x3] }
 0xa1b   : > { %v11168_v57 = vrot.slane %v20894_v4, %v19760_v37 }
 0xa1c   : > { %16796 = vmatpush1.bf16.msra.mxu1 %v20844_v2 }
 0xa1d   : > { %16732 = vmatpush1.bf16.msra.mxu0 %v20696_v53  ;;  %16798 = vmatprep.subr.bf16.mxu1 %v20848_v22  ;;  %v11066_v53 = vld [vmem:[#allocation20 + $0x3a0] sm:$0xff] }
 0xa1e   : > { %16734 = vmatprep.subr.bf16.mxu0 %v20700_v13  ;;  %v20868_v13 = vpack.c.bf16 %v11068_v14, %v11066_v53  ;;  %v10955_v53 = vld [vmem:[#allocation20 + $0x30] sm:$0xff]  ;;  %v20905_v14 = vpack.c.bf16 %v10956_v58, %v10954_v46  ;;  %v10970_v58 = vld [vmem:[#allocation20 + $0xa8] sm:$0xff] }
 0xa1f   : > { %v10967_v46 = vld [vmem:[#allocation20 + $0x90] sm:$0xff] }
 0xa20   : > { %16800 = vmatpush1.bf16.msra.mxu1 %v20852_v38 }
 0xa21   : > { %16736 = vmatpush1.bf16.msra.mxu0 %v20704_v32  ;;  %16802 = vmatprep.subr.bf16.mxu1 %v20856_v47  ;;  %v11070_v32 = vld [vmem:[#allocation20 + $0x3c0] sm:$0xff] }
 0xa22   : > { %16738 = vmatprep.subr.bf16.mxu0 %v20708_v63  ;;  %v20876_v63 = vpack.c.bf16 %v11072_v51, %v11070_v32  ;;  %v20912_v32 = vpack.c.bf16 %v10955_v53, %v10953_v15  ;;  %v10959_v51 = vld [vmem:[#allocation20 + $0x50] sm:$0xff]  ;;  %v9957_v15 = vld [vmem:[%s21424_s19] sm:$0x3]  ;;  %v10969_v53 = vld [vmem:[#allocation20 + $0xa0] sm:$0xff] }
 0xa24   : > { %16804 = vmatpush1.bf16.msra.mxu1 %v20860_v42 }
 0xa25   : > { %16740 = vmatpush1.bf16.msra.mxu0 %v20712_v23  ;;  %16806 = vmatprep.subr.bf16.mxu1 %v20864_v44  ;;  %v11074_v23 = vld [vmem:[#allocation20 + $0x3e0] sm:$0xff] }
 0xa26   : > { %16742 = vmatprep.subr.bf16.mxu0 %v20716_v18  ;;  %v20884_v18 = vpack.c.bf16 %v11076_v6, %v11074_v23  ;;  %v10961_v6 = vld [vmem:[#allocation20 + $0x60] sm:$0xff] }
 0xa28   : > { %16808 = vmatpush1.bf16.msra.mxu1 %v20868_v13 }
 0xa29   : > { %16744 = vmatpush1.bf16.msra.mxu0 %v20720_v39  ;;  %16810 = vmatprep.subr.bf16.mxu1 %v20872_v33  ;;  %v10949_v39 = vld [vmem:[#allocation20] sm:$0xff] }
 0xa2a   : > { %16746 = vmatprep.subr.bf16.mxu0 %v20724_v49  ;;  %v20892_v49 = vpack.c.bf16 %v10951_v60, %v10949_v39  ;;  %v10968_v39 = vld [vmem:[#allocation20 + $0x98] sm:$0xff]  ;;  %v10965_v60 = vld [vmem:[#allocation20 + $0x80] sm:$0xff] }
 0xa2c   : > { %16812 = vmatpush1.bf16.msra.mxu1 %v20876_v63 }
 0xa2d   : > { %16748 = vmatpush1.bf16.msra.mxu0 %v20728_v25  ;;  %16814 = vmatprep.subr.bf16.mxu1 %v20880_v30  ;;  %v20900_v25 = vld [vmem:[#allocation7 + $0x7] ss:$8 sm:$0x3] }
 0xa2e   : > { %16750 = vmatprep.subr.bf16.mxu0 %v20732_v16  ;;  %v10833_v16 = vrot.slane %v20744_v52, %v19757_v40  ;;  %v10957_v52 = vld [vmem:[#allocation20 + $0x40] sm:$0xff] }
 0xa2f   : > { %v20920_v23 = vpack.c.bf16 %v10959_v51, %v10957_v52  ;;  %v10973_v52 = vld [vmem:[#allocation20 + $0xc0] sm:$0xff]  ;;  %v10975_v51 = vld [vmem:[#allocation20 + $0xd0] sm:$0xff] }
 0xa30   : > { %16816 = vmatpush1.bf16.msra.mxu1 %v20884_v18 }
 0xa31   : > { %16752 = vmatpush1.bf16.msra.mxu0 %v20736_v9  ;;  %16818 = vmatprep.subr.bf16.mxu1 %v20888_v62  ;;  %v11564_v9 = vrot.slane %v20900_v25, %v19760_v37 }
 0xa32   : > { %16946 = vmatprep.subr.bf16.mxu0 %v20740_v48  ;;  %v20915_v48 = vpack.c.bf16 %v10960_v17, %v10958_v45  ;;  %v10974_v45 = vld [vmem:[#allocation20 + $0xc8] sm:$0xff]  ;;  %v10976_v17 = vld [vmem:[#allocation20 + $0xd8] sm:$0xff] }
 0xa33   : > { %11154 = vmatmul.mubr.f32.vlgmr.msra.gmra.mrb[72].mxu1 %v11082_v56  ;;  %v10972_v56 = vld [vmem:[#allocation20 + $0xb8] sm:$0xff] }
 0xa34   : > { %10905 = vmatmul.mubr.f32.vlgmr.msra.gmra.mrb[72].mxu0 %v10833_v16  ;;  %16820 = vmatpush1.bf16.msra.mxu1 %v20892_v49  ;;  %v10971_v16 = vld [vmem:[#allocation20 + $0xb0] sm:$0xff] }
 0xa35   : > { %11235 = vmatprep.mubr.f32.mxu1 %v11168_v57  ;;  %16948 = vmatpush1.bf16.msra.mxu0 %v20746_v24  ;;  %v20924_v24 = vpack.c.bf16 %v10964_v19, %v10962_v34  ;;  %v20946_v57 = vpack.c.bf16 %v10971_v16, %v10969_v53  ;;  %v10980_v34 = vld [vmem:[#allocation20 + $0xf8] sm:$0xff]  ;;  %v10981_v16 = vld [vmem:[#allocation20 + $0x100] sm:$0xff] }
 0xa36   : > { %11631 = vmatprep.mubr.f32.mxu0 %v11564_v9  ;;  %16822 = vmatprep.subr.bf16.mxu1 %v20905_v14  ;;  %v20951_v9 = vpack.c.bf16 %v10976_v17, %v10974_v45  ;;  %v10983_v45 = vld [vmem:[#allocation20 + $0x110] sm:$0xff]  ;;  %v10988_v17 = vld [vmem:[#allocation20 + $0x138] sm:$0xff] }
 0xa37   : > { %16950 = vmatprep.subr.bf16.mxu0 %v20759_v50  ;;  %v20928_v50 = vpack.c.bf16 %v10963_v3, %v10961_v6 }
 0xa38   : > { %16824 = vmatpush1.bf16.msra.mxu1 %v20912_v32 }
 0xa39   : > { %16952 = vmatpush1.bf16.msra.mxu0 %v20764_v31  ;;  %16826 = vmatprep.subr.bf16.mxu1 %v20915_v48  ;;  %v20932_v31 = vpack.c.bf16 %v10968_v39, %v10966_v59  ;;  %v20955_v59 = vpack.c.bf16 %v10975_v51, %v10973_v52  ;;  %v10985_v52 = vld [vmem:[#allocation20 + $0x120] sm:$0xff]  ;;  %v10987_v51 = vld [vmem:[#allocation20 + $0x130] sm:$0xff] }
 0xa3a   : > { %16954 = vmatprep.subr.bf16.mxu0 %v20767_v7  ;;  %v20936_v7 = vpack.c.bf16 %v10967_v46, %v10965_v60  ;;  %v10977_v60 = vld [vmem:[#allocation20 + $0xe0] sm:$0xff]  ;;  %v10979_v46 = vld [vmem:[#allocation20 + $0xf0] sm:$0xff] }
 0xa3c   : > { %16828 = vmatpush1.bf16.msra.mxu1 %v20920_v23 }
 0xa3d   : > { %16956 = vmatpush1.bf16.msra.mxu0 %v20772_v43  ;;  %16830 = vmatprep.subr.bf16.mxu1 %v20924_v24  ;;  %v20941_v43 = vpack.c.bf16 %v10972_v56, %v10970_v58  ;;  %v10984_v58 = vld [vmem:[#allocation20 + $0x118] sm:$0xff] }
 0xa3e   : > { %16958 = vmatprep.subr.bf16.mxu0 %v20776_v5  ;;  %v9962_v5 = vrot.slane %v9957_v15, %v19757_v40 }
 0xa40   : > { %16832 = vmatpush1.bf16.msra.mxu1 %v20928_v50 }
 0xa41   : > { %16960 = vmatpush1.bf16.msra.mxu0 %v20780_v36  ;;  %16834 = vmatprep.subr.bf16.mxu1 %v20932_v31  ;;  %v9966_v36 = vrot.slane %v9957_v15, %v19760_v37  ;;  %v20963_v15 = vpack.c.bf16 %v10979_v46, %v10977_v60  ;;  %v10995_v46 = vld [vmem:[#allocation20 + $0x170] sm:$0xff] }
 0xa42   : > { %16962 = vmatprep.subr.bf16.mxu0 %v20784_v11  ;;  %v10978_v11 = vld [vmem:[#allocation20 + $0xe8] sm:$0xff] }
 0xa43   : > { %v20959_v39 = vpack.c.bf16 %v10980_v34, %v10978_v11  ;;  %v10992_v11 = vld [vmem:[#allocation20 + $0x158] sm:$0xff]  ;;  %v20984_v34 = vpack.c.bf16 %v10987_v51, %v10985_v52 }
 0xa44   : > { %16836 = vmatpush1.bf16.msra.mxu1 %v20936_v7  ;;  %v11008_v52 = vld [vmem:[#allocation20 + $0x1d8] sm:$0xff] }
 0xa45   : > { %16964 = vmatpush1.bf16.msra.mxu0 %v20788_v8  ;;  %16838 = vmatprep.subr.bf16.mxu1 %v20941_v43 }
 0xa46   : > { %16966 = vmatprep.subr.bf16.mxu0 %v20793_v54  ;;  %v10982_v54 = vld [vmem:[#allocation20 + $0x108] sm:$0xff] }
 0xa47   : > { %v9950_v19 = vpop.f32.mrb[70].mxu0 }
 0xa48   : > { %v9969_v6 = vadd.f32 %v9962_v5, %v9950_v19  ;;  %v9952_v3 = vpop.f32.mrb[71].mxu0  ;;  %16840 = vmatpush1.bf16.msra.mxu1 %v20946_v57 }
 0xa49   : > { %v9970_v8 = vadd.f32 %v9966_v36, %v9952_v3  ;;  %16968 = vmatpush1.bf16.msra.mxu0 %v20799_v10  ;;  %16842 = vmatprep.subr.bf16.mxu1 %v20951_v9  ;;  %v20968_v10 = vpack.c.bf16 %v10984_v58, %v10982_v54  ;;  %v20973_v36 = vpack.c.bf16 %v10983_v45, %v10981_v16  ;;  %v10994_v3 = vld [vmem:[#allocation20 + $0x168] sm:$0xff]  ;;  %v11000_v58 = vld [vmem:[#allocation20 + $0x198] sm:$0xff] }
 0xa4a   : > { %16970 = vmatprep.subr.bf16.mxu0 %v20803_v29  ;;  %v10986_v29 = vld [vmem:[#allocation20 + $0x128] sm:$0xff]  ;;  %v11004_v45 = vld [vmem:[#allocation20 + $0x1b8] sm:$0xff] }
 0xa4b   : > { %v9973_v56 = vcombine.low %v9969_v6, %v9970_v8  ;;  %v10991_v6 = vld [vmem:[#allocation20 + $0x150] sm:$0xff]  ;;  %v10996_v8 = vld [vmem:[#allocation20 + $0x178] sm:$0xff]  ;;  %v10998_v54 = vld [vmem:[#allocation20 + $0x188] sm:$0xff] }
 0xa4c   : > { %16844 = vmatpush1.bf16.msra.mxu1 %v20955_v59  ;;  %v20996_v60 = vpack.c.bf16 %v10996_v8, %v10994_v3  ;;  %v11002_v16 = vld [vmem:[#allocation20 + $0x1a8] sm:$0xff]  ;;  %v11011_v3 = vld [vmem:[#allocation20 + $0x1f0] sm:$0xff] }
 0xa4d   : > { %v9980_v53 = vrot.slane %v9973_v56, %v19777_v41  ;;  %16972 = vmatpush1.bf16.msra.mxu0 %v20807_v27  ;;  %16846 = vmatprep.subr.bf16.mxu1 %v20959_v39  ;;  %v20980_v27 = vpack.c.bf16 %v10988_v17, %v10986_v29  ;;  %v21004_v56 = vpack.c.bf16 %v11000_v58, %v10998_v54  ;;  %v11003_v17 = vld [vmem:[#allocation20 + $0x1b0] sm:$0xff]  ;;  %v11244_v8 = vld [vmem:[#allocation20 + $0x408] sm:$0xff] }
 0xa4e   : > { %16974 = vmatprep.subr.bf16.mxu0 %v20811_v35  ;;  %v10990_v35 = vld [vmem:[#allocation20 + $0x148] sm:$0xff]  ;;  %v21012_v29 = vpack.c.bf16 %v11004_v45, %v11002_v16  ;;  %v11245_v54 = vld [vmem:[#allocation20 + $0x410] sm:$0xff]  ;;  %v11164_v16 = vrot.slane %v20894_v4, %v19757_v40  ;;  %v11247_v45 = vld [vmem:[#allocation20 + $0x420] sm:$0xff] }
 0xa4f   : > { %v9987_v5 = vrot.slane %v9980_v53, %v19777_v41  ;;  %v20988_v19 = vpack.c.bf16 %v10992_v11, %v10990_v35  ;;  %v10999_v53 = vld [vmem:[#allocation20 + $0x190] sm:$0xff]  ;;  %v11010_v11 = vld [vmem:[#allocation20 + $0x1e8] sm:$0xff] }
 0xa50   : > { %16848 = vmatpush1.bf16.msra.mxu1 %v20963_v15  ;;  %v11007_v35 = vld [vmem:[#allocation20 + $0x1d0] sm:$0xff]  ;;  %v11248_v58 = vld [vmem:[#allocation20 + $0x428] sm:$0xff] }
 0xa51   : > { %12495 = vst.msk [vmem:[%s20386_s14 + $0x3] ss:$8 sm:$0x3] %vm19790_vm4, %v9987_v5  ;;  %16976 = vmatpush1.bf16.msra.mxu0 %v20816_v20  ;;  %16850 = vmatprep.subr.bf16.mxu1 %v20968_v10  ;;  %v10989_v20 = vld [vmem:[#allocation20 + $0x140] sm:$0xff]  ;;  %v11006_v5 = vld [vmem:[#allocation20 + $0x1c8] sm:$0xff] }
 0xa52   : > { %16978 = vmatprep.subr.bf16.mxu0 %v20820_v21  ;;  %v20992_v21 = vpack.c.bf16 %v10991_v6, %v10989_v20  ;;  %v21020_v51 = vpack.c.bf16 %v11008_v52, %v11006_v5  ;;  %v11012_v20 = vld [vmem:[#allocation20 + $0x1f8] sm:$0xff]  ;;  %v11252_v5 = vld [vmem:[#allocation20 + $0x448] sm:$0xff] }
 0xa53   : > { %v21028_v6 = vpack.c.bf16 %v11012_v20, %v11010_v11  ;;  %v11254_v52 = vld [vmem:[#allocation20 + $0x458] sm:$0xff]  ;;  %v11253_v11 = vld [vmem:[#allocation20 + $0x450] sm:$0xff] }
 0xa54   : > { %16852 = vmatpush1.bf16.msra.mxu1 %v20973_v36  ;;  %v11258_v20 = vld [vmem:[#allocation20 + $0x478] sm:$0xff] }
 0xa55   : > { %16980 = vmatpush1.bf16.msra.mxu0 %v20828_v12  ;;  %16854 = vmatprep.subr.bf16.mxu1 %v20980_v27  ;;  %v10993_v12 = vld [vmem:[#allocation20 + $0x160] sm:$0xff] }
 0xa56   : > { %16982 = vmatprep.subr.bf16.mxu0 %v20832_v26  ;;  %v21000_v26 = vpack.c.bf16 %v10995_v46, %v10993_v12  ;;  %v11246_v12 = vld [vmem:[#allocation20 + $0x418] sm:$0xff] }
 0xa57   : > { %v16881_v46 = vpack.c.bf16 %v11246_v12, %v11244_v8  ;;  %v11255_v8 = vld [vmem:[#allocation20 + $0x460] sm:$0xff]  ;;  %v11257_v12 = vld [vmem:[#allocation20 + $0x470] sm:$0xff] }
 0xa58   : > { %16856 = vmatpush1.bf16.msra.mxu1 %v20984_v34 }
 0xa59   : > { %16984 = vmatpush1.bf16.msra.mxu0 %v20836_v28  ;;  %16858 = vmatprep.subr.bf16.mxu1 %v20988_v19  ;;  %v10997_v28 = vld [vmem:[#allocation20 + $0x180] sm:$0xff] }
 0xa5a   : > { %16986 = vmatprep.subr.bf16.mxu0 %v20840_v61  ;;  %v21008_v61 = vpack.c.bf16 %v10999_v53, %v10997_v28  ;;  %v11250_v28 = vld [vmem:[#allocation20 + $0x438] sm:$0xff]  ;;  %v21038_v53 = vld [vmem:[#allocation7 + $0x7] ss:$8 sm:$0x3] }
 0xa5c   : > { %16860 = vmatpush1.bf16.msra.mxu1 %v20992_v21 }
 0xa5d   : > { %16988 = vmatpush1.bf16.msra.mxu0 %v20844_v2  ;;  %16862 = vmatprep.subr.bf16.mxu1 %v20996_v60  ;;  %v11001_v2 = vld [vmem:[#allocation20 + $0x1a0] sm:$0xff] }
 0xa5e   : > { %16990 = vmatprep.subr.bf16.mxu0 %v20848_v22  ;;  %v21016_v22 = vpack.c.bf16 %v11003_v17, %v11001_v2  ;;  %v11249_v2 = vld [vmem:[#allocation20 + $0x430] sm:$0xff]  ;;  %v16885_v17 = vpack.c.bf16 %v11250_v28, %v11248_v58  ;;  %v11259_v58 = vld [vmem:[#allocation20 + $0x480] sm:$0xff]  ;;  %v11264_v28 = vld [vmem:[#allocation20 + $0x4a8] sm:$0xff] }
 0xa5f   : > { %v16887_v4 = vpack.c.bf16 %v11249_v2, %v11247_v45  ;;  %v11265_v45 = vld [vmem:[#allocation20 + $0x4b0] sm:$0xff]  ;;  %v11268_v2 = vld [vmem:[#allocation20 + $0x4c8] sm:$0xff] }
 0xa60   : > { %16864 = vmatpush1.bf16.msra.mxu1 %v21000_v26 }
 0xa61   : > { %16992 = vmatpush1.bf16.msra.mxu0 %v20852_v38  ;;  %16866 = vmatprep.subr.bf16.mxu1 %v21004_v56  ;;  %v11005_v38 = vld [vmem:[#allocation20 + $0x1c0] sm:$0xff] }
 0xa62   : > { %16994 = vmatprep.subr.bf16.mxu0 %v20856_v47  ;;  %v21024_v47 = vpack.c.bf16 %v11007_v35, %v11005_v38  ;;  %v11315_v38 = vrot.slane %v21038_v53, %v19760_v37  ;;  %v16889_v35 = vpack.c.bf16 %v11254_v52, %v11252_v5  ;;  %v11269_v5 = vld [vmem:[#allocation20 + $0x4d0] sm:$0xff]  ;;  %v11272_v52 = vld [vmem:[#allocation20 + $0x4e8] sm:$0xff] }
 0xa64   : > { %16868 = vmatpush1.bf16.msra.mxu1 %v21008_v61 }
 0xa65   : > { %16996 = vmatpush1.bf16.msra.mxu0 %v20860_v42  ;;  %16870 = vmatprep.subr.bf16.mxu1 %v21012_v29  ;;  %v11009_v42 = vld [vmem:[#allocation20 + $0x1e0] sm:$0xff] }
 0xa66   : > { %16998 = vmatprep.subr.bf16.mxu0 %v20864_v44  ;;  %v21032_v44 = vpack.c.bf16 %v11011_v3, %v11009_v42 }
 0xa68   : > { %16872 = vmatpush1.bf16.msra.mxu1 %v21016_v22 }
 0xa69   : > { %17000 = vmatpush1.bf16.msra.mxu0 %v20868_v13  ;;  %16874 = vmatprep.subr.bf16.mxu1 %v21020_v51  ;;  %v11243_v13 = vld [vmem:[#allocation20 + $0x400] sm:$0xff] }
 0xa6a   : > { %17002 = vmatprep.subr.bf16.mxu0 %v20872_v33  ;;  %v16883_v33 = vpack.c.bf16 %v11245_v54, %v11243_v13  ;;  %v16895_v13 = vpack.c.bf16 %v11257_v12, %v11255_v8  ;;  %v11281_v8 = vld [vmem:[#allocation20 + $0x530] sm:$0xff]  ;;  %v11284_v12 = vld [vmem:[#allocation20 + $0x548] sm:$0xff] }
 0xa6c   : > { %16876 = vmatpush1.bf16.msra.mxu1 %v21024_v47 }
 0xa6d   : > { %17004 = vmatpush1.bf16.msra.mxu0 %v20876_v63  ;;  %16878 = vmatprep.subr.bf16.mxu1 %v21028_v6  ;;  %v21043_v63 = vld [vmem:[#allocation7 + $0x6] ss:$8 sm:$0x3] }
 0xa6e   : > { %17006 = vmatprep.subr.bf16.mxu0 %v20880_v30  ;;  %v11560_v30 = vrot.slane %v20900_v25, %v19757_v40  ;;  %v11251_v25 = vld [vmem:[#allocation20 + $0x440] sm:$0xff] }
 0xa6f   : > { %v16891_v42 = vpack.c.bf16 %v11253_v11, %v11251_v25  ;;  %v11275_v11 = vld [vmem:[#allocation20 + $0x500] sm:$0xff] }
 0xa70   : > { %16880 = vmatpush1.bf16.msra.mxu1 %v21032_v44 }
 0xa71   : > { %17008 = vmatpush1.bf16.msra.mxu0 %v20884_v18  ;;  %16882 = vmatprep.subr.bf16.mxu1 %v16881_v46  ;;  %v11646_v18 = vrot.slane %v21043_v63, %v19760_v37  ;;  %v11262_v46 = vld [vmem:[#allocation20 + $0x498] sm:$0xff] }
 0xa72   : > { %17010 = vmatprep.subr.bf16.mxu0 %v20888_v62  ;;  %v11256_v62 = vld [vmem:[#allocation20 + $0x468] sm:$0xff] }
 0xa73   : > { %11236 = vmatmul.mubr.f32.vlgmr.msra.gmra.mrb[72].mxu1 %v11164_v16  ;;  %v16893_v3 = vpack.c.bf16 %v11258_v20, %v11256_v62  ;;  %v11263_v16 = vld [vmem:[#allocation20 + $0x4a0] sm:$0xff]  ;;  %v11277_v62 = vld [vmem:[#allocation20 + $0x510] sm:$0xff]  ;;  %v11280_v20 = vld [vmem:[#allocation20 + $0x528] sm:$0xff] }
 0xa74   : > { %11632 = vmatmul.mubr.f32.vlgmr.msra.gmra.mrb[74].mxu0 %v11560_v30  ;;  %16884 = vmatpush1.bf16.msra.mxu1 %v16883_v33  ;;  %v16903_v30 = vpack.c.bf16 %v11265_v45, %v11263_v16  ;;  %v11293_v16 = vld [vmem:[#allocation20 + $0x590] sm:$0xff]  ;;  %v11296_v45 = vld [vmem:[#allocation20 + $0x5a8] sm:$0xff] }
 0xa75   : > { %11382 = vmatprep.mubr.f32.mxu1 %v11315_v38  ;;  %17012 = vmatpush1.bf16.msra.mxu0 %v20892_v49  ;;  %v11260_v49 = vld [vmem:[#allocation20 + $0x488] sm:$0xff] }
 0xa76   : > { %11713 = vmatprep.mubr.f32.mxu0 %v11646_v18  ;;  %16886 = vmatprep.subr.bf16.mxu1 %v16885_v17  ;;  %v16897_v54 = vpack.c.bf16 %v11262_v46, %v11260_v49  ;;  %v11267_v17 = vld [vmem:[#allocation20 + $0x4c0] sm:$0xff] }
 0xa77   : > { %17014 = vmatprep.subr.bf16.mxu0 %v20905_v14  ;;  %v11261_v14 = vld [vmem:[#allocation20 + $0x490] sm:$0xff]  ;;  %v16907_v38 = vpack.c.bf16 %v11269_v5, %v11267_v17  ;;  %v11271_v18 = vld [vmem:[#allocation20 + $0x4e0] sm:$0xff] }
 0xa78   : > { %16888 = vmatpush1.bf16.msra.mxu1 %v16887_v4  ;;  %v16899_v33 = vpack.c.bf16 %v11261_v14, %v11259_v58  ;;  %v11273_v4 = vld [vmem:[#allocation20 + $0x4f0] sm:$0xff]  ;;  %v11283_v46 = vld [vmem:[#allocation20 + $0x540] sm:$0xff] }
 0xa79   : > { %17016 = vmatpush1.bf16.msra.mxu0 %v20912_v32  ;;  %16890 = vmatprep.subr.bf16.mxu1 %v16889_v35  ;;  %v11266_v32 = vld [vmem:[#allocation20 + $0x4b8] sm:$0xff]  ;;  %v11276_v35 = vld [vmem:[#allocation20 + $0x508] sm:$0xff]  ;;  %v16911_v25 = vpack.c.bf16 %v11273_v4, %v11271_v18  ;;  %v11287_v14 = vld [vmem:[#allocation20 + $0x560] sm:$0xff] }
 0xa7a   : > { %17018 = vmatprep.subr.bf16.mxu0 %v20915_v48  ;;  %v16901_v48 = vpack.c.bf16 %v11266_v32, %v11264_v28  ;;  %v11289_v28 = vld [vmem:[#allocation20 + $0x570] sm:$0xff]  ;;  %v11292_v32 = vld [vmem:[#allocation20 + $0x588] sm:$0xff]  ;;  %v11299_v5 = vld [vmem:[#allocation20 + $0x5c0] sm:$0xff] }
 0xa7b   : > { %v12509_v4 = vld [vmem:[%s21425_s3 + $0x88] sm:$0xff] }
 0xa7c   : > { %16892 = vmatpush1.bf16.msra.mxu1 %v16891_v42  ;;  %v16915_v42 = vpack.c.bf16 %v11277_v62, %v11275_v11  ;;  %v12502_v11 = vld [vmem:[%s21425_s3 + $0x50] sm:$0xff]  ;;  %v12503_v62 = vld [vmem:[%s21425_s3 + $0x58] sm:$0xff] }
 0xa7d   : > { %17020 = vmatpush1.bf16.msra.mxu0 %v20920_v23  ;;  %16894 = vmatprep.subr.bf16.mxu1 %v16893_v3  ;;  %v11270_v23 = vld [vmem:[#allocation20 + $0x4d8] sm:$0xff]  ;;  %v11279_v3 = vld [vmem:[#allocation20 + $0x520] sm:$0xff] }
 0xa7e   : > { %17022 = vmatprep.subr.bf16.mxu0 %v20924_v24  ;;  %v16905_v24 = vpack.c.bf16 %v11270_v23, %v11268_v2  ;;  %v16919_v49 = vpack.c.bf16 %v11281_v8, %v11279_v3  ;;  %v11295_v23 = vld [vmem:[#allocation20 + $0x5a0] sm:$0xff] }
 0xa7f   : > { %v12514_v8 = vld [vmem:[%s21425_s3 + $0xb0] sm:$0xff] }
 0xa80   : > { %16896 = vmatpush1.bf16.msra.mxu1 %v16895_v13  ;;  %v11285_v13 = vld [vmem:[#allocation20 + $0x550] sm:$0xff] }
 0xa81   : > { %17024 = vmatpush1.bf16.msra.mxu0 %v20928_v50  ;;  %16898 = vmatprep.subr.bf16.mxu1 %v16897_v54  ;;  %v11274_v50 = vld [vmem:[#allocation20 + $0x4f8] sm:$0xff]  ;;  %v11288_v54 = vld [vmem:[#allocation20 + $0x568] sm:$0xff]  ;;  %v16923_v58 = vpack.c.bf16 %v11285_v13, %v11283_v46 }
 0xa82   : > { %17026 = vmatprep.subr.bf16.mxu0 %v20932_v31  ;;  %v16909_v31 = vpack.c.bf16 %v11274_v50, %v11272_v52  ;;  %v11301_v52 = vld [vmem:[#allocation20 + $0x5d0] sm:$0xff]  ;;  %v11306_v50 = vld [vmem:[#allocation20 + $0x5f8] sm:$0xff]  ;;  %v10435_v13 = vld [vmem:[%s21424_s19] sm:$0x3] }
 0xa84   : > { %16900 = vmatpush1.bf16.msra.mxu1 %v16899_v33  ;;  %v16927_v33 = vpack.c.bf16 %v11289_v28, %v11287_v14 }
 0xa85   : > { %17028 = vmatpush1.bf16.msra.mxu0 %v20936_v7  ;;  %16902 = vmatprep.subr.bf16.mxu1 %v16901_v48  ;;  %v11278_v7 = vld [vmem:[#allocation20 + $0x518] sm:$0xff]  ;;  %v11291_v48 = vld [vmem:[#allocation20 + $0x580] sm:$0xff] }
 0xa86   : > { %17030 = vmatprep.subr.bf16.mxu0 %v20941_v43  ;;  %v16913_v43 = vpack.c.bf16 %v11278_v7, %v11276_v35  ;;  %v16931_v2 = vpack.c.bf16 %v11293_v16, %v11291_v48  ;;  %v12501_v35 = vld [vmem:[%s21425_s3 + $0x48] sm:$0xff]  ;;  %v10913_v16 = vld [vmem:[%s21424_s19] sm:$0x3] }
 0xa88   : > { %16904 = vmatpush1.bf16.msra.mxu1 %v16903_v30  ;;  %v11297_v30 = vld [vmem:[#allocation20 + $0x5b0] sm:$0xff] }
 0xa89   : > { %17032 = vmatpush1.bf16.msra.mxu0 %v20946_v57  ;;  %16906 = vmatprep.subr.bf16.mxu1 %v16905_v24  ;;  %v11282_v57 = vld [vmem:[#allocation20 + $0x538] sm:$0xff]  ;;  %v11300_v24 = vld [vmem:[#allocation20 + $0x5c8] sm:$0xff]  ;;  %v16935_v17 = vpack.c.bf16 %v11297_v30, %v11295_v23 }
 0xa8a   : > { %17034 = vmatprep.subr.bf16.mxu0 %v20951_v9  ;;  %v16917_v9 = vpack.c.bf16 %v11282_v57, %v11280_v20  ;;  %v12512_v20 = vld [vmem:[%s21425_s3 + $0xa0] sm:$0xff]  ;;  %v12513_v57 = vld [vmem:[%s21425_s3 + $0xa8] sm:$0xff] }
 0xa8c   : > { %16908 = vmatpush1.bf16.msra.mxu1 %v16907_v38 }
 0xa8d   : > { %17036 = vmatpush1.bf16.msra.mxu0 %v20955_v59  ;;  %16910 = vmatprep.subr.bf16.mxu1 %v16909_v31  ;;  %v11286_v59 = vld [vmem:[#allocation20 + $0x558] sm:$0xff]  ;;  %v11303_v31 = vld [vmem:[#allocation20 + $0x5e0] sm:$0xff] }
 0xa8e   : > { %17038 = vmatprep.subr.bf16.mxu0 %v20959_v39  ;;  %v16921_v39 = vpack.c.bf16 %v11286_v59, %v11284_v12  ;;  %v12515_v12 = vld [vmem:[%s21425_s3 + $0xb8] sm:$0xff]  ;;  %v12506_v59 = vld [vmem:[%s21425_s3 + $0x70] sm:$0xff] }
 0xa90   : > { %16912 = vmatpush1.bf16.msra.mxu1 %v16911_v25  ;;  %v12510_v25 = vld [vmem:[%s21425_s3 + $0x90] sm:$0xff] }
 0xa91   : > { %17040 = vmatpush1.bf16.msra.mxu0 %v20963_v15  ;;  %16914 = vmatprep.subr.bf16.mxu1 %v16913_v43  ;;  %v11290_v15 = vld [vmem:[#allocation20 + $0x578] sm:$0xff]  ;;  %v12511_v43 = vld [vmem:[%s21425_s3 + $0x98] sm:$0xff] }
 0xa92   : > { %17042 = vmatprep.subr.bf16.mxu0 %v20968_v10  ;;  %v16925_v10 = vpack.c.bf16 %v11290_v15, %v11288_v54  ;;  %v11765_v54 = vld [vmem:[%s19151_s2 + $0x1] sm:$0x1]  ;;  %v11755_v15 = vld [vmem:[%s19151_s2] sm:$0x1] }
 0xa94   : > { %16916 = vmatpush1.bf16.msra.mxu1 %v16915_v42  ;;  %v12505_v42 = vld [vmem:[%s21425_s3 + $0x68] sm:$0xff] }
 0xa95   : > { %17044 = vmatpush1.bf16.msra.mxu0 %v20973_v36  ;;  %16918 = vmatprep.subr.bf16.mxu1 %v16917_v9  ;;  %v11294_v36 = vld [vmem:[#allocation20 + $0x598] sm:$0xff]  ;;  %v17080_v9 = vpack.c.bf16 %v12513_v57, %v12512_v20  ;;  %v11921_v20 = vld [vmem:[%s21427_s26] sm:$0x1]  ;;  %s12528_s26 = sshll.u32 %s18126_s18, 6 }
 0xa96   : > { %17046 = vmatprep.subr.bf16.mxu0 %v20980_v27  ;;  %v16929_v27 = vpack.c.bf16 %v11294_v36, %v11292_v32  ;;  %s21169_s5 = scalar_lea.hbm %s21379_s12, %s12528_s26 }
 0xa98   : > { %16920 = vmatpush1.bf16.msra.mxu1 %v16919_v49  ;;  %v12507_v49 = vld [vmem:[%s21425_s3 + $0x78] sm:$0xff] }
 0xa99   : > { %17048 = vmatpush1.bf16.msra.mxu0 %v20984_v34  ;;  %16922 = vmatprep.subr.bf16.mxu1 %v16921_v39  ;;  %v11298_v34 = vld [vmem:[#allocation20 + $0x5b8] sm:$0xff]  ;;  %v17083_v39 = vpack.c.bf16 %v12515_v12, %v12514_v8  ;;  %v17095_v46 = vpack.c.bf16 %v12507_v49, %v12506_v59 }
 0xa9a   : > { %17050 = vmatprep.subr.bf16.mxu0 %v20988_v19  ;;  %v16933_v19 = vpack.c.bf16 %v11298_v34, %v11296_v45  ;;  %v10922_v45 = vrot.slane %v10913_v16, %v19760_v37 }
 0xa9c   : > { %16924 = vmatpush1.bf16.msra.mxu1 %v16923_v58  ;;  %v10440_v58 = vrot.slane %v10435_v13, %v19757_v40 }
 0xa9d   : > { %17052 = vmatpush1.bf16.msra.mxu0 %v20992_v21  ;;  %16926 = vmatprep.subr.bf16.mxu1 %v16925_v10  ;;  %v11302_v21 = vld [vmem:[#allocation20 + $0x5d8] sm:$0xff]  ;;  %v10444_v10 = vrot.slane %v10435_v13, %v19760_v37 }
 0xa9e   : > { %17054 = vmatprep.subr.bf16.mxu0 %v20996_v60  ;;  %v16937_v60 = vpack.c.bf16 %v11302_v21, %v11300_v24 }
 0xaa0   : > { %16928 = vmatpush1.bf16.msra.mxu1 %v16927_v33 }
 0xaa1   : > { %17056 = vmatpush1.bf16.msra.mxu0 %v21000_v26  ;;  %16930 = vmatprep.subr.bf16.mxu1 %v16929_v27  ;;  %v11304_v26 = vld [vmem:[#allocation20 + $0x5e8] sm:$0xff] }
 0xaa2   : > { %17058 = vmatprep.subr.bf16.mxu0 %v21004_v56  ;;  %v16939_v56 = vpack.c.bf16 %v11301_v52, %v11299_v5  ;;  %v16941_v38 = vpack.c.bf16 %v11306_v50, %v11304_v26  ;;  %v12520_v5 = vld [vmem:[%s21426_s22 + $0x30] sm:$0xff]  ;;  %v12521_v26 = vld [vmem:[%s21426_s22 + $0x38] sm:$0xff] }
 0xaa3   : > { %v17101_v50 = vpack.c.bf16 %v12521_v26, %v12520_v5 }
 0xaa4   : > { %16932 = vmatpush1.bf16.msra.mxu1 %v16931_v2 }
 0xaa5   : > { %17060 = vmatpush1.bf16.msra.mxu0 %v21008_v61  ;;  %16934 = vmatprep.subr.bf16.mxu1 %v16933_v19  ;;  %v11305_v61 = vld [vmem:[#allocation20 + $0x5f0] sm:$0xff] }
 0xaa6   : > { %17062 = vmatprep.subr.bf16.mxu0 %v21012_v29  ;;  %v16943_v18 = vpack.c.bf16 %v11305_v61, %v11303_v31  ;;  %v12508_v29 = vld [vmem:[%s21425_s3 + $0x80] sm:$0xff] }
 0xaa7   : > { %v17074_v7 = vpack.c.bf16 %v12509_v4, %v12508_v29 }
 0xaa8   : > { %16936 = vmatpush1.bf16.msra.mxu1 %v16935_v17  ;;  %v12518_v17 = vld [vmem:[%s21426_s22 + $0x20] sm:$0xff] }
 0xaa9   : > { %17064 = vmatpush1.bf16.msra.mxu0 %v21016_v22  ;;  %16938 = vmatprep.subr.bf16.mxu1 %v16937_v60  ;;  %v12500_v22 = vld [vmem:[%s21425_s3 + $0x40] sm:$0xff]  ;;  %v12519_v60 = vld [vmem:[%s21426_s22 + $0x28] sm:$0xff] }
 0xaaa   : > { %17066 = vmatprep.subr.bf16.mxu0 %v21020_v51  ;;  %v11311_v51 = vrot.slane %v21038_v53, %v19757_v40  ;;  %v17089_v53 = vpack.c.bf16 %v12503_v62, %v12502_v11  ;;  %v17098_v52 = vpack.c.bf16 %v12519_v60, %v12518_v17 }
 0xaac   : > { %16940 = vmatpush1.bf16.msra.mxu1 %v16939_v56  ;;  %v11391_v56 = vld [vmem:[%s21424_s19] sm:$0x3] }
 0xaad   : > { %17068 = vmatpush1.bf16.msra.mxu0 %v21024_v47  ;;  %16942 = vmatprep.subr.bf16.mxu1 %v16941_v38  ;;  %v17086_v47 = vpack.c.bf16 %v12501_v35, %v12500_v22  ;;  %v11720_v38 = vld [vmem:[%s21424_s19] sm:$0x3]  ;;  %v11396_v31 = vrot.slane %v11391_v56, %v19757_v40  ;;  %s17945_s19 = smov [#allocation27]  }
 0xaae   : > { %17070 = vmatprep.subr.bf16.mxu0 %v21028_v6  ;;  %v11642_v6 = vrot.slane %v21043_v63, %v19757_v40  ;;  %v12504_v63 = vld [vmem:[%s21425_s3 + $0x60] sm:$0xff]  ;;  %v11725_v61 = vrot.slane %v11720_v38, %v19757_v40  ;;  %v11729_v29 = vrot.slane %v11720_v38, %v19760_v37  ;;  %s21161_s3 = scalar_lea.vmem [#allocation30], %s18381_s20  ;;  %s17693_s21 = sshll.u32 %s17945_s19, 4  ;;  %s17694_s21 = int_to_ptr.vmem [resolvable:$false] %s17693_s21 }
 0xaaf   : > { %v17092_v3 = vpack.c.bf16 %v12505_v42, %v12504_v63  ;;  %s17695_s26 = scalar_lea.vmem %s17694_s21, 128  ;;  %p17696_p0 = scmp.lt.s32.totalorder %s21172_s6, %s17694_s21 }
 0xab0   : > { %16944 = vmatpush1.bf16.msra.mxu1 %v16943_v18  ;;  %v11400_v18 = vrot.slane %v11391_v56, %v19760_v37  ;;  %p17697_p2 = scmp.lt.s32.totalorder %s17695_s26, %s17689_s17 }
 0xab1   : > { %17072 = vmatpush1.bf16.msra.mxu0 %v21032_v44  ;;  %17073 = vmatprep.subr.bf16.mxu1 %v17941_v0  ;;  %v17077_v44 = vpack.c.bf16 %v12511_v43, %v12510_v25 }
 0xab2   : > { %17085 = vmatprep.subr.bf16.mxu0 %v17941_v0  ;;  %p17698_p8 = por %p17697_p2, %p17696_p0 }
 0xab3   : > { %11383 = vmatmul.mubr.f32.vlgmr.msra.gmra.mrb[72].mxu1 %v11311_v51 }
 0xab4   : > { %11714 = vmatmul.mubr.f32.vlgmr.msra.gmra.mrb[74].mxu0 %v11642_v6  ;;  %17075 = vmatpush3.bf16.msra.mxu1 %v17074_v7  ;;  %p17699_p4 = pnand %p17698_p8, %p17692_p6 }
 0xab5   : > { %17087 = vmatpush3.bf16.msra.mxu0 %v17086_v47  ;;  %17076 = vmatprep.subr.bf16.mxu1 %v17941_v0 }
 0xab6   : > { %17088 = vmatprep.subr.bf16.mxu0 %v17941_v0  ;;  %14441 = vmatprep.mubr.msk.f32.mxu1 %vm17942_vm0, %v17943_v1 }
 0xab7   : > { %14460 = vmatprep.mubr.msk.f32.mxu0 %vm17942_vm0, %v17943_v1 }
 0xab8   : > { %17078 = vmatpush3.bf16.msra.mxu1 %v17077_v44 }
 0xab9   : > { %17090 = vmatpush3.bf16.msra.mxu0 %v17089_v53  ;;  %17079 = vmatprep.subr.bf16.mxu1 %v17941_v0 }
 0xaba   : > { %17091 = vmatprep.subr.bf16.mxu0 %v17941_v0 }
 0xabc   : > { %17081 = vmatpush3.bf16.msra.mxu1 %v17080_v9 }
 0xabd   : > { %17093 = vmatpush3.bf16.msra.mxu0 %v17092_v3  ;;  %17082 = vmatprep.subr.bf16.mxu1 %v17941_v0 }
 0xabe   : > { %17094 = vmatprep.subr.bf16.mxu0 %v17941_v0 }
 0xac0   : > { %17084 = vmatpush3.bf16.msra.mxu1 %v17083_v39 }
 0xac1   : > { %17096 = vmatpush3.bf16.msra.mxu0 %v17095_v46  ;;  %17097 = vmatprep.subr.bf16.mxu1 %v17941_v0 }
 0xac3   : > { %14442 = vmatmul.mubr.msk.f32.vlgmr.msra.gmra.mrb[74].mxu1 %vm3002_vm3, %v11765_v54 }
 0xac4   : > { %14461 = vmatmul.mubr.msk.f32.vlgmr.msra.gmra.mrb[76].mxu0 %vm3002_vm3, %v11755_v15  ;;  %14471 = vmatprep.mubr.msk.f32.mxu1 %vm17942_vm0, %v17943_v1  ;;  %v10918_v1 = vrot.slane %v10913_v16, %v19757_v40 }
 0xac5   : > { %17099 = vmatpush3.bf16.msra.mxu1 %v17098_v52 }
 0xac6   : > { %v10428_v14 = vpop.f32.mrb[70].mxu1  ;;  %17100 = vmatprep.subr.bf16.mxu1 %v17941_v0 }
 0xac7   : > { %v10447_v28 = vadd.f32 %v10440_v58, %v10428_v14  ;;  %v10430_v32 = vpop.f32.mrb[71].mxu1 }
 0xac8   : > { %v10448_v36 = vadd.f32 %v10444_v10, %v10430_v32 }
 0xac9   : > { %17102 = vmatpush3.bf16.msra.mxu1 %v17101_v50 }
 0xaca   : > { %v10451_v33 = vcombine.low %v10447_v28, %v10448_v36 }
 0xacc   : > { %v10458_v27 = vrot.slane %v10451_v33, %v19777_v41 }
 0xace   : > { %v10465_v48 = vrot.slane %v10458_v27, %v19777_v41 }
 0xad0   : > { %12496 = vst.msk [vmem:[%s20386_s14 + $0x4] ss:$8 sm:$0x3] %vm19790_vm4, %v10465_v48 }
 0xb07   : > { %v10906_v34 = vpop.f32.mrb[72].mxu0 }
 0xb08   : > { %v10925_v2 = vadd.f32 %v10918_v1, %v10906_v34  ;;  %v10908_v19 = vpop.f32.mrb[73].mxu0 }
 0xb09   : > { %v10926_v23 = vadd.f32 %v10922_v45, %v10908_v19 }
 0xb0b   : > { %v10929_v30 = vcombine.low %v10925_v2, %v10926_v23 }
 0xb0d   : > { %v10936_v24 = vrot.slane %v10929_v30, %v19777_v41 }
 0xb0f   : > { %v10943_v21 = vrot.slane %v10936_v24, %v19777_v41 }
 0xb11   : > { %12497 = vst.msk [vmem:[%s20386_s14 + $0x5] ss:$8 sm:$0x3] %vm19790_vm4, %v10943_v21 }
 0xb86   : > { %v11384_v4 = vpop.f32.mrb[72].mxu1 }
 0xb87   : > { %v11403_v22 = vadd.f32 %v11396_v31, %v11384_v4  ;;  %v11715_v35 = vpop.f32.mrb[74].mxu0  ;;  %v11386_v7 = vpop.f32.mrb[73].mxu1 }
 0xb88   : > { %v11732_v51 = vadd.f32 %v11725_v61, %v11715_v35  ;;  %v11404_v0 = vadd.f32 %v11400_v18, %v11386_v7  ;;  %v11717_v47 = vpop.f32.mrb[75].mxu0 }
 0xb89   : > { %v11733_v25 = vadd.f32 %v11729_v29, %v11717_v47 }
 0xb8a   : > { %v11407_v43 = vcombine.low %v11403_v22, %v11404_v0 }
 0xb8b   : > { %v11736_v6 = vcombine.low %v11732_v51, %v11733_v25 }
 0xb8c   : > { %v11414_v40 = vrot.slane %v11407_v43, %v19777_v41 }
 0xb8d   : > { %v11743_v11 = vrot.slane %v11736_v6, %v19777_v41 }
 0xb8e   : > { %v11421_v62 = vrot.slane %v11414_v40, %v19777_v41 }
 0xb8f   : > { %v11750_v37 = vrot.slane %v11743_v11, %v19777_v41 }
 0xb90   : > { %12498 = vst.msk [vmem:[%s20386_s14 + $0x6] ss:$8 sm:$0x3] %vm19790_vm4, %v11421_v62 }
 0xb91   : > { %12499 = vst.msk [vmem:[%s20386_s14 + $0x7] ss:$8 sm:$0x3] %vm19790_vm4, %v11750_v37 }
 0xb96   : > { %v11844_v44 = vpop.f32.mrb[74].mxu1 }
 0xb97   : > { %v11917_v53 = vpop.f32.mrb[76].mxu0  ;;  %v14443_v57 = vpop.f32.mrb[75].mxu1 }
 0xb98   : > { %v11918_v63 = vadd.f32 %v11917_v53, %v11844_v44  ;;  %v14462_v42 = vpop.f32.mrb[77].mxu0 }
 0xb9a   : > { %v11922_v41 = vadd.f32 %v11921_v20, %v11918_v63 }
 0xb9c   : > { %11924 = vst.msk [vmem:[%s21161_s3] sm:$0x1] %vm11923_vm5, %v11922_v41 }
 0xba3   : > { %v11925_v55 = vld [vmem:[%s21161_s3] sm:$0x1] }
 0xba4   : > { %v11926_v9 = vmax.f32 %v11925_v55, 0.0 }
 0xba6   : > { %14472 = vmatmul.mubr.msk.f32.vlgmr.msra.gmra.mrb[76].mxu1 %vm11933_vm6, %v11926_v9 }
 0xba7   : > { %17702 = shalt.err (!%p17699_p4)
}
 0xba8   : > { %s17703_s16 = scalar_lea.hbm %s21169_s5, 64  ;;  %s17707_s19 = scalar_lea.hbm %s21379_s12, 128 }
 0xba9   : > { %p17704_p10 = scmp.ne.s32.totalorder %s21169_s5, %s17703_s16  ;;  %p17708_p12 = scmp.lt.u32.totalorder %s21169_s5, %s21379_s12 }
 0xbaa   : > { %p17709_p5 = scmp.lt.u32.totalorder %s17707_s19, %s17703_s16  ;;  %p17711_p1 = scmp.lt.u32.totalorder %s17703_s16, %s21169_s5 }
 0xbab   : > { %p17705_p3 = pnand %p17704_p10, %p21428_p9 }
 0xbac   : > { %p17710_p7 = por %p17709_p5, %p17708_p12 }
 0xbad   : > { %p17706_p11 = pneg %p17705_p3 }
 0xbae   : > { %p17712_p13 = por %p17711_p1, %p17710_p7 }
 0xbb0   : > { %p17713_p6 = pnand %p17712_p13, %p17706_p11 }
 0xbb2   : > { %17716 = shalt.err (!%p17713_p6)
}
 0xbb3   : > { %17218 = dma.vmem_to_hbm [thread:$0]  (%p21428_p9), %s21172_s6, 64, %s21169_s5, %s21177_s13  }
 0xbb4   : > { %s21200_s21 = scalar_lea.hbm %s18098_s30, %s21352_s8  ;;  %s12080_s17 = sshll.u32 %s21161_s3, 4  ;;  %s12081_s17 = int_to_ptr.vmem [resolvable:$true] %s12080_s17 }
 0xbb5   : > { %s21205_s26 = scalar_lea.sflag [#allocation31], %s12013_s4  ;;  %s17717_s16 = scalar_lea.vmem %s12081_s17, 16 }
 0xbb6   : > { %p17718_p0 = scmp.ne.s32.totalorder %s12081_s17, %s17717_s16  ;;  %s17946_s19 = smov [#allocation30]  }
 0xbb7   : > { %s17721_s12 = sshll.u32 %s17946_s19, 4  ;;  %s17722_s12 = int_to_ptr.vmem [resolvable:$false] %s17721_s12 }
 0xbb8   : > { %p17719_p2 = pnand %p17718_p0, %p21428_p9  ;;  %s17723_s22 = scalar_lea.vmem %s17722_s12, 32 }
 0xbb9   : > { %p17724_p4 = scmp.lt.s32.totalorder %s12081_s17, %s17722_s12  ;;  %p17725_p10 = scmp.lt.s32.totalorder %s17723_s22, %s17717_s16 }
 0xbba   : > { %p17720_p8 = pneg %p17719_p2 }
 0xbbb   : > { %p17726_p3 = por %p17725_p10, %p17724_p4 }
 0xbbd   : > { %p17727_p11 = pnand %p17726_p3, %p17720_p8 }
 0xbbf   : > { %17730 = shalt.err (!%p17727_p11)
}
 0xbc0   : > { %s17731_s5 = scalar_lea.hbm %s21200_s21, 16  ;;  %s17735_s6 = scalar_lea.hbm %s18098_s30, 32 }
 0xbc1   : > { %p17732_p12 = scmp.ne.s32.totalorder %s21200_s21, %s17731_s5  ;;  %p17736_p1 = scmp.lt.u32.totalorder %s21200_s21, %s18098_s30 }
 0xbc2   : > { %p17737_p13 = scmp.lt.u32.totalorder %s17735_s6, %s17731_s5  ;;  %p17739_p0 = scmp.lt.u32.totalorder %s17731_s5, %s21200_s21 }
 0xbc3   : > { %p17733_p5 = pnand %p17732_p12, %p21428_p9 }
 0xbc4   : > { %p17738_p6 = por %p17737_p13, %p17736_p1 }
 0xbc5   : > { %p17734_p7 = pneg %p17733_p5 }
 0xbc6   : > { %p17740_p2 = por %p17739_p0, %p17738_p6 }
 0xbc8   : > { %p17741_p8 = pnand %p17740_p2, %p17734_p7 }
 0xbca   : > { %17744 = shalt.err (!%p17741_p8)
}
 0xbcb   : > { %s21429_s12 = sld [smem:[#allocation64_spill]]  ;;  %s12535_s4 = sshll.u32 %s18126_s18, 8 }
 0xbcc   : > { %17220 = dma.vmem_to_hbm [thread:$0]  (%p21428_p9), %s12081_s17, 16, %s21200_s21, %s21205_s26  }
 0xbcd   : > { %s12041_s22 = sshll.u32 %s20386_s14, 4  ;;  %s12529_s16 = sshll.u32 %s18126_s18, 5  ;;  %s21226_s22 = int_to_ptr.vmem [resolvable:$true] %s12041_s22 }
 0xbce   : > { %s12009_s19 = scalar_lea.sflag [#allocation10], %s18381_s20  ;;  %s17745_s5 = scalar_lea.vmem %s21226_s22, 256 }
 0xbcf   : > { %p17746_p4 = scmp.ne.s32.totalorder %s21226_s22, %s17745_s5  ;;  %s17947_s6 = smov [#allocation26]  }
 0xbd0   : > { %s17749_s8 = sshll.u32 %s17947_s6, 4  ;;  %s17750_s8 = int_to_ptr.vmem [resolvable:$false] %s17749_s8 }
 0xbd1   : > { %s21223_s3 = scalar_lea.hbm %s21429_s12, %s12535_s4  ;;  %p17747_p10 = pnand %p17746_p4, %p21428_p9 }
 0xbd2   : > { %s17751_s21 = scalar_lea.vmem %s17750_s8, 512  ;;  %p17752_p11 = scmp.lt.s32.totalorder %s21226_s22, %s17750_s8 }
 0xbd3   : > { %p17748_p3 = pneg %p17747_p10  ;;  %p17753_p12 = scmp.lt.s32.totalorder %s17751_s21, %s17745_s5 }
 0xbd5   : > { %p17754_p5 = por %p17753_p12, %p17752_p11 }
 0xbd7   : > { %p17755_p7 = pnand %p17754_p5, %p17748_p3 }
 0xbd9   : > { %17758 = shalt.err (!%p17755_p7)
}
 0xbda   : > { %s17759_s14 = scalar_lea.hbm %s21223_s3, 256  ;;  %s17763_s17 = scalar_lea.hbm %s21429_s12, 512 }
 0xbdb   : > { %p17760_p1 = scmp.ne.s32.totalorder %s21223_s3, %s17759_s14  ;;  %p17764_p0 = scmp.lt.u32.totalorder %s21223_s3, %s21429_s12 }
 0xbdc   : > { %p17765_p2 = scmp.lt.u32.totalorder %s17763_s17, %s17759_s14  ;;  %p17767_p4 = scmp.lt.u32.totalorder %s17759_s14, %s21223_s3 }
 0xbdd   : > { %p17761_p13 = pnand %p17760_p1, %p21428_p9 }
 0xbde   : > { %p17766_p8 = por %p17765_p2, %p17764_p0 }
 0xbdf   : > { %p17762_p6 = pneg %p17761_p13 }
 0xbe0   : > { %p17768_p10 = por %p17767_p4, %p17766_p8 }
 0xbe2   : > { %p17769_p3 = pnand %p17768_p10, %p17762_p6 }
 0xbe4   : > { %17772 = shalt.err (!%p17769_p3)
}
 0xbe5   : > { %s21430_s8 = sld [smem:[#allocation66_spill]]  ;;  %s12067_s5 = sshll.u32 %s19151_s2, 4  ;;  %s12068_s5 = int_to_ptr.vmem [resolvable:$true] %s12067_s5 }
 0xbe6   : > { %17217 = dma.vmem_to_hbm [thread:$0]  (%p21428_p9), %s21226_s22, 256, %s21223_s3, %s12009_s19  }
 0xbe7   : > { %s17773_s6 = scalar_lea.vmem %s12068_s5, 32  ;;  %s17948_s21 = smov [#allocation29]  }
 0xbe8   : > { %p17774_p11 = scmp.ne.s32.totalorder %s12068_s5, %s17773_s6  ;;  %s17777_s14 = sshll.u32 %s17948_s21, 4  ;;  %s17778_s14 = int_to_ptr.vmem [resolvable:$false] %s17777_s14 }
 0xbe9   : > { %s17779_s17 = scalar_lea.vmem %s17778_s14, 64  ;;  %p17780_p7 = scmp.lt.s32.totalorder %s12068_s5, %s17778_s14 }
 0xbea   : > { %p17775_p12 = pnand %p17774_p11, %p21428_p9  ;;  %p17781_p1 = scmp.lt.s32.totalorder %s17779_s17, %s17773_s6 }
 0xbeb   : > { %s21250_s4 = scalar_lea.hbm %s21430_s8, %s12529_s16 }
 0xbec   : > { %p17776_p5 = pneg %p17775_p12  ;;  %p17782_p13 = por %p17781_p1, %p17780_p7 }
 0xbee   : > { %p17783_p6 = pnand %p17782_p13, %p17776_p5 }
 0xbf0   : > { %17786 = shalt.err (!%p17783_p6)
}
 0xbf1   : > { %s17787_s2 = scalar_lea.hbm %s21250_s4, 32  ;;  %s17791_s3 = scalar_lea.hbm %s21430_s8, 64 }
 0xbf2   : > { %p17788_p0 = scmp.ne.s32.totalorder %s21250_s4, %s17787_s2  ;;  %p17792_p4 = scmp.lt.u32.totalorder %s21250_s4, %s21430_s8 }
 0xbf3   : > { %p17793_p10 = scmp.lt.u32.totalorder %s17791_s3, %s17787_s2  ;;  %p17795_p11 = scmp.lt.u32.totalorder %s17787_s2, %s21250_s4 }
 0xbf4   : > { %p17789_p2 = pnand %p17788_p0, %p21428_p9 }
 0xbf5   : > { %p17794_p3 = por %p17793_p10, %p17792_p4 }
 0xbf6   : > { %p17790_p8 = pneg %p17789_p2 }
 0xbf7   : > { %p17796_p12 = por %p17795_p11, %p17794_p3 }
 0xbf9   : > { %p17797_p5 = pnand %p17796_p12, %p17790_p8 }
 0xbfb   : > { %17800 = shalt.err (!%p17797_p5)
}
 0xbfc   : > { %s21431_s22 = sld [smem:[#allocation62_spill]]  ;;  %s21432_s16 = sld [smem:[#allocation67_spill]] }
 0xbfd   : > { %17219 = dma.vmem_to_hbm [thread:$0]  (%p21428_p9), %s12068_s5, 32, %s21250_s4, %s21177_s13  }
 0xbfe   : > { %s1098_s19 = scalar_lea.vmem [#allocation32], %s18381_s20  ;;  %s21433_s21 = sshll.u32 %s18126_s18, 4 }
 0xbff   : > { %s12093_s6 = sshll.u32 %s1098_s19, 4  ;;  %s17949_s2 = smov [#allocation32]   ;;  %s12094_s6 = int_to_ptr.vmem [resolvable:$true] %s12093_s6 }
 0xc00   : > { %s17801_s17 = scalar_lea.vmem %s12094_s6, 16  ;;  %s17805_s3 = sshll.u32 %s17949_s2, 4  ;;  %s17806_s3 = int_to_ptr.vmem [resolvable:$false] %s17805_s3 }
 0xc01   : > { %p17802_p7 = scmp.ne.s32.totalorder %s12094_s6, %s17801_s17  ;;  %s17807_s13 = scalar_lea.vmem %s17806_s3, 32 }
 0xc02   : > { %v11932_v3 = vld [vmem:[%s21431_s22] sm:$0x1]  ;;  %s21272_s14 = scalar_lea.hbm %s21432_s16, %s21433_s21  ;;  %p17808_p6 = scmp.lt.s32.totalorder %s12094_s6, %s17806_s3 }
 0xc03   : > { %p17803_p1 = pnand %p17802_p7, %p21428_p9  ;;  %p17809_p0 = scmp.lt.s32.totalorder %s17807_s13, %s17801_s17 }
 0xc05   : > { %p17804_p13 = pneg %p17803_p1  ;;  %p17810_p2 = por %p17809_p0, %p17808_p6 }
 0xc07   : > { %p17811_p8 = pnand %p17810_p2, %p17804_p13 }
 0xc79   : > { %v12003_v8 = vpop.f32.mrb[76].mxu1 }
 0xc7a   : > { %v12004_v12 = vadd.f32 %v12003_v8, %v11932_v3  ;;  %v14473_v59 = vpop.f32.mrb[77].mxu1 }
 0xc7c   : > { %12007 = vst.msk [vmem:[%s1098_s19] sm:$0x1] %vm11923_vm5, %v12004_v12 }
 0xc7d   : > { %17814 = shalt.err (!%p17811_p8)
}
 0xc7e   : > { %s17815_s18 = scalar_lea.hbm %s21272_s14, 16  ;;  %s17819_s20 = scalar_lea.hbm %s21432_s16, 32 }
 0xc7f   : > { %p17816_p4 = scmp.ne.s32.totalorder %s21272_s14, %s17815_s18  ;;  %p17820_p11 = scmp.lt.u32.totalorder %s21272_s14, %s21432_s16 }
 0xc80   : > { %p17821_p12 = scmp.lt.u32.totalorder %s17819_s20, %s17815_s18  ;;  %p17823_p7 = scmp.lt.u32.totalorder %s17815_s18, %s21272_s14 }
 0xc81   : > { %p17817_p10 = pnand %p17816_p4, %p21428_p9 }
 0xc82   : > { %p17822_p5 = por %p17821_p12, %p17820_p11 }
 0xc83   : > { %p17818_p3 = pneg %p17817_p10 }
 0xc84   : > { %p17824_p1 = por %p17823_p7, %p17822_p5 }
 0xc86   : > { %p17825_p13 = pnand %p17824_p1, %p17818_p3 }
 0xc88   : > { %17828 = shalt.err (!%p17825_p13)
}
 0xc89   : > { %17221 = dma.vmem_to_hbm [thread:$0]  (%p21428_p9), %s12094_s6, 16, %s21272_s14, %s21205_s26  }
 0xc8a PF: > { %s12105_s4 = sand.u32 1, %s17883_s7   ;;  %p21434_p6 = scmp.ne.s32.totalorder %s21402_s1, 0 }
 0xc8b   : > { %p21435_p0 = scmp.ge.s32.totalorder %s17895_s0, 2  ;;  %s12106_s5 = scalar_lea.sflag [#allocation10], %s12105_s4 }
 0xc8d   : > { %p17263_p2 = pnand %p21435_p0, %p21434_p6 }
 0xc8f   : > { %17870 = dma.done.wait (!%p17263_p2), %s12106_s5, 256  }
 0xc90   : > { %17872 = vsyncadd (!%p17263_p2), %s12106_s5, 4294967040  ;;  %s21436_s22 = sadd.s32 4294967294, %s17895_s0  }
 0xc91   : > { %s12114_s19 = sand.u32 1, %s21436_s22  }
 0xc92   : > { %s12115_s21 = scalar_lea.sflag [#allocation28], %s12114_s19 }
 0xc93   : > { %17874 = dma.done.wait (!%p17263_p2), %s12115_s21, 96  }
 0xc94   : > { %17876 = vsyncadd (!%p17263_p2), %s12115_s21, 4294967200  ;;  %s12133_s9 = scalar_lea.sflag [#allocation31], %s12114_s19 }
 0xc95   : > { %17878 = dma.done.wait (!%p17263_p2), %s12133_s9, 32  }
 0xc96   : > { %17880 = vsyncadd (!%p17263_p2), %s12133_s9, 4294967264  ;;  %p84_p9 = scmp.ge.s32.totalorder %s18303_s28, 4   ;;  %s21437_s7 = smov %s17887_s10 }
 0xc97   : > { %s21438_s10 = smov %s17891_s11  ;;  %s21439_s11 = smov %s18314_s15 }
 0xc98   : > { %s21440_s0 = smov %s18303_s28  ;;  %86 = sbr.rel (!%p84_p9) target bundleno = 76 (0x4c), region = 327 }
 0xc9f   :  { %12145 = vsyncpa [#allocation9], 1 }
 0xca0   :  { %12147 = vsyncpa [#allocation9 + $0x1], 1 }
 0xca1   :  { %12148 = vsyncpa [#allocation12], 1 }
 0xca2   :  { %12149 = vsyncpa [#allocation15], 1 }
 0xca3   :  { %12150 = vsyncpa [#allocation18], 1 }
 0xca4   :  { %12151 = vsyncpa [#allocation21], 1 }
 0xca5   :  { %12152 = vsyncpa [#allocation24], 1 }
 0xca6   :  { %12153 = vsyncpa [#allocation10], 1 }
 0xca7   :  { %12155 = vsyncpa [#allocation10 + $0x1], 1 }
 0xca8   :  { %12156 = vsyncpa [#allocation28], 1 }
 0xca9   :  { %12158 = vsyncpa [#allocation28 + $0x1], 1 }
 0xcaa   :  { %12159 = vsyncpa [#allocation31], 1 }
 0xcab   :  { %12161 = vsyncpa [#allocation31 + $0x1], 1 }

</bundles_post_ra>
